<compile_context>
chip_gen: v7x
topology: tpu7x:2x2x1
jax: 0.10.0
libtpu: 0.0.40
codegen_flags: <defaults>
</compile_context>

<pallas_src>
import functools
import math

import jax
import jax.numpy as jnp
from jax.experimental import pallas as pl
from jax.experimental.pallas import tpu as pltpu

# ----- NetConfig -------------------------------------------------------------
PLAQ_IN = 2
RECT_IN = 4
PLAQ_OUT = 4
RECT_OUT = 8
C_IN = PLAQ_IN + RECT_IN          # 6  (conv1 input channels)
C_MID = C_IN * 2                  # 12 (conv1 output channels)
C_OUT = PLAQ_OUT + RECT_OUT       # 12 (conv2 output channels)
KS = 3                            # conv kernel size
WS = 4                            # attention window size


# ----- in-kernel elementwise math --------------------------------------------
def _erf(x):
    # Abramowitz & Stegun 7.1.26, |err| < 1.5e-7 (NOT bit-exact vs torch.erf).
    a1, a2, a3, a4, a5 = (0.254829592, -0.284496736, 1.421413741,
                          -1.453152027, 1.061405429)
    p = 0.3275911
    s = jnp.where(x >= 0.0, 1.0, -1.0)
    ax = jnp.abs(x)
    t = pl.reciprocal(1.0 + p * ax)                 # exact reciprocal (EUP)
    poly = ((((a5 * t + a4) * t + a3) * t + a2) * t + a1) * t
    return s * (1.0 - poly * jnp.exp(-ax * ax))


def _gelu_exact(x):
    # nn.GELU() default (approximate='none'): 0.5*x*(1+erf(x/sqrt(2)))
    return 0.5 * x * (1.0 + _erf(x * (1.0 / math.sqrt(2.0))))


def _atan(x):
    # Cephes-style atanf (range reduction + degree-7 poly), |err| ~1e-7.
    s = jnp.where(x >= 0.0, 1.0, -1.0)
    ax = jnp.abs(x)
    t3p8 = 2.414213562373095      # tan(3*pi/8)
    tp8 = 0.4142135623730950      # tan(pi/8)
    big = ax > t3p8
    mid = jnp.logical_and(ax > tp8, jnp.logical_not(big))
    safe = jnp.where(ax == 0.0, 1.0, ax)
    inv_safe = pl.reciprocal(safe)                  # EUP instead of f32 divide
    inv_ap1 = pl.reciprocal(ax + 1.0)               # EUP instead of f32 divide
    xr = jnp.where(big, -inv_safe, jnp.where(mid, (ax - 1.0) * inv_ap1, ax))
    y0 = jnp.where(big, math.pi / 2.0, jnp.where(mid, math.pi / 4.0, 0.0))
    z = xr * xr
    poly = ((((8.05374449538e-2 * z - 1.38776856032e-1) * z
              + 1.99777106478e-1) * z - 3.33329491539e-1) * z * xr + xr)
    return s * (y0 + poly)


# ----- fused Pallas kernel ----------------------------------------------------
def _fused_kernel(x_ref, w1_ref, b1_ref, w2t_ref, b2_ref, mask_ref, wm_ref,
                  o_ref, *, lat_w):
    """conv1(3x3 circ)+GELU -> windowed self-attn -> conv2(3x3 circ)+GELU+atan/(2pi).

    Pixel-rows layout: activations are (H*W, C), row p = h*W + w.
      x_ref    : (1, H*W, C_IN)       input image
      w1_ref   : (9*C_IN, C_MID)      flattened conv1 weight, tap-major
      b1_ref   : (1, C_MID)
      w2t_ref  : (C_OUT, 9*C_MID)     flattened + transposed conv2 weight
      b2_ref   : (C_OUT, 1)
      mask_ref : (H*W, H*W)           additive mask: 0 same-window / -1e30 else
      wm_ref   : (H*W, 2)             [:,0]=1 where w==0, [:,1]=1 where w==W-1
      o_ref    : (1, C_OUT, H*W)      channels-major output (lane-dense store)
    """
    x = x_ref[0]                                       # (H*W, C_IN)
    is_w0 = wm_ref[:, 0:1] > 0.5                       # (H*W, 1)
    is_wl = wm_ref[:, 1:2] > 0.5

    def roll_rows(a, shift):
        # circular roll of the pixel-rows axis (sublane roll, XLU slot)
        s = shift % a.shape[0]
        return a if s == 0 else pltpu.roll(a, s, 0)

    def im2col(a):
        # 9 circular 3x3 taps built in VMEM, concatenated along lanes.
        # W-shift by -1 / +1 pixel = row roll, with the wrap column fixed up.
        xm1 = jnp.where(is_w0, roll_rows(a, 1 - lat_w), roll_rows(a, 1))
        xp1 = jnp.where(is_wl, roll_rows(a, lat_w - 1), roll_rows(a, -1))
        xw = (xm1, a, xp1)                             # kw = 0, 1, 2
        cols = []
        for kh in range(3):                            # H-shift: pure row roll
            for kw in range(3):
                cols.append(roll_rows(xw[kw], (1 - kh) * lat_w))
        return jnp.concatenate(cols, axis=1)           # (H*W, 9*C)

    # ---- conv1 (circular 'same' 3x3) + bias + GELU: one MXU matmul ----------
    y1 = jnp.dot(im2col(x), w1_ref[...],
                 preferred_element_type=jnp.float32) + b1_ref[...]
    y1 = _gelu_exact(y1)                               # (H*W, C_MID)

    # ---- windowed self-attention (masked full-Gram form) --------------------
    c_mid = y1.shape[1]
    qs = y1 * (1.0 / math.sqrt(c_mid))                 # fold 1/sqrt(C) into Q
    scores = jnp.einsum("pc,qc->pq", qs, y1,
                        preferred_element_type=jnp.float32) + mask_ref[...]
    m = jnp.max(scores, axis=-1, keepdims=True)
    e = jnp.exp(scores - m)                            # off-window -> exactly 0
    attn = e * pl.reciprocal(jnp.sum(e, axis=-1, keepdims=True))   # exact
    att = jnp.dot(attn, y1, preferred_element_type=jnp.float32)    # (H*W, C_MID)

    # ---- conv2 (circular 3x3), channels-major + GELU + atan/(2*pi) ----------
    y2t = jnp.einsum("ck,pk->cp", w2t_ref[...], im2col(att),
                     preferred_element_type=jnp.float32) + b2_ref[...]
    y2t = _gelu_exact(y2t)
    y2t = _atan(y2t) * (1.0 / (2.0 * math.pi))         # arctan(x)/pi/2
    o_ref[0] = y2t                                     # (C_OUT, H*W), 256 dense lanes


# ----- wrapper ----------------------------------------------------------------
def _build_static_tables(h, w):
    hw = h * w
    # same-window additive mask (0 / -1e30); row ordering p = h*W + w
    win_id = ((jnp.arange(h) // WS)[:, None] * (w // WS)
              + (jnp.arange(w) // WS)[None, :]).reshape(hw)
    attn_mask = jnp.where(win_id[:, None] == win_id[None, :],
                          0.0, -1e30).astype(jnp.float32)
    # W-wrap row indicators for the circular-conv taps
    col = jnp.tile(jnp.arange(w), h)
    wmask = jnp.stack([(col == 0), (col == w - 1)], axis=1).astype(jnp.float32)
    return attn_mask, wmask


def local_net_v8_forward(params, plaq_features, rect_features):
    B, _, H, W = plaq_features.shape
    assert H % WS == 0 and W % WS == 0, "H/W must be divisible by window size"
    HW = H * W

    # concat + NCHW -> pixel-rows (B, H*W, C_IN): the only XLA glue on the input
    x = jnp.concatenate([plaq_features, rect_features], axis=1)   # (B, 6, H, W)
    x = jnp.transpose(x, (0, 2, 3, 1)).reshape(B, HW, C_IN)

    # pre-flattened conv weights (tap-major contraction axis) + biases
    w1f = jnp.transpose(params["w1"], (2, 3, 1, 0)).reshape(9 * C_IN, C_MID)
    b1 = params["b1"].reshape(1, C_MID)
    w2t = jnp.transpose(params["w2"], (0, 2, 3, 1)).reshape(C_OUT, 9 * C_MID)
    b2 = params["b2"].reshape(C_OUT, 1)

    attn_mask, wmask = _build_static_tables(H, W)

    kern = functools.partial(_fused_kernel, lat_w=W)
    out = pl.pallas_call(
        kern,
        out_shape=jax.ShapeDtypeStruct((B, C_OUT, HW), jnp.float32),
        grid=(B,),
        in_specs=[
            pl.BlockSpec((1, HW, C_IN), lambda b: (b, 0, 0)),        # x
            pl.BlockSpec((9 * C_IN, C_MID), lambda b: (0, 0)),       # w1f
            pl.BlockSpec((1, C_MID), lambda b: (0, 0)),              # b1
            pl.BlockSpec((C_OUT, 9 * C_MID), lambda b: (0, 0)),      # w2t
            pl.BlockSpec((C_OUT, 1), lambda b: (0, 0)),              # b2
            pl.BlockSpec((HW, HW), lambda b: (0, 0)),                # attn mask
            pl.BlockSpec((HW, 2), lambda b: (0, 0)),                 # wrap masks
        ],
        out_specs=pl.BlockSpec((1, C_OUT, HW), lambda b: (b, 0, 0)),
        compiler_params=pltpu.CompilerParams(
            dimension_semantics=("parallel",),
        ),
    )(x, w1f, b1, w2t, b2, attn_mask, wmask)

    out = out.reshape(B, C_OUT, H, W)       # free reshape: already channels-major
    plaq_coeffs = out[:, :PLAQ_OUT, :, :]
    rect_coeffs = out[:, PLAQ_OUT:, :, :]
    return plaq_coeffs, rect_coeffs


# ----- main -------------------------------------------------------------------
if __name__ == "__main__":
    key = jax.random.PRNGKey(0)
    kw1, kb1, kw2, kb2, kp, kr = jax.random.split(key, 6)

    # deterministic Conv2d-style init (uniform +/- 1/sqrt(fan_in))
    fan1 = C_IN * KS * KS
    bnd1 = 1.0 / math.sqrt(fan1)
    fan2 = C_MID * KS * KS
    bnd2 = 1.0 / math.sqrt(fan2)
    params = {
        "w1": jax.random.uniform(kw1, (C_MID, C_IN, KS, KS), jnp.float32, -bnd1, bnd1),
        "b1": jax.random.uniform(kb1, (C_MID,), jnp.float32, -bnd1, bnd1),
        "w2": jax.random.uniform(kw2, (C_OUT, C_MID, KS, KS), jnp.float32, -bnd2, bnd2),
        "b2": jax.random.uniform(kb2, (C_OUT,), jnp.float32, -bnd2, bnd2),
    }

    B, H, W = 2, 16, 16   # H, W divisible by attn_window=4
    plaq = jax.random.normal(kp, (B, PLAQ_IN, H, W), jnp.float32)
    rect = jax.random.normal(kr, (B, RECT_IN, H, W), jnp.float32)

    fwd = jax.jit(local_net_v8_forward)
    plaq_c, rect_c = fwd(params, plaq, rect)
    jax.block_until_ready((plaq_c, rect_c))

    assert plaq_c.shape == (B, PLAQ_OUT, H, W) and plaq_c.dtype == jnp.float32
    assert rect_c.shape == (B, RECT_OUT, H, W) and rect_c.dtype == jnp.float32
    assert bool(jnp.all(jnp.isfinite(plaq_c))) and bool(jnp.all(jnp.isfinite(rect_c)))
    print("KERNEL_OK")
</pallas_src>

<mosaic_0001>
module attributes {stable_mosaic.version = 11 : i64} {
  func.func @_fused_kernel(%arg0: i32, %arg1: memref<1x256x6xf32, #tpu.memory_space<vmem>>, %arg2: memref<54x12xf32, #tpu.memory_space<vmem>>, %arg3: memref<1x12xf32, #tpu.memory_space<vmem>>, %arg4: memref<12x108xf32, #tpu.memory_space<vmem>>, %arg5: memref<12x1xf32, #tpu.memory_space<vmem>>, %arg6: memref<256x256xf32, #tpu.memory_space<vmem>>, %arg7: memref<256x2xf32, #tpu.memory_space<vmem>>, %arg8: memref<1x12x256xf32, #tpu.memory_space<vmem>>) attributes {dimension_semantics = [#tpu.dimension_semantics<parallel>], iteration_bounds = array<i64: 2>, scalar_prefetch = 0 : i64, scratch_operands = 0 : i64, tpu.core_type = #tpu.core_type<tc>, window_params = [{transform_indices = @transform_0, window_bounds = array<i64: 1, 256, 6>}, {pipeline_mode = #tpu.pipeline_mode<synchronous>, transform_indices = @transform_1, window_bounds = array<i64: 54, 12>}, {pipeline_mode = #tpu.pipeline_mode<synchronous>, transform_indices = @transform_2, window_bounds = array<i64: 1, 12>}, {pipeline_mode = #tpu.pipeline_mode<synchronous>, transform_indices = @transform_3, window_bounds = array<i64: 12, 108>}, {pipeline_mode = #tpu.pipeline_mode<synchronous>, transform_indices = @transform_4, window_bounds = array<i64: 12, 1>}, {pipeline_mode = #tpu.pipeline_mode<synchronous>, transform_indices = @transform_5, window_bounds = array<i64: 256, 256>}, {pipeline_mode = #tpu.pipeline_mode<synchronous>, transform_indices = @transform_6, window_bounds = array<i64: 256, 2>}, {transform_indices = @transform_7, window_bounds = array<i64: 1, 12, 256>}]} {
    %c0 = arith.constant 0 : index
    %c0_0 = arith.constant 0 : index
    %c0_1 = arith.constant 0 : index
    %0 = vector.load %arg1[%c0, %c0_0, %c0_1] : memref<1x256x6xf32, #tpu.memory_space<vmem>>, vector<1x256x6xf32>
    %1 = vector.shape_cast %0 : vector<1x256x6xf32> to vector<256x6xf32>
    %c0_2 = arith.constant 0 : index
    %c0_3 = arith.constant 0 : index
    %2 = vector.load %arg7[%c0_2, %c0_3] : memref<256x2xf32, #tpu.memory_space<vmem>>, vector<256x1xf32>
    %cst = arith.constant 5.000000e-01 : f32
    %3 = vector.broadcast %cst : f32 to vector<256x1xf32>
    %4 = arith.cmpf ogt, %2, %3 : vector<256x1xf32>
    %c0_4 = arith.constant 0 : index
    %c1 = arith.constant 1 : index
    %5 = vector.load %arg7[%c0_4, %c1] : memref<256x2xf32, #tpu.memory_space<vmem>>, vector<256x1xf32>
    %cst_5 = arith.constant 5.000000e-01 : f32
    %6 = vector.broadcast %cst_5 : f32 to vector<256x1xf32>
    %7 = arith.cmpf ogt, %5, %6 : vector<256x1xf32>
    %c241_i32 = arith.constant 241 : i32
    %8 = tpu.dynamic_rotate %1 by %c241_i32 dim 0 : vector<256x6xf32>, i32 -> vector<256x6xf32>
    %c1_i32 = arith.constant 1 : i32
    %9 = tpu.dynamic_rotate %1 by %c1_i32 dim 0 : vector<256x6xf32>, i32 -> vector<256x6xf32>
    %10 = vector.shape_cast %4 : vector<256x1xi1> to vector<256x1xi1>
    %11 = vector.broadcast %10 : vector<256x1xi1> to vector<256x6xi1>
    %12 = arith.select %11, %8, %9 : vector<256x6xi1>, vector<256x6xf32>
    %c15_i32 = arith.constant 15 : i32
    %13 = tpu.dynamic_rotate %1 by %c15_i32 dim 0 : vector<256x6xf32>, i32 -> vector<256x6xf32>
    %c255_i32 = arith.constant 255 : i32
    %14 = tpu.dynamic_rotate %1 by %c255_i32 dim 0 : vector<256x6xf32>, i32 -> vector<256x6xf32>
    %15 = vector.shape_cast %7 : vector<256x1xi1> to vector<256x1xi1>
    %16 = vector.broadcast %15 : vector<256x1xi1> to vector<256x6xi1>
    %17 = arith.select %16, %13, %14 : vector<256x6xi1>, vector<256x6xf32>
    %c16_i32 = arith.constant 16 : i32
    %18 = tpu.dynamic_rotate %12 by %c16_i32 dim 0 : vector<256x6xf32>, i32 -> vector<256x6xf32>
    %c16_i32_6 = arith.constant 16 : i32
    %19 = tpu.dynamic_rotate %1 by %c16_i32_6 dim 0 : vector<256x6xf32>, i32 -> vector<256x6xf32>
    %c16_i32_7 = arith.constant 16 : i32
    %20 = tpu.dynamic_rotate %17 by %c16_i32_7 dim 0 : vector<256x6xf32>, i32 -> vector<256x6xf32>
    %c240_i32 = arith.constant 240 : i32
    %21 = tpu.dynamic_rotate %12 by %c240_i32 dim 0 : vector<256x6xf32>, i32 -> vector<256x6xf32>
    %c240_i32_8 = arith.constant 240 : i32
    %22 = tpu.dynamic_rotate %1 by %c240_i32_8 dim 0 : vector<256x6xf32>, i32 -> vector<256x6xf32>
    %c240_i32_9 = arith.constant 240 : i32
    %23 = tpu.dynamic_rotate %17 by %c240_i32_9 dim 0 : vector<256x6xf32>, i32 -> vector<256x6xf32>
    %24 = tpu.concatenate %18, %19, %20, %12, %1, %17, %21, %22, %23 in 1 : vector<256x6xf32>, vector<256x6xf32>, vector<256x6xf32>, vector<256x6xf32>, vector<256x6xf32>, vector<256x6xf32>, vector<256x6xf32>, vector<256x6xf32>, vector<256x6xf32> -> vector<256x54xf32>
    %c0_10 = arith.constant 0 : index
    %c0_11 = arith.constant 0 : index
    %25 = vector.load %arg2[%c0_10, %c0_11] : memref<54x12xf32, #tpu.memory_space<vmem>>, vector<54x12xf32>
    %cst_12 = arith.constant dense<0.000000e+00> : vector<256x12xf32>
    %26 = tpu.matmul %24, %25, %cst_12 {dimension_numbers = #tpu.dot_dimension_numbers<[1], [0], [0], [1], [0, 0, 1, 1], [], []>} : vector<256x54xf32>, vector<54x12xf32>, vector<256x12xf32> -> vector<256x12xf32>
    %c0_13 = arith.constant 0 : index
    %c0_14 = arith.constant 0 : index
    %27 = vector.load %arg3[%c0_13, %c0_14] : memref<1x12xf32, #tpu.memory_space<vmem>>, vector<1x12xf32>
    %28 = vector.broadcast %27 : vector<1x12xf32> to vector<256x12xf32>
    %29 = arith.addf %26, %28 : vector<256x12xf32>
    %cst_15 = arith.constant 5.000000e-01 : f32
    %30 = vector.broadcast %cst_15 : f32 to vector<256x12xf32>
    %31 = arith.mulf %30, %29 : vector<256x12xf32>
    %cst_16 = arith.constant 0.707106769 : f32
    %32 = vector.broadcast %cst_16 : f32 to vector<256x12xf32>
    %33 = arith.mulf %29, %32 : vector<256x12xf32>
    %cst_17 = arith.constant 0.000000e+00 : f32
    %34 = vector.broadcast %cst_17 : f32 to vector<256x12xf32>
    %35 = arith.cmpf oge, %33, %34 : vector<256x12xf32>
    %cst_18 = arith.constant 1.000000e+00 : f32
    %cst_19 = arith.constant -1.000000e+00 : f32
    %36 = vector.broadcast %cst_18 : f32 to vector<256x12xf32>
    %37 = vector.broadcast %cst_19 : f32 to vector<256x12xf32>
    %38 = arith.select %35, %36, %37 : vector<256x12xi1>, vector<256x12xf32>
    %39 = math.absf %33 : vector<256x12xf32>
    %cst_20 = arith.constant 0.327591091 : f32
    %40 = vector.broadcast %cst_20 : f32 to vector<256x12xf32>
    %41 = arith.mulf %40, %39 : vector<256x12xf32>
    %cst_21 = arith.constant 1.000000e+00 : f32
    %42 = vector.broadcast %cst_21 : f32 to vector<256x12xf32>
    %43 = arith.addf %42, %41 : vector<256x12xf32>
    %44 = tpu.reciprocal %43 : vector<256x12xf32> -> vector<256x12xf32>
    %cst_22 = arith.constant 1.06140542 : f32
    %45 = vector.broadcast %cst_22 : f32 to vector<256x12xf32>
    %46 = arith.mulf %45, %44 : vector<256x12xf32>
    %cst_23 = arith.constant -1.45315206 : f32
    %47 = vector.broadcast %cst_23 : f32 to vector<256x12xf32>
    %48 = arith.addf %46, %47 : vector<256x12xf32>
    %49 = arith.mulf %48, %44 : vector<256x12xf32>
    %cst_24 = arith.constant 1.42141378 : f32
    %50 = vector.broadcast %cst_24 : f32 to vector<256x12xf32>
    %51 = arith.addf %49, %50 : vector<256x12xf32>
    %52 = arith.mulf %51, %44 : vector<256x12xf32>
    %cst_25 = arith.constant -0.284496725 : f32
    %53 = vector.broadcast %cst_25 : f32 to vector<256x12xf32>
    %54 = arith.addf %52, %53 : vector<256x12xf32>
    %55 = arith.mulf %54, %44 : vector<256x12xf32>
    %cst_26 = arith.constant 0.254829586 : f32
    %56 = vector.broadcast %cst_26 : f32 to vector<256x12xf32>
    %57 = arith.addf %55, %56 : vector<256x12xf32>
    %58 = arith.mulf %57, %44 : vector<256x12xf32>
    %cst_27 = arith.constant 0.000000e+00 : f32
    %59 = vector.broadcast %cst_27 : f32 to vector<256x12xf32>
    %60 = arith.subf %59, %39 : vector<256x12xf32>
    %61 = arith.mulf %60, %39 : vector<256x12xf32>
    %62 = math.exp %61 : vector<256x12xf32>
    %63 = arith.mulf %58, %62 : vector<256x12xf32>
    %cst_28 = arith.constant 1.000000e+00 : f32
    %64 = vector.broadcast %cst_28 : f32 to vector<256x12xf32>
    %65 = arith.subf %64, %63 : vector<256x12xf32>
    %66 = arith.mulf %38, %65 : vector<256x12xf32>
    %cst_29 = arith.constant 1.000000e+00 : f32
    %67 = vector.broadcast %cst_29 : f32 to vector<256x12xf32>
    %68 = arith.addf %67, %66 : vector<256x12xf32>
    %69 = arith.mulf %31, %68 : vector<256x12xf32>
    %cst_30 = arith.constant 0.288675129 : f32
    %70 = vector.broadcast %cst_30 : f32 to vector<256x12xf32>
    %71 = arith.mulf %69, %70 : vector<256x12xf32>
    "tpu.trace_start"() <{level = 10 : i32, message = "pc,qc->pq"}> : () -> ()
    %cst_31 = arith.constant dense<0.000000e+00> : vector<256x256xf32>
    %72 = tpu.matmul %71, %69, %cst_31 {dimension_numbers = #tpu.dot_dimension_numbers<[1], [1], [0], [0], [0, 0, 1, 0], [], []>} : vector<256x12xf32>, vector<256x12xf32>, vector<256x256xf32> -> vector<256x256xf32>
    "tpu.trace_stop"() : () -> ()
    %c0_32 = arith.constant 0 : index
    %c0_33 = arith.constant 0 : index
    %73 = vector.load %arg6[%c0_32, %c0_33] : memref<256x256xf32, #tpu.memory_space<vmem>>, vector<256x256xf32>
    %74 = arith.addf %72, %73 : vector<256x256xf32>
    %cst_34 = arith.constant dense<0xFF800000> : vector<256xf32>
    %75 = vector.multi_reduction <maximumf>, %74, %cst_34 [1] : vector<256x256xf32> to vector<256xf32>
    %76 = vector.shape_cast %75 : vector<256xf32> to vector<256x1xf32>
    %77 = vector.broadcast %76 : vector<256x1xf32> to vector<256x256xf32>
    %78 = arith.subf %74, %77 : vector<256x256xf32>
    %79 = math.exp %78 : vector<256x256xf32>
    %cst_35 = arith.constant dense<0.000000e+00> : vector<256xf32>
    %80 = vector.multi_reduction <add>, %79, %cst_35 [1] : vector<256x256xf32> to vector<256xf32>
    %81 = vector.shape_cast %80 : vector<256xf32> to vector<256x1xf32>
    %82 = tpu.reciprocal %81 : vector<256x1xf32> -> vector<256x1xf32>
    %83 = vector.broadcast %82 : vector<256x1xf32> to vector<256x256xf32>
    %84 = arith.mulf %79, %83 : vector<256x256xf32>
    %cst_36 = arith.constant dense<0.000000e+00> : vector<256x12xf32>
    %85 = tpu.matmul %84, %69, %cst_36 {dimension_numbers = #tpu.dot_dimension_numbers<[1], [0], [0], [1], [0, 0, 1, 1], [], []>} : vector<256x256xf32>, vector<256x12xf32>, vector<256x12xf32> -> vector<256x12xf32>
    %c0_37 = arith.constant 0 : index
    %c0_38 = arith.constant 0 : index
    %86 = vector.load %arg4[%c0_37, %c0_38] : memref<12x108xf32, #tpu.memory_space<vmem>>, vector<12x108xf32>
    %c241_i32_39 = arith.constant 241 : i32
    %87 = tpu.dynamic_rotate %85 by %c241_i32_39 dim 0 : vector<256x12xf32>, i32 -> vector<256x12xf32>
    %c1_i32_40 = arith.constant 1 : i32
    %88 = tpu.dynamic_rotate %85 by %c1_i32_40 dim 0 : vector<256x12xf32>, i32 -> vector<256x12xf32>
    %89 = vector.shape_cast %4 : vector<256x1xi1> to vector<256x1xi1>
    %90 = vector.broadcast %89 : vector<256x1xi1> to vector<256x12xi1>
    %91 = arith.select %90, %87, %88 : vector<256x12xi1>, vector<256x12xf32>
    %c15_i32_41 = arith.constant 15 : i32
    %92 = tpu.dynamic_rotate %85 by %c15_i32_41 dim 0 : vector<256x12xf32>, i32 -> vector<256x12xf32>
    %c255_i32_42 = arith.constant 255 : i32
    %93 = tpu.dynamic_rotate %85 by %c255_i32_42 dim 0 : vector<256x12xf32>, i32 -> vector<256x12xf32>
    %94 = vector.shape_cast %7 : vector<256x1xi1> to vector<256x1xi1>
    %95 = vector.broadcast %94 : vector<256x1xi1> to vector<256x12xi1>
    %96 = arith.select %95, %92, %93 : vector<256x12xi1>, vector<256x12xf32>
    %c16_i32_43 = arith.constant 16 : i32
    %97 = tpu.dynamic_rotate %91 by %c16_i32_43 dim 0 : vector<256x12xf32>, i32 -> vector<256x12xf32>
    %c16_i32_44 = arith.constant 16 : i32
    %98 = tpu.dynamic_rotate %85 by %c16_i32_44 dim 0 : vector<256x12xf32>, i32 -> vector<256x12xf32>
    %c16_i32_45 = arith.constant 16 : i32
    %99 = tpu.dynamic_rotate %96 by %c16_i32_45 dim 0 : vector<256x12xf32>, i32 -> vector<256x12xf32>
    %c240_i32_46 = arith.constant 240 : i32
    %100 = tpu.dynamic_rotate %91 by %c240_i32_46 dim 0 : vector<256x12xf32>, i32 -> vector<256x12xf32>
    %c240_i32_47 = arith.constant 240 : i32
    %101 = tpu.dynamic_rotate %85 by %c240_i32_47 dim 0 : vector<256x12xf32>, i32 -> vector<256x12xf32>
    %c240_i32_48 = arith.constant 240 : i32
    %102 = tpu.dynamic_rotate %96 by %c240_i32_48 dim 0 : vector<256x12xf32>, i32 -> vector<256x12xf32>
    %103 = tpu.concatenate %97, %98, %99, %91, %85, %96, %100, %101, %102 in 1 : vector<256x12xf32>, vector<256x12xf32>, vector<256x12xf32>, vector<256x12xf32>, vector<256x12xf32>, vector<256x12xf32>, vector<256x12xf32>, vector<256x12xf32>, vector<256x12xf32> -> vector<256x108xf32>
    "tpu.trace_start"() <{level = 10 : i32, message = "ck,pk->cp"}> : () -> ()
    %cst_49 = arith.constant dense<0.000000e+00> : vector<12x256xf32>
    %104 = tpu.matmul %86, %103, %cst_49 {dimension_numbers = #tpu.dot_dimension_numbers<[1], [1], [0], [0], [0, 0, 1, 0], [], []>} : vector<12x108xf32>, vector<256x108xf32>, vector<12x256xf32> -> vector<12x256xf32>
    "tpu.trace_stop"() : () -> ()
    %c0_50 = arith.constant 0 : index
    %c0_51 = arith.constant 0 : index
    %105 = vector.load %arg5[%c0_50, %c0_51] : memref<12x1xf32, #tpu.memory_space<vmem>>, vector<12x1xf32>
    %106 = vector.broadcast %105 : vector<12x1xf32> to vector<12x256xf32>
    %107 = arith.addf %104, %106 : vector<12x256xf32>
    %cst_52 = arith.constant 5.000000e-01 : f32
    %108 = vector.broadcast %cst_52 : f32 to vector<12x256xf32>
    %109 = arith.mulf %108, %107 : vector<12x256xf32>
    %cst_53 = arith.constant 0.707106769 : f32
    %110 = vector.broadcast %cst_53 : f32 to vector<12x256xf32>
    %111 = arith.mulf %107, %110 : vector<12x256xf32>
    %cst_54 = arith.constant 0.000000e+00 : f32
    %112 = vector.broadcast %cst_54 : f32 to vector<12x256xf32>
    %113 = arith.cmpf oge, %111, %112 : vector<12x256xf32>
    %cst_55 = arith.constant 1.000000e+00 : f32
    %cst_56 = arith.constant -1.000000e+00 : f32
    %114 = vector.broadcast %cst_55 : f32 to vector<12x256xf32>
    %115 = vector.broadcast %cst_56 : f32 to vector<12x256xf32>
    %116 = arith.select %113, %114, %115 : vector<12x256xi1>, vector<12x256xf32>
    %117 = math.absf %111 : vector<12x256xf32>
    %cst_57 = arith.constant 0.327591091 : f32
    %118 = vector.broadcast %cst_57 : f32 to vector<12x256xf32>
    %119 = arith.mulf %118, %117 : vector<12x256xf32>
    %cst_58 = arith.constant 1.000000e+00 : f32
    %120 = vector.broadcast %cst_58 : f32 to vector<12x256xf32>
    %121 = arith.addf %120, %119 : vector<12x256xf32>
    %122 = tpu.reciprocal %121 : vector<12x256xf32> -> vector<12x256xf32>
    %cst_59 = arith.constant 1.06140542 : f32
    %123 = vector.broadcast %cst_59 : f32 to vector<12x256xf32>
    %124 = arith.mulf %123, %122 : vector<12x256xf32>
    %cst_60 = arith.constant -1.45315206 : f32
    %125 = vector.broadcast %cst_60 : f32 to vector<12x256xf32>
    %126 = arith.addf %124, %125 : vector<12x256xf32>
    %127 = arith.mulf %126, %122 : vector<12x256xf32>
    %cst_61 = arith.constant 1.42141378 : f32
    %128 = vector.broadcast %cst_61 : f32 to vector<12x256xf32>
    %129 = arith.addf %127, %128 : vector<12x256xf32>
    %130 = arith.mulf %129, %122 : vector<12x256xf32>
    %cst_62 = arith.constant -0.284496725 : f32
    %131 = vector.broadcast %cst_62 : f32 to vector<12x256xf32>
    %132 = arith.addf %130, %131 : vector<12x256xf32>
    %133 = arith.mulf %132, %122 : vector<12x256xf32>
    %cst_63 = arith.constant 0.254829586 : f32
    %134 = vector.broadcast %cst_63 : f32 to vector<12x256xf32>
    %135 = arith.addf %133, %134 : vector<12x256xf32>
    %136 = arith.mulf %135, %122 : vector<12x256xf32>
    %cst_64 = arith.constant 0.000000e+00 : f32
    %137 = vector.broadcast %cst_64 : f32 to vector<12x256xf32>
    %138 = arith.subf %137, %117 : vector<12x256xf32>
    %139 = arith.mulf %138, %117 : vector<12x256xf32>
    %140 = math.exp %139 : vector<12x256xf32>
    %141 = arith.mulf %136, %140 : vector<12x256xf32>
    %cst_65 = arith.constant 1.000000e+00 : f32
    %142 = vector.broadcast %cst_65 : f32 to vector<12x256xf32>
    %143 = arith.subf %142, %141 : vector<12x256xf32>
    %144 = arith.mulf %116, %143 : vector<12x256xf32>
    %cst_66 = arith.constant 1.000000e+00 : f32
    %145 = vector.broadcast %cst_66 : f32 to vector<12x256xf32>
    %146 = arith.addf %145, %144 : vector<12x256xf32>
    %147 = arith.mulf %109, %146 : vector<12x256xf32>
    %cst_67 = arith.constant 0.000000e+00 : f32
    %148 = vector.broadcast %cst_67 : f32 to vector<12x256xf32>
    %149 = arith.cmpf oge, %147, %148 : vector<12x256xf32>
    %cst_68 = arith.constant 1.000000e+00 : f32
    %cst_69 = arith.constant -1.000000e+00 : f32
    %150 = vector.broadcast %cst_68 : f32 to vector<12x256xf32>
    %151 = vector.broadcast %cst_69 : f32 to vector<12x256xf32>
    %152 = arith.select %149, %150, %151 : vector<12x256xi1>, vector<12x256xf32>
    %153 = math.absf %147 : vector<12x256xf32>
    %cst_70 = arith.constant 2.41421366 : f32
    %154 = vector.broadcast %cst_70 : f32 to vector<12x256xf32>
    %155 = arith.cmpf ogt, %153, %154 : vector<12x256xf32>
    %cst_71 = arith.constant 0.414213568 : f32
    %156 = vector.broadcast %cst_71 : f32 to vector<12x256xf32>
    %157 = arith.cmpf ogt, %153, %156 : vector<12x256xf32>
    %cst_72 = arith.constant dense<true> : vector<12x256xi1>
    %158 = arith.xori %155, %cst_72 : vector<12x256xi1>
    %159 = arith.andi %157, %158 : vector<12x256xi1>
    %cst_73 = arith.constant 0.000000e+00 : f32
    %160 = vector.broadcast %cst_73 : f32 to vector<12x256xf32>
    %161 = arith.cmpf oeq, %153, %160 : vector<12x256xf32>
    %cst_74 = arith.constant 1.000000e+00 : f32
    %162 = vector.broadcast %cst_74 : f32 to vector<12x256xf32>
    %163 = arith.select %161, %162, %153 : vector<12x256xi1>, vector<12x256xf32>
    %164 = tpu.reciprocal %163 : vector<12x256xf32> -> vector<12x256xf32>
    %cst_75 = arith.constant 1.000000e+00 : f32
    %165 = vector.broadcast %cst_75 : f32 to vector<12x256xf32>
    %166 = arith.addf %153, %165 : vector<12x256xf32>
    %167 = tpu.reciprocal %166 : vector<12x256xf32> -> vector<12x256xf32>
    %cst_76 = arith.constant 0.000000e+00 : f32
    %168 = vector.broadcast %cst_76 : f32 to vector<12x256xf32>
    %169 = arith.subf %168, %164 : vector<12x256xf32>
    %cst_77 = arith.constant 1.000000e+00 : f32
    %170 = vector.broadcast %cst_77 : f32 to vector<12x256xf32>
    %171 = arith.subf %153, %170 : vector<12x256xf32>
    %172 = arith.mulf %171, %167 : vector<12x256xf32>
    %173 = arith.select %159, %172, %153 : vector<12x256xi1>, vector<12x256xf32>
    %174 = arith.select %155, %169, %173 : vector<12x256xi1>, vector<12x256xf32>
    %cst_78 = arith.constant 0.785398185 : f32
    %cst_79 = arith.constant 0.000000e+00 : f32
    %175 = vector.broadcast %cst_78 : f32 to vector<12x256xf32>
    %176 = vector.broadcast %cst_79 : f32 to vector<12x256xf32>
    %177 = arith.select %159, %175, %176 : vector<12x256xi1>, vector<12x256xf32>
    %cst_80 = arith.constant 1.57079637 : f32
    %178 = vector.broadcast %cst_80 : f32 to vector<12x256xf32>
    %179 = arith.select %155, %178, %177 : vector<12x256xi1>, vector<12x256xf32>
    %180 = arith.mulf %174, %174 : vector<12x256xf32>
    %cst_81 = arith.constant 0.0805374458 : f32
    %181 = vector.broadcast %cst_81 : f32 to vector<12x256xf32>
    %182 = arith.mulf %181, %180 : vector<12x256xf32>
    %cst_82 = arith.constant 0.138776854 : f32
    %183 = vector.broadcast %cst_82 : f32 to vector<12x256xf32>
    %184 = arith.subf %182, %183 : vector<12x256xf32>
    %185 = arith.mulf %184, %180 : vector<12x256xf32>
    %cst_83 = arith.constant 0.199777111 : f32
    %186 = vector.broadcast %cst_83 : f32 to vector<12x256xf32>
    %187 = arith.addf %185, %186 : vector<12x256xf32>
    %188 = arith.mulf %187, %180 : vector<12x256xf32>
    %cst_84 = arith.constant 0.333329499 : f32
    %189 = vector.broadcast %cst_84 : f32 to vector<12x256xf32>
    %190 = arith.subf %188, %189 : vector<12x256xf32>
    %191 = arith.mulf %190, %180 : vector<12x256xf32>
    %192 = arith.mulf %191, %174 : vector<12x256xf32>
    %193 = arith.addf %192, %174 : vector<12x256xf32>
    %194 = arith.addf %179, %193 : vector<12x256xf32>
    %195 = arith.mulf %152, %194 : vector<12x256xf32>
    %cst_85 = arith.constant 0.159154937 : f32
    %196 = vector.broadcast %cst_85 : f32 to vector<12x256xf32>
    %197 = arith.mulf %195, %196 : vector<12x256xf32>
    %c0_86 = arith.constant 0 : index
    %c0_87 = arith.constant 0 : index
    %c0_88 = arith.constant 0 : index
    %198 = vector.load %arg8[%c0_86, %c0_87, %c0_88] : memref<1x12x256xf32, #tpu.memory_space<vmem>>, vector<1x12x256xf32>
    %199 = vector.shape_cast %198 : vector<1x12x256xf32> to vector<12x256xf32>
    %200 = vector.shape_cast %197 : vector<12x256xf32> to vector<1x12x256xf32>
    tpu.vector_store %arg8[%c0_86, %c0_87, %c0_88], %200 {strides = array<i32>} : memref<1x12x256xf32, #tpu.memory_space<vmem>>, vector<1x12x256xf32>,
    return
  }
  func.func @transform_0(%arg0: i32) -> (i32, i32, i32) {
    %c0_i32 = arith.constant 0 : i32
    %c0_i32_0 = arith.constant 0 : i32
    %c0_i32_1 = arith.constant 0 : i32
    return %arg0, %c0_i32, %c0_i32_0 : i32, i32, i32
  }
  func.func @transform_1(%arg0: i32) -> (i32, i32) {
    %c0_i32 = arith.constant 0 : i32
    %c0_i32_0 = arith.constant 0 : i32
    %c0_i32_1 = arith.constant 0 : i32
    return %c0_i32, %c0_i32_0 : i32, i32
  }
  func.func @transform_2(%arg0: i32) -> (i32, i32) {
    %c0_i32 = arith.constant 0 : i32
    %c0_i32_0 = arith.constant 0 : i32
    %c0_i32_1 = arith.constant 0 : i32
    return %c0_i32, %c0_i32_0 : i32, i32
  }
  func.func @transform_3(%arg0: i32) -> (i32, i32) {
    %c0_i32 = arith.constant 0 : i32
    %c0_i32_0 = arith.constant 0 : i32
    %c0_i32_1 = arith.constant 0 : i32
    return %c0_i32, %c0_i32_0 : i32, i32
  }
  func.func @transform_4(%arg0: i32) -> (i32, i32) {
    %c0_i32 = arith.constant 0 : i32
    %c0_i32_0 = arith.constant 0 : i32
    %c0_i32_1 = arith.constant 0 : i32
    return %c0_i32, %c0_i32_0 : i32, i32
  }
  func.func @transform_5(%arg0: i32) -> (i32, i32) {
    %c0_i32 = arith.constant 0 : i32
    %c0_i32_0 = arith.constant 0 : i32
    %c0_i32_1 = arith.constant 0 : i32
    return %c0_i32, %c0_i32_0 : i32, i32
  }
  func.func @transform_6(%arg0: i32) -> (i32, i32) {
    %c0_i32 = arith.constant 0 : i32
    %c0_i32_0 = arith.constant 0 : i32
    %c0_i32_1 = arith.constant 0 : i32
    return %c0_i32, %c0_i32_0 : i32, i32
  }
  func.func @transform_7(%arg0: i32) -> (i32, i32, i32) {
    %c0_i32 = arith.constant 0 : i32
    %c0_i32_0 = arith.constant 0 : i32
    %c0_i32_1 = arith.constant 0 : i32
    return %arg0, %c0_i32, %c0_i32_0 : i32, i32, i32
  }
}

</mosaic_0001>

<bundles_post_ra>
// kernel: local_net_v8_forward.1
= control target key start
LH: loop header
LB: loop body
LE: loop exit
PB: predicated region body
PF: predicated region fallthrough
CT: control target
= control target key end

     0   :  { %s7898_s24 = smov 0   ;;  %s13508_s0 = inlined_call_operand.vmem [shape: f32[2,256,6], index: 0, kind: input, shape index: {}]   ;;  %s13509_s1 = inlined_call_operand.vmem [shape: f32[54,12], index: 1, kind: input, shape index: {}]   ;;  %s13510_s2 = inlined_call_operand.vmem [shape: f32[1,12], index: 2, kind: input, shape index: {}]   ;;  %s13511_s3 = inlined_call_operand.vmem [shape: f32[12,108], index: 3, kind: input, shape index: {}]   ;;  %s13512_s4 = inlined_call_operand.vmem [shape: f32[12,1], index: 4, kind: input, shape index: {}]   ;;  %s13513_s5 = inlined_call_operand.vmem [shape: f32[256,256], index: 5, kind: input, shape index: {}]   ;;  %s13514_s6 = inlined_call_operand.vmem [shape: f32[256,2], index: 6, kind: input, shape index: {}]   ;;  %s13515_s7 = inlined_call_operand.vmem [shape: f32[2,12,256], index: 7, kind: output, shape index: {}]  }
   0x1 LB: > { %s6210_s25 = sadd.s32 4294967295, %s7838_s24   ;;  %p6214_p0 = scmp.ge.s32.totalorder %s7838_s24, 1  ;;  %s7838_s24 = sphi %s7898_s24, %s17_s24  }
   0x2   : > { %p237_p1 = scmp.lt.s32.totalorder %s7838_s24, 3 }
   0x4   : > { %p238_p2 = pnand %p6214_p0, %p237_p1 }
   0x6   : > { %241 = sbr.rel (%p238_p2) target bundleno = 2638 (0xa4e), region = 48 }
   0xd   : > { %v342_v0 = vld [vmem:[%s13514_s6 + $0xf8] sm:$0xff]  ;;  %v311_v1 = vld [vmem:[%s13514_s6] sm:$0xff]  ;;  %v313_v2 = vld [vmem:[%s13514_s6 + $0x10] sm:$0xff]  ;;  %v13530_v3 = vmov 1   ;;  %v13527_v4 = vmov 0   ;;  %p269_p3 = scmp.lt.s32.totalorder %s6210_s25, 1  ;;  %v407_v50 = vlaneseq }
   0xe   : > { %6783 = vset.pattern.permute.xlu1 %v13530_v3  ;;  %6782 = vset.pattern.permute.xlu0 %v13527_v4  ;;  %vm374_vm0 = vcmp.gt.f32.partialorder %v342_v0, 0.5  ;;  %vm343_vm1 = vcmp.gt.f32.partialorder %v311_v1, 0.5  ;;  %vm345_vm2 = vcmp.gt.f32.partialorder %v313_v2, 0.5  ;;  %v312_v5 = vld [vmem:[%s13514_s6 + $0x8] sm:$0xff]  ;;  %v314_v8 = vld [vmem:[%s13514_s6 + $0x18] sm:$0xff]  ;;  %v341_v11 = vld [vmem:[%s13514_s6 + $0xf0] sm:$0xff] }
   0xf   : > { %v7921_v6 = vsel %vm374_vm0, 1, %v13527_v4  ;;  %v442_v7 = vsel %vm343_vm1, 1, %v13527_v4  ;;  %vm344_vm3 = vcmp.gt.f32.partialorder %v312_v5, 0.5  ;;  %v444_v9 = vsel %vm345_vm2, 1, %v13527_v4  ;;  %v315_v14 = vld [vmem:[%s13514_s6 + $0x20] sm:$0xff]  ;;  %v318_v15 = vld [vmem:[%s13514_s6 + $0x38] sm:$0xff] }
  0x10   : > { %793 = vperm.xlu1 %6783, %v7921_v6   ;;  %475 = vperm.xlu0 %6782, %v442_v7   ;;  %v443_v10 = vsel %vm344_vm3, 1, %v13527_v4  ;;  %vm346_vm4 = vcmp.gt.f32.partialorder %v314_v8, 0.5  ;;  %vm373_vm5 = vcmp.gt.f32.partialorder %v341_v11, 0.5  ;;  %vm347_vm6 = vcmp.gt.f32.partialorder %v315_v14, 0.5  ;;  %v316_v17 = vld [vmem:[%s13514_s6 + $0x28] sm:$0xff]  ;;  %v319_v18 = vld [vmem:[%s13514_s6 + $0x40] sm:$0xff] }
  0x11   : > { %v445_v12 = vsel %vm346_vm4, 1, %v13527_v4  ;;  %v7937_v13 = vsel %vm373_vm5, 1, %v13527_v4  ;;  %v446_v16 = vsel %vm347_vm6, 1, %v13527_v4  ;;  %vm350_vm7 = vcmp.gt.f32.partialorder %v318_v15, 0.5  ;;  %v322_v21 = vld [vmem:[%s13514_s6 + $0x58] sm:$0xff]  ;;  %v323_v23 = vld [vmem:[%s13514_s6 + $0x60] sm:$0xff] }
  0x12   : > { %vm348_vm8 = vcmp.gt.f32.partialorder %v316_v17, 0.5  ;;  %v449_v19 = vsel %vm350_vm7, 1, %v13527_v4  ;;  %vm351_vm9 = vcmp.gt.f32.partialorder %v319_v18, 0.5  ;;  %vm354_vm10 = vcmp.gt.f32.partialorder %v322_v21, 0.5  ;;  %v326_v25 = vld [vmem:[%s13514_s6 + $0x78] sm:$0xff]  ;;  %v317_v26 = vld [vmem:[%s13514_s6 + $0x30] sm:$0xff] }
  0x13   : > { %v447_v20 = vsel %vm348_vm8, 1, %v13527_v4  ;;  %v450_v22 = vsel %vm351_vm9, 1, %v13527_v4  ;;  %v453_v24 = vsel %vm354_vm10, 1, %v13527_v4  ;;  %vm355_vm11 = vcmp.gt.f32.partialorder %v323_v23, 0.5  ;;  %v327_v28 = vld [vmem:[%s13514_s6 + $0x80] sm:$0xff]  ;;  %v330_v31 = vld [vmem:[%s13514_s6 + $0x98] sm:$0xff] }
  0x14   : > { %6784 = vset.pattern.permute.xlu1 %v13527_v4  ;;  %481 = vperm.xlu0 %6782, %v444_v9   ;;  %v454_v27 = vsel %vm355_vm11, 1, %v13527_v4  ;;  %vm358_vm12 = vcmp.gt.f32.partialorder %v326_v25, 0.5  ;;  %vm349_vm13 = vcmp.gt.f32.partialorder %v317_v26, 0.5  ;;  %vm359_vm14 = vcmp.gt.f32.partialorder %v327_v28, 0.5  ;;  %v320_v33 = vld [vmem:[%s13514_s6 + $0x48] sm:$0xff]  ;;  %v331_v34 = vld [vmem:[%s13514_s6 + $0xa0] sm:$0xff] }
  0x15   : > { %478 = vperm.xlu1 %6784, %v443_v10   ;;  %v457_v29 = vsel %vm358_vm12, 1, %v13527_v4  ;;  %v7979_v30 = vsel %vm349_vm13, 1, %v13527_v4  ;;  %v458_v32 = vsel %vm359_vm14, 1, %v13527_v4  ;;  %vm362_vm15 = vcmp.gt.f32.partialorder %v330_v31, 0.5  ;;  %v334_v37 = vld [vmem:[%s13514_s6 + $0xb8] sm:$0xff]  ;;  %v336_v39 = vld [vmem:[%s13514_s6 + $0xc8] sm:$0xff] }
  0x16   : > { %vm352_vm0 = vcmp.gt.f32.partialorder %v320_v33, 0.5  ;;  %v461_v35 = vsel %vm362_vm15, 1, %v13527_v4  ;;  %vm363_vm1 = vcmp.gt.f32.partialorder %v331_v34, 0.5  ;;  %vm366_vm2 = vcmp.gt.f32.partialorder %v334_v37, 0.5  ;;  %v321_v41 = vld [vmem:[%s13514_s6 + $0x50] sm:$0xff]  ;;  %v324_v44 = vld [vmem:[%s13514_s6 + $0x68] sm:$0xff] }
  0x17   : > { %v451_v36 = vsel %vm352_vm0, 1, %v13527_v4  ;;  %v8000_v38 = vsel %vm363_vm1, 1, %v13527_v4  ;;  %v8007_v40 = vsel %vm366_vm2, 1, %v13527_v4  ;;  %vm368_vm3 = vcmp.gt.f32.partialorder %v336_v39, 0.5  ;;  %v325_v46 = vld [vmem:[%s13514_s6 + $0x70] sm:$0xff]  ;;  %v328_v48 = vld [vmem:[%s13514_s6 + $0x88] sm:$0xff] }
  0x18   : > { %484 = vperm.xlu0 %6782, %v445_v12   ;;  %v8015_v42 = vsel %vm368_vm3, 1, %v13527_v4  ;;  %vm353_vm4 = vcmp.gt.f32.partialorder %v321_v41, 0.5  ;;  %vm356_vm5 = vcmp.gt.f32.partialorder %v324_v44, 0.5  ;;  %vm357_vm6 = vcmp.gt.f32.partialorder %v325_v46, 0.5  ;;  %s14427_s25 = smov (!%p269_p3, %s6210_s25), 1  ;;  %v329_v51 = vld [vmem:[%s13514_s6 + $0x90] sm:$0xff] }
  0x19   : > { %6785 = vset.pattern.permute.xlu1 %v13530_v3  ;;  %v8020_v43 = vsel %vm353_vm4, 1, %v13527_v4  ;;  %v455_v45 = vsel %vm356_vm5, 1, %v13527_v4  ;;  %v8035_v47 = vsel %vm357_vm6, 1, %v13527_v4  ;;  %vm360_vm7 = vcmp.gt.f32.partialorder %v328_v48, 0.5  ;;  %s6365_s9 = sshll.u32 %s14427_s25, 8  ;;  %v332_v0 = vld [vmem:[%s13514_s6 + $0xa8] sm:$0xff] }
  0x1a   : > { %700 = vperm.xlu1 %6785, %v442_v7   ;;  %v459_v49 = vsel %vm360_vm7, 1, %v13527_v4  ;;  %s8058_s14 = scalar_lea.vmem %s13508_s0, %s6365_s9  ;;  %v8060_v52 = vshrl.u32 %v407_v50, 7  ;;  %vm361_vm8 = vcmp.gt.f32.partialorder %v329_v51, 0.5  ;;  %vm364_vm10 = vcmp.gt.f32.partialorder %v332_v0, 0.5  ;;  %v333_v5 = vld [vmem:[%s13514_s6 + $0xb0] sm:$0xff]  ;;  %s7842_s21 = smov 12  }
  0x1b   : > { %v8064_v53 = vld [vmem:[%s8058_s14 + $0x38] sm:$0xff]  ;;  %v8067_v54 = vld [vmem:[%s8058_s14 + $0x40] sm:$0xff]  ;;  %v8070_v55 = vld [vmem:[%s8058_s14 + $0x48] sm:$0xff]  ;;  %v8080_v61 = vsel %vm361_vm8, 1, %v13527_v4  ;;  %v463_v1 = vsel %vm364_vm10, 1, %v13527_v4  ;;  %vm365_vm11 = vcmp.gt.f32.partialorder %v333_v5, 0.5 }
  0x1c   : > { %6786 = vset.pattern.permute.xlu0 %v13530_v3  ;;  %13861 = vst [vmem:[#allocation2_spill] sm:$0xff] %v8060_v52  ;;  %v8073_v56 = vld [vmem:[%s8058_s14 + $0x50] sm:$0xff]  ;;  %v13526_v57 = vrot.slane %v8064_v53, 7  ;;  %v13524_v58 = vrot.slane %v8067_v54, 7  ;;  %v13525_v59 = vrot.slane %v8070_v55, 7  ;;  %vm409_vm9 = vcmp.lt.s32.totalorder %v8060_v52, 1 }
  0x1d   : > { %790 = vperm.xlu0 %6786, %v7937_v13   ;;  %v13520_v60 = vrot.slane %v8073_v56, 7  ;;  %v8125_v11 = vld [vmem:[%s8058_s14 + $0xf0] sm:$0xff]  ;;  %v8130_v14 = vld [vmem:[%s8058_s14 + $0x58] sm:$0xff]  ;;  %v8134_v15 = vsel %vm365_vm11, 1, %v13527_v4  ;;  %v8140_v17 = vld [vmem:[%s8058_s14 + $0x68] sm:$0xff]  ;;  %vm666_vm12 = vcmp.lt.s32.totalorder %v8060_v52, 7 }
  0x1e   : > { %703 = vperm.xlu1 %6785, %v443_v10   ;;  %v8089_v62 = vsel %vm409_vm9, %v13526_v57, %v13524_v58  ;;  %v8122_v10 = vld [vmem:[%s8058_s14 + $0xe8] sm:$0xff]  ;;  %v8143_v18 = vld [vmem:[%s8058_s14 + $0x70] sm:$0xff]  ;;  %s7843_s26 = smov 6   ;;  %s7844_s27 = smov 30  }
  0x1f   : > { %v8097_v63 = vsel %vm409_vm9, %v13525_v59, %v13520_v60  ;;  %v13517_v23 = vrot.slane %v8143_v18, 7  ;;  %v663_v26 = vrot.slane %v8122_v10, 1  ;;  %v337_v44 = vld [vmem:[%s13514_s6 + $0xd0] sm:$0xff]  ;;  %v8301_v60 = vld [vmem:[%s8058_s14 + $0x20] sm:$0xff]  ;;  %s7845_s28 = smov 36   ;;  %s7846_s29 = smov 18  }
  0x20   : > { %vm369_vm15 = vcmp.gt.f32.partialorder %v337_v44, 0.5  ;;  %v8256_v5 = vld [vmem:[%s8058_s14 + $0x10] sm:$0xff]  ;;  %v379_v57 = vrot.slane %v8301_v60, 7  ;;  %s7847_s30 = smov 42   ;;  %s7848_s8 = smov 24  }
  0x21   : > { %709 = vperm.xlu0 %6786, %v445_v12   ;;  %v468_v48 = vsel %vm369_vm15, 1, %v13527_v4  ;;  %s7849_s11 = smov 48   ;;  %s7852_s17 = smov 84  }
  0x22   : > { %706 = vperm.xlu1 %6785, %v444_v9   ;;  %v8118_v9 = vld [vmem:[%s8058_s14 + $0xe0] sm:$0xff]  ;;  %s7853_s18 = smov 96   ;;  %s7854_s19 = smov 60  }
  0x23   : > { %v13516_v25 = vrot.slane %v8118_v9, 1  ;;  %s7855_s20 = smov 72  }
  0x25   : > { %712 = vperm.xlu0 %6786, %v446_v16  }
  0x26   : > { %6787 = vset.pattern.permute.xlu1 %v13527_v4 }
  0x27   : > { %487 = vperm.xlu1 %6787, %v446_v16   ;;  %v8137_v16 = vld [vmem:[%s8058_s14 + $0x60] sm:$0xff] }
  0x28   : > { %v13518_v21 = vrot.slane %v8137_v16, 7 }
  0x29   : > { %721 = vperm.xlu0 %6786, %v449_v19  }
  0x2b   : > { %490 = vperm.xlu1 %6787, %v447_v20  }
  0x2d   : > { %724 = vperm.xlu0 %6786, %v450_v22  }
  0x2f   : > { %6788 = vset.pattern.permute.xlu1 %v13530_v3 }
  0x30   : > { %715 = vperm.xlu1 %6788, %v447_v20   ;;  %v13523_v20 = vrot.slane %v8130_v14, 7 }
  0x31   : > { %733 = vperm.xlu0 %6786, %v453_v24  }
  0x32   : > { %v8168_v31 = vsel %vm409_vm9, %v13523_v20, %v13518_v21 }
  0x34   : > { %6789 = vset.pattern.permute.xlu1 %v13527_v4 }
  0x35   : > { %496 = vperm.xlu1 %6789, %v449_v19   ;;  %736 = vperm.xlu0 %6786, %v454_v27   ;;  %v8146_v19 = vld [vmem:[%s8058_s14 + $0xf8] sm:$0xff] }
  0x36   : > { %v665_v28 = vrot.slane %v8146_v19, 1 }
  0x39   : > { %6790 = vset.pattern.permute.xlu1 %v13530_v3  ;;  %745 = vperm.xlu0 %6786, %v457_v29  }
  0x3a   : > { %718 = vperm.xlu1 %6790, %v7979_v30  }
  0x3d   : > { %748 = vperm.xlu0 %6786, %v458_v32  }
  0x3e   : > { %6791 = vset.pattern.permute.xlu1 %v13527_v4 }
  0x3f   : > { %499 = vperm.xlu1 %6791, %v450_v22   ;;  %v13519_v22 = vrot.slane %v8140_v17, 7 }
  0x41   : > { %757 = vperm.xlu0 %6786, %v461_v35  }
  0x43   : > { %502 = vperm.xlu1 %6791, %v451_v36  }
  0x45   : > { %760 = vperm.xlu0 %6786, %v8000_v38  }
  0x47   : > { %6792 = vset.pattern.permute.xlu1 %v13530_v3 }
  0x48   : > { %727 = vperm.xlu1 %6792, %v451_v36   ;;  %v8189_v36 = vsel %vm666_vm12, %v13516_v25, %v663_v26 }
  0x49   : > { %769 = vperm.xlu0 %6786, %v8007_v40   ;;  %13868 = vst [vmem:[#allocation9_spill] sm:$0xff] %v8189_v36 }
  0x4c   : > { %6793 = vset.pattern.permute.xlu1 %v13527_v4 }
  0x4d   : > { %508 = vperm.xlu1 %6793, %v453_v24   ;;  %775 = vperm.xlu0 %6786, %v8015_v42  }
  0x51   : > { %6794 = vset.pattern.permute.xlu1 %v13530_v3 }
  0x52   : > { %730 = vperm.xlu1 %6794, %v8020_v43  }
  0x56   : > { %6795 = vset.pattern.permute.xlu1 %v13527_v4 }
  0x57   : > { %511 = vperm.xlu1 %6795, %v454_v27   ;;  %v664_v27 = vrot.slane %v8125_v11, 1 }
  0x5b   : > { %514 = vperm.xlu1 %6795, %v455_v45  }
  0x5f   : > { %6796 = vset.pattern.permute.xlu1 %v13530_v3 }
  0x60   : > { %739 = vperm.xlu1 %6796, %v455_v45  }
  0x64   : > { %6797 = vset.pattern.permute.xlu1 %v13527_v4 }
  0x65   : > { %520 = vperm.xlu1 %6797, %v457_v29   ;;  %v8160_v29 = vld [vmem:[%s8058_s14] sm:$0xff] }
  0x66   : > { %v634_v33 = vrot.slane %v8160_v29, 1 }
  0x68   : > { %v698_v39 = vsel %vm666_vm12, %v665_v28, %v634_v33 }
  0x69   : > { %6798 = vset.pattern.permute.xlu1 %v13530_v3 }
  0x6a   : > { %742 = vperm.xlu1 %6798, %v8035_v47  }
  0x6e   : > { %6799 = vset.pattern.permute.xlu1 %v13527_v4 }
  0x6f   : > { %523 = vperm.xlu1 %6799, %v458_v32   ;;  %v8176_v32 = vsel %vm409_vm9, %v13519_v22, %v13517_v23  ;;  %v8298_v22 = vld [vmem:[%s8058_s14 + $0x18] sm:$0xff] }
  0x70   : > { %v378_v59 = vrot.slane %v8298_v22, 7 }
  0x73   : > { %526 = vperm.xlu1 %6799, %v459_v49  }
  0x77   : > { %6800 = vset.pattern.permute.xlu1 %v13530_v3 }
  0x78   : > { %751 = vperm.xlu1 %6800, %v459_v49   ;;  %v8230_v49 = vld [vmem:[%s8058_s14 + $0x8] sm:$0xff] }
  0x79   : > { %v376_v20 = vrot.slane %v8230_v49, 7 }
  0x7c   : > { %6801 = vset.pattern.permute.xlu1 %v13527_v4 }
  0x7d   : > { %532 = vperm.xlu1 %6801, %v461_v35   ;;  %v667_v35 = vsel %vm666_vm12, %v664_v27, %v665_v28  ;;  %v8263_v28 = vld [vmem:[%s8058_s14 + $0x80] sm:$0xff] }
  0x7e   : > { %13878 = vst [vmem:[#allocation19_spill] sm:$0xff] %v8263_v28  ;;  %v13521_v44 = vrot.slane %v8263_v28, 7 }
  0x81   : > { %6802 = vset.pattern.permute.xlu1 %v13530_v3 }
  0x82   : > { %754 = vperm.xlu1 %6802, %v8080_v61  }
  0x86   : > { %6803 = vset.pattern.permute.xlu1 %v13527_v4 }
  0x87   : > { %535 = vperm.xlu1 %6803, %v8000_v38   ;;  %v8197_v38 = vsel %vm666_vm12, %v663_v26, %v664_v27  ;;  %v13529_v26 = vrot.slane %v8256_v5, 1  ;;  %v8260_v27 = vld [vmem:[%s8058_s14 + $0x78] sm:$0xff] }
  0x88   : > { %13870 = vst [vmem:[#allocation11_spill] sm:$0xff] %v8197_v38 }
  0x8b   : > { %538 = vperm.xlu1 %6803, %v463_v1  }
  0x8f   : > { %6804 = vset.pattern.permute.xlu1 %v13530_v3  ;;  %v8108_v2 = vpop.permute.xlu0 %475  ;;  %v8113_v7 = vpop.permute.xlu1 %793 }
  0x90   : > { %13862 = vst [vmem:[#allocation3_spill] sm:$0xff] %v8108_v2  ;;  %13863 = vst [vmem:[#allocation4_spill] sm:$0xff] %v8113_v7  ;;  %763 = vperm.xlu1 %6804, %v463_v1   ;;  %vm13582_vm13 = vcmp.eq.s32.totalorder %v8113_v7, 1  ;;  %vm13580_vm4 = vcmp.eq.s32.totalorder %v8108_v2, 1 }
  0x91   : > { %v8218_v45 = vsel %vm13582_vm13, %v8197_v38, %v698_v39  ;;  %v8412_v38 = vld [vmem:[%s8058_s14 + $0x30] sm:$0xff] }
  0x92   : > { %13873 = vst [vmem:[#allocation14_spill] sm:$0xff] %v8218_v45 }
  0x93   : > { %v8115_v8 = vpop.permute.xlu0 %481 }
  0x94   : > { %13864 = vst [vmem:[#allocation5_spill] sm:$0xff] %v8115_v8  ;;  %6805 = vset.pattern.permute.xlu1 %v13527_v4  ;;  %v8127_v12 = vpop.permute.xlu1 %478  ;;  %vm13661_vm15 = vcmp.eq.s32.totalorder %v8115_v8, 1 }
  0x95   : > { %13865 = vst [vmem:[#allocation6_spill] sm:$0xff] %v8127_v12  ;;  %544 = vperm.xlu1 %6805, %v8007_v40   ;;  %vm571_vm5 = vcmp.eq.s32.totalorder %v8127_v12, 1 }
  0x97   : > { %v8152_v24 = vpop.permute.xlu0 %484 }
  0x98   : > { %13866 = vst [vmem:[#allocation7_spill] sm:$0xff] %v8152_v24  ;;  %vm13665_vm3 = vcmp.eq.s32.totalorder %v8152_v24, 1 }
  0x99   : > { %6806 = vset.pattern.permute.xlu1 %v13530_v3  ;;  %v8180_v34 = vpop.permute.xlu1 %700 }
  0x9a   : > { %13867 = vst [vmem:[#allocation8_spill] sm:$0xff] %v8180_v34  ;;  %766 = vperm.xlu1 %6806, %v8134_v15   ;;  %vm13564_vm1 = vcmp.eq.s32.totalorder %v8180_v34, 1 }
  0x9c   : > { %v8191_v37 = vpop.permute.xlu0 %790 }
  0x9d   : > { %13869 = vst [vmem:[#allocation10_spill] sm:$0xff] %v8191_v37  ;;  %vm13595_vm14 = vcmp.eq.s32.totalorder %v8191_v37, 1  ;;  %v8201_v40 = vpop.permute.xlu1 %703 }
  0x9e   : > { %13871 = vst [vmem:[#allocation12_spill] sm:$0xff] %v8201_v40  ;;  %6807 = vset.pattern.permute.xlu1 %v13527_v4  ;;  %v8207_v41 = vsel %vm13595_vm14, %v8189_v36, %v667_v35  ;;  %vm13558_vm2 = vcmp.eq.s32.totalorder %v8201_v40, 1 }
  0x9f   : > { %13872 = vst [vmem:[#allocation13_spill] sm:$0xff] %v8207_v41  ;;  %565 = vperm.xlu1 %6807, %v7937_v13   ;;  %1019 = vrot.lane.b32.xlu0 %v8207_v41, %s7842_s21  ;;  %v335_v13 = vld [vmem:[%s13514_s6 + $0xc0] sm:$0xff]  ;;  %v13894_v41 = vmov 0  }
  0xa0   : > { %vm367_vm0 = vcmp.gt.f32.partialorder %v335_v13, 0.5  ;;  %v8275_v13 = vld [vmem:[%s8058_s14 + $0x28] sm:$0xff] }
  0xa1   : > { %v8220_v46 = vpop.permute.xlu1 %706  ;;  %v8238_v51 = vsel %vm367_vm0, 1, %v13527_v4 }
  0xa2   : > { %13874 = vst [vmem:[#allocation15_spill] sm:$0xff] %v8220_v46  ;;  %vm797_vm7 = vcmp.eq.s32.totalorder %v8220_v46, 1 }
  0xa3   : > { %568 = vperm.xlu1 %6807, %v7921_v6   ;;  %1021 = vrot.lane.b32.xlu0 %v8218_v45, %s7842_s21  ;;  %v635_v6 = vrot.slane %v8230_v49, 1  ;;  %v8402_v45 = vpop.permute.xlu0 %709 }
  0xa4   : > { %13892 = vst [vmem:[#allocation31_spill] sm:$0xff] %v8402_v45  ;;  %vm13666_vm10 = vcmp.eq.s32.totalorder %v8402_v45, 1 }
  0xa5   : > { %v8242_v0 = vsel %vm666_vm12, %v634_v33, %v635_v6  ;;  %v8281_v25 = vsel %vm666_vm12, %v635_v6, %v13529_v26  ;;  %v13533_v6 = vrot.slane %v8275_v13, 7 }
  0xa6   : > { %v8232_v50 = vpop.permute.xlu1 %487  ;;  %v8295_v21 = vsel %vm13558_vm2, %v698_v39, %v8281_v25  ;;  %v13534_v39 = vrot.slane %v8146_v19, 7 }
  0xa7   : > { %13875 = vst [vmem:[#allocation16_spill] sm:$0xff] %v8232_v50  ;;  %550 = vperm.xlu1 %6807, %v8015_v42   ;;  %778 = vperm.xlu0 %6786, %v468_v48   ;;  %v8253_v42 = vsel %vm13564_vm1, %v667_v35, %v8242_v0  ;;  %v13522_v35 = vrot.slane %v8260_v27, 7  ;;  %13880 = vst [vmem:[#allocation21_spill] sm:$0xff] %v8295_v21  ;;  %vm13662_vm1 = vcmp.eq.s32.totalorder %v8232_v50, 1 }
  0xa8   : > { %13877 = vst [vmem:[#allocation18_spill] sm:$0xff] %v8253_v42 }
  0xa9   : > { %v8290_v23 = vsel %vm409_vm9, %v13522_v35, %v13521_v44  ;;  %v377_v44 = vrot.slane %v8256_v5, 7  ;;  %v375_v35 = vrot.slane %v8160_v29, 7 }
  0xaa   : > { %v8244_v1 = vpop.permute.xlu1 %490 }
  0xab   : > { %13876 = vst [vmem:[#allocation17_spill] sm:$0xff] %v8244_v1  ;;  %6808 = vset.pattern.permute.xlu1 %v13530_v3  ;;  %897 = vrot.lane.b32.xlu0 %v8230_v49, %s7843_s26  ;;  %v438_v26 = vsel %vm409_vm9, %v377_v44, %v378_v59  ;;  %v439_v3 = vsel %vm409_vm9, %v376_v20, %v377_v44  ;;  %vm13655_vm11 = vcmp.eq.s32.totalorder %v8244_v1, 1 }
  0xac   : > { %772 = vperm.xlu1 %6808, %v8238_v51   ;;  %v8332_v40 = vsel %vm409_vm9, %v13534_v39, %v375_v35  ;;  %v8352_v44 = vsel %vm409_vm9, %v375_v35, %v376_v20  ;;  %v13885_v39 = vmov 1  }
  0xad   : > { %v8362_v2 = vsel %vm571_vm5, %v438_v26, %v8352_v44 }
  0xae   : > { %13887 = vst [vmem:[#allocation27_spill] sm:$0xff] %v8362_v2 }
  0xaf   : > { %1339 = vrot.lane.b32.xlu0 %v8253_v42, %s7844_s27  ;;  %v8268_v33 = vpop.permute.xlu1 %715 }
  0xb0   : > { %13879 = vst [vmem:[#allocation20_spill] sm:$0xff] %v8268_v33  ;;  %891 = vrot.lane.b32.xlu1 %v8125_v11, %s7843_s26 }
  0xb1   : > { %6809 = vset.pattern.permute.xlu1 %v13527_v4  ;;  %v436_v4 = vsel %vm409_vm9, %v379_v57, %v13533_v6 }
  0xb2   : > { %v8338_v6 = vsel %vm13665_vm3, %v436_v4, %v438_v26  ;;  %v637_v26 = vrot.slane %v8298_v22, 1 }
  0xb3   : > { %1341 = vrot.lane.b32.xlu0 %v8295_v21, %s7844_s27  ;;  %13883 = vst [vmem:[#allocation24_spill] sm:$0xff] %v8338_v6 }
  0xb4   : > { %893 = vrot.lane.b32.xlu1 %v8146_v19, %s7843_s26  ;;  %v8312_v58 = vpop.permute.xlu1 %496 }
  0xb5   : > { %13881 = vst [vmem:[#allocation22_spill] sm:$0xff] %v8312_v58 }
  0xb7   : > { %1025 = vrot.lane.b32.xlu0 %v8295_v21, %s7842_s21  ;;  %v638_v21 = vrot.slane %v8301_v60, 1 }
  0xb8   : > { %553 = vperm.xlu1 %6809, %v468_v48   ;;  %v8345_v48 = vsel %vm13580_vm4, %v439_v3, %v8332_v40 }
  0xb9   : > { %v8334_v34 = vpop.permute.xlu1 %718  ;;  %13884 = vst [vmem:[#allocation25_spill] sm:$0xff] %v8345_v48 }
  0xba   : > { %13882 = vst [vmem:[#allocation23_spill] sm:$0xff] %v8334_v34 }
  0xbb   : > { %1437 = vrot.lane.b32.xlu0 %v8338_v6, %s7845_s28 }
  0xbc   : > { %1147 = vrot.lane.b32.xlu1 %v8345_v48, %s7846_s29 }
  0xbd   : > { %6810 = vset.pattern.permute.xlu1 %v13885_v39  ;;  %v338_v39 = vld [vmem:[%s13514_s6 + $0xd8] sm:$0xff] }
  0xbe   : > { %v8355_v7 = vpop.permute.xlu1 %499  ;;  %vm370_vm8 = vcmp.gt.f32.partialorder %v338_v39, 0.5  ;;  %v13551_v39 = vrot.slane %v8412_v38, 7 }
  0xbf   : > { %13886 = vst [vmem:[#allocation26_spill] sm:$0xff] %v8355_v7  ;;  %1153 = vrot.lane.b32.xlu0 %v8338_v6, %s7846_s29  ;;  %vm13640_vm6 = vcmp.eq.s32.totalorder %v8355_v7, 1  ;;  %v13891_v7 = vrot.slane %v8256_v5, 1 }
  0xc0   : > { %1149 = vrot.lane.b32.xlu1 %v8362_v2, %s7846_s29  ;;  %v8371_v20 = vsel %vm13640_vm6, %v8097_v63, %v8089_v62 }
  0xc1   : > { %13888 = vst [vmem:[#allocation28_spill] sm:$0xff] %v8371_v20  ;;  %v695_v24 = vsel %vm666_vm12, %v13891_v7, %v637_v26  ;;  %v8409_v7 = vsel %vm370_vm8, 1, %v13894_v41 }
  0xc2   : > { %v8373_v35 = vpop.permute.xlu1 %502  ;;  %v8397_v12 = vsel %vm797_vm7, %v8242_v0, %v695_v24  ;;  %v8419_v0 = vsel %vm666_vm12, %v637_v26, %v638_v21  ;;  %v13896_v26 = vrot.slane %v8064_v53, 7 }
  0xc3   : > { %13889 = vst [vmem:[#allocation29_spill] sm:$0xff] %v8373_v35  ;;  %1533 = vrot.lane.b32.xlu0 %v8298_v22, %s7847_s30  ;;  %v8429_v46 = vsel %vm13666_vm10, %v8281_v25, %v8419_v0  ;;  %v8447_v25 = vsel %vm409_vm9, %v378_v59, %v379_v57  ;;  %v8465_v57 = vpop.permute.xlu0 %712 }
  0xc4   : > { %1243 = vrot.lane.b32.xlu1 %v8160_v29, %s7848_s8  ;;  %v8440_v36 = vsel %vm409_vm9, %v13551_v39, %v13896_v26  ;;  %v8461_v26 = vsel %vm13661_vm15, %v8447_v25, %v439_v3  ;;  %v13554_v39 = vrot.slane %v8275_v13, 1  ;;  %13900 = vst [vmem:[#allocation37_spill] sm:$0xff] %v8465_v57  ;;  %vm13664_vm8 = vcmp.eq.s32.totalorder %v8465_v57, 1  ;;  %v340_v57 = vld [vmem:[%s13514_s6 + $0xe8] sm:$0xff] }
  0xc5   : > { %v8452_v45 = vsel %vm13655_vm11, %v8440_v36, %v436_v4  ;;  %13899 = vst [vmem:[#allocation36_spill] sm:$0xff] %v8461_v26  ;;  %vm372_vm2 = vcmp.gt.f32.partialorder %v340_v57, 0.5  ;;  %v1992_v57 = vld [vmem:[%s13509_s1 + $0x28] sm:$0xff]  ;;  %vm1822_vm11 = vcmask 195584   ;;  %vm1954_vm15 = vcmask 392192  }
  0xc6   : > { %13897 = vst [vmem:[#allocation34_spill] sm:$0xff] %v8452_v45  ;;  %v8484_v3 = vsel %vm666_vm12, %v638_v21, %v13554_v39  ;;  %v1987_v21 = vld [vmem:[%s13509_s1] sm:$0xff]  ;;  %v1988_v39 = vld [vmem:[%s13509_s1 + $0x8] sm:$0xff] }
  0xc7   : > { %899 = vrot.lane.b32.xlu0 %v8256_v5, %s7843_s26  ;;  %v8386_v37 = vpop.permute.xlu1 %727  ;;  %v6600_v8 = vpack.c.bf16 %v1988_v39, %v1987_v21  ;;  %v1989_v39 = vld [vmem:[%s13509_s1 + $0x10] sm:$0xff]  ;;  %v1990_v21 = vld [vmem:[%s13509_s1 + $0x18] sm:$0xff] }
  0xc8   : > { %13890 = vst [vmem:[#allocation30_spill] sm:$0xff] %v8386_v37  ;;  %895 = vrot.lane.b32.xlu1 %v8160_v29, %s7843_s26  ;;  %vm13649_vm6 = vcmp.eq.s32.totalorder %v8386_v37, 1  ;;  %v13967_v37 = vrot.slane %v8137_v16, 7 }
  0xc9   : > { %6601 = vmatprep.subr.bf16.mxu0 %v6600_v8 }
  0xca   : > { %6603 = vmatpush3.bf16.msra.mxu0 %v6600_v8  ;;  %v8529_v8 = vsel %vm372_vm2, 1, %v13894_v41  ;;  %vm2098_vm2 = vcmask 1045504  }
  0xcb   : > { %1343 = vrot.lane.b32.xlu0 %v8397_v12, %s7844_s27 }
  0xcc   : > { %1245 = vrot.lane.b32.xlu1 %v8230_v49, %s7848_s8  ;;  %v8406_v29 = vpop.permute.xlu1 %508 }
  0xcd   : > { %13893 = vst [vmem:[#allocation32_spill] sm:$0xff] %v8406_v29 }
  0xcf   : > { %901 = vrot.lane.b32.xlu0 %v8298_v22, %s7843_s26 }
  0xd0   : > { %781 = vperm.xlu1 %6810, %v8409_v7  }
  0xd1   : > { %v8423_v49 = vpop.permute.xlu1 %730 }
  0xd2   : > { %13895 = vst [vmem:[#allocation33_spill] sm:$0xff] %v8423_v49 }
  0xd3   : > { %1345 = vrot.lane.b32.xlu0 %v8429_v46, %s7844_s27 }
  0xd4   : > { %1023 = vrot.lane.b32.xlu1 %v8253_v42, %s7842_s21 }
  0xd6   : > { %v8454_v6 = vpop.permute.xlu1 %511 }
  0xd7   : > { %13898 = vst [vmem:[#allocation35_spill] sm:$0xff] %v8454_v6  ;;  %1441 = vrot.lane.b32.xlu0 %v8452_v45, %s7845_s28  ;;  %vm13621_vm0 = vcmp.eq.s32.totalorder %v8454_v6, 1  ;;  %v8491_v6 = vsel %vm13664_vm8, %v695_v24, %v8484_v3  ;;  %v8505_v24 = vpop.permute.xlu0 %721  ;;  %vm13667_vm8 = vcmp.eq.s32.totalorder %v8423_v49, 1 }
  0xd8   : > { %1435 = vrot.lane.b32.xlu1 %v8461_v26, %s7845_s28  ;;  %v8473_v4 = vsel %vm13621_vm0, %v8176_v32, %v8168_v31  ;;  %13904 = vst [vmem:[#allocation41_spill] sm:$0xff] %v8505_v24  ;;  %vm13633_vm0 = vcmp.eq.s32.totalorder %v8373_v35, 1 }
  0xd9   : > { %13901 = vst [vmem:[#allocation38_spill] sm:$0xff] %v8473_v4 }
  0xda   : > { %v8475_v59 = vpop.permute.xlu1 %514 }
  0xdb   : > { %13902 = vst [vmem:[#allocation39_spill] sm:$0xff] %v8475_v59  ;;  %1251 = vrot.lane.b32.xlu0 %v8301_v60, %s7848_s8  ;;  %v8524_v4 = vpop.permute.xlu0 %724 }
  0xdc   : > { %1151 = vrot.lane.b32.xlu1 %v8461_v26, %s7846_s29  ;;  %v6604_v26 = vpack.c.bf16 %v1990_v21, %v1989_v39  ;;  %13906 = vst [vmem:[#allocation43_spill] sm:$0xff] %v8524_v4 }
  0xde   : > { %6605 = vmatprep.subr.bf16.mxu0 %v6604_v26 }
  0xdf   : > { %1631 = vrot.lane.b32.xlu0 %v8491_v6, %s7849_s11  ;;  %v8495_v1 = vpop.permute.xlu1 %739  ;;  %6607 = vmatpush3.bf16.msra.mxu0 %v6604_v26  ;;  %v1993_v26 = vld [vmem:[%s13509_s1 + $0x30] sm:$0x3f]  ;;  %v8545_v28 = vpop.permute.xlu0 %733 }
  0xe0   : > { %13903 = vst [vmem:[#allocation40_spill] sm:$0xff] %v8495_v1  ;;  %1531 = vrot.lane.b32.xlu1 %v8256_v5, %s7847_s30  ;;  %13908 = vst [vmem:[#allocation45_spill] sm:$0xff] %v8545_v28  ;;  %vm13668_vm3 = vcmp.eq.s32.totalorder %v8545_v28, 1 }
  0xe3   : > { %903 = vrot.lane.b32.xlu0 %v8301_v60, %s7843_s26 }
  0xe4   : > { %1247 = vrot.lane.b32.xlu1 %v8256_v5, %s7848_s8  ;;  %v8514_v42 = vpop.permute.xlu1 %520  ;;  %v1991_v5 = vld [vmem:[%s13509_s1 + $0x20] sm:$0xff] }
  0xe5   : > { %13905 = vst [vmem:[#allocation42_spill] sm:$0xff] %v8514_v42  ;;  %v6608_v21 = vpack.c.bf16 %v1992_v57, %v1991_v5  ;;  %v8555_v5 = vpop.permute.xlu0 %736  ;;  %v13912_v57 = vrot.slane %v8412_v38, 7 }
  0xe6   : > { %13911 = vst [vmem:[#allocation48_spill] sm:$0xff] %v8555_v5 }
  0xe7   : > { %1347 = vrot.lane.b32.xlu0 %v8491_v6, %s7844_s27  ;;  %6609 = vmatprep.subr.bf16.mxu0 %v6608_v21 }
  0xe8   : > { %1627 = vrot.lane.b32.xlu1 %v8397_v12, %s7849_s11  ;;  %6611 = vmatpush3.bf16.msra.mxu0 %v6608_v21 }
  0xe9   : > { %v8537_v39 = vpop.permute.xlu1 %742  ;;  %6550 = vmatprep.subr.msk.mxu0 %vm2098_vm2, %v1993_v26  ;;  %v8596_v50 = vpop.permute.xlu0 %745 }
  0xea   : > { %13907 = vst [vmem:[#allocation44_spill] sm:$0xff] %v8537_v39  ;;  %13920 = vst [vmem:[#allocation55_spill] sm:$0xff] %v8596_v50  ;;  %v644_v50 = vrot.slane %v8073_v56, 1 }
  0xeb   : > { %787 = vperm.xlu0 %6786, %v8529_v8  }
  0xec   : > { %1249 = vrot.lane.b32.xlu1 %v8298_v22, %s7848_s8  ;;  %6551 = vmatpush3.msk.msra.mxu0 %vm2098_vm2, %v1993_v26  ;;  %v8570_v26 = vld [vmem:[%s8058_s14 + $0xa0] sm:$0xff] }
  0xed   : > { %13914 = vst [vmem:[#allocation49_spill] sm:$0xff] %v8570_v26 }
  0xee   : > { %v8547_v42 = vpop.permute.xlu1 %523 }
  0xef   : > { %13909 = vst [vmem:[#allocation46_spill] sm:$0xff] %v8547_v42  ;;  %6811 = vset.pattern.permute.xlu0 %v13894_v41  ;;  %v8573_v42 = vld [vmem:[%s8058_s14 + $0xa8] sm:$0xff] }
  0xf0   : > { %493 = vperm.xlu0 %6811, %v7979_v30   ;;  %1629 = vrot.lane.b32.xlu1 %v8429_v46, %s7849_s11  ;;  %v13913_v30 = vrot.slane %v8275_v13, 7  ;;  %13915 = vst [vmem:[#allocation50_spill] sm:$0xff] %v8573_v42  ;;  %v13573_v39 = vrot.slane %v8573_v42, 7 }
  0xf2   : > { %v8553_v22 = vpop.permute.xlu1 %526  ;;  %v8567_v21 = vsel %vm409_vm9, %v13913_v30, %v13912_v57  ;;  %v8589_v57 = vld [vmem:[%s8058_s14 + $0x90] sm:$0xff]  ;;  %v8592_v30 = vld [vmem:[%s8058_s14 + $0x98] sm:$0xff] }
  0xf3   : > { %13910 = vst [vmem:[#allocation47_spill] sm:$0xff] %v8553_v22  ;;  %13918 = vst [vmem:[#allocation53_spill] sm:$0xff] %v8589_v57  ;;  %v13575_v20 = vrot.slane %v8589_v57, 7 }
  0xf4   : > { %505 = vperm.xlu0 %6811, %v8020_v43   ;;  %1027 = vrot.lane.b32.xlu1 %v8397_v12, %s7842_s21  ;;  %v8579_v43 = vsel %vm13662_vm1, %v8567_v21, %v8447_v25  ;;  %v13574_v12 = vrot.slane %v8570_v26, 7  ;;  %13919 = vst [vmem:[#allocation54_spill] sm:$0xff] %v8592_v30  ;;  %v13576_v25 = vrot.slane %v8592_v30, 7  ;;  %vm1921_vm1 = vcmask 343040  }
  0xf5   : > { %13916 = vst [vmem:[#allocation51_spill] sm:$0xff] %v8579_v43 }
  0xf6   : > { %v8616_v42 = vsel %vm409_vm9, %v13575_v20, %v13576_v25  ;;  %v8637_v20 = vld [vmem:[%s8058_s14 + $0xb0] sm:$0xff]  ;;  %v8640_v25 = vld [vmem:[%s8058_s14 + $0xb8] sm:$0xff] }
  0xf7   : > { %v8581_v22 = vpop.permute.xlu1 %751  ;;  %13922 = vst [vmem:[#allocation57_spill] sm:$0xff] %v8616_v42  ;;  %13926 = vst [vmem:[#allocation61_spill] sm:$0xff] %v8637_v20 }
  0xf8   : > { %13917 = vst [vmem:[#allocation52_spill] sm:$0xff] %v8581_v22  ;;  %517 = vperm.xlu0 %6811, %v8035_v47   ;;  %1439 = vrot.lane.b32.xlu1 %v8579_v43, %s7845_s28  ;;  %v420_v47 = vsel %vm409_vm9, %v13574_v12, %v13573_v39  ;;  %v339_v12 = vld [vmem:[%s13514_s6 + $0xe0] sm:$0xff]  ;;  %13927 = vst [vmem:[#allocation62_spill] sm:$0xff] %v8640_v25 }
  0xf9   : > { %vm371_vm4 = vcmp.gt.f32.partialorder %v339_v12, 0.5  ;;  %v640_v12 = vrot.slane %v8412_v38, 1 }
  0xfc   : > { %529 = vperm.xlu0 %6811, %v8080_v61   ;;  %1029 = vrot.lane.b32.xlu1 %v8429_v46, %s7842_s21  ;;  %v8607_v22 = vpop.permute.xlu1 %532  ;;  %v8623_v61 = vpop.permute.xlu0 %748 }
  0xfd   : > { %13921 = vst [vmem:[#allocation56_spill] sm:$0xff] %v8607_v22  ;;  %vm13605_vm2 = vcmp.eq.s32.totalorder %v8607_v22, 1  ;;  %13924 = vst [vmem:[#allocation59_spill] sm:$0xff] %v8623_v61  ;;  %v13587_v22 = vrot.slane %v8640_v25, 7  ;;  %v8674_v25 = vld [vmem:[%s8058_s14 + $0xc8] sm:$0xff] }
  0xfe   : > { %v8621_v39 = vsel %vm13605_vm2, %v420_v47, %v8616_v42  ;;  %13934 = vst [vmem:[#allocation69_spill] sm:$0xff] %v8674_v25  ;;  %vm13654_vm2 = vcmp.eq.s32.totalorder %v8334_v34, 1 }
  0xff   : > { %13923 = vst [vmem:[#allocation58_spill] sm:$0xff] %v8621_v39 }
 0x100   : > { %541 = vperm.xlu0 %6811, %v8134_v15   ;;  %1155 = vrot.lane.b32.xlu1 %v8579_v43, %s7846_s29  ;;  %v13588_v15 = vrot.slane %v8637_v20, 7  ;;  %v8644_v39 = vpop.permute.xlu0 %757 }
 0x101   : > { %v8628_v46 = vpop.permute.xlu1 %754  ;;  %13928 = vst [vmem:[#allocation63_spill] sm:$0xff] %v8644_v39 }
 0x102   : > { %13925 = vst [vmem:[#allocation60_spill] sm:$0xff] %v8628_v46 }
 0x104   : > { %547 = vperm.xlu0 %6811, %v8238_v51   ;;  %1535 = vrot.lane.b32.xlu1 %v8301_v60, %s7847_s30  ;;  %v470_v60 = vsel %vm371_vm4, 1, %v13894_v41  ;;  %v418_v51 = vsel %vm409_vm9, %v13588_v15, %v13587_v22  ;;  %vm13663_vm4 = vcmp.eq.s32.totalorder %v8268_v33, 1 }
 0x106   : > { %v8646_v43 = vpop.permute.xlu1 %535 }
 0x107   : > { %13929 = vst [vmem:[#allocation64_spill] sm:$0xff] %v8646_v43  ;;  %v8661_v43 = vpop.permute.xlu0 %760 }
 0x108   : > { %556 = vperm.xlu0 %6811, %v8409_v7   ;;  %1157 = vrot.lane.b32.xlu1 %v8452_v45, %s7846_s29  ;;  %13931 = vst [vmem:[#allocation66_spill] sm:$0xff] %v8661_v43  ;;  %v8671_v45 = vld [vmem:[%s8058_s14 + $0xc0] sm:$0xff]  ;;  %v13597_v43 = vrot.slane %v8674_v25, 7 }
 0x109   : > { %13933 = vst [vmem:[#allocation68_spill] sm:$0xff] %v8671_v45  ;;  %v13598_v15 = vrot.slane %v8671_v45, 7 }
 0x10a   : > { %v8658_v61 = vpop.permute.xlu1 %538 }
 0x10b   : > { %13930 = vst [vmem:[#allocation65_spill] sm:$0xff] %v8658_v61  ;;  %vm13596_vm13 = vcmp.eq.s32.totalorder %v8658_v61, 1  ;;  %v8682_v61 = vpop.permute.xlu0 %769  ;;  %v416_v20 = vsel %vm409_vm9, %v13598_v15, %v13597_v43  ;;  %v13942_v43 = vrot.slane %v8067_v54, 7 }
 0x10c   : > { %559 = vperm.xlu0 %6811, %v470_v60   ;;  %1537 = vrot.lane.b32.xlu1 %v8275_v13, %s7847_s30  ;;  %v8667_v7 = vsel %vm13596_vm13, %v418_v51, %v420_v47  ;;  %13936 = vst [vmem:[#allocation71_spill] sm:$0xff] %v8682_v61  ;;  %v13937_v47 = vrot.slane %v8275_v13, 1  ;;  %vm13646_vm13 = vcmp.eq.s32.totalorder %v8312_v58, 1 }
 0x10d   : > { %13932 = vst [vmem:[#allocation67_spill] sm:$0xff] %v8667_v7 }
 0x10e   : > { %v692_v7 = vsel %vm666_vm12, %v13937_v47, %v640_v12  ;;  %v13941_v47 = vrot.slane %v8070_v55, 7 }
 0x10f   : > { %v8676_v22 = vpop.permute.xlu1 %763 }
 0x110   : > { %13935 = vst [vmem:[#allocation70_spill] sm:$0xff] %v8676_v22  ;;  %562 = vperm.xlu0 %6811, %v8529_v8   ;;  %784 = vperm.xlu1 %6810, %v470_v60   ;;  %v832_v22 = vsel %vm13663_vm4, %v8419_v0, %v692_v7  ;;  %v8709_v60 = vpop.permute.xlu0 %775  ;;  %vm2001_vm4 = vcmask 441344  }
 0x111   : > { %13940 = vst [vmem:[#allocation74_spill] sm:$0xff] %v8709_v60 }
 0x114   : > { %1349 = vrot.lane.b32.xlu0 %v832_v22, %s7844_s27  ;;  %1253 = vrot.lane.b32.xlu1 %v8275_v13, %s7848_s8  ;;  %v8700_v8 = vpop.permute.xlu1 %544 }
 0x115   : > { %13938 = vst [vmem:[#allocation72_spill] sm:$0xff] %v8700_v8  ;;  %vm13604_vm14 = vcmp.eq.s32.totalorder %v8700_v8, 1  ;;  %7452 = vset.pattern.permute.xlu1 %v13894_v41  ;;  %v432_v41 = vsel %vm409_vm9, %v13942_v43, %v13941_v47  ;;  %v8726_v8 = vpop.permute.xlu0 %1019  ;;  %v8739_v43 = vld [vmem:[%s8058_s14 + $0xd0] sm:$0xff] }
 0x116   : > { %v8706_v0 = vsel %vm13604_vm14, %v416_v20, %v418_v51  ;;  %v8724_v51 = vsel %vm13646_vm13, %v432_v41, %v8440_v36  ;;  %13946 = vst [vmem:[#allocation78_spill] sm:$0xff] %v8739_v43  ;;  %v8742_v36 = vld [vmem:[%s8058_s14 + $0xd8] sm:$0xff]  ;;  %v13609_v47 = vrot.slane %v8739_v43, 7  ;;  %v642_v43 = vrot.slane %v8067_v54, 1 }
 0x117   : > { %13939 = vst [vmem:[#allocation73_spill] sm:$0xff] %v8706_v0  ;;  %13944 = vst [vmem:[#allocation76_spill] sm:$0xff] %v8724_v51  ;;  %v13608_v58 = vrot.slane %v8742_v36, 7  ;;  %vm13660_vm13 = vcmp.eq.s32.totalorder %v8406_v29, 1 }
 0x118   : > { %1033 = vrot.lane.b32.xlu0 %v832_v22, %s7842_s21  ;;  %1633 = vrot.lane.b32.xlu1 %v832_v22, %s7849_s11  ;;  %13947 = vst [vmem:[#allocation79_spill] sm:$0xff] %v8742_v36 }
 0x119   : > { %v8719_v15 = vpop.permute.xlu1 %766  ;;  %v8746_v33 = vpop.permute.xlu0 %1021 }
 0x11a   : > { %13943 = vst [vmem:[#allocation75_spill] sm:$0xff] %v8719_v15  ;;  %v13955_v15 = vrot.slane %v8073_v56, 7 }
 0x11c   : > { %1445 = vrot.lane.b32.xlu0 %v8724_v51, %s7845_s28  ;;  %905 = vrot.lane.b32.xlu1 %v8275_v13, %s7843_s26  ;;  %v8758_v13 = vsel %vm409_vm9, %v13609_v47, %v13608_v58 }
 0x11e   : > { %v8732_v22 = vpop.permute.xlu1 %565 }
 0x11f   : > { %13945 = vst [vmem:[#allocation77_spill] sm:$0xff] %v8732_v22 }
 0x120   : > { %1161 = vrot.lane.b32.xlu0 %v8724_v51, %s7846_s29  ;;  %1031 = vrot.lane.b32.xlu1 %v8491_v6, %s7842_s21  ;;  %v641_v51 = vrot.slane %v8064_v53, 1 }
 0x122   : > { %v8748_v0 = vpop.permute.xlu1 %568  ;;  %v691_v47 = vsel %vm666_vm12, %v640_v12, %v641_v51  ;;  %v690_v12 = vsel %vm666_vm12, %v641_v51, %v642_v43  ;;  %v13954_v51 = vrot.slane %v8130_v14, 7 }
 0x123   : > { %13948 = vst [vmem:[#allocation80_spill] sm:$0xff] %v8748_v0  ;;  %v8783_v25 = vsel %vm13654_vm2, %v8484_v3, %v691_v47  ;;  %vm1789_vm2 = vcmask 146432  }
 0x124   : > { %1541 = vrot.lane.b32.xlu0 %v8064_v53, %s7847_s30 }
 0x126   : > { %v8760_v6 = vpop.permute.xlu0 %778  ;;  %v8762_v60 = vpop.permute.xlu1 %550 }
 0x127   : > { %13949 = vst [vmem:[#allocation81_spill] sm:$0xff] %v8760_v6  ;;  %13950 = vst [vmem:[#allocation82_spill] sm:$0xff] %v8762_v60  ;;  %vm13616_vm14 = vcmp.eq.s32.totalorder %v8762_v60, 1 }
 0x128   : > { %907 = vrot.lane.b32.xlu0 %v8412_v38, %s7843_s26  ;;  %v8772_v36 = vsel %vm13616_vm14, %v8758_v13, %v416_v20  ;;  %vm13652_vm14 = vcmp.eq.s32.totalorder %v8505_v24, 1 }
 0x129   : > { %13951 = vst [vmem:[#allocation83_spill] sm:$0xff] %v8772_v36  ;;  %v8801_v34 = vsel %vm13652_vm14, %v692_v7, %v690_v12  ;;  %v430_v7 = vsel %vm409_vm9, %v13955_v15, %v13954_v51  ;;  %v643_v15 = vrot.slane %v8070_v55, 1  ;;  %vm1723_vm14 = vcmask 48128  }
 0x12a   : > { %v8774_v58 = vpop.permute.xlu0 %897  ;;  %v8822_v39 = vsel %vm13633_vm0, %v430_v7, %v432_v41  ;;  %vm13645_vm0 = vcmp.eq.s32.totalorder %v8524_v4, 1  ;;  %v13648_v4 = vrot.slane %v8122_v10, 7 }
 0x12b   : > { %v8778_v6 = vpop.permute.xlu1 %772  ;;  %13956 = vst [vmem:[#allocation86_spill] sm:$0xff] %v8822_v39  ;;  %v8844_v35 = vsel %vm666_vm12, %v642_v43, %v643_v15 }
 0x12c   : > { %13952 = vst [vmem:[#allocation84_spill] sm:$0xff] %v8778_v6  ;;  %1351 = vrot.lane.b32.xlu0 %v8783_v25, %s7844_s27  ;;  %v8851_v42 = vsel %vm13645_vm0, %v691_v47, %v8844_v35  ;;  %v8867_v47 = vsel %vm666_vm12, %v643_v15, %v644_v50  ;;  %vm13653_vm0 = vcmp.eq.s32.totalorder %v8732_v22, 1 }
 0x12d   : > { %13959 = vst [vmem:[#allocation89_spill] sm:$0xff] %v8851_v42 }
 0x12e   : > { %v8788_v60 = vpop.permute.xlu0 %1339 }
 0x12f   : > { %v892_v20 = vpop.permute.xlu1 %891 }
 0x130   : > { %909 = vrot.lane.b32.xlu0 %v8064_v53, %s7843_s26 }
 0x132   : > { %v8795_v36 = vpop.permute.xlu0 %1341 }
 0x133   : > { %v8797_v3 = vpop.permute.xlu1 %893 }
 0x134   : > { %1353 = vrot.lane.b32.xlu0 %v8801_v34, %s7844_s27 }
 0x136   : > { %v8805_v6 = vpop.permute.xlu0 %1025 }
 0x137   : > { %v8807_v61 = vpop.permute.xlu1 %553 }
 0x138   : > { %13953 = vst [vmem:[#allocation85_spill] sm:$0xff] %v8807_v61  ;;  %1037 = vrot.lane.b32.xlu0 %v8801_v34, %s7842_s21 }
 0x13a   : > { %v8818_v24 = vpop.permute.xlu0 %1437 }
 0x13b   : > { %v1148_v45 = vpop.permute.xlu1 %1147 }
 0x13c   : > { %1449 = vrot.lane.b32.xlu0 %v8822_v39, %s7845_s28 }
 0x13e   : > { %v8826_v61 = vpop.permute.xlu0 %1153 }
 0x13f   : > { %13957 = vst [vmem:[#allocation87_spill] sm:$0xff] %v8826_v61  ;;  %v1150_v46 = vpop.permute.xlu1 %1149 }
 0x140   : > { %1165 = vrot.lane.b32.xlu0 %v8822_v39, %s7846_s29 }
 0x142   : > { %v8830_v30 = vpop.permute.xlu0 %1533 }
 0x143   : > { %v1244_v26 = vpop.permute.xlu1 %1243 }
 0x144   : > { %1545 = vrot.lane.b32.xlu0 %v8070_v55, %s7847_s30 }
 0x146   : > { %v8835_v51 = vpop.permute.xlu0 %899 }
 0x147   : > { %13958 = vst [vmem:[#allocation88_spill] sm:$0xff] %v8835_v51  ;;  %v8837_v41 = vpop.permute.xlu1 %895 }
 0x148   : > { %911 = vrot.lane.b32.xlu0 %v8067_v54, %s7843_s26 }
 0x14a   : > { %v8846_v39 = vpop.permute.xlu0 %1343 }
 0x14b   : > { %v1246_v57 = vpop.permute.xlu1 %1245 }
 0x14c   : > { %1355 = vrot.lane.b32.xlu0 %v8851_v42, %s7844_s27  ;;  %v405_v42 = vrot.slane %v8125_v11, 7 }
 0x14e   : > { %v8855_v51 = vpop.permute.xlu0 %901  ;;  %v8887_v15 = vsel %vm409_vm9, %v13648_v4, %v405_v42 }
 0x14f   : > { %13960 = vst [vmem:[#allocation90_spill] sm:$0xff] %v8855_v51  ;;  %v8858_v54 = vpop.permute.xlu1 %781  ;;  %13965 = vst [vmem:[#allocation95_spill] sm:$0xff] %v8887_v15  ;;  %v8904_v4 = vsel %vm13653_vm0, %v8332_v40, %v8887_v15  ;;  %vm1756_vm0 = vcmask 97280  }
 0x150   : > { %13961 = vst [vmem:[#allocation91_spill] sm:$0xff] %v8858_v54  ;;  %913 = vrot.lane.b32.xlu0 %v8070_v55, %s7843_s26  ;;  %v8876_v54 = vsel %vm13649_vm6, %v690_v12, %v8867_v47  ;;  %v13966_v12 = vrot.slane %v8140_v17, 7  ;;  %13968 = vst [vmem:[#allocation96_spill] sm:$0xff] %v8904_v4  ;;  %vm13656_vm6 = vcmp.eq.s32.totalorder %v8748_v0, 1  ;;  %v1724_v40 = vsel %vm1723_vm14, %v8904_v4, %v892_v20 }
 0x151   : > { %13963 = vst [vmem:[#allocation93_spill] sm:$0xff] %v8876_v54 }
 0x152   : > { %v8863_v43 = vpop.permute.xlu0 %1345 }
 0x153   : > { %13962 = vst [vmem:[#allocation92_spill] sm:$0xff] %v8863_v43  ;;  %v8871_v51 = vpop.permute.xlu1 %1023 }
 0x154   : > { %1357 = vrot.lane.b32.xlu0 %v8876_v54, %s7844_s27 }
 0x156   : > { %v8880_v55 = vpop.permute.xlu0 %1441 }
 0x157   : > { %13964 = vst [vmem:[#allocation94_spill] sm:$0xff] %v8880_v55  ;;  %v1436_v11 = vpop.permute.xlu1 %1435  ;;  %v8898_v55 = vsel %vm409_vm9, %v13967_v37, %v13966_v12 }
 0x158   : > { %1041 = vrot.lane.b32.xlu0 %v8876_v54, %s7842_s21  ;;  %v13969_v54 = vrot.slane %v8146_v19, 7  ;;  %v8920_v37 = vsel %vm13660_vm13, %v8898_v55, %v430_v7  ;;  %vm1888_vm13 = vcmask 293888  }
 0x159   : > { %13971 = vst [vmem:[#allocation98_spill] sm:$0xff] %v8920_v37 }
 0x15a   : > { %v8906_v43 = vpop.permute.xlu0 %1251  ;;  %v8913_v1 = vsel %vm409_vm9, %v405_v42, %v13969_v54  ;;  %v1757_v54 = vsel %vm1756_vm0, %v1724_v40, %v8726_v8 }
 0x15b   : > { %13970 = vst [vmem:[#allocation97_spill] sm:$0xff] %v8913_v1  ;;  %v8915_v61 = vpop.permute.xlu1 %1151  ;;  %v8930_v19 = vsel %vm13656_vm6, %v8352_v44, %v8913_v1  ;;  %v1790_v12 = vsel %vm1789_vm2, %v1757_v54, %v1148_v45  ;;  %vm1855_vm6 = vcmask 244736  }
 0x15c   : > { %1453 = vrot.lane.b32.xlu0 %v8920_v37, %s7845_s28  ;;  %13972 = vst [vmem:[#allocation99_spill] sm:$0xff] %v8930_v19  ;;  %v1725_v20 = vsel %vm1723_vm14, %v8930_v19, %v8797_v3  ;;  %v1823_v44 = vsel %vm1822_vm11, %v1790_v12, %v1244_v26  ;;  %v14009_v19 = vld [vmem:[#allocation49_spill] sm:$0xff] }
 0x15d   : > { %v1758_v29 = vsel %vm1756_vm0, %v1725_v20, %v8746_v33  ;;  %v1856_v40 = vsel %vm1855_vm6, %v1823_v44, %v8788_v60  ;;  %v646_v20 = vrot.slane %v8137_v16, 1  ;;  %v14010_v1 = vrot.slane %v14009_v19, 7 }
 0x15e   : > { %v8932_v42 = vpop.permute.xlu0 %1631  ;;  %v1791_v8 = vsel %vm1789_vm2, %v1758_v29, %v1150_v46  ;;  %v1889_v26 = vsel %vm1888_vm13, %v1856_v40, %v1436_v11  ;;  %v645_v46 = vrot.slane %v8130_v14, 1 }
 0x15f   : > { %v1532_v7 = vpop.permute.xlu1 %1531  ;;  %v1824_v45 = vsel %vm1822_vm11, %v1791_v8, %v1246_v57 }
 0x160   : > { %1169 = vrot.lane.b32.xlu0 %v8920_v37, %s7846_s29  ;;  %v1922_v33 = vsel %vm1921_vm1, %v1889_v26, %v1532_v7  ;;  %v1857_v57 = vsel %vm1855_vm6, %v1824_v45, %v8795_v36  ;;  %v8969_v11 = vsel %vm666_vm12, %v644_v50, %v645_v46  ;;  %v13979_v26 = vrot.slane %v8143_v18, 7 }
 0x161   : > { %v1890_v36 = vsel %vm1888_vm13, %v1857_v57, %v8818_v24  ;;  %v8995_v24 = vsel %vm666_vm12, %v645_v46, %v646_v20  ;;  %v1726_v46 = vsel %vm1723_vm14, %v8345_v48, %v8837_v41 }
 0x162   : > { %v8943_v0 = vpop.permute.xlu0 %903  ;;  %v1923_v50 = vsel %vm1921_vm1, %v1890_v36, %v8830_v30 }
 0x163   : > { %v1248_v22 = vpop.permute.xlu1 %1247 }
 0x164   : > { %1549 = vrot.lane.b32.xlu0 %v8130_v14, %s7847_s30 }
 0x166   : > { %v8954_v3 = vpop.permute.xlu0 %1347 }
 0x167   : > { %v1628_v54 = vpop.permute.xlu1 %1627 }
 0x168   : > { %915 = vrot.lane.b32.xlu0 %v8073_v56, %s7843_s26  ;;  %v1955_v29 = vsel %vm1954_vm15, %v1922_v33, %v1628_v54  ;;  %v8977_v56 = vsel %vm13667_vm8, %v8844_v35, %v8969_v11 }
 0x169   : > { %6552 = vmatprep.mubr.msk.f32.mxu0 %vm2001_vm4, %v1955_v29 }
 0x16a   : > { %v8965_v60 = vpop.permute.xlu0 %787 }
 0x16b   : > { %13973 = vst [vmem:[#allocation100_spill] sm:$0xff] %v8965_v60  ;;  %v8971_v7 = vpop.permute.xlu1 %1249  ;;  %v14020_v60 = vld [vmem:[#allocation59_spill] sm:$0xff] }
 0x16c   : > { %1359 = vrot.lane.b32.xlu0 %v8977_v56, %s7844_s27 }
 0x16f   : > { %v8984_v12 = vpop.permute.xlu0 %493  ;;  %v1630_v44 = vpop.permute.xlu1 %1629 }
 0x170   : > { %13974 = vst [vmem:[#allocation101_spill] sm:$0xff] %v8984_v12  ;;  %vm13669_vm10 = vcmp.eq.s32.totalorder %v8984_v12, 1  ;;  %v1956_v35 = vsel %vm1954_vm15, %v1923_v50, %v1630_v44  ;;  %917 = vrot.lane.b32.xlu0 %v8130_v14, %s7843_s26  ;;  %v9014_v14 = vsel %vm13668_vm3, %v8867_v47, %v8995_v24  ;;  %vm13671_vm3 = vcmp.eq.s32.totalorder %v8475_v59, 1 }
 0x171   : > { %6553 = vmatmul.mubr.msk.f32.vlgmr.msra.gmra.mrb[0].mxu0 %vm2001_vm4, %v1956_v35  ;;  %v9002_v30 = vsel %vm13669_vm10, %v8089_v62, %v8567_v21  ;;  %v13978_v47 = vrot.slane %v8260_v27, 7  ;;  %v647_v44 = vrot.slane %v8140_v17, 1  ;;  %v13674_v35 = vrot.slane %v8118_v9, 7 }
 0x172   : > { %1443 = vrot.lane.b32.xlu1 %v9002_v30, %s7845_s28 }
 0x173   : > { %v9006_v8 = vpop.permute.xlu0 %505  ;;  %v9008_v40 = vpop.permute.xlu1 %1027 }
 0x174   : > { %13975 = vst [vmem:[#allocation102_spill] sm:$0xff] %v9006_v8  ;;  %vm580_vm8 = vcmp.eq.s32.totalorder %v9006_v8, 1  ;;  %1361 = vrot.lane.b32.xlu0 %v9014_v14, %s7844_s27 }
 0x175   : > { %v9023_v62 = vsel %vm580_vm8, %v8168_v31, %v8097_v63  ;;  %v9039_v63 = vsel %vm409_vm9, %v13979_v26, %v13978_v47 }
 0x176   : > { %13976 = vst [vmem:[#allocation103_spill] sm:$0xff] %v9023_v62  ;;  %1159 = vrot.lane.b32.xlu1 %v9002_v30, %s7846_s29  ;;  %v9057_v29 = vsel %vm13671_vm3, %v9039_v63, %v8898_v55 }
 0x177   : > { %v9027_v21 = vpop.permute.xlu0 %517  ;;  %v1440_v45 = vpop.permute.xlu1 %1439  ;;  %13981 = vst [vmem:[#allocation106_spill] sm:$0xff] %v9057_v29 }
 0x178   : > { %13977 = vst [vmem:[#allocation104_spill] sm:$0xff] %v9027_v21  ;;  %vm13670_vm10 = vcmp.eq.s32.totalorder %v9027_v21, 1  ;;  %1045 = vrot.lane.b32.xlu0 %v9014_v14, %s7842_s21 }
 0x179   : > { %v9045_v31 = vsel %vm13670_vm10, %v8290_v23, %v8176_v32  ;;  %v1759_v32 = vsel %vm1756_vm0, %v1726_v46, %v8871_v51  ;;  %vm13681_vm10 = vcmp.eq.s32.totalorder %v8555_v5, 1 }
 0x17a   : > { %1539 = vrot.lane.b32.xlu1 %v8412_v38, %s7847_s30  ;;  %v1792_v57 = vsel %vm1789_vm2, %v1759_v32, %v8915_v61 }
 0x17b   : > { %v9049_v33 = vpop.permute.xlu0 %529  ;;  %v9051_v54 = vpop.permute.xlu1 %1029  ;;  %v1825_v36 = vsel %vm1822_vm11, %v1792_v57, %v1248_v22 }
 0x17c   : > { %13980 = vst [vmem:[#allocation105_spill] sm:$0xff] %v9049_v33  ;;  %1457 = vrot.lane.b32.xlu0 %v9057_v29, %s7845_s28  ;;  %v1858_v41 = vsel %vm1855_vm6, %v1825_v36, %v8846_v39 }
 0x17d   : > { %v1891_v61 = vsel %vm1888_vm13, %v1858_v41, %v1440_v45  ;;  %v13984_v45 = vrot.slane %v8122_v10, 7  ;;  %v14084_v52 = vld [vmem:[#allocation103_spill] sm:$0xff] }
 0x17e   : > { %1255 = vrot.lane.b32.xlu1 %v8412_v38, %s7848_s8 }
 0x17f   : > { %v9071_v55 = vpop.permute.xlu0 %541  ;;  %v9073_v50 = vpop.permute.xlu1 %1155  ;;  %v9100_v47 = vsel %vm409_vm9, %v13674_v35, %v13984_v45  ;;  %v13997_v35 = vld [vmem:[#allocation19_spill] sm:$0xff] }
 0x180   : > { %13982 = vst [vmem:[#allocation107_spill] sm:$0xff] %v9071_v55  ;;  %1173 = vrot.lane.b32.xlu0 %v9057_v29, %s7846_s29  ;;  %13985 = vst [vmem:[#allocation109_spill] sm:$0xff] %v9100_v47 }
 0x182   : > { %1635 = vrot.lane.b32.xlu1 %v8783_v25, %s7849_s11 }
 0x183   : > { %v9082_v51 = vpop.permute.xlu0 %547  ;;  %v1536_v38 = vpop.permute.xlu1 %1535 }
 0x184   : > { %13983 = vst [vmem:[#allocation108_spill] sm:$0xff] %v9082_v51  ;;  %v1924_v22 = vsel %vm1921_vm1, %v1891_v61, %v1536_v38  ;;  %1553 = vrot.lane.b32.xlu0 %v8140_v17, %s7847_s30  ;;  %v13992_v61 = vld [vmem:[#allocation40_spill] sm:$0xff] }
 0x185   : > { %v1957_v39 = vsel %vm1954_vm15, %v1924_v22, %v8932_v42  ;;  %v13994_v38 = vld [vmem:[#allocation92_spill] sm:$0xff] }
 0x186   : > { %1257 = vrot.lane.b32.xlu1 %v8064_v53, %s7848_s8  ;;  %6555 = vmatprep.mubr.msk.f32.mxu0 %vm2001_vm4, %v1957_v39  ;;  %v685_v53 = vsel %vm666_vm12, %v646_v20, %v647_v44  ;;  %v13989_v20 = vld [vmem:[#allocation87_spill] sm:$0xff] }
 0x187   : > { %v9102_v26 = vpop.permute.xlu0 %556  ;;  %v9104_v46 = vpop.permute.xlu1 %1157  ;;  %v9125_v57 = vsel %vm13681_vm10, %v8969_v11, %v685_v53 }
 0x188   : > { %13986 = vst [vmem:[#allocation110_spill] sm:$0xff] %v9102_v26  ;;  %vm13672_vm3 = vcmp.eq.s32.totalorder %v9102_v26, 1  ;;  %919 = vrot.lane.b32.xlu0 %v8137_v16, %s7843_s26  ;;  %v1727_v16 = vsel %vm1723_vm14, %v8362_v2, %v8774_v58  ;;  %v14001_v26 = vld [vmem:[#allocation44_spill] sm:$0xff] }
 0x189   : > { %v9116_v10 = vsel %vm13672_vm3, %v9100_v47, %v8758_v13  ;;  %v1760_v13 = vsel %vm1756_vm0, %v1727_v16, %v8805_v6  ;;  %vm13673_vm3 = vcmp.eq.s32.totalorder %v13992_v61, 1  ;;  %v13993_v6 = vld [vmem:[#allocation28_spill] sm:$0xff]  ;;  %v13995_v16 = vld [vmem:[#allocation94_spill] sm:$0xff] }
 0x18a   : > { %13987 = vst [vmem:[#allocation111_spill] sm:$0xff] %v9116_v10  ;;  %1637 = vrot.lane.b32.xlu1 %v8801_v34, %s7849_s11  ;;  %v648_v34 = vrot.slane %v8143_v18, 1  ;;  %v1793_v11 = vsel %vm1789_vm2, %v1760_v13, %v13989_v20  ;;  %v14017_v10 = vld [vmem:[#allocation60_spill] sm:$0xff] }
 0x18b   : > { %v9120_v42 = vpop.permute.xlu0 %559  ;;  %v1538_v32 = vpop.permute.xlu1 %1537  ;;  %v1826_v58 = vsel %vm1822_vm11, %v1793_v11, %v8971_v7 }
 0x18c   : > { %13988 = vst [vmem:[#allocation112_spill] sm:$0xff] %v9120_v42  ;;  %1363 = vrot.lane.b32.xlu0 %v9125_v57, %s7844_s27  ;;  %v1859_v22 = vsel %vm1855_vm6, %v1826_v58, %v13994_v38 }
 0x18d   : > { %v1892_v13 = vsel %vm1888_vm13, %v1859_v22, %v13995_v16  ;;  %v13998_v22 = vrot.slane %v13997_v35, 7 }
 0x18e   : > { %1035 = vrot.lane.b32.xlu1 %v8783_v25, %s7842_s21  ;;  %v684_v25 = vsel %vm666_vm12, %v647_v44, %v648_v34  ;;  %v1925_v20 = vsel %vm1921_vm1, %v1892_v13, %v1538_v32  ;;  %v7805_v32 = vld [vmem:[%s8058_s14 + $0x40] sm:$0xff] }
 0x18f   : > { %v9139_v36 = vpop.permute.xlu0 %562  ;;  %v9141_v41 = vpop.permute.xlu1 %784  ;;  %v9161_v7 = vsel %vm13673_vm3, %v8995_v24, %v684_v25  ;;  %v13996_v24 = vld [vmem:[#allocation42_spill] sm:$0xff] }
 0x190   : > { %13990 = vst [vmem:[#allocation87_spill] sm:$0xff] %v9139_v36  ;;  %13991 = vst [vmem:[#allocation113_spill] sm:$0xff] %v9141_v41  ;;  %921 = vrot.lane.b32.xlu0 %v8140_v17, %s7843_s26  ;;  %v9164_v17 = vld [vmem:[%s8058_s14 + $0x88] sm:$0xff]  ;;  %vm13677_vm3 = vcmp.eq.s32.totalorder %v13996_v24, 1  ;;  %v14002_v24 = vld [vmem:[#allocation93_spill] sm:$0xff] }
 0x191   : > { %v13675_v44 = vrot.slane %v9164_v17, 7  ;;  %v651_v49 = vrot.slane %v9164_v17, 1 }
 0x192   : > { %1447 = vrot.lane.b32.xlu1 %v13993_v6, %s7845_s28 }
 0x193   : > { %v9154_v39 = vpop.permute.xlu0 %1349  ;;  %v9156_v45 = vpop.permute.xlu1 %1253  ;;  %v424_v16 = vsel %vm409_vm9, %v13998_v22, %v13675_v44 }
 0x194   : > { %1365 = vrot.lane.b32.xlu0 %v9161_v7, %s7844_s27 }
 0x196   : > { %1163 = vrot.lane.b32.xlu1 %v13993_v6, %s7846_s29 }
 0x197   : > { %v9174_v11 = vpop.permute.xlu0 %1033  ;;  %v1634_v58 = vpop.permute.xlu1 %1633 }
 0x198   : > { %v1958_v38 = vsel %vm1954_vm15, %v1925_v20, %v1634_v58  ;;  %1049 = vrot.lane.b32.xlu0 %v9161_v7, %s7842_s21  ;;  %v9194_v20 = vsel %vm13677_vm3, %v424_v16, %v9039_v63  ;;  %v7806_v63 = vld [vmem:[%s8058_s14 + $0x48] sm:$0xff]  ;;  %vm13683_vm3 = vcmp.eq.s32.totalorder %v14001_v26, 1 }
 0x199   : > { %6556 = vmatmul.mubr.msk.f32.gmra.mrb[2].mxu0 %vm2001_vm4, %v1958_v38  ;;  %13999 = vst [vmem:[#allocation28_spill] sm:$0xff] %v9194_v20  ;;  %v14000_v38 = vld [vmem:[#allocation89_spill] sm:$0xff] }
 0x19a   : > { %1543 = vrot.lane.b32.xlu1 %v7805_v32, %s7847_s30 }
 0x19b   : > { %v9189_v13 = vpop.permute.xlu0 %1445 }
 0x19c   : > { %1461 = vrot.lane.b32.xlu0 %v9194_v20, %s7845_s28 }
 0x19e   : > { %1259 = vrot.lane.b32.xlu1 %v7805_v32, %s7848_s8  ;;  %v649_v32 = vrot.slane %v8260_v27, 1 }
 0x19f   : > { %v9199_v58 = vpop.permute.xlu0 %1161 }
 0x1a0   : > { %1177 = vrot.lane.b32.xlu0 %v9194_v20, %s7846_s29  ;;  %v9221_v21 = vsel %vm666_vm12, %v648_v34, %v649_v32  ;;  %v14003_v34 = vld [vmem:[#allocation55_spill] sm:$0xff] }
 0x1a1   : > { %vm13694_vm10 = vcmp.eq.s32.totalorder %v14003_v34, 1 }
 0x1a2   : > { %1639 = vrot.lane.b32.xlu1 %v14000_v38, %s7849_s11 }
 0x1a3   : > { %v9205_v22 = vpop.permute.xlu0 %1541 }
 0x1a4   : > { %1557 = vrot.lane.b32.xlu0 %v8260_v27, %s7847_s30 }
 0x1a6   : > { %1261 = vrot.lane.b32.xlu1 %v7806_v63, %s7848_s8  ;;  %v9228_v63 = vsel %vm13683_vm3, %v685_v53, %v9221_v21 }
 0x1a7   : > { %v9211_v44 = vpop.permute.xlu0 %907 }
 0x1a8   : > { %923 = vrot.lane.b32.xlu0 %v8143_v18, %s7843_s26  ;;  %v650_v18 = vrot.slane %v13997_v35, 1 }
 0x1aa   : > { %1641 = vrot.lane.b32.xlu1 %v14002_v24, %s7849_s11  ;;  %v682_v53 = vsel %vm666_vm12, %v649_v32, %v650_v18  ;;  %v7807_v32 = vld [vmem:[%s8058_s14 + $0x50] sm:$0xff]  ;;  %v681_v20 = vsel %vm666_vm12, %v650_v18, %v651_v49 }
 0x1ab   : > { %v9223_v59 = vpop.permute.xlu0 %1351  ;;  %v9248_v35 = vsel %vm13694_vm10, %v684_v25, %v682_v53  ;;  %v14005_v25 = vld [vmem:[#allocation57_spill] sm:$0xff]  ;;  %vm13710_vm10 = vcmp.eq.s32.totalorder %v9049_v33, 1 }
 0x1ac   : > { %1367 = vrot.lane.b32.xlu0 %v9228_v63, %s7844_s27 }
 0x1ae   : > { %1039 = vrot.lane.b32.xlu1 %v14000_v38, %s7842_s21  ;;  %v14004_v38 = vld [vmem:[#allocation47_spill] sm:$0xff] }
 0x1af   : > { %v9235_v24 = vpop.permute.xlu0 %909  ;;  %vm13690_vm3 = vcmp.eq.s32.totalorder %v14004_v38, 1 }
 0x1b0   : > { %925 = vrot.lane.b32.xlu0 %v8260_v27, %s7843_s26  ;;  %v9266_v61 = vsel %vm13690_vm3, %v14005_v25, %v424_v16  ;;  %v7808_v16 = vld [vmem:[%s8058_s14 + $0x58] sm:$0xff] }
 0x1b1   : > { %14006 = vst [vmem:[#allocation92_spill] sm:$0xff] %v9266_v61  ;;  %v14007_v25 = vld [vmem:[#allocation53_spill] sm:$0xff] }
 0x1b2   : > { %1451 = vrot.lane.b32.xlu1 %v9023_v62, %s7845_s28  ;;  %v652_v38 = vrot.slane %v14007_v25, 1 }
 0x1b3   : > { %v9244_v26 = vpop.permute.xlu0 %1353 }
 0x1b4   : > { %1369 = vrot.lane.b32.xlu0 %v9248_v35, %s7844_s27  ;;  %v680_v12 = vsel %vm666_vm12, %v651_v49, %v652_v38  ;;  %v7809_v49 = vld [vmem:[%s8058_s14 + $0x60] sm:$0xff] }
 0x1b6   : > { %1167 = vrot.lane.b32.xlu1 %v9023_v62, %s7846_s29  ;;  %v14024_v62 = vld [vmem:[#allocation36_spill] sm:$0xff] }
 0x1b7   : > { %v9254_v27 = vpop.permute.xlu0 %1037 }
 0x1b8   : > { %1053 = vrot.lane.b32.xlu0 %v9248_v35, %s7842_s21 }
 0x1ba   : > { %1547 = vrot.lane.b32.xlu1 %v7807_v32, %s7847_s30 }
 0x1bb   : > { %v9261_v34 = vpop.permute.xlu0 %1449 }
 0x1bc   : > { %1465 = vrot.lane.b32.xlu0 %v9266_v61, %s7845_s28 }
 0x1be   : > { %1263 = vrot.lane.b32.xlu1 %v7807_v32, %s7848_s8  ;;  %v14008_v32 = vld [vmem:[#allocation52_spill] sm:$0xff] }
 0x1bf   : > { %v9271_v5 = vpop.permute.xlu0 %1165  ;;  %vm13704_vm3 = vcmp.eq.s32.totalorder %v14008_v32, 1 }
 0x1c0   : > { %1181 = vrot.lane.b32.xlu0 %v9266_v61, %s7846_s29  ;;  %v14013_v61 = vrot.slane %v14007_v25, 7 }
 0x1c2   : > { %1643 = vrot.lane.b32.xlu1 %v8977_v56, %s7849_s11 }
 0x1c3   : > { %v9277_v8 = vpop.permute.xlu0 %1545 }
 0x1c4   : > { %1561 = vrot.lane.b32.xlu0 %v9164_v17, %s7847_s30 }
 0x1c6   : > { %1265 = vrot.lane.b32.xlu1 %v7808_v16, %s7848_s8  ;;  %v9298_v16 = vsel %vm13704_vm3, %v682_v53, %v680_v12  ;;  %v14014_v53 = vrot.slane %v9164_v17, 7  ;;  %vm13714_vm3 = vcmp.eq.s32.totalorder %v14017_v10, 1 }
 0x1c7   : > { %v9284_v28 = vpop.permute.xlu0 %911 }
 0x1c8   : > { %1277 = vrot.lane.b32.xlu0 %v9164_v17, %s7848_s8  ;;  %v9317_v32 = vsel %vm409_vm9, %v14014_v53, %v14013_v61  ;;  %v654_v53 = vrot.slane %v14009_v19, 1 }
 0x1ca   : > { %1645 = vrot.lane.b32.xlu1 %v9014_v14, %s7849_s11  ;;  %v14011_v14 = vld [vmem:[#allocation54_spill] sm:$0xff] }
 0x1cb   : > { %v9294_v2 = vpop.permute.xlu0 %1355  ;;  %v14012_v47 = vrot.slane %v14011_v14, 7  ;;  %v653_v61 = vrot.slane %v14011_v14, 1  ;;  %v14019_v14 = vld [vmem:[#allocation63_spill] sm:$0xff] }
 0x1cc   : > { %1657 = vrot.lane.b32.xlu0 %v9298_v16, %s7849_s11 }
 0x1cd   : > { %v421_v36 = vsel %vm409_vm9, %v14012_v47, %v14010_v1  ;;  %v14016_v1 = vld [vmem:[#allocation38_spill] sm:$0xff]  ;;  %v9341_v33 = vsel %vm666_vm12, %v652_v38, %v653_v61  ;;  %v9359_v38 = vpop.permute.xlu1 %905 }
 0x1ce   : > { %1043 = vrot.lane.b32.xlu1 %v8977_v56, %s7842_s21  ;;  %v9324_v56 = vsel %vm13710_vm10, %v421_v36, %v9317_v32  ;;  %v9350_v29 = vsel %vm13714_vm3, %v681_v20, %v9341_v33  ;;  %vm13723_vm10 = vcmp.eq.s32.totalorder %v14019_v14, 1  ;;  %vm13726_vm3 = vcmp.eq.s32.totalorder %v14020_v60, 1  ;;  %v7810_v14 = vld [vmem:[%s8058_s14 + $0x68] sm:$0xff] }
 0x1cf   : > { %v9319_v48 = vpop.permute.xlu0 %913  ;;  %14015 = vst [vmem:[#allocation94_spill] sm:$0xff] %v9324_v56  ;;  %v9379_v41 = vsel %vm13726_vm3, %v9221_v21, %v681_v20  ;;  %v14023_v20 = vld [vmem:[#allocation88_spill] sm:$0xff] }
 0x1d0   : > { %1467 = vrot.lane.b32.xlu0 %v9324_v56, %s7845_s28  ;;  %v1728_v15 = vsel %vm1723_vm14, %v14024_v62, %v14023_v20  ;;  %v14029_v62 = vld [vmem:[#allocation50_spill] sm:$0xff] }
 0x1d1   : > { %v9381_v37 = vpop.permute.xlu1 %1031  ;;  %v14030_v20 = vrot.slane %v14029_v62, 7 }
 0x1d2   : > { %1455 = vrot.lane.b32.xlu1 %v14016_v1, %s7845_s28 }
 0x1d3   : > { %v9330_v47 = vpop.permute.xlu0 %1357 }
 0x1d4   : > { %1563 = vrot.lane.b32.xlu0 %v14007_v25, %s7847_s30 }
 0x1d6   : > { %1171 = vrot.lane.b32.xlu1 %v14016_v1, %s7846_s29  ;;  %v9357_v1 = vsel %vm666_vm12, %v653_v61, %v654_v53 }
 0x1d7   : > { %v9345_v4 = vpop.permute.xlu0 %1041  ;;  %v9368_v10 = vsel %vm13723_vm10, %v680_v12, %v9357_v1 }
 0x1d8   : > { %14018 = vst [vmem:[#allocation19_spill] sm:$0xff] %v9345_v4  ;;  %1659 = vrot.lane.b32.xlu0 %v9350_v29, %s7849_s11 }
 0x1da   : > { %1551 = vrot.lane.b32.xlu1 %v7809_v49, %s7847_s30 }
 0x1db   : > { %v9363_v18 = vpop.permute.xlu0 %1453 }
 0x1dc   : > { %1661 = vrot.lane.b32.xlu0 %v9368_v10, %s7849_s11 }
 0x1de   : > { %1267 = vrot.lane.b32.xlu1 %v7809_v49, %s7848_s8 }
 0x1df   : > { %v9374_v61 = vpop.permute.xlu0 %1169 }
 0x1e0   : > { %14021 = vst [vmem:[#allocation89_spill] sm:$0xff] %v9374_v61  ;;  %1055 = vrot.lane.b32.xlu0 %v9379_v41, %s7842_s21  ;;  %v14027_v61 = vld [vmem:[#allocation61_spill] sm:$0xff] }
 0x1e1   : > { %v14028_v4 = vrot.slane %v14027_v61, 7 }
 0x1e2   : > { %1647 = vrot.lane.b32.xlu1 %v9125_v57, %s7849_s11 }
 0x1e3   : > { %v9387_v12 = vpop.permute.xlu0 %1549 }
 0x1e4   : > { %1183 = vrot.lane.b32.xlu0 %v9324_v56, %s7846_s29  ;;  %v1444_v49 = vpop.permute.xlu1 %1443  ;;  %v1761_v56 = vsel %vm1756_vm0, %v1728_v15, %v9008_v40 }
 0x1e6   : > { %1269 = vrot.lane.b32.xlu1 %v7810_v14, %s7848_s8  ;;  %v14026_v14 = vld [vmem:[#allocation64_spill] sm:$0xff] }
 0x1e7   : > { %v9393_v60 = vpop.permute.xlu0 %915  ;;  %vm13724_vm10 = vcmp.eq.s32.totalorder %v14026_v14, 1  ;;  %v14035_v14 = vld [vmem:[#allocation24_spill] sm:$0xff] }
 0x1e8   : > { %14022 = vst [vmem:[#allocation93_spill] sm:$0xff] %v9393_v60  ;;  %1279 = vrot.lane.b32.xlu0 %v14007_v25, %s7848_s8  ;;  %v9397_v21 = vpop.permute.xlu1 %1159  ;;  %v1794_v60 = vsel %vm1789_vm2, %v1761_v56, %v9073_v50 }
 0x1e9   : > { %v1827_v15 = vsel %vm1822_vm11, %v1794_v60, %v8906_v43 }
 0x1ea   : > { %1649 = vrot.lane.b32.xlu1 %v9161_v7, %s7849_s11  ;;  %v9419_v7 = vsel %vm409_vm9, %v14030_v20, %v14028_v4  ;;  %v655_v4 = vrot.slane %v14029_v62, 1  ;;  %v14033_v20 = vld [vmem:[#allocation66_spill] sm:$0xff] }
 0x1eb   : > { %v9406_v42 = vpop.permute.xlu0 %1359  ;;  %v9430_v50 = vsel %vm13724_vm10, %v9419_v7, %v421_v36  ;;  %vm13732_vm10 = vcmp.eq.s32.totalorder %v14033_v20, 1  ;;  %v14034_v36 = vld [vmem:[#allocation90_spill] sm:$0xff] }
 0x1ec   : > { %14025 = vst [vmem:[#allocation57_spill] sm:$0xff] %v9406_v42  ;;  %1375 = vrot.lane.b32.xlu0 %v9350_v29, %s7844_s27  ;;  %v1540_v25 = vpop.permute.xlu1 %1539  ;;  %14032 = vst [vmem:[#allocation49_spill] sm:$0xff] %v9430_v50 }
 0x1ee   : > { %1047 = vrot.lane.b32.xlu1 %v9125_v57, %s7842_s21  ;;  %v1860_v57 = vsel %vm1855_vm6, %v1827_v15, %v8954_v3  ;;  %v9453_v3 = vsel %vm666_vm12, %v654_v53, %v655_v4 }
 0x1ef   : > { %v9425_v40 = vpop.permute.xlu0 %917  ;;  %v1893_v43 = vsel %vm1888_vm13, %v1860_v57, %v1444_v49 }
 0x1f0   : > { %14031 = vst [vmem:[#allocation53_spill] sm:$0xff] %v9425_v40  ;;  %1471 = vrot.lane.b32.xlu0 %v9430_v50, %s7845_s28  ;;  %v9434_v56 = vpop.permute.xlu1 %1255  ;;  %v1729_v40 = vsel %vm1723_vm14, %v14035_v14, %v14034_v36  ;;  %v1926_v42 = vsel %vm1921_vm1, %v1893_v43, %v1540_v25  ;;  %v13730_v14 = vrot.slane %v14027_v61, 1  ;;  %v7811_v43 = vld [vmem:[%s8058_s14 + $0x70] sm:$0xff] }
 0x1f1   : > { %v1762_v49 = vsel %vm1756_vm0, %v1729_v40, %v9051_v54  ;;  %v9472_v54 = vsel %vm13732_vm10, %v9341_v33, %v9453_v3  ;;  %v13728_v40 = vmov 0.0|0.0  }
 0x1f2   : > { %1459 = vrot.lane.b32.xlu1 %v9045_v31, %s7845_s28  ;;  %v1795_v57 = vsel %vm1789_vm2, %v1762_v49, %v9104_v46  ;;  %6660 = vmatprep.subr.bf16.mxu0 %v13728_v40  ;;  %v9486_v33 = vsel %vm666_vm12, %v655_v4, %v13730_v14 }
 0x1f3   : > { %v9442_v60 = vpop.permute.xlu0 %1361  ;;  %v1828_v53 = vsel %vm1822_vm11, %v1795_v57, %v9156_v45 }
 0x1f4   : > { %1567 = vrot.lane.b32.xlu0 %v14009_v19, %s7847_s30  ;;  %v1636_v62 = vpop.permute.xlu1 %1635  ;;  %v1861_v45 = vsel %vm1855_vm6, %v1828_v53, %v9154_v39  ;;  %v7812_v53 = vld [vmem:[%s8058_s14 + $0x78] sm:$0xff] }
 0x1f5   : > { %v1959_v15 = vsel %vm1954_vm15, %v1926_v42, %v1636_v62  ;;  %v14036_v42 = vld [vmem:[#allocation70_spill] sm:$0xff]  ;;  %v1894_v36 = vsel %vm1888_vm13, %v1861_v45, %v9189_v13 }
 0x1f6   : > { %1175 = vrot.lane.b32.xlu1 %v9045_v31, %s7846_s29  ;;  %6558 = vmatprep.mubr.msk.f32.mxu0 %vm2001_vm4, %v1959_v15  ;;  %vm13727_vm3 = vcmp.eq.s32.totalorder %v14036_v42, 1  ;;  %v1927_v49 = vsel %vm1921_vm1, %v1894_v36, %v9205_v22  ;;  %v14037_v36 = vld [vmem:[#allocation51_spill] sm:$0xff]  ;;  %v14042_v42 = vld [vmem:[#allocation46_spill] sm:$0xff] }
 0x1f7   : > { %v9466_v25 = vpop.permute.xlu0 %1045  ;;  %v9496_v39 = vsel %vm13727_vm3, %v9357_v1, %v9486_v33  ;;  %vm13735_vm3 = vcmp.eq.s32.totalorder %v9071_v55, 1  ;;  %vm13736_vm10 = vcmp.eq.s32.totalorder %v14042_v42, 1  ;;  %v14065_v42 = vrot.slane %v8118_v9, 7 }
 0x1f8   : > { %1663 = vrot.lane.b32.xlu0 %v9472_v54, %s7849_s11  ;;  %v1258_v46 = vpop.permute.xlu1 %1257 }
 0x1fa   : > { %1555 = vrot.lane.b32.xlu1 %v7811_v43, %s7847_s30 }
 0x1fb   : > { %v9490_v62 = vpop.permute.xlu0 %1457 }
 0x1fc   : > { %1665 = vrot.lane.b32.xlu0 %v9496_v39, %s7849_s11  ;;  %v1638_v4 = vpop.permute.xlu1 %1637 }
 0x1fd   : > { %v1960_v15 = vsel %vm1954_vm15, %v1927_v49, %v1638_v4  ;;  %v1730_v49 = vsel %vm1723_vm14, %v14037_v36, %v8943_v0  ;;  %v14043_v0 = vld [vmem:[#allocation34_spill] sm:$0xff] }
 0x1fe   : > { %1271 = vrot.lane.b32.xlu1 %v7811_v43, %s7848_s8  ;;  %6559 = vmatmul.mubr.msk.f32.gmra.mrb[4].mxu0 %vm2001_vm4, %v1960_v15  ;;  %v14038_v15 = vld [vmem:[#allocation68_spill] sm:$0xff]  ;;  %v1731_v36 = vsel %vm1723_vm14, %v14043_v0, %v9359_v38  ;;  %v14048_v0 = vld [vmem:[#allocation71_spill] sm:$0xff] }
 0x1ff   : > { %v9505_v13 = vpop.permute.xlu0 %1173 }
 0x200   : > { %1059 = vrot.lane.b32.xlu0 %v9350_v29, %s7842_s21  ;;  %v9509_v1 = vpop.permute.xlu1 %1035 }
 0x202   : > { %1651 = vrot.lane.b32.xlu1 %v9228_v63, %s7849_s11 }
 0x203   : > { %v9513_v22 = vpop.permute.xlu0 %1553 }
 0x204   : > { %1187 = vrot.lane.b32.xlu0 %v9430_v50, %s7846_s29  ;;  %v1448_v57 = vpop.permute.xlu1 %1447 }
 0x206   : > { %1273 = vrot.lane.b32.xlu1 %v7812_v53, %s7848_s8  ;;  %v14039_v53 = vrot.slane %v14038_v15, 7 }
 0x207   : > { %v9519_v45 = vpop.permute.xlu0 %919 }
 0x208   : > { %1283 = vrot.lane.b32.xlu0 %v14009_v19, %s7848_s8  ;;  %v9523_v29 = vpop.permute.xlu1 %1163  ;;  %v14040_v19 = vld [vmem:[#allocation62_spill] sm:$0xff] }
 0x209   : > { %v14041_v40 = vrot.slane %v14040_v19, 7 }
 0x20a   : > { %1653 = vrot.lane.b32.xlu1 %v9248_v35, %s7849_s11  ;;  %v1763_v35 = vsel %vm1756_vm0, %v1730_v49, %v9381_v37 }
 0x20b   : > { %v9527_v43 = vpop.permute.xlu0 %1363  ;;  %v9541_v14 = vsel %vm409_vm9, %v14041_v40, %v14039_v53  ;;  %v1796_v20 = vsel %vm1789_vm2, %v1763_v35, %v9397_v21  ;;  %v1764_v21 = vsel %vm1756_vm0, %v1731_v36, %v9174_v11  ;;  %v14046_v35 = vld [vmem:[#allocation75_spill] sm:$0xff] }
 0x20c   : > { %1379 = vrot.lane.b32.xlu0 %v9472_v54, %s7844_s27  ;;  %v1544_v4 = vpop.permute.xlu1 %1543  ;;  %v1829_v50 = vsel %vm1822_vm11, %v1796_v20, %v9434_v56  ;;  %v9561_v37 = vsel %vm13735_vm3, %v9541_v14, %v9419_v7  ;;  %v1797_v56 = vsel %vm1789_vm2, %v1764_v21, %v9199_v58  ;;  %v657_v20 = vrot.slane %v14040_v19, 1 }
 0x20d   : > { %14044 = vst [vmem:[#allocation54_spill] sm:$0xff] %v9561_v37  ;;  %v1862_v7 = vsel %vm1855_vm6, %v1829_v50, %v9223_v59  ;;  %v1830_v49 = vsel %vm1822_vm11, %v1797_v56, %v1258_v46  ;;  %vm13742_vm3 = vcmp.eq.s32.totalorder %v14046_v35, 1  ;;  %v14047_v58 = vrot.slane %v14027_v61, 1  ;;  %v7813_v56 = vld [vmem:[%s8058_s14 + $0x80] sm:$0xff] }
 0x20e   : > { %1051 = vrot.lane.b32.xlu1 %v9228_v63, %s7842_s21  ;;  %v9571_v63 = vsel %vm13736_vm10, %v9317_v32, %v8290_v23  ;;  %v1895_v11 = vsel %vm1888_vm13, %v1862_v7, %v1448_v57  ;;  %v13738_v50 = vrot.slane %v14038_v15, 1  ;;  %v1863_v57 = vsel %vm1855_vm6, %v1830_v49, %v9244_v26 }
 0x20f   : > { %v9555_v40 = vpop.permute.xlu0 %921  ;;  %14045 = vst [vmem:[#allocation88_spill] sm:$0xff] %v9571_v63  ;;  %v1928_v23 = vsel %vm1921_vm1, %v1895_v11, %v1544_v4  ;;  %v9592_v32 = vsel %vm666_vm12, %v14047_v58, %v657_v20  ;;  %vm13737_vm10 = vcmp.eq.s32.totalorder %v14048_v0, 1  ;;  %v1896_v21 = vsel %vm1888_vm13, %v1863_v57, %v9261_v34 }
 0x210   : > { %1475 = vrot.lane.b32.xlu0 %v9561_v37, %s7845_s28  ;;  %v1260_v38 = vpop.permute.xlu1 %1259  ;;  %v9607_v19 = vsel %vm13742_vm3, %v9453_v3, %v9592_v32  ;;  %v9616_v26 = vsel %vm666_vm12, %v657_v20, %v13738_v50  ;;  %v1929_v20 = vsel %vm1921_vm1, %v1896_v21, %v9277_v8  ;;  %v14049_v21 = vld [vmem:[#allocation58_spill] sm:$0xff] }
 0x211   : > { %v9628_v7 = vsel %vm13737_vm10, %v9486_v33, %v9616_v26  ;;  %vm13741_vm10 = vcmp.eq.s32.totalorder %v9082_v51, 1  ;;  %v14056_v51 = vld [vmem:[#allocation84_spill] sm:$0xff] }
 0x212   : > { %1463 = vrot.lane.b32.xlu1 %v9571_v63, %s7845_s28 }
 0x213   : > { %v9582_v53 = vpop.permute.xlu0 %1365 }
 0x214   : > { %1571 = vrot.lane.b32.xlu0 %v14027_v61, %s7847_s30  ;;  %v1640_v59 = vpop.permute.xlu1 %1639 }
 0x215   : > { %v1961_v46 = vsel %vm1954_vm15, %v1928_v23, %v1640_v59 }
 0x216   : > { %1179 = vrot.lane.b32.xlu1 %v9571_v63, %s7846_s29  ;;  %6561 = vmatprep.mubr.msk.f32.mxu0 %vm2001_vm4, %v1961_v46  ;;  %v1732_v46 = vsel %vm1723_vm14, %v9002_v30, %v9211_v44  ;;  %v14068_v63 = vld [vmem:[#allocation67_spill] sm:$0xff] }
 0x217   : > { %v9601_v4 = vpop.permute.xlu0 %1049 }
 0x218   : > { %1667 = vrot.lane.b32.xlu0 %v9607_v19, %s7849_s11  ;;  %v1262_v36 = vpop.permute.xlu1 %1261 }
 0x21a   : > { %1559 = vrot.lane.b32.xlu1 %v7813_v56, %s7847_s30 }
 0x21b   : > { %v9622_v3 = vpop.permute.xlu0 %1461 }
 0x21c   : > { %1669 = vrot.lane.b32.xlu0 %v9628_v7, %s7849_s11  ;;  %v1642_v49 = vpop.permute.xlu1 %1641 }
 0x21d   : > { %v1962_v34 = vsel %vm1954_vm15, %v1929_v20, %v1642_v49  ;;  %v14050_v20 = vld [vmem:[#allocation78_spill] sm:$0xff] }
 0x21e   : > { %1275 = vrot.lane.b32.xlu1 %v7813_v56, %s7848_s8  ;;  %6562 = vmatmul.mubr.msk.f32.gmra.mrb[6].mxu0 %vm2001_vm4, %v1962_v34  ;;  %v14051_v49 = vrot.slane %v14050_v20, 7  ;;  %v14052_v34 = vld [vmem:[#allocation69_spill] sm:$0xff] }
 0x21f   : > { %v9637_v11 = vpop.permute.xlu0 %1177  ;;  %v14053_v50 = vrot.slane %v14052_v34, 7 }
 0x220   : > { %1063 = vrot.lane.b32.xlu0 %v9472_v54, %s7842_s21  ;;  %v9641_v33 = vpop.permute.xlu1 %1039 }
 0x221   : > { %v9679_v30 = vsel %vm409_vm9, %v14053_v50, %v14051_v49 }
 0x222   : > { %1655 = vrot.lane.b32.xlu1 %v9379_v41, %s7849_s11 }
 0x223   : > { %v9645_v23 = vpop.permute.xlu0 %1557 }
 0x224   : > { %1191 = vrot.lane.b32.xlu0 %v9561_v37, %s7846_s29  ;;  %v1452_v8 = vpop.permute.xlu1 %1451 }
 0x226   : > { %1371 = vrot.lane.b32.xlu1 %v9379_v41, %s7844_s27 }
 0x227   : > { %v9651_v59 = vpop.permute.xlu0 %923 }
 0x228   : > { %1287 = vrot.lane.b32.xlu0 %v14027_v61, %s7848_s8  ;;  %v9655_v54 = vpop.permute.xlu1 %1167  ;;  %v1765_v61 = vsel %vm1756_vm0, %v1732_v46, %v9509_v1  ;;  %v9688_v1 = vsel %vm13741_vm10, %v9679_v30, %v9541_v14  ;;  %v9704_v14 = vld [vmem:[%s8058_s14 + $0x98] sm:$0xff]  ;;  %vm13759_vm10 = vcmp.eq.s32.totalorder %v14056_v51, 1  ;;  %v1734_v51 = vsel %vm1723_vm14, %v13993_v6, %v9284_v28 }
 0x229   : > { %v1798_v57 = vsel %vm1789_vm2, %v1765_v61, %v9523_v29  ;;  %14054 = vst [vmem:[#allocation36_spill] sm:$0xff] %v9688_v1  ;;  %v14055_v29 = vld [vmem:[#allocation76_spill] sm:$0xff] }
 0x22a   : > { %1373 = vrot.lane.b32.xlu1 %v9298_v16, %s7844_s27  ;;  %v1831_v44 = vsel %vm1822_vm11, %v1798_v57, %v1260_v38  ;;  %v1733_v46 = vsel %vm1723_vm14, %v14055_v29, %v9235_v24 }
 0x22b   : > { %v9659_v58 = vpop.permute.xlu0 %1367  ;;  %v1766_v38 = vsel %vm1756_vm0, %v1733_v46, %v9254_v27  ;;  %v1864_v57 = vsel %vm1855_vm6, %v1831_v44, %v9294_v2  ;;  %v659_v2 = vrot.slane %v14052_v34, 1  ;;  %v13743_v44 = vrot.slane %v14050_v20, 1 }
 0x22c   : > { %1383 = vrot.lane.b32.xlu0 %v9607_v19, %s7844_s27  ;;  %v1548_v41 = vpop.permute.xlu1 %1547  ;;  %v1799_v50 = vsel %vm1789_vm2, %v1766_v38, %v9271_v5  ;;  %v1897_v49 = vsel %vm1888_vm13, %v1864_v57, %v1452_v8  ;;  %v14057_v8 = vrot.slane %v14038_v15, 1 }
 0x22d   : > { %v1832_v24 = vsel %vm1822_vm11, %v1799_v50, %v1262_v36  ;;  %v1930_v27 = vsel %vm1921_vm1, %v1897_v49, %v1548_v41  ;;  %v14058_v50 = vld [vmem:[#allocation74_spill] sm:$0xff] }
 0x22e   : > { %1469 = vrot.lane.b32.xlu1 %v14049_v21, %s7845_s28  ;;  %v1865_v36 = vsel %vm1855_vm6, %v1832_v24, %v9330_v47  ;;  %v9727_v41 = vsel %vm666_vm12, %v14057_v8, %v659_v2  ;;  %vm13745_vm3 = vcmp.eq.s32.totalorder %v14058_v50, 1  ;;  %v14064_v50 = vld [vmem:[#allocation85_spill] sm:$0xff] }
 0x22f   : > { %v9682_v55 = vpop.permute.xlu0 %925  ;;  %v9735_v34 = vsel %vm13759_vm10, %v9592_v32, %v9727_v41 }
 0x230   : > { %1479 = vrot.lane.b32.xlu0 %v9688_v1, %s7845_s28  ;;  %v9695_v61 = vpop.permute.xlu1 %1263 }
 0x232   : > { %1565 = vrot.lane.b32.xlu1 %v9704_v14, %s7847_s30 }
 0x233   : > { %v9710_v29 = vpop.permute.xlu0 %1369 }
 0x234   : > { %1575 = vrot.lane.b32.xlu0 %v14038_v15, %s7847_s30  ;;  %v1644_v5 = vpop.permute.xlu1 %1643  ;;  %v9746_v15 = vsel %vm666_vm12, %v659_v2, %v13743_v44 }
 0x235   : > { %v1963_v46 = vsel %vm1954_vm15, %v1930_v27, %v1644_v5  ;;  %v9758_v57 = vsel %vm13745_vm3, %v9616_v26, %v9746_v15  ;;  %vm13758_vm3 = vcmp.eq.s32.totalorder %v14064_v50, 1 }
 0x236   : > { %927 = vrot.lane.b32.xlu1 %v7813_v56, %s7843_s26  ;;  %6564 = vmatprep.mubr.msk.f32.mxu0 %vm2001_vm4, %v1963_v46  ;;  %v1898_v56 = vsel %vm1888_vm13, %v1865_v36, %v9363_v18  ;;  %14059 = vst [vmem:[#allocation61_spill] sm:$0xff] %v9758_v57 }
 0x237   : > { %v9729_v38 = vpop.permute.xlu0 %1053  ;;  %v1931_v24 = vsel %vm1921_vm1, %v1898_v56, %v9387_v12  ;;  %v9779_v12 = vld [vmem:[%s13510_s2] ss:$0 sm:$0xff] }
 0x238   : > { %1671 = vrot.lane.b32.xlu0 %v9735_v34, %s7849_s11  ;;  %v9740_v47 = vpop.permute.xlu1 %1265  ;;  %14061 = vst [vmem:[#allocation90_spill] sm:$0xff] %v9779_v12 }
 0x23a   : > { %929 = vrot.lane.b32.xlu1 %v9164_v17, %s7843_s26 }
 0x23b   : > { %v9752_v32 = vpop.permute.xlu0 %1465 }
 0x23c   : > { %1673 = vrot.lane.b32.xlu0 %v9758_v57, %s7849_s11  ;;  %v1646_v49 = vpop.permute.xlu1 %1645 }
 0x23d   : > { %v1964_v18 = vsel %vm1954_vm15, %v1931_v24, %v1646_v49  ;;  %v9802_v24 = vld [vmem:[%s8058_s14 + $0xc0] sm:$0xff] }
 0x23e   : > { %1057 = vrot.lane.b32.xlu1 %v9298_v16, %s7842_s21  ;;  %6565 = vmatmul.mubr.msk.f32.gmra.mrb[8].mxu0 %vm2001_vm4, %v1964_v18  ;;  %14063 = vst [vmem:[#allocation51_spill] sm:$0xff] %v9802_v24 }
 0x23f   : > { %v9768_v17 = vpop.permute.xlu0 %1181 }
 0x240   : > { %14060 = vst [vmem:[#allocation50_spill] sm:$0xff] %v9768_v17  ;;  %1067 = vrot.lane.b32.xlu0 %v9607_v19, %s7842_s21  ;;  %v9772_v26 = vpop.permute.xlu1 %1043 }
 0x242   : > { %1185 = vrot.lane.b32.xlu1 %v14049_v21, %s7846_s29 }
 0x243   : > { %v9781_v27 = vpop.permute.xlu0 %1561 }
 0x244   : > { %1195 = vrot.lane.b32.xlu0 %v9688_v1, %s7846_s29  ;;  %v6554_v16 = vpop.f32.mrb[0].mxu0  ;;  %v1456_v5 = vpop.permute.xlu1 %1455  ;;  %v14066_v1 = vld [vmem:[#allocation79_spill] sm:$0xff] }
 0x245   : > { %v9786_v2 = vadd.f32 %v6554_v16, %v9779_v12  ;;  %v2168_v19 = vpop.f32.mrb[1].mxu0  ;;  %v14067_v37 = vrot.slane %v14066_v1, 7 }
 0x246   : > { %v9789_v46 = vadd.f32 %v9779_v12, %v2168_v19  ;;  %1281 = vrot.lane.b32.xlu1 %v9704_v14, %s7848_s8 }
 0x247   : > { %v9794_v36 = vmul.f32 0.70710677, %v9786_v2  ;;  %v9796_v8 = vpop.permute.xlu0 %1277  ;;  %v9826_v21 = vsel %vm409_vm9, %v14067_v37, %v14065_v42  ;;  %v14070_v42 = vld [vmem:[#allocation86_spill] sm:$0xff] }
 0x248   : > { %14062 = vst [vmem:[#allocation24_spill] sm:$0xff] %v9796_v8  ;;  %v9799_v56 = vmul.f32 0.70710677, %v9789_v46  ;;  %1291 = vrot.lane.b32.xlu0 %v9802_v24, %s7848_s8  ;;  %v9806_v49 = vpop.permute.xlu1 %1171  ;;  %v1767_v24 = vsel %vm1756_vm0, %v1734_v51, %v9641_v33  ;;  %v9842_v51 = vsel %vm13758_vm3, %v9826_v21, %v9679_v30  ;;  %v1735_v37 = vsel %vm1723_vm14, %v14070_v42, %v9319_v48  ;;  %v9852_v33 = vld [vmem:[%s8058_s14 + $0xd8] sm:$0xff] }
 0x249   : > { %v2456_v18 = vand.u32 2147483647, %v9794_v36  ;;  %v1800_v28 = vsel %vm1789_vm2, %v1767_v24, %v9655_v54  ;;  %14069 = vst [vmem:[#allocation68_spill] sm:$0xff] %v9842_v51  ;;  %14071 = vst [vmem:[#allocation62_spill] sm:$0xff] %v9852_v33  ;;  %v661_v54 = vrot.slane %v9852_v33, 1  ;;  %v14073_v30 = vld [vmem:[#allocation89_spill] sm:$0xff] }
 0x24a   : > { %v2455_v16 = vand.u32 2147483647, %v9799_v56  ;;  %1377 = vrot.lane.b32.xlu1 %v9368_v10, %s7844_s27  ;;  %v1833_v8 = vsel %vm1822_vm11, %v1800_v28, %v9695_v61  ;;  %v14072_v61 = vld [vmem:[#allocation19_spill] sm:$0xff] }
 0x24b   : > { %v2488_v19 = vmul.f32 0.3275911, %v2456_v18  ;;  %v9812_v44 = vpop.permute.xlu0 %1657  ;;  %v9862_v28 = vld [vmem:[%s8058_s14 + $0xa8] sm:$0xff] }
 0x24c   : > { %v2487_v0 = vmul.f32 0.3275911, %v2455_v16  ;;  %1387 = vrot.lane.b32.xlu0 %v9735_v34, %s7844_s27  ;;  %v1552_v35 = vpop.permute.xlu1 %1551 }
 0x24d   : > { %v2520_v57 = vadd.f32 1.0, %v2488_v19  ;;  %v14074_v19 = vld [vmem:[#allocation57_spill] sm:$0xff] }
 0x24e   : > { %v2519_v6 = vadd.f32 1.0, %v2487_v0  ;;  %1473 = vrot.lane.b32.xlu1 %v14068_v63, %s7845_s28  ;;  %v1866_v48 = vsel %vm1855_vm6, %v1833_v8, %v14074_v19 }
 0x24f   : > { %7453 = vrcp.f32 %v2520_v57  ;;  %v9836_v1 = vpop.permute.xlu0 %1467  ;;  %v1768_v57 = vsel %vm1756_vm0, %v1735_v37, %v14072_v61  ;;  %v1899_v42 = vsel %vm1888_vm13, %v1866_v48, %v1456_v5  ;;  %v14075_v37 = vld [vmem:[#allocation81_spill] sm:$0xff]  ;;  %v2871_v48 = vsub.f32 0.0, %v2455_v16 }
 0x250   : > { %7455 = vrcp.f32 %v2519_v6  ;;  %1483 = vrot.lane.b32.xlu0 %v9842_v51, %s7845_s28  ;;  %v9849_v0 = vpop.permute.xlu1 %1267  ;;  %v1801_v24 = vsel %vm1789_vm2, %v1768_v57, %v14073_v30  ;;  %vm13768_vm3 = vcmp.eq.s32.totalorder %v14075_v37, 1  ;;  %v1932_v61 = vsel %vm1921_vm1, %v1899_v42, %v1552_v35  ;;  %v9874_v57 = vld [vmem:[%s8058_s14 + $0xd0] sm:$0xff] }
 0x251   : > { %v1834_v6 = vsel %vm1822_vm11, %v1801_v24, %v9740_v47  ;;  %14076 = vst [vmem:[#allocation34_spill] sm:$0xff] %v9874_v57  ;;  %v14077_v30 = vrot.slane %v14050_v20, 1  ;;  %v2872_v47 = vsub.f32 0.0, %v2456_v18  ;;  %v7819_v35 = vld [vmem:[%s8058_s14 + $0x90] sm:$0xff]  ;;  %v2903_v33 = vmul.f32 %v2871_v48, %v2455_v16 }
 0x252   : > { %1569 = vrot.lane.b32.xlu1 %v9862_v28, %s7847_s30  ;;  %v1867_v24 = vsel %vm1855_vm6, %v1834_v6, %v9442_v60 }
 0x253   : > { %v9869_v50 = vpop.permute.xlu0 %1563  ;;  %v9882_v19 = vsel %vm666_vm12, %v14077_v30, %v661_v54  ;;  %v14078_v30 = vld [vmem:[#allocation91_spill] sm:$0xff] }
 0x254   : > { %1579 = vrot.lane.b32.xlu0 %v9874_v57, %s7847_s30  ;;  %v1648_v8 = vpop.permute.xlu1 %1647  ;;  %v9896_v20 = vsel %vm13768_vm3, %v9727_v41, %v9882_v19  ;;  %vm13764_vm10 = vcmp.eq.s32.totalorder %v14078_v30, 1  ;;  %v14079_v41 = vrot.slane %v8118_v9, 1  ;;  %vm2392_vm3 = vcmp.ge.f32.partialorder %v9794_v36, 0.0 }
 0x255   : > { %v1965_v5 = vsel %vm1954_vm15, %v1932_v61, %v1648_v8  ;;  %v2904_v61 = vmul.f32 %v2872_v47, %v2456_v18  ;;  %v1900_v8 = vsel %vm1888_vm13, %v1867_v24, %v9490_v62 }
 0x256   : > { %931 = vrot.lane.b32.xlu1 %v7819_v35, %s7843_s26  ;;  %6567 = vmatprep.mubr.msk.f32.mxu0 %vm2001_vm4, %v1965_v5  ;;  %v9911_v37 = vsel %vm666_vm12, %v661_v54, %v14079_v41  ;;  %v1933_v9 = vsel %vm1921_vm1, %v1900_v8, %v9513_v22  ;;  %v2935_v41 = vmul.f32 1.442695, %v2903_v33 }
 0x257   : > { %v9890_v42 = vpop.permute.xlu0 %1659  ;;  %v9919_v18 = vsel %vm13764_vm10, %v9746_v15, %v9911_v37  ;;  %v2937_v16 = vmul.f32 1.442695, %v2904_v61 }
 0x258   : > { %1675 = vrot.lane.b32.xlu0 %v9896_v20, %s7849_s11  ;;  %v9901_v60 = vpop.permute.xlu1 %1269  ;;  %14080 = vst [vmem:[#allocation78_spill] sm:$0xff] %v9919_v18 }
 0x259   : > { %v7454_v6 = vpop.eup %7453  ;;  %7457 = vpow2.f32 %v2937_v16  ;;  %v14081_v16 = vld [vmem:[#allocation112_spill] sm:$0xff] }
 0x25a   : > { %v7456_v5 = vpop.eup %7455  ;;  %v2584_v35 = vmul.f32 1.0614054, %v7454_v6  ;;  %933 = vrot.lane.b32.xlu1 %v9704_v14, %s7843_s26  ;;  %7459 = vpow2.f32 %v2935_v41  ;;  %vm13770_vm10 = vcmp.eq.s32.totalorder %v14081_v16, 1 }
 0x25b   : > { %v9913_v17 = vpop.permute.xlu0 %1661  ;;  %v2583_v62 = vmul.f32 1.0614054, %v7456_v5 }
 0x25c   : > { %v2616_v47 = vadd.f32 -1.4531521, %v2584_v35  ;;  %1677 = vrot.lane.b32.xlu0 %v9919_v18, %s7849_s11  ;;  %v1650_v14 = vpop.permute.xlu1 %1649  ;;  %v7822_v18 = vld [vmem:[%s8058_s14 + $0xa0] sm:$0xff] }
 0x25d   : > { %v1966_v54 = vsel %vm1954_vm15, %v1933_v9, %v1650_v14  ;;  %v2615_v24 = vadd.f32 -1.4531521, %v2583_v62 }
 0x25e   : > { %v2648_v48 = vmul.f32 %v7454_v6, %v2616_v47  ;;  %1061 = vrot.lane.b32.xlu1 %v9368_v10, %s7842_s21  ;;  %6568 = vmatmul.mubr.msk.f32.gmra.mrb[10].mxu0 %vm2001_vm4, %v1966_v54 }
 0x25f   : > { %v9929_v15 = vpop.permute.xlu0 %1055  ;;  %v2647_v35 = vmul.f32 %v7456_v5, %v2615_v24 }
 0x260   : > { %v2680_v30 = vadd.f32 1.4214138, %v2648_v48  ;;  %1071 = vrot.lane.b32.xlu0 %v9735_v34, %s7842_s21  ;;  %v9933_v22 = vpop.permute.xlu1 %1047 }
 0x261   : > { %v2679_v61 = vadd.f32 1.4214138, %v2647_v35 }
 0x262   : > { %v2712_v8 = vmul.f32 %v7454_v6, %v2680_v30  ;;  %1189 = vrot.lane.b32.xlu1 %v14068_v63, %s7846_s29 }
 0x263   : > { %v9937_v33 = vpop.permute.xlu0 %1183  ;;  %v2711_v10 = vmul.f32 %v7456_v5, %v2679_v61  ;;  %v7458_v35 = vpop.eup %7457 }
 0x264   : > { %v2744_v62 = vadd.f32 -0.28449672, %v2712_v8  ;;  %1199 = vrot.lane.b32.xlu0 %v9842_v51, %s7846_s29  ;;  %v1460_v47 = vpop.permute.xlu1 %1459  ;;  %v14082_v8 = vld [vmem:[#allocation95_spill] sm:$0xff] }
 0x265   : > { %v2743_v9 = vadd.f32 -0.28449672, %v2711_v10  ;;  %v9958_v10 = vsel %vm13770_vm10, %v14082_v8, %v9826_v21  ;;  %vm2391_vm10 = vcmp.ge.f32.partialorder %v9799_v56, 0.0  ;;  %v14085_v8 = vld [vmem:[#allocation53_spill] sm:$0xff]  ;;  %v2327_v56 = vmul.f32 0.5, %v9789_v46 }
 0x266   : > { %v2776_v14 = vmul.f32 %v7454_v6, %v2744_v62  ;;  %1285 = vrot.lane.b32.xlu1 %v9862_v28, %s7848_s8 }
 0x267   : > { %v9943_v34 = vpop.permute.xlu0 %1279  ;;  %v2775_v30 = vmul.f32 %v7456_v5, %v2743_v9  ;;  %v7460_v9 = vpop.eup %7459 }
 0x268   : > { %v2808_v54 = vadd.f32 0.2548296, %v2776_v14  ;;  %1295 = vrot.lane.b32.xlu0 %v9874_v57, %s7848_s8  ;;  %v9948_v24 = vpop.permute.xlu1 %1175  ;;  %v14083_v14 = vld [vmem:[#allocation93_spill] sm:$0xff]  ;;  %v10027_v57 = vld [vmem:[%s8058_s14 + $0xe0] sm:$0xff] }
 0x269   : > { %v2807_v48 = vadd.f32 0.2548296, %v2775_v30  ;;  %v1736_v51 = vsel %vm1723_vm14, %v14084_v52, %v14083_v14  ;;  %v14086_v52 = vld [vmem:[#allocation98_spill] sm:$0xff] }
 0x26a   : > { %v2840_v41 = vmul.f32 %v7454_v6, %v2808_v54  ;;  %1381 = vrot.lane.b32.xlu1 %v9496_v39, %s7844_s27  ;;  %v1769_v63 = vsel %vm1756_vm0, %v1736_v51, %v9772_v26  ;;  %v1737_v14 = vsel %vm1723_vm14, %v14086_v52, %v14085_v8  ;;  %v14087_v26 = vld [vmem:[#allocation73_spill] sm:$0xff]  ;;  %v13772_v51 = vmov -1.0  }
 0x26b   : > { %v9952_v61 = vpop.permute.xlu0 %1375  ;;  %v2839_v62 = vmul.f32 %v7456_v5, %v2807_v48  ;;  %v2423_v8 = vsel %vm2391_vm10, 1.0, %v13772_v51 }
 0x26c   : > { %v3000_v6 = vmul.f32 %v7458_v35, %v2840_v41  ;;  %1391 = vrot.lane.b32.xlu0 %v9896_v20, %s7844_s27  ;;  %v1556_v30 = vpop.permute.xlu1 %1555  ;;  %v6557_v54 = vpop.f32.mrb[2].mxu0  ;;  %v1802_v35 = vsel %vm1789_vm2, %v1769_v63, %v9806_v49  ;;  %v1770_v49 = vsel %vm1756_vm0, %v1737_v14, %v9466_v25 }
 0x26d   : > { %v9970_v21 = vadd.f32 %v6557_v54, %v9779_v12  ;;  %v2178_v5 = vpop.f32.mrb[3].mxu0  ;;  %v2999_v48 = vmul.f32 %v7460_v9, %v2839_v62  ;;  %v2424_v54 = vsel %vm2392_vm3, 1.0, %v13772_v51  ;;  %v1835_v62 = vsel %vm1822_vm11, %v1802_v35, %v9849_v0  ;;  %v10013_v51 = vld [vmem:[%s8058_s14 + $0xb8] sm:$0xff] }
 0x26e   : > { %v3032_v41 = vsub.f32 1.0, %v3000_v6  ;;  %v9978_v16 = vadd.f32 %v9779_v12, %v2178_v5  ;;  %1477 = vrot.lane.b32.xlu1 %v14087_v26, %s7845_s28  ;;  %v1803_v52 = vsel %vm1789_vm2, %v1770_v49, %v9505_v13  ;;  %v1868_v35 = vsel %vm1855_vm6, %v1835_v62, %v9527_v43 }
 0x26f   : > { %v9988_v9 = vmul.f32 0.70710677, %v9970_v21  ;;  %v9990_v6 = vpop.permute.xlu0 %1471  ;;  %v3031_v63 = vsub.f32 1.0, %v2999_v48  ;;  %v2328_v48 = vmul.f32 0.5, %v9786_v2  ;;  %v1836_v13 = vsel %vm1822_vm11, %v1803_v52, %v9901_v60 }
 0x270   : > { %v3064_v5 = vmul.f32 %v3032_v41, %v2424_v54  ;;  %v9998_v36 = vmul.f32 0.70710677, %v9978_v16  ;;  %1487 = vrot.lane.b32.xlu0 %v9958_v10, %s7845_s28  ;;  %v10002_v0 = vpop.permute.xlu1 %1271  ;;  %v1901_v2 = vsel %vm1888_vm13, %v1868_v35, %v1460_v47 }
 0x271   : > { %v2458_v25 = vand.u32 2147483647, %v9988_v9  ;;  %v3063_v14 = vmul.f32 %v3031_v63, %v2423_v8  ;;  %v1934_v62 = vsel %vm1921_vm1, %v1901_v2, %v1556_v30 }
 0x272   : > { %v3096_v41 = vadd.f32 1.0, %v3064_v5  ;;  %v2457_v54 = vand.u32 2147483647, %v9998_v36  ;;  %1573 = vrot.lane.b32.xlu1 %v10013_v51, %s7847_s30  ;;  %v14088_v5 = vld [vmem:[#allocation113_spill] sm:$0xff] }
 0x273   : > { %v2490_v63 = vmul.f32 0.3275911, %v2458_v25  ;;  %v10020_v49 = vpop.permute.xlu0 %1567  ;;  %v3095_v46 = vadd.f32 1.0, %v3063_v14  ;;  %vm13782_vm3 = vcmp.eq.s32.totalorder %v14088_v5, 1  ;;  %v1869_v14 = vsel %vm1855_vm6, %v1836_v13, %v9582_v53  ;;  %v14090_v53 = vld [vmem:[#allocation100_spill] sm:$0xff] }
 0x274   : > { %v10023_v43 = vmul.f32 %v3096_v41, %v2328_v48  ;;  %v2489_v8 = vmul.f32 0.3275911, %v2457_v54  ;;  %1583 = vrot.lane.b32.xlu0 %v10027_v57, %s7847_s30  ;;  %v1652_v60 = vpop.permute.xlu1 %1651  ;;  %v14089_v48 = vld [vmem:[#allocation9_spill] sm:$0xff]  ;;  %vm13781_vm10 = vcmp.eq.s32.totalorder %v14090_v53, 1  ;;  %v14091_v13 = vmov 0.0|0.0  }
 0x275   : > { %v2522_v52 = vadd.f32 1.0, %v2490_v63  ;;  %v1967_v47 = vsel %vm1954_vm15, %v1934_v62, %v1652_v60  ;;  %v3127_v35 = vmul.f32 %v3095_v46, %v2327_v56  ;;  %v10043_v41 = vsel %vm13782_vm3, %v9882_v19, %v14089_v48 }
 0x276   : > { %v2521_v12 = vadd.f32 1.0, %v2489_v8  ;;  %935 = vrot.lane.b32.xlu1 %v7822_v18, %s7843_s26  ;;  %6570 = vmatprep.mubr.msk.f32.mxu0 %vm2001_vm4, %v1967_v47  ;;  %v1902_v19 = vsel %vm1888_vm13, %v1869_v14, %v9622_v3  ;;  %v2874_v8 = vsub.f32 0.0, %v2458_v25  ;;  %v2873_v60 = vsub.f32 0.0, %v2457_v54 }
 0x277   : > { %7461 = vrcp.f32 %v2522_v52  ;;  %v10037_v30 = vpop.permute.xlu0 %1663  ;;  %v10045_v2 = vmul.f32 0.28867513, %v3127_v35  ;;  %v10048_v56 = vpack.c.bf16 %v10023_v43, %v3127_v35  ;;  %v1935_v62 = vsel %vm1921_vm1, %v1902_v19, %v9645_v23 }
 0x278   : > { %7463 = vrcp.f32 %v2521_v12  ;;  %1679 = vrot.lane.b32.xlu0 %v10043_v41, %s7849_s11  ;;  %v1274_v18 = vpop.permute.xlu1 %1273  ;;  %v14092_v12 = vld [vmem:[#allocation11_spill] sm:$0xff]  ;;  %v2906_v35 = vmul.f32 %v2874_v8, %v2458_v25  ;;  %v2905_v48 = vmul.f32 %v2873_v60, %v2457_v54  ;;  %v14093_v25 = vld [vmem:[#allocation106_spill] sm:$0xff]  ;;  %vm2393_vm3 = vcmp.ge.f32.partialorder %v9998_v36, 0.0 }
 0x279   : > { %6438 = vmatprep.mubr.msk.f32.mxu1 %vm1756_vm0, %v10045_v2  ;;  %6662 = vmatpush1.bf16.msra.mxu0 %v10048_v56  ;;  %v10067_v46 = vsel %vm13781_vm10, %v9911_v37, %v14092_v12  ;;  %v1739_v54 = vsel %vm1723_vm14, %v14093_v25, %v9555_v40  ;;  %vm2394_vm10 = vcmp.ge.f32.partialorder %v9988_v9, 0.0 }
 0x27a   : > { %937 = vrot.lane.b32.xlu1 %v9862_v28, %s7843_s26  ;;  %6663 = vmatprep.subr.bf16.mxu0 %v14091_v13  ;;  %v2939_v53 = vmul.f32 1.442695, %v2905_v48 }
 0x27b   : > { %v10061_v63 = vpop.permute.xlu0 %1665 }
 0x27c   : > { %1681 = vrot.lane.b32.xlu0 %v10067_v46, %s7849_s11  ;;  %v1654_v3 = vpop.permute.xlu1 %1653 }
 0x27d   : > { %v1968_v28 = vsel %vm1954_vm15, %v1935_v62, %v1654_v3  ;;  %v2941_v3 = vmul.f32 1.442695, %v2906_v35 }
 0x27e   : > { %1065 = vrot.lane.b32.xlu1 %v9496_v39, %s7842_s21  ;;  %6571 = vmatmul.mubr.msk.f32.gmra.mrb[12].mxu0 %vm2001_vm4, %v1968_v28 }
 0x27f   : > { %v10077_v52 = vpop.permute.xlu0 %1059  ;;  %7465 = vpow2.f32 %v2941_v3 }
 0x280   : > { %1075 = vrot.lane.b32.xlu0 %v9896_v20, %s7842_s21  ;;  %v10081_v37 = vpop.permute.xlu1 %1051  ;;  %7467 = vpow2.f32 %v2939_v53 }
 0x281   : > { %v7462_v47 = vpop.eup %7461 }
 0x282   : > { %v7464_v23 = vpop.eup %7463  ;;  %v2586_v14 = vmul.f32 1.0614054, %v7462_v47  ;;  %1193 = vrot.lane.b32.xlu1 %v14087_v26, %s7846_s29 }
 0x283   : > { %v2585_v19 = vmul.f32 1.0614054, %v7464_v23  ;;  %v10085_v12 = vpop.permute.xlu0 %1187 }
 0x284   : > { %v2618_v39 = vadd.f32 -1.4531521, %v2586_v14  ;;  %1203 = vrot.lane.b32.xlu0 %v9958_v10, %s7846_s29  ;;  %v1464_v62 = vpop.permute.xlu1 %1463  ;;  %v1772_v14 = vsel %vm1756_vm0, %v1739_v54, %v9601_v4  ;;  %v14094_v4 = vld [vmem:[#allocation38_spill] sm:$0xff] }
 0x285   : > { %v2617_v20 = vadd.f32 -1.4531521, %v2585_v19  ;;  %v1805_v48 = vsel %vm1789_vm2, %v1772_v14, %v9637_v11  ;;  %v14095_v14 = vld [vmem:[#allocation83_spill] sm:$0xff] }
 0x286   : > { %v2650_v28 = vmul.f32 %v7462_v47, %v2618_v39  ;;  %1289 = vrot.lane.b32.xlu1 %v10013_v51, %s7848_s8  ;;  %v1838_v40 = vsel %vm1822_vm11, %v1805_v48, %v1274_v18 }
 0x287   : > { %v2649_v8 = vmul.f32 %v7464_v23, %v2617_v20  ;;  %v10094_v60 = vpop.permute.xlu0 %1283  ;;  %v1871_v18 = vsel %vm1855_vm6, %v1838_v40, %v9710_v29 }
 0x288   : > { %v2682_v5 = vadd.f32 1.4214138, %v2650_v28  ;;  %1299 = vrot.lane.b32.xlu0 %v10027_v57, %s7848_s8  ;;  %v1180_v35 = vpop.permute.xlu1 %1179  ;;  %v1738_v28 = vsel %vm1723_vm14, %v14094_v4, %v9519_v45 }
 0x289   : > { %v2681_v19 = vadd.f32 1.4214138, %v2649_v8 }
 0x28a   : > { %v2714_v39 = vmul.f32 %v7462_v47, %v2682_v5  ;;  %1385 = vrot.lane.b32.xlu1 %v9628_v7, %s7844_s27  ;;  %v1771_v5 = vsel %vm1756_vm0, %v1738_v28, %v9933_v22  ;;  %v1904_v22 = vsel %vm1888_vm13, %v1871_v18, %v9752_v32  ;;  %v10131_v28 = vld [vmem:[%s8058_s14 + $0xc8] sm:$0xff] }
 0x28b   : > { %v2713_v20 = vmul.f32 %v7464_v23, %v2681_v19  ;;  %v10105_v25 = vpop.permute.xlu0 %1379  ;;  %v1804_v3 = vsel %vm1789_vm2, %v1771_v5, %v9948_v24 }
 0x28c   : > { %v2746_v54 = vadd.f32 -0.28449672, %v2714_v39  ;;  %1395 = vrot.lane.b32.xlu0 %v10043_v41, %s7844_s27  ;;  %v1560_v11 = vpop.permute.xlu1 %1559  ;;  %v1837_v48 = vsel %vm1822_vm11, %v1804_v3, %v10002_v0  ;;  %v7466_v0 = vpop.eup %7465  ;;  %v7824_v3 = vld [vmem:[%s8058_s14 + $0xf0] sm:$0xff] }
 0x28d   : > { %v2745_v53 = vadd.f32 -0.28449672, %v2713_v20  ;;  %v14096_v20 = vld [vmem:[#allocation96_spill] sm:$0xff]  ;;  %v1870_v4 = vsel %vm1855_vm6, %v1837_v48, %v9659_v58  ;;  %v7468_v18 = vpop.eup %7467 }
 0x28e   : > { %v2778_v8 = vmul.f32 %v7462_v47, %v2746_v54  ;;  %1481 = vrot.lane.b32.xlu1 %v14095_v14, %s7845_s28  ;;  %v1903_v5 = vsel %vm1888_vm13, %v1870_v4, %v1464_v62 }
 0x28f   : > { %v2777_v45 = vmul.f32 %v7464_v23, %v2745_v53  ;;  %v10122_v19 = vpop.permute.xlu0 %1475  ;;  %v1937_v53 = vsel %vm1921_vm1, %v1904_v22, %v9781_v27  ;;  %v1936_v58 = vsel %vm1921_vm1, %v1903_v5, %v1560_v11  ;;  %v14097_v22 = vmov -1.0  }
 0x290   : > { %v2810_v39 = vadd.f32 0.2548296, %v2778_v8  ;;  %1491 = vrot.lane.b32.xlu0 %v14096_v20, %s7845_s28  ;;  %v1276_v29 = vpop.permute.xlu1 %1275  ;;  %v1970_v11 = vsel %vm1954_vm15, %v1937_v53, %v9812_v44  ;;  %v2330_v5 = vmul.f32 0.5, %v9970_v21 }
 0x291   : > { %v2809_v24 = vadd.f32 0.2548296, %v2777_v45 }
 0x292   : > { %v2842_v40 = vmul.f32 %v7462_v47, %v2810_v39  ;;  %1577 = vrot.lane.b32.xlu1 %v10131_v28, %s7847_s30  ;;  %v7825_v39 = vld [vmem:[%s8058_s14 + $0xb0] sm:$0xff] }
 0x293   : > { %v2841_v54 = vmul.f32 %v7464_v23, %v2809_v24  ;;  %v10136_v32 = vpop.permute.xlu0 %1571  ;;  %v1740_v23 = vsel %vm1723_vm14, %v9045_v31, %v9651_v59  ;;  %v2426_v31 = vsel %vm2394_vm10, 1.0, %v14097_v22 }
 0x294   : > { %v3002_v47 = vmul.f32 %v7466_v0, %v2842_v40  ;;  %1587 = vrot.lane.b32.xlu0 %v7824_v3, %s7847_s30  ;;  %v1656_v8 = vpop.permute.xlu1 %1655  ;;  %v1773_v48 = vsel %vm1756_vm0, %v1740_v23, %v10081_v37  ;;  %v2425_v40 = vsel %vm2393_vm3, 1.0, %v14097_v22  ;;  %v14098_v0 = vld [vmem:[#allocation13_spill] sm:$0xff]  ;;  %v14099_v23 = vld [vmem:[#allocation14_spill] sm:$0xff] }
 0x295   : > { %v3001_v62 = vmul.f32 %v7468_v18, %v2841_v54  ;;  %v1969_v45 = vsel %vm1954_vm15, %v1936_v58, %v1656_v8  ;;  %v1806_v36 = vsel %vm1789_vm2, %v1773_v48, %v1180_v35  ;;  %v2329_v18 = vmul.f32 0.5, %v9978_v16  ;;  %v14100_v16 = vld [vmem:[#allocation28_spill] sm:$0xff]  ;;  %v14101_v48 = vld [vmem:[#allocation50_spill] sm:$0xff] }
 0x296   : > { %v3034_v27 = vsub.f32 1.0, %v3002_v47  ;;  %939 = vrot.lane.b32.xlu1 %v7825_v39, %s7843_s26  ;;  %6573 = vmatprep.mubr.msk.f32.mxu0 %vm2001_vm4, %v1969_v45  ;;  %v1839_v4 = vsel %vm1822_vm11, %v1806_v36, %v1276_v29  ;;  %v14102_v39 = vld [vmem:[#allocation24_spill] sm:$0xff] }
 0x297   : > { %v3033_v59 = vsub.f32 1.0, %v3001_v62  ;;  %v10160_v24 = vpop.permute.xlu0 %1667  ;;  %6574 = vmatmul.mubr.msk.f32.gmra.mrb[14].mxu0 %vm2001_vm4, %v1970_v11 }
 0x298   : > { %v3066_v37 = vmul.f32 %v3034_v27, %v2426_v31  ;;  %1683 = vrot.lane.b32.xlu0 %v14098_v0, %s7849_s11  ;;  %v1372_v44 = vpop.permute.xlu1 %1371 }
 0x299   : > { %v3065_v54 = vmul.f32 %v3033_v59, %v2425_v40  ;;  %v1872_v9 = vsel %vm1855_vm6, %v1839_v4, %v1372_v44  ;;  %v14103_v4 = vld [vmem:[#allocation88_spill] sm:$0xff] }
 0x29a   : > { %v3098_v53 = vadd.f32 1.0, %v3066_v37  ;;  %v1905_v35 = vsel %vm1888_vm13, %v1872_v9, %v9836_v1  ;;  %941 = vrot.lane.b32.xlu1 %v10013_v51, %s7843_s26 }
 0x29b   : > { %v3097_v47 = vadd.f32 1.0, %v3065_v54  ;;  %v10174_v29 = vpop.permute.xlu0 %1669  ;;  %v1938_v58 = vsel %vm1921_vm1, %v1905_v35, %v9869_v50  ;;  %v1741_v50 = vsel %vm1723_vm14, %v14100_v16, %v9682_v55  ;;  %v14104_v54 = vld [vmem:[#allocation61_spill] sm:$0xff]  ;;  %v14109_v16 = vld [vmem:[#allocation18_spill] sm:$0xff] }
 0x29c   : > { %v10178_v8 = vmul.f32 %v3098_v53, %v2330_v5  ;;  %1685 = vrot.lane.b32.xlu0 %v14099_v23, %s7849_s11  ;;  %v1374_v21 = vpop.permute.xlu1 %1373  ;;  %v1971_v1 = vsel %vm1954_vm15, %v1938_v58, %v9890_v42  ;;  %v1774_v42 = vsel %vm1756_vm0, %v1741_v50, %v9729_v38 }
 0x29d   : > { %v10184_v62 = vmul.f32 %v3097_v47, %v2329_v18  ;;  %6576 = vmatprep.mubr.msk.f32.mxu0 %vm2001_vm4, %v1971_v1 }
 0x29e   : > { %1069 = vrot.lane.b32.xlu1 %v9628_v7, %s7842_s21  ;;  %v1807_v7 = vsel %vm1789_vm2, %v1774_v42, %v14101_v48 }
 0x29f   : > { %v10194_v51 = vpack.c.bf16 %v10178_v8, %v10184_v62  ;;  %v10196_v45 = vpop.permute.xlu0 %1063  ;;  %v1840_v55 = vsel %vm1822_vm11, %v1807_v7, %v14102_v39 }
 0x2a0   : > { %1079 = vrot.lane.b32.xlu0 %v10043_v41, %s7842_s21  ;;  %v1470_v27 = vpop.permute.xlu1 %1469  ;;  %v1873_v11 = vsel %vm1855_vm6, %v1840_v55, %v1374_v21 }
 0x2a1   : > { %6665 = vmatpush1.bf16.msra.mxu0 %v10194_v51  ;;  %v1906_v41 = vsel %vm1888_vm13, %v1873_v11, %v1470_v27  ;;  %v14110_v27 = vld [vmem:[#allocation92_spill] sm:$0xff] }
 0x2a2   : > { %1197 = vrot.lane.b32.xlu1 %v14095_v14, %s7846_s29  ;;  %6666 = vmatprep.subr.bf16.mxu0 %v14091_v13 }
 0x2a3   : > { %v10211_v38 = vpop.permute.xlu0 %1191 }
 0x2a4   : > { %1207 = vrot.lane.b32.xlu0 %v14096_v20, %s7846_s29  ;;  %v1566_v31 = vpop.permute.xlu1 %1565 }
 0x2a5   : > { %v1939_v59 = vsel %vm1921_vm1, %v1906_v41, %v1566_v31 }
 0x2a6   : > { %1293 = vrot.lane.b32.xlu1 %v10131_v28, %s7848_s8  ;;  %v1972_v36 = vsel %vm1954_vm15, %v1939_v59, %v9913_v17 }
 0x2a7   : > { %v10221_v37 = vpop.permute.xlu0 %1287  ;;  %6577 = vmatmul.mubr.msk.f32.gmra.mrb[16].mxu0 %vm2001_vm4, %v1972_v36 }
 0x2a8   : > { %1303 = vrot.lane.b32.xlu0 %v7824_v3, %s7848_s8  ;;  %v928_v40 = vpop.permute.xlu1 %927 }
 0x2a9   : > { %v1742_v44 = vsel %vm1723_vm14, %v14103_v4, %v928_v40 }
 0x2aa   : > { %v1775_v20 = vsel %vm1756_vm0, %v1742_v44, %v9929_v15  ;;  %1389 = vrot.lane.b32.xlu1 %v14104_v54, %s7844_s27  ;;  %v14105_v15 = vld [vmem:[#allocation111_spill] sm:$0xff] }
 0x2ab   : > { %v1808_v9 = vsel %vm1789_vm2, %v1775_v20, %v9937_v33  ;;  %v10233_v17 = vpop.permute.xlu0 %1383  ;;  %v14111_v20 = vld [vmem:[#allocation94_spill] sm:$0xff] }
 0x2ac   : > { %v1841_v5 = vsel %vm1822_vm11, %v1808_v9, %v9943_v34  ;;  %1399 = vrot.lane.b32.xlu0 %v14098_v0, %s7844_s27  ;;  %v930_v3 = vpop.permute.xlu1 %929  ;;  %v14106_v34 = vld [vmem:[#allocation25_spill] sm:$0xff]  ;;  %v14112_v9 = vld [vmem:[#allocation87_spill] sm:$0xff] }
 0x2ad   : > { %v1874_v53 = vsel %vm1855_vm6, %v1841_v5, %v9952_v61  ;;  %v14107_v61 = vld [vmem:[#allocation62_spill] sm:$0xff]  ;;  %v1743_v48 = vsel %vm1723_vm14, %v14110_v27, %v930_v3  ;;  %vm13783_vm3 = vcmp.eq.s32.totalorder %v14112_v9, 1 }
 0x2ae   : > { %1485 = vrot.lane.b32.xlu1 %v14105_v15, %s7845_s28  ;;  %v1907_v35 = vsel %vm1888_vm13, %v1874_v53, %v9990_v6  ;;  %v7826_v6 = vld [vmem:[%s8058_s14] sm:$0xff] }
 0x2af   : > { %v10245_v33 = vpop.permute.xlu0 %1479  ;;  %v1940_v18 = vsel %vm1921_vm1, %v1907_v35, %v10020_v49  ;;  %v14108_v49 = vld [vmem:[#allocation51_spill] sm:$0xff]  ;;  %v14113_v3 = vld [vmem:[#allocation78_spill] sm:$0xff] }
 0x2b0   : > { %1495 = vrot.lane.b32.xlu0 %v14106_v34, %s7845_s28  ;;  %v1058_v47 = vpop.permute.xlu1 %1057  ;;  %v1973_v0 = vsel %vm1954_vm15, %v1940_v18, %v10037_v30  ;;  %v14114_v34 = vld [vmem:[#allocation109_spill] sm:$0xff] }
 0x2b1   : > { %6579 = vmatprep.mubr.msk.f32.mxu0 %vm2001_vm4, %v1973_v0  ;;  %v1776_v39 = vsel %vm1756_vm0, %v1743_v48, %v1058_v47  ;;  %v14115_v47 = vld [vmem:[#allocation97_spill] sm:$0xff] }
 0x2b2   : > { %1581 = vrot.lane.b32.xlu1 %v14107_v61, %s7847_s30  ;;  %v10308_v0 = vsel %vm13783_vm3, %v14115_v47, %v14114_v34 }
 0x2b3   : > { %v10256_v58 = vpop.permute.xlu0 %1575 }
 0x2b4   : > { %1591 = vrot.lane.b32.xlu0 %v7826_v6, %s7847_s30  ;;  %v1186_v21 = vpop.permute.xlu1 %1185 }
 0x2b5   : > { %v1809_v11 = vsel %vm1789_vm2, %v1776_v39, %v1186_v21 }
 0x2b6   : > { %943 = vrot.lane.b32.xlu1 %v14108_v49, %s7843_s26 }
 0x2b7   : > { %v10262_v1 = vpop.permute.xlu0 %1671 }
 0x2b8   : > { %1687 = vrot.lane.b32.xlu0 %v14109_v16, %s7849_s11  ;;  %v1282_v30 = vpop.permute.xlu1 %1281 }
 0x2b9   : > { %v1842_v41 = vsel %vm1822_vm11, %v1809_v11, %v1282_v30  ;;  %v14116_v30 = vld [vmem:[#allocation90_spill] sm:$0xff] }
 0x2ba   : > { %945 = vrot.lane.b32.xlu1 %v10131_v28, %s7843_s26 }
 0x2bb   : > { %v10268_v50 = vpop.permute.xlu0 %1673 }
 0x2bc   : > { %v1378_v42 = vpop.permute.xlu1 %1377 }
 0x2bd   : > { %v1875_v28 = vsel %vm1855_vm6, %v1842_v41, %v1378_v42  ;;  %v10327_v42 = vld [vmem:[%s8058_s14 + $0xe8] sm:$0xff] }
 0x2be   : > { %1073 = vrot.lane.b32.xlu1 %v14104_v54, %s7842_s21 }
 0x2bf   : > { %v10274_v7 = vpop.permute.xlu0 %1067 }
 0x2c0   : > { %v1474_v55 = vpop.permute.xlu1 %1473 }
 0x2c1   : > { %v1908_v31 = vsel %vm1888_vm13, %v1875_v28, %v1474_v55  ;;  %v14117_v55 = vld [vmem:[#allocation34_spill] sm:$0xff] }
 0x2c2   : > { %1201 = vrot.lane.b32.xlu1 %v14105_v15, %s7846_s29 }
 0x2c3   : > { %v10283_v36 = vpop.permute.xlu0 %1195 }
 0x2c4   : > { %v1570_v59 = vpop.permute.xlu1 %1569 }
 0x2c5   : > { %v1941_v40 = vsel %vm1921_vm1, %v1908_v31, %v1570_v59 }
 0x2c6   : > { %1297 = vrot.lane.b32.xlu1 %v14107_v61, %s7848_s8  ;;  %v1974_v4 = vsel %vm1954_vm15, %v1941_v40, %v10061_v63 }
 0x2c7   : > { %6580 = vmatmul.mubr.msk.f32.gmra.mrb[18].mxu0 %vm2001_vm4, %v1974_v4  ;;  %v10298_v53 = vpop.permute.xlu0 %1291 }
 0x2c8   : > { %v932_v44 = vpop.permute.xlu1 %931 }
 0x2c9   : > { %v1744_v54 = vsel %vm1723_vm14, %v14111_v20, %v932_v44 }
 0x2ca   : > { %v1777_v5 = vsel %vm1756_vm0, %v1744_v54, %v10077_v52  ;;  %1393 = vrot.lane.b32.xlu1 %v14113_v3, %s7844_s27  ;;  %v14118_v54 = vld [vmem:[#allocation58_spill] sm:$0xff] }
 0x2cb   : > { %v1810_v63 = vsel %vm1789_vm2, %v1777_v5, %v10085_v12  ;;  %v10320_v49 = vpop.permute.xlu0 %1387 }
 0x2cc   : > { %v1843_v35 = vsel %vm1822_vm11, %v1810_v63, %v10094_v60  ;;  %v934_v18 = vpop.permute.xlu1 %933 }
 0x2cd   : > { %v1876_v52 = vsel %vm1855_vm6, %v1843_v35, %v10105_v25  ;;  %v1745_v5 = vsel %vm1723_vm14, %v14118_v54, %v934_v18 }
 0x2ce   : > { %1489 = vrot.lane.b32.xlu1 %v10308_v0, %s7845_s28  ;;  %v1909_v6 = vsel %vm1888_vm13, %v1876_v52, %v10122_v19 }
 0x2cf   : > { %v1942_v12 = vsel %vm1921_vm1, %v1909_v6, %v10136_v32  ;;  %v10343_v11 = vpop.permute.xlu0 %1483 }
 0x2d0   : > { %v1062_v60 = vpop.permute.xlu1 %1061  ;;  %v1975_v21 = vsel %vm1954_vm15, %v1942_v12, %v10160_v24 }
 0x2d1   : > { %v6560_v16 = vpop.f32.mrb[4].mxu0  ;;  %6582 = vmatprep.mubr.msk.f32.mxu0 %vm2001_vm4, %v1975_v21  ;;  %v1778_v63 = vsel %vm1756_vm0, %v1745_v5, %v1062_v60 }
 0x2d2   : > { %v10324_v25 = vadd.f32 %v6560_v16, %v14116_v30  ;;  %1585 = vrot.lane.b32.xlu1 %v10327_v42, %s7847_s30  ;;  %v2188_v19 = vpop.f32.mrb[5].mxu0 }
 0x2d3   : > { %v10332_v32 = vadd.f32 %v14116_v30, %v2188_v19  ;;  %v10348_v20 = vpop.permute.xlu0 %1579 }
 0x2d4   : > { %v10335_v27 = vmul.f32 0.70710677, %v10324_v25  ;;  %v1190_v24 = vpop.permute.xlu1 %1189 }
 0x2d5   : > { %v10338_v48 = vmul.f32 0.70710677, %v10332_v32  ;;  %v1811_v34 = vsel %vm1789_vm2, %v1778_v63, %v1190_v24 }
 0x2d6   : > { %v2460_v39 = vand.u32 2147483647, %v10335_v27  ;;  %947 = vrot.lane.b32.xlu1 %v14117_v55, %s7843_s26  ;;  %vm2396_vm10 = vcmp.ge.f32.partialorder %v10335_v27, 0.0 }
 0x2d7   : > { %v2459_v41 = vand.u32 2147483647, %v10338_v48  ;;  %v10359_v6 = vpop.permute.xlu0 %1675  ;;  %vm2395_vm3 = vcmp.ge.f32.partialorder %v10338_v48, 0.0  ;;  %v2332_v48 = vmul.f32 0.5, %v10324_v25 }
 0x2d8   : > { %v2492_v28 = vmul.f32 0.3275911, %v2460_v39  ;;  %v1286_v31 = vpop.permute.xlu1 %1285  ;;  %v2876_v47 = vsub.f32 0.0, %v2460_v39  ;;  %v2427_v27 = vsel %vm2395_vm3, 1.0, %v14097_v22 }
 0x2d9   : > { %v2491_v59 = vmul.f32 0.3275911, %v2459_v41  ;;  %v2875_v52 = vsub.f32 0.0, %v2459_v41 }
 0x2da   : > { %v2524_v40 = vadd.f32 1.0, %v2492_v28  ;;  %949 = vrot.lane.b32.xlu1 %v14107_v61, %s7843_s26  ;;  %v1844_v61 = vsel %vm1822_vm11, %v1811_v34, %v1286_v31  ;;  %v2908_v16 = vmul.f32 %v2876_v47, %v2460_v39 }
 0x2db   : > { %v2523_v4 = vadd.f32 1.0, %v2491_v59  ;;  %v2907_v28 = vmul.f32 %v2875_v52, %v2459_v41 }
 0x2dc   : > { %7469 = vrcp.f32 %v2524_v40  ;;  %v1382_v44 = vpop.permute.xlu1 %1381  ;;  %v2945_v39 = vmul.f32 1.442695, %v2908_v16 }
 0x2dd   : > { %7471 = vrcp.f32 %v2523_v4  ;;  %v1877_v12 = vsel %vm1855_vm6, %v1844_v61, %v1382_v44  ;;  %v10369_v4 = vpop.permute.xlu0 %1677  ;;  %v14119_v44 = vld [vmem:[#allocation49_spill] sm:$0xff]  ;;  %v2943_v41 = vmul.f32 1.442695, %v2907_v28 }
 0x2de   : > { %1077 = vrot.lane.b32.xlu1 %v14113_v3, %s7842_s21  ;;  %7473 = vpow2.f32 %v2945_v39 }
 0x2df   : > { %7475 = vpow2.f32 %v2943_v41 }
 0x2e0   : > { %v1478_v35 = vpop.permute.xlu1 %1477 }
 0x2e1   : > { %v1910_v3 = vsel %vm1888_vm13, %v1877_v12, %v1478_v35 }
 0x2e2   : > { %1205 = vrot.lane.b32.xlu1 %v10308_v0, %s7846_s29 }
 0x2e4   : > { %v1574_v21 = vpop.permute.xlu1 %1573 }
 0x2e5   : > { %v1943_v18 = vsel %vm1921_vm1, %v1910_v3, %v1574_v21  ;;  %v14120_v3 = vld [vmem:[#allocation99_spill] sm:$0xff] }
 0x2e6   : > { %v7470_v60 = vpop.eup %7469  ;;  %1301 = vrot.lane.b32.xlu1 %v10327_v42, %s7848_s8  ;;  %v1976_v19 = vsel %vm1954_vm15, %v1943_v18, %v10174_v29 }
 0x2e7   : > { %v7472_v24 = vpop.eup %7471  ;;  %v2588_v55 = vmul.f32 1.0614054, %v7470_v60  ;;  %6583 = vmatmul.mubr.msk.f32.gmra.mrb[20].mxu0 %vm2001_vm4, %v1976_v19 }
 0x2e8   : > { %v2587_v31 = vmul.f32 1.0614054, %v7472_v24  ;;  %v936_v59 = vpop.permute.xlu1 %935 }
 0x2e9   : > { %v2620_v40 = vadd.f32 -1.4531521, %v2588_v55  ;;  %v1746_v54 = vsel %vm1723_vm14, %v14119_v44, %v936_v59 }
 0x2ea   : > { %v2619_v5 = vadd.f32 -1.4531521, %v2587_v31  ;;  %v1779_v63 = vsel %vm1756_vm0, %v1746_v54, %v10196_v45  ;;  %1397 = vrot.lane.b32.xlu1 %v10067_v46, %s7844_s27 }
 0x2eb   : > { %v2652_v29 = vmul.f32 %v7470_v60, %v2620_v40  ;;  %v1812_v35 = vsel %vm1789_vm2, %v1779_v63, %v10211_v38  ;;  %v10387_v38 = vpop.permute.xlu0 %1071 }
 0x2ec   : > { %v2651_v34 = vmul.f32 %v7472_v24, %v2619_v5  ;;  %v1845_v47 = vsel %vm1822_vm11, %v1812_v35, %v10221_v37  ;;  %v938_v61 = vpop.permute.xlu1 %937 }
 0x2ed   : > { %v2684_v52 = vadd.f32 1.4214138, %v2652_v29  ;;  %v1878_v12 = vsel %vm1855_vm6, %v1845_v47, %v10233_v17  ;;  %v7474_v47 = vpop.eup %7473 }
 0x2ee   : > { %v2683_v45 = vadd.f32 1.4214138, %v2651_v34  ;;  %1493 = vrot.lane.b32.xlu1 %v14120_v3, %s7845_s28  ;;  %v1911_v21 = vsel %vm1888_vm13, %v1878_v12, %v10245_v33  ;;  %v7828_v33 = vld [vmem:[%s8058_s14 + $0xf8] sm:$0xff] }
 0x2ef   : > { %v2716_v18 = vmul.f32 %v7470_v60, %v2684_v52  ;;  %v1944_v37 = vsel %vm1921_vm1, %v1911_v21, %v10256_v58  ;;  %v10405_v63 = vpop.permute.xlu0 %1199  ;;  %v7476_v21 = vpop.eup %7475 }
 0x2f0   : > { %v2715_v16 = vmul.f32 %v7472_v24, %v2683_v45  ;;  %v1066_v19 = vpop.permute.xlu1 %1065  ;;  %v1977_v17 = vsel %vm1954_vm15, %v1944_v37, %v10262_v1 }
 0x2f1   : > { %v2748_v55 = vadd.f32 -0.28449672, %v2716_v18  ;;  %v6563_v28 = vpop.f32.mrb[6].mxu0  ;;  %6585 = vmatprep.mubr.msk.f32.mxu0 %vm2001_vm4, %v1977_v17 }
 0x2f2   : > { %v2747_v31 = vadd.f32 -0.28449672, %v2715_v16  ;;  %v10395_v59 = vadd.f32 %v6563_v28, %v14116_v30  ;;  %1589 = vrot.lane.b32.xlu1 %v7828_v33, %s7847_s30  ;;  %v2198_v40 = vpop.f32.mrb[7].mxu0 }
 0x2f3   : > { %v2780_v44 = vmul.f32 %v7470_v60, %v2748_v55  ;;  %v10400_v58 = vadd.f32 %v14116_v30, %v2198_v40 }
 0x2f4   : > { %v2779_v54 = vmul.f32 %v7472_v24, %v2747_v31  ;;  %v10403_v39 = vmul.f32 0.70710677, %v10395_v59  ;;  %v1194_v1 = vpop.permute.xlu1 %1193 }
 0x2f5   : > { %v2812_v5 = vadd.f32 0.2548296, %v2780_v44  ;;  %v10408_v29 = vmul.f32 0.70710677, %v10400_v58 }
 0x2f6   : > { %v2811_v41 = vadd.f32 0.2548296, %v2779_v54  ;;  %v2462_v35 = vand.u32 2147483647, %v10403_v39  ;;  %951 = vrot.lane.b32.xlu1 %v10027_v57, %s7843_s26  ;;  %v14121_v54 = vld [vmem:[#allocation67_spill] sm:$0xff]  ;;  %vm2398_vm3 = vcmp.ge.f32.partialorder %v10403_v39, 0.0 }
 0x2f7   : > { %v2844_v34 = vmul.f32 %v7470_v60, %v2812_v5  ;;  %v2461_v30 = vand.u32 2147483647, %v10408_v29  ;;  %v10418_v60 = vpop.permute.xlu0 %1295  ;;  %v1747_v5 = vsel %vm1723_vm14, %v14121_v54, %v938_v61 }
 0x2f8   : > { %v2843_v52 = vmul.f32 %v7472_v24, %v2811_v41  ;;  %v2494_v12 = vmul.f32 0.3275911, %v2462_v35  ;;  %v1290_v45 = vpop.permute.xlu1 %1289  ;;  %v2428_v24 = vsel %vm2396_vm10, 1.0, %v14097_v22  ;;  %v2331_v41 = vmul.f32 0.5, %v10332_v32 }
 0x2f9   : > { %v3004_v18 = vmul.f32 %v7474_v47, %v2844_v34  ;;  %v2493_v37 = vmul.f32 0.3275911, %v2461_v30  ;;  %v1780_v47 = vsel %vm1756_vm0, %v1747_v5, %v1066_v19  ;;  %v2877_v61 = vsub.f32 0.0, %v2461_v30 }
 0x2fa   : > { %v3003_v16 = vmul.f32 %v7476_v21, %v2843_v52  ;;  %v2526_v17 = vadd.f32 1.0, %v2494_v12  ;;  %953 = vrot.lane.b32.xlu1 %v10327_v42, %s7843_s26  ;;  %vm2397_vm10 = vcmp.ge.f32.partialorder %v10408_v29, 0.0 }
 0x2fb   : > { %v3036_v57 = vsub.f32 1.0, %v3004_v18  ;;  %v2525_v55 = vadd.f32 1.0, %v2493_v37  ;;  %v10431_v21 = vpop.permute.xlu0 %1391  ;;  %v1813_v18 = vsel %vm1789_vm2, %v1780_v47, %v1194_v1 }
 0x2fc   : > { %v3035_v28 = vsub.f32 1.0, %v3003_v16  ;;  %7477 = vrcp.f32 %v2526_v17  ;;  %v1386_v31 = vpop.permute.xlu1 %1385  ;;  %v1846_v25 = vsel %vm1822_vm11, %v1813_v18, %v1290_v45 }
 0x2fd   : > { %v3068_v40 = vmul.f32 %v3036_v57, %v2428_v24  ;;  %7479 = vrcp.f32 %v2525_v55  ;;  %v1879_v32 = vsel %vm1855_vm6, %v1846_v25, %v1386_v31  ;;  %v2909_v31 = vmul.f32 %v2877_v61, %v2461_v30 }
 0x2fe   : > { %v3067_v44 = vmul.f32 %v3035_v28, %v2427_v27  ;;  %1081 = vrot.lane.b32.xlu1 %v10067_v46, %s7842_s21  ;;  %v2878_v46 = vsub.f32 0.0, %v2462_v35 }
 0x2ff   : > { %v3100_v42 = vadd.f32 1.0, %v3068_v40  ;;  %v10450_v24 = vpop.permute.xlu0 %1487  ;;  %v2947_v30 = vmul.f32 1.442695, %v2909_v31 }
 0x300   : > { %v3099_v34 = vadd.f32 1.0, %v3067_v44  ;;  %v1482_v52 = vpop.permute.xlu1 %1481  ;;  %v2910_v55 = vmul.f32 %v2878_v46, %v2462_v35  ;;  %v14122_v35 = vld [vmem:[#allocation54_spill] sm:$0xff] }
 0x301   : > { %v10429_v12 = vmul.f32 %v3100_v42, %v2332_v48  ;;  %v1912_v16 = vsel %vm1888_vm13, %v1879_v32, %v1482_v52 }
 0x302   : > { %v10434_v37 = vmul.f32 %v3099_v34, %v2331_v41  ;;  %1209 = vrot.lane.b32.xlu1 %v14120_v3, %s7846_s29  ;;  %v2949_v48 = vmul.f32 1.442695, %v2910_v55  ;;  %v10480_v55 = vld [vmem:[%s13510_s2] ss:$0 sm:$0xff] }
 0x303   : > { %v10464_v18 = vpop.permute.xlu0 %1583 }
 0x304   : > { %v10442_v19 = vpack.c.bf16 %v10429_v12, %v10434_v37  ;;  %v1578_v17 = vpop.permute.xlu1 %1577  ;;  %7481 = vpow2.f32 %v2949_v48 }
 0x305   : > { %v1945_v1 = vsel %vm1921_vm1, %v1912_v16, %v1578_v17  ;;  %7483 = vpow2.f32 %v2947_v30 }
 0x306   : > { %v7478_v57 = vpop.eup %7477  ;;  %1305 = vrot.lane.b32.xlu1 %v7828_v33, %s7848_s8  ;;  %6668 = vmatpush1.bf16.msra.mxu0 %v10442_v19  ;;  %v1978_v3 = vsel %vm1954_vm15, %v1945_v1, %v10268_v50 }
 0x307   : > { %v7480_v45 = vpop.eup %7479  ;;  %v2590_v28 = vmul.f32 1.0614054, %v7478_v57  ;;  %6586 = vmatmul.mubr.msk.f32.gmra.mrb[22].mxu0 %vm2001_vm4, %v1978_v3  ;;  %6669 = vmatprep.subr.bf16.mxu0 %v14091_v13  ;;  %v7830_v3 = vld [vmem:[%s8058_s14 + $0x8] sm:$0xff]  ;;  %v10487_v31 = vpop.permute.xlu0 %1679 }
 0x308   : > { %v2589_v40 = vmul.f32 1.0614054, %v7480_v45  ;;  %v940_v27 = vpop.permute.xlu1 %939 }
 0x309   : > { %v2622_v44 = vadd.f32 -1.4531521, %v2590_v28  ;;  %v1748_v33 = vsel %vm1723_vm14, %v14122_v35, %v940_v27 }
 0x30a   : > { %v2621_v42 = vadd.f32 -1.4531521, %v2589_v40  ;;  %v1781_v50 = vsel %vm1756_vm0, %v1748_v33, %v10274_v7  ;;  %1401 = vrot.lane.b32.xlu1 %v14099_v23, %s7844_s27  ;;  %v14123_v23 = vld [vmem:[#allocation27_spill] sm:$0xff] }
 0x30b   : > { %v2654_v54 = vmul.f32 %v7478_v57, %v2622_v44  ;;  %v1814_v5 = vsel %vm1789_vm2, %v1781_v50, %v10283_v36  ;;  %v14124_v50 = vld [vmem:[#allocation21_spill] sm:$0xff] }
 0x30c   : > { %v2653_v41 = vmul.f32 %v7480_v45, %v2621_v42  ;;  %v1847_v34 = vsel %vm1822_vm11, %v1814_v5, %v10298_v53  ;;  %v942_v47 = vpop.permute.xlu1 %941 }
 0x30d   : > { %v2686_v52 = vadd.f32 1.4214138, %v2654_v54  ;;  %v1880_v46 = vsel %vm1855_vm6, %v1847_v34, %v10320_v49  ;;  %v1749_v29 = vsel %vm1723_vm14, %v14087_v26, %v942_v47 }
 0x30e   : > { %v2685_v7 = vadd.f32 1.4214138, %v2653_v41  ;;  %1497 = vrot.lane.b32.xlu1 %v14123_v23, %s7845_s28  ;;  %v1913_v36 = vsel %vm1888_vm13, %v1880_v46, %v10343_v11  ;;  %v7482_v5 = vpop.eup %7481  ;;  %v10503_v23 = vpop.permute.xlu0 %1681 }
 0x30f   : > { %v2718_v25 = vmul.f32 %v7478_v57, %v2686_v52  ;;  %v1946_v53 = vsel %vm1921_vm1, %v1913_v36, %v10348_v20  ;;  %v7484_v46 = vpop.eup %7483 }
 0x310   : > { %v2717_v61 = vmul.f32 %v7480_v45, %v2685_v7  ;;  %v1070_v32 = vpop.permute.xlu1 %1069  ;;  %v1979_v16 = vsel %vm1954_vm15, %v1946_v53, %v10359_v6 }
 0x311   : > { %v2750_v49 = vadd.f32 -0.28449672, %v2718_v25  ;;  %v6566_v17 = vpop.f32.mrb[8].mxu0  ;;  %6588 = vmatprep.mubr.msk.f32.mxu0 %vm2001_vm4, %v1979_v16 }
 0x312   : > { %v2749_v1 = vadd.f32 -0.28449672, %v2717_v61  ;;  %v10483_v11 = vadd.f32 %v10480_v55, %v6566_v17  ;;  %1593 = vrot.lane.b32.xlu1 %v7830_v3, %s7847_s30  ;;  %v2208_v20 = vpop.f32.mrb[9].mxu0  ;;  %v2334_v3 = vmul.f32 0.5, %v10395_v59  ;;  %s6366_s30 = sshll.u32 %s14427_s25, 5 }
 0x313   : > { %v2782_v28 = vmul.f32 %v7478_v57, %v2750_v49  ;;  %v10490_v6 = vadd.f32 %v10480_v55, %v2208_v20  ;;  %s278_s9 = scalar_lea.vmem %s13515_s7, %s6366_s30 }
 0x314   : > { %v2781_v40 = vmul.f32 %v7480_v45, %v2749_v1  ;;  %v10493_v27 = vmul.f32 0.70710677, %v10483_v11  ;;  %v1198_v44 = vpop.permute.xlu1 %1197  ;;  %v2429_v1 = vsel %vm2397_vm10, 1.0, %v14097_v22 }
 0x315   : > { %v2814_v35 = vadd.f32 0.2548296, %v2782_v28  ;;  %v10496_v33 = vmul.f32 0.70710677, %v10490_v6  ;;  %v10509_v28 = vpop.permute.xlu0 %1075 }
 0x316   : > { %v2813_v48 = vadd.f32 0.2548296, %v2781_v40  ;;  %v2464_v42 = vand.u32 2147483647, %v10493_v27  ;;  %1689 = vrot.lane.b32.xlu1 %v14124_v50, %s7849_s11  ;;  %v2333_v40 = vmul.f32 0.5, %v10400_v58 }
 0x317   : > { %v2846_v54 = vmul.f32 %v7478_v57, %v2814_v35  ;;  %v2463_v30 = vand.u32 2147483647, %v10496_v33  ;;  %v2430_v57 = vsel %vm2398_vm3, 1.0, %v14097_v22  ;;  %vm2400_vm3 = vcmp.ge.f32.partialorder %v10493_v27, 0.0 }
 0x318   : > { %v2845_v41 = vmul.f32 %v7480_v45, %v2813_v48  ;;  %v2496_v34 = vmul.f32 0.3275911, %v2464_v42  ;;  %v1294_v52 = vpop.permute.xlu1 %1293  ;;  %v1782_v48 = vsel %vm1756_vm0, %v1749_v29, %v1070_v32  ;;  %vm2399_vm10 = vcmp.ge.f32.partialorder %v10496_v33, 0.0 }
 0x319   : > { %v3006_v7 = vmul.f32 %v7482_v5, %v2846_v54  ;;  %v2495_v36 = vmul.f32 0.3275911, %v2463_v30  ;;  %v1815_v5 = vsel %vm1789_vm2, %v1782_v48, %v1198_v44  ;;  %v10527_v32 = vpop.permute.xlu0 %1203  ;;  %v2336_v27 = vmul.f32 0.5, %v10483_v11 }
 0x31a   : > { %v3005_v25 = vmul.f32 %v7484_v46, %v2845_v41  ;;  %v2528_v53 = vadd.f32 1.0, %v2496_v34  ;;  %v2880_v34 = vsub.f32 0.0, %v2464_v42  ;;  %v1848_v59 = vsel %vm1822_vm11, %v1815_v5, %v1294_v52 }
 0x31b   : > { %v3038_v61 = vsub.f32 1.0, %v3006_v7  ;;  %v2527_v16 = vadd.f32 1.0, %v2495_v36  ;;  %v2879_v46 = vsub.f32 0.0, %v2463_v30 }
 0x31c   : > { %v3037_v49 = vsub.f32 1.0, %v3005_v25  ;;  %7485 = vrcp.f32 %v2528_v53  ;;  %v1390_v45 = vpop.permute.xlu1 %1389  ;;  %v2912_v25 = vmul.f32 %v2880_v34, %v2464_v42 }
 0x31d   : > { %v3070_v17 = vmul.f32 %v3038_v61, %v2430_v57  ;;  %7487 = vrcp.f32 %v2527_v16  ;;  %v1881_v7 = vsel %vm1855_vm6, %v1848_v59, %v1390_v45  ;;  %v2911_v16 = vmul.f32 %v2879_v46, %v2463_v30 }
 0x31e   : > { %v3069_v39 = vmul.f32 %v3037_v49, %v2429_v1 }
 0x31f   : > { %v3102_v20 = vadd.f32 1.0, %v3070_v17  ;;  %v14125_v17 = vld [vmem:[#allocation36_spill] sm:$0xff]  ;;  %v2951_v29 = vmul.f32 1.442695, %v2911_v16 }
 0x320   : > { %v3101_v35 = vadd.f32 1.0, %v3069_v39  ;;  %v1486_v50 = vpop.permute.xlu1 %1485  ;;  %v2953_v39 = vmul.f32 1.442695, %v2912_v25 }
 0x321   : > { %v10515_v54 = vmul.f32 %v3102_v20, %v2334_v3  ;;  %v1914_v58 = vsel %vm1888_vm13, %v1881_v7, %v1486_v50  ;;  %v10539_v20 = vpop.permute.xlu0 %1299 }
 0x322   : > { %v10518_v41 = vmul.f32 %v3101_v35, %v2333_v40  ;;  %7489 = vpow2.f32 %v2953_v39 }
 0x323   : > { %7491 = vpow2.f32 %v2951_v29 }
 0x324   : > { %v10524_v26 = vpack.c.bf16 %v10515_v54, %v10518_v41  ;;  %v1582_v47 = vpop.permute.xlu1 %1581 }
 0x325   : > { %v1947_v36 = vsel %vm1921_vm1, %v1914_v58, %v1582_v47  ;;  %v10553_v58 = vpop.permute.xlu0 %1395 }
 0x326   : > { %v7486_v44 = vpop.eup %7485  ;;  %6671 = vmatpush1.bf16.msra.mxu0 %v10524_v26  ;;  %v1980_v52 = vsel %vm1954_vm15, %v1947_v36, %v10369_v4 }
 0x327   : > { %v7488_v53 = vpop.eup %7487  ;;  %v2592_v61 = vmul.f32 1.0614054, %v7486_v44  ;;  %6589 = vmatmul.mubr.msk.f32.gmra.mrb[24].mxu0 %vm2001_vm4, %v1980_v52  ;;  %6672 = vmatprep.subr.bf16.mxu0 %v14091_v13 }
 0x328   : > { %v2591_v57 = vmul.f32 1.0614054, %v7488_v53  ;;  %v944_v49 = vpop.permute.xlu1 %943 }
 0x329   : > { %v2624_v45 = vadd.f32 -1.4531521, %v2592_v61  ;;  %v1750_v1 = vsel %vm1723_vm14, %v14125_v17, %v944_v49 }
 0x32a   : > { %v2623_v42 = vadd.f32 -1.4531521, %v2591_v57  ;;  %v1783_v3 = vsel %vm1756_vm0, %v1750_v1, %v10387_v38  ;;  %v10569_v1 = vpop.permute.xlu0 %1491 }
 0x32b   : > { %v2656_v4 = vmul.f32 %v7486_v44, %v2624_v45  ;;  %v1816_v30 = vsel %vm1789_vm2, %v1783_v3, %v10405_v63 }
 0x32c   : > { %v2655_v40 = vmul.f32 %v7488_v53, %v2623_v42  ;;  %v1849_v35 = vsel %vm1822_vm11, %v1816_v30, %v10418_v60  ;;  %v946_v48 = vpop.permute.xlu1 %945  ;;  %v7490_v3 = vpop.eup %7489 }
 0x32d   : > { %v2688_v50 = vadd.f32 1.4214138, %v2656_v4  ;;  %v1882_v5 = vsel %vm1855_vm6, %v1849_v35, %v10431_v21  ;;  %v1751_v33 = vsel %vm1723_vm14, %v14095_v14, %v946_v48 }
 0x32e   : > { %v2687_v34 = vadd.f32 1.4214138, %v2655_v40  ;;  %v1915_v38 = vsel %vm1888_vm13, %v1882_v5, %v10450_v24  ;;  %v7492_v40 = vpop.eup %7491 }
 0x32f   : > { %v2720_v59 = vmul.f32 %v7486_v44, %v2688_v50  ;;  %v1948_v46 = vsel %vm1921_vm1, %v1915_v38, %v10464_v18 }
 0x330   : > { %v2719_v63 = vmul.f32 %v7488_v53, %v2687_v34  ;;  %v1074_v7 = vpop.permute.xlu1 %1073  ;;  %v1981_v60 = vsel %vm1954_vm15, %v1948_v46, %v10487_v31  ;;  %v2432_v46 = vsel %vm2400_vm3, 1.0, %v14097_v22 }
 0x331   : > { %v2752_v47 = vadd.f32 -0.28449672, %v2720_v59  ;;  %v6569_v36 = vpop.f32.mrb[10].mxu0  ;;  %6591 = vmatprep.mubr.msk.f32.mxu0 %vm2001_vm4, %v1981_v60 }
 0x332   : > { %v2751_v21 = vadd.f32 -0.28449672, %v2719_v63  ;;  %v10557_v25 = vadd.f32 %v10480_v55, %v6569_v36  ;;  %v2218_v24 = vpop.f32.mrb[11].mxu0 }
 0x333   : > { %v2784_v52 = vmul.f32 %v7486_v44, %v2752_v47  ;;  %v10560_v61 = vadd.f32 %v10480_v55, %v2218_v24  ;;  %v1588_v47 = vpop.permute.xlu0 %1587  ;;  %v2335_v24 = vmul.f32 0.5, %v10490_v6 }
 0x334   : > { %v2783_v18 = vmul.f32 %v7488_v53, %v2751_v21  ;;  %v10563_v16 = vmul.f32 0.70710677, %v10557_v25  ;;  %v1202_v31 = vpop.permute.xlu1 %1201 }
 0x335   : > { %v2816_v57 = vadd.f32 0.2548296, %v2784_v52  ;;  %v10566_v49 = vmul.f32 0.70710677, %v10560_v61 }
 0x336   : > { %v2815_v45 = vadd.f32 0.2548296, %v2783_v18  ;;  %v2466_v17 = vand.u32 2147483647, %v10563_v16  ;;  %v1784_v18 = vsel %vm1756_vm0, %v1751_v33, %v1074_v7  ;;  %vm2402_vm3 = vcmp.ge.f32.partialorder %v10563_v16, 0.0 }
 0x337   : > { %v2848_v39 = vmul.f32 %v7486_v44, %v2816_v57  ;;  %v2465_v42 = vand.u32 2147483647, %v10566_v49  ;;  %v1684_v11 = vpop.permute.xlu0 %1683  ;;  %v2338_v16 = vmul.f32 0.5, %v10557_v25 }
 0x338   : > { %v2847_v4 = vmul.f32 %v7488_v53, %v2815_v45  ;;  %v2498_v29 = vmul.f32 0.3275911, %v2466_v17  ;;  %v1298_v30 = vpop.permute.xlu1 %1297  ;;  %v2431_v53 = vsel %vm2399_vm10, 1.0, %v14097_v22  ;;  %vm2401_vm10 = vcmp.ge.f32.partialorder %v10566_v49, 0.0 }
 0x339   : > { %v3008_v35 = vmul.f32 %v7490_v3, %v2848_v39  ;;  %v2497_v50 = vmul.f32 0.3275911, %v2465_v42  ;;  %v1817_v39 = vsel %vm1789_vm2, %v1784_v18, %v1202_v31 }
 0x33a   : > { %v3007_v5 = vmul.f32 %v7492_v40, %v2847_v4  ;;  %v2530_v34 = vadd.f32 1.0, %v2498_v29  ;;  %v2882_v4 = vsub.f32 0.0, %v2466_v17  ;;  %v1850_v29 = vsel %vm1822_vm11, %v1817_v39, %v1298_v30 }
 0x33b   : > { %v3040_v38 = vsub.f32 1.0, %v3008_v35  ;;  %v2529_v59 = vadd.f32 1.0, %v2497_v50  ;;  %v2881_v40 = vsub.f32 0.0, %v2465_v42 }
 0x33c   : > { %v3039_v44 = vsub.f32 1.0, %v3007_v5  ;;  %7493 = vrcp.f32 %v2530_v34  ;;  %v1394_v63 = vpop.permute.xlu1 %1393  ;;  %v2914_v31 = vmul.f32 %v2882_v4, %v2466_v17 }
 0x33d   : > { %v3072_v60 = vmul.f32 %v3040_v38, %v2432_v46  ;;  %7495 = vrcp.f32 %v2529_v59  ;;  %v1883_v35 = vsel %vm1855_vm6, %v1850_v29, %v1394_v63  ;;  %v2913_v38 = vmul.f32 %v2881_v40, %v2465_v42 }
 0x33e   : > { %v3071_v36 = vmul.f32 %v3039_v44, %v2431_v53  ;;  %v10599_v44 = vpop.permute.xlu0 %1685  ;;  %v2957_v53 = vmul.f32 1.442695, %v2914_v31 }
 0x33f   : > { %v3104_v21 = vadd.f32 1.0, %v3072_v60  ;;  %v14126_v60 = vld [vmem:[#allocation68_spill] sm:$0xff] }
 0x340   : > { %v3103_v52 = vadd.f32 1.0, %v3071_v36  ;;  %v1490_v57 = vpop.permute.xlu1 %1489  ;;  %7497 = vpow2.f32 %v2957_v53 }
 0x341   : > { %v10581_v45 = vmul.f32 %v3104_v21, %v2336_v27  ;;  %v1916_v6 = vsel %vm1888_vm13, %v1883_v35, %v1490_v57  ;;  %v2955_v21 = vmul.f32 1.442695, %v2913_v38 }
 0x342   : > { %v10584_v3 = vmul.f32 %v3103_v52, %v2335_v24 }
 0x343   : > { %7499 = vpow2.f32 %v2955_v21 }
 0x344   : > { %v10590_v14 = vpack.c.bf16 %v10581_v45, %v10584_v3  ;;  %v1586_v48 = vpop.permute.xlu1 %1585 }
 0x345   : > { %v1949_v7 = vsel %vm1921_vm1, %v1916_v6, %v1586_v48 }
 0x346   : > { %v7494_v50 = vpop.eup %7493  ;;  %6674 = vmatpush1.bf16.msra.mxu0 %v10590_v14  ;;  %v1982_v30 = vsel %vm1954_vm15, %v1949_v7, %v10503_v23 }
 0x347   : > { %v7496_v5 = vpop.eup %7495  ;;  %v2594_v34 = vmul.f32 1.0614054, %v7494_v50  ;;  %6592 = vmatmul.mubr.msk.f32.gmra.mrb[26].mxu0 %vm2001_vm4, %v1982_v30  ;;  %6675 = vmatprep.subr.bf16.mxu0 %v14091_v13 }
 0x348   : > { %v2593_v59 = vmul.f32 1.0614054, %v7496_v5  ;;  %v948_v46 = vpop.permute.xlu1 %947 }
 0x349   : > { %v2626_v63 = vadd.f32 -1.4531521, %v2594_v34  ;;  %v1752_v17 = vsel %vm1723_vm14, %v14126_v60, %v948_v46 }
 0x34a   : > { %v2625_v36 = vadd.f32 -1.4531521, %v2593_v59  ;;  %v1785_v23 = vsel %vm1756_vm0, %v1752_v17, %v10509_v28  ;;  %v10613_v28 = vpop.permute.xlu0 %1079 }
 0x34b   : > { %v2658_v27 = vmul.f32 %v7494_v50, %v2626_v63  ;;  %v1818_v42 = vsel %vm1789_vm2, %v1785_v23, %v10527_v32 }
 0x34c   : > { %v2657_v33 = vmul.f32 %v7496_v5, %v2625_v36  ;;  %v1851_v24 = vsel %vm1822_vm11, %v1818_v42, %v10539_v20  ;;  %v950_v52 = vpop.permute.xlu1 %949  ;;  %v7498_v36 = vpop.eup %7497 }
 0x34d   : > { %v2690_v18 = vadd.f32 1.4214138, %v2658_v27  ;;  %v1884_v57 = vsel %vm1855_vm6, %v1851_v24, %v10553_v58  ;;  %v7500_v42 = vpop.eup %7499  ;;  %v1753_v49 = vsel %vm1723_vm14, %v14105_v15, %v950_v52 }
 0x34e   : > { %v2689_v39 = vadd.f32 1.4214138, %v2657_v33  ;;  %v1917_v4 = vsel %vm1888_vm13, %v1884_v57, %v10569_v1  ;;  %v10627_v59 = vpop.permute.xlu0 %1207 }
 0x34f   : > { %v2722_v29 = vmul.f32 %v7494_v50, %v2690_v18  ;;  %v1950_v32 = vsel %vm1921_vm1, %v1917_v4, %v1588_v47 }
 0x350   : > { %v2721_v40 = vmul.f32 %v7496_v5, %v2689_v39  ;;  %v1078_v35 = vpop.permute.xlu1 %1077  ;;  %v1983_v20 = vsel %vm1954_vm15, %v1950_v32, %v1684_v11 }
 0x351   : > { %v2754_v6 = vadd.f32 -0.28449672, %v2722_v29  ;;  %v6572_v48 = vpop.f32.mrb[12].mxu0  ;;  %6594 = vmatprep.mubr.msk.f32.mxu0 %vm2001_vm4, %v1983_v20  ;;  %v2433_v20 = vsel %vm2401_vm10, 1.0, %v14097_v22 }
 0x352   : > { %v2753_v58 = vadd.f32 -0.28449672, %v2721_v40  ;;  %v10619_v7 = vadd.f32 %v10480_v55, %v6572_v48  ;;  %v2228_v31 = vpop.f32.mrb[13].mxu0  ;;  %v1304_v39 = vpop.permute.xlu0 %1303 }
 0x353   : > { %v2786_v1 = vmul.f32 %v7494_v50, %v2754_v6  ;;  %v10622_v30 = vadd.f32 %v10480_v55, %v2228_v31 }
 0x354   : > { %v2785_v34 = vmul.f32 %v7496_v5, %v2753_v58  ;;  %v10625_v47 = vmul.f32 0.70710677, %v10619_v7  ;;  %v1206_v38 = vpop.permute.xlu1 %1205  ;;  %v2337_v58 = vmul.f32 0.5, %v10560_v61 }
 0x355   : > { %v2818_v11 = vadd.f32 0.2548296, %v2786_v1  ;;  %v10630_v46 = vmul.f32 0.70710677, %v10622_v30  ;;  %v1786_v1 = vsel %vm1756_vm0, %v1753_v49, %v1078_v35 }
 0x356   : > { %v2817_v63 = vadd.f32 0.2548296, %v2785_v34  ;;  %v2468_v60 = vand.u32 2147483647, %v10625_v47 }
 0x357   : > { %v2850_v17 = vmul.f32 %v7494_v50, %v2818_v11  ;;  %v2467_v53 = vand.u32 2147483647, %v10630_v46  ;;  %v2434_v50 = vsel %vm2402_vm3, 1.0, %v14097_v22  ;;  %v1400_v11 = vpop.permute.xlu0 %1399  ;;  %vm2404_vm3 = vcmp.ge.f32.partialorder %v10625_v47, 0.0 }
 0x358   : > { %v2849_v23 = vmul.f32 %v7496_v5, %v2817_v63  ;;  %v2500_v27 = vmul.f32 0.3275911, %v2468_v60  ;;  %v1302_v21 = vpop.permute.xlu1 %1301  ;;  %vm2403_vm10 = vcmp.ge.f32.partialorder %v10630_v46, 0.0 }
 0x359   : > { %v3010_v33 = vmul.f32 %v7498_v36, %v2850_v17  ;;  %v2499_v24 = vmul.f32 0.3275911, %v2467_v53  ;;  %v1819_v17 = vsel %vm1789_vm2, %v1786_v1, %v1206_v38 }
 0x35a   : > { %v3009_v18 = vmul.f32 %v7500_v42, %v2849_v23  ;;  %v2532_v57 = vadd.f32 1.0, %v2500_v27  ;;  %v2884_v23 = vsub.f32 0.0, %v2468_v60  ;;  %v1852_v25 = vsel %vm1822_vm11, %v1819_v17, %v1302_v21 }
 0x35b   : > { %v3042_v4 = vsub.f32 1.0, %v3010_v33  ;;  %v2531_v29 = vadd.f32 1.0, %v2499_v24  ;;  %v2883_v27 = vsub.f32 0.0, %v2467_v53 }
 0x35c   : > { %v3041_v32 = vsub.f32 1.0, %v3009_v18  ;;  %7501 = vrcp.f32 %v2532_v57  ;;  %v1398_v40 = vpop.permute.xlu1 %1397  ;;  %v2916_v24 = vmul.f32 %v2884_v23, %v2468_v60  ;;  %v1496_v18 = vpop.permute.xlu0 %1495 }
 0x35d   : > { %v3074_v5 = vmul.f32 %v3042_v4, %v2434_v50  ;;  %7503 = vrcp.f32 %v2531_v29  ;;  %v1885_v42 = vsel %vm1855_vm6, %v1852_v25, %v1398_v40  ;;  %v2915_v4 = vmul.f32 %v2883_v27, %v2467_v53 }
 0x35e   : > { %v3073_v6 = vmul.f32 %v3041_v32, %v2433_v20  ;;  %v2961_v60 = vmul.f32 1.442695, %v2916_v24 }
 0x35f   : > { %v3106_v48 = vadd.f32 1.0, %v3074_v5 }
 0x360   : > { %v3105_v31 = vadd.f32 1.0, %v3073_v6  ;;  %v1494_v34 = vpop.permute.xlu1 %1493  ;;  %7505 = vpow2.f32 %v2961_v60 }
 0x361   : > { %v10643_v63 = vmul.f32 %v3106_v48, %v2338_v16  ;;  %v1918_v61 = vsel %vm1888_vm13, %v1885_v42, %v1494_v34  ;;  %v2959_v16 = vmul.f32 1.442695, %v2915_v4  ;;  %v1592_v34 = vpop.permute.xlu0 %1591 }
 0x362   : > { %v10646_v36 = vmul.f32 %v3105_v31, %v2337_v58 }
 0x363   : > { %7507 = vpow2.f32 %v2959_v16 }
 0x364   : > { %v10652_v15 = vpack.c.bf16 %v10643_v63, %v10646_v36  ;;  %v1590_v52 = vpop.permute.xlu1 %1589 }
 0x365   : > { %v1951_v35 = vsel %vm1921_vm1, %v1918_v61, %v1590_v52 }
 0x366   : > { %v7502_v33 = vpop.eup %7501  ;;  %6677 = vmatpush1.bf16.msra.mxu0 %v10652_v15  ;;  %v1984_v38 = vsel %vm1954_vm15, %v1951_v35, %v10599_v44 }
 0x367   : > { %v7504_v21 = vpop.eup %7503  ;;  %v2596_v57 = vmul.f32 1.0614054, %v7502_v33  ;;  %6595 = vmatmul.mubr.msk.f32.gmra.mrb[28].mxu0 %vm2001_vm4, %v1984_v38  ;;  %6678 = vmatprep.subr.bf16.mxu0 %v14091_v13 }
 0x368   : > { %v2595_v29 = vmul.f32 1.0614054, %v7504_v21  ;;  %v952_v50 = vpop.permute.xlu1 %951 }
 0x369   : > { %v2628_v32 = vadd.f32 -1.4531521, %v2596_v57  ;;  %v1754_v40 = vsel %vm1723_vm14, %v9958_v10, %v952_v50 }
 0x36a   : > { %v2627_v5 = vadd.f32 -1.4531521, %v2595_v29  ;;  %v1787_v20 = vsel %vm1756_vm0, %v1754_v40, %v10613_v28  ;;  %v6575_v44 = vpop.f32.mrb[14].mxu0  ;;  %v1688_v29 = vpop.permute.xlu0 %1687 }
 0x36b   : > { %v2660_v6 = vmul.f32 %v7502_v33, %v2628_v32  ;;  %v1820_v53 = vsel %vm1789_vm2, %v1787_v20, %v10627_v59  ;;  %v10668_v48 = vadd.f32 %v10480_v55, %v6575_v44  ;;  %v2238_v49 = vpop.f32.mrb[15].mxu0  ;;  %v7506_v16 = vpop.eup %7505 }
 0x36c   : > { %v2659_v58 = vmul.f32 %v7504_v21, %v2627_v5  ;;  %v1853_v31 = vsel %vm1822_vm11, %v1820_v53, %v1304_v39  ;;  %v10672_v10 = vadd.f32 %v10480_v55, %v2238_v49  ;;  %v10674_v1 = vpop.permute.xlu1 %953 }
 0x36d   : > { %v2692_v28 = vadd.f32 1.4214138, %v2660_v6  ;;  %v10677_v17 = vmul.f32 0.70710677, %v10668_v48  ;;  %v1886_v25 = vsel %vm1855_vm6, %v1853_v31, %v1400_v11 }
 0x36e   : > { %v2691_v23 = vadd.f32 1.4214138, %v2659_v58  ;;  %v10680_v59 = vmul.f32 0.70710677, %v10672_v10  ;;  %v1919_v35 = vsel %vm1888_vm13, %v1886_v25, %v1496_v18  ;;  %v7508_v58 = vpop.eup %7507 }
 0x36f   : > { %v2724_v27 = vmul.f32 %v7502_v33, %v2692_v28  ;;  %v2470_v39 = vand.u32 2147483647, %v10677_v17  ;;  %v1952_v11 = vsel %vm1921_vm1, %v1919_v35, %v1592_v34 }
 0x370   : > { %v2723_v42 = vmul.f32 %v7504_v21, %v2691_v23  ;;  %v2469_v61 = vand.u32 2147483647, %v10680_v59  ;;  %v10685_v52 = vpop.permute.xlu1 %1081  ;;  %v1985_v5 = vsel %vm1954_vm15, %v1952_v11, %v1688_v29  ;;  %v2340_v11 = vmul.f32 0.5, %v10619_v7 }
 0x371   : > { %v2756_v24 = vadd.f32 -0.28449672, %v2724_v27  ;;  %v2502_v38 = vmul.f32 0.3275911, %v2470_v39  ;;  %6597 = vmatprep.mubr.msk.f32.mxu0 %vm2001_vm4, %v1985_v5  ;;  %v2886_v28 = vsub.f32 0.0, %v2470_v39 }
 0x372   : > { %v2755_v57 = vadd.f32 -0.28449672, %v2723_v42  ;;  %v2501_v4 = vmul.f32 0.3275911, %v2469_v61  ;;  %v2885_v27 = vsub.f32 0.0, %v2469_v61 }
 0x373   : > { %v2788_v50 = vmul.f32 %v7502_v33, %v2756_v24  ;;  %v2534_v32 = vadd.f32 1.0, %v2502_v38  ;;  %v2918_v29 = vmul.f32 %v2886_v28, %v2470_v39  ;;  %v1755_v39 = vsel %vm1723_vm14, %v10308_v0, %v10674_v1 }
 0x374   : > { %v2787_v40 = vmul.f32 %v7504_v21, %v2755_v57  ;;  %v2533_v60 = vadd.f32 1.0, %v2501_v4  ;;  %v1210_v20 = vpop.permute.xlu1 %1209  ;;  %v2435_v57 = vsel %vm2403_vm10, 1.0, %v14097_v22  ;;  %vm2406_vm14 = vcmp.ge.f32.partialorder %v10677_v17, 0.0 }
 0x375   : > { %v2820_v44 = vadd.f32 0.2548296, %v2788_v50  ;;  %7509 = vrcp.f32 %v2534_v32 }
 0x376   : > { %v2819_v6 = vadd.f32 0.2548296, %v2787_v40  ;;  %7511 = vrcp.f32 %v2533_v60  ;;  %v2917_v60 = vmul.f32 %v2885_v27, %v2469_v61  ;;  %v2965_v61 = vmul.f32 1.442695, %v2918_v29 }
 0x377   : > { %v2852_v18 = vmul.f32 %v7502_v33, %v2820_v44  ;;  %v2436_v33 = vsel %vm2404_vm3, 1.0, %v14097_v22 }
 0x378   : > { %v2851_v53 = vmul.f32 %v7504_v21, %v2819_v6  ;;  %v1306_v49 = vpop.permute.xlu1 %1305  ;;  %v2339_v6 = vmul.f32 0.5, %v10622_v30  ;;  %v2963_v27 = vmul.f32 1.442695, %v2917_v60  ;;  %v1788_v30 = vsel %vm1756_vm0, %v1755_v39, %v10685_v52 }
 0x379   : > { %v3012_v31 = vmul.f32 %v7506_v16, %v2852_v18  ;;  %v1821_v0 = vsel %vm1789_vm2, %v1788_v30, %v1210_v20 }
 0x37a   : > { %v3011_v34 = vmul.f32 %v7508_v58, %v2851_v53  ;;  %v6578_v23 = vpop.f32.mrb[16].mxu0 }
 0x37b   : > { %v3044_v25 = vsub.f32 1.0, %v3012_v31  ;;  %v10694_v42 = vadd.f32 %v10480_v55, %v6578_v23  ;;  %v2248_v35 = vpop.f32.mrb[17].mxu0 }
 0x37c   : > { %v3043_v24 = vsub.f32 1.0, %v3011_v34  ;;  %v10698_v21 = vadd.f32 %v10480_v55, %v2248_v35  ;;  %v1402_v38 = vpop.permute.xlu1 %1401 }
 0x37d   : > { %v3076_v47 = vmul.f32 %v3044_v25, %v2436_v33  ;;  %v10702_v46 = vmul.f32 0.70710677, %v10694_v42 }
 0x37e   : > { %v3075_v4 = vmul.f32 %v3043_v24, %v2435_v57  ;;  %v10705_v50 = vmul.f32 0.70710677, %v10698_v21 }
 0x37f   : > { %v7510_v32 = vpop.eup %7509  ;;  %v3108_v40 = vadd.f32 1.0, %v3076_v47  ;;  %v2472_v5 = vand.u32 2147483647, %v10702_v46 }
 0x380   : > { %v7512_v44 = vpop.eup %7511  ;;  %v3107_v18 = vadd.f32 1.0, %v3075_v4  ;;  %v2598_v16 = vmul.f32 1.0614054, %v7510_v32  ;;  %v1498_v53 = vpop.permute.xlu1 %1497  ;;  %v2471_v23 = vand.u32 2147483647, %v10705_v50  ;;  %v1854_v4 = vsel %vm1822_vm11, %v1821_v0, %v1306_v49 }
 0x381   : > { %v10710_v58 = vmul.f32 %v3108_v40, %v2340_v11  ;;  %v2597_v31 = vmul.f32 1.0614054, %v7512_v44  ;;  %v2504_v34 = vmul.f32 0.3275911, %v2472_v5  ;;  %v1887_v40 = vsel %vm1855_vm6, %v1854_v4, %v1402_v38 }
 0x382   : > { %v10715_v28 = vmul.f32 %v3107_v18, %v2339_v6  ;;  %v2630_v7 = vadd.f32 -1.4531521, %v2598_v16  ;;  %v2503_v1 = vmul.f32 0.3275911, %v2471_v23  ;;  %v1920_v60 = vsel %vm1888_vm13, %v1887_v40, %v1498_v53 }
 0x383   : > { %v2629_v25 = vadd.f32 -1.4531521, %v2597_v31  ;;  %v2536_v35 = vadd.f32 1.0, %v2504_v34  ;;  %v2888_v34 = vsub.f32 0.0, %v2472_v5  ;;  %vm2408_vm6 = vcmp.ge.f32.partialorder %v10702_v46, 0.0 }
 0x384   : > { %v10722_v33 = vpack.c.bf16 %v10710_v58, %v10715_v28  ;;  %v2662_v24 = vmul.f32 %v7510_v32, %v2630_v7  ;;  %v1594_v47 = vpop.permute.xlu1 %1593  ;;  %v2535_v11 = vadd.f32 1.0, %v2503_v1  ;;  %vm2407_vm2 = vcmp.ge.f32.partialorder %v10705_v50, 0.0 }
 0x385   : > { %v2661_v57 = vmul.f32 %v7512_v44, %v2629_v25  ;;  %7513 = vrcp.f32 %v2536_v35  ;;  %v1953_v6 = vsel %vm1921_vm1, %v1920_v60, %v1594_v47  ;;  %vm2405_vm1 = vcmp.ge.f32.partialorder %v10680_v59, 0.0 }
 0x386   : > { %v2694_v29 = vadd.f32 1.4214138, %v2662_v24  ;;  %7515 = vpow2.f32 %v2965_v61  ;;  %6680 = vmatpush1.bf16.msra.mxu0 %v10722_v33  ;;  %v2920_v24 = vmul.f32 %v2888_v34, %v2472_v5  ;;  %v2341_v34 = vmul.f32 0.5, %v10672_v10 }
 0x387   : > { %v2693_v52 = vadd.f32 1.4214138, %v2661_v57  ;;  %7517 = vpow2.f32 %v2963_v27  ;;  %6681 = vmatprep.subr.bf16.mxu0 %v14091_v13  ;;  %v2887_v27 = vsub.f32 0.0, %v2471_v23  ;;  %v2344_v46 = vmul.f32 0.5, %v10694_v42 }
 0x388   : > { %v2726_v20 = vmul.f32 %v7510_v32, %v2694_v29  ;;  %7519 = vrcp.f32 %v2535_v11  ;;  %v1690_v18 = vpop.permute.xlu1 %1689 }
 0x389   : > { %v2725_v49 = vmul.f32 %v7512_v44, %v2693_v52  ;;  %v1986_v16 = vsel %vm1954_vm15, %v1953_v6, %v1690_v18  ;;  %v2919_v40 = vmul.f32 %v2887_v27, %v2471_v23  ;;  %v2438_v18 = vsel %vm2406_vm14, 1.0, %v14097_v22 }
 0x38a   : > { %v2758_v31 = vadd.f32 -0.28449672, %v2726_v20  ;;  %6598 = vmatmul.mubr.msk.f32.gmra.mrb[30].mxu0 %vm2001_vm4, %v1986_v16  ;;  %v2969_v20 = vmul.f32 1.442695, %v2920_v24  ;;  %vm10775_vm4 = vmpackc.low %vm1756_vm0, %vm1756_vm0 }
 0x38b   : > { %v2757_v38 = vadd.f32 -0.28449672, %v2725_v49  ;;  %v2967_v17 = vmul.f32 1.442695, %v2919_v40 }
 0x38c   : > { %v2790_v39 = vmul.f32 %v7510_v32, %v2758_v31  ;;  %7521 = vpow2.f32 %v2969_v20 }
 0x38d   : > { %v2789_v7 = vmul.f32 %v7512_v44, %v2757_v38  ;;  %7523 = vpow2.f32 %v2967_v17 }
 0x38e   : > { %v2822_v61 = vadd.f32 0.2548296, %v2790_v39  ;;  %v2342_v39 = vmul.f32 0.5, %v10668_v48 }
 0x38f   : > { %v7514_v25 = vpop.eup %7513  ;;  %v2821_v53 = vadd.f32 0.2548296, %v2789_v7 }
 0x390   : > { %v7516_v30 = vpop.eup %7515  ;;  %v2854_v35 = vmul.f32 %v7510_v32, %v2822_v61  ;;  %v2600_v0 = vmul.f32 1.0614054, %v7514_v25 }
 0x391   : > { %v7518_v1 = vpop.eup %7517  ;;  %v2853_v47 = vmul.f32 %v7512_v44, %v2821_v53  ;;  %v2437_v44 = vsel %vm2405_vm1, 1.0, %v14097_v22 }
 0x392   : > { %v7520_v57 = vpop.eup %7519  ;;  %v3014_v4 = vmul.f32 %v7516_v30, %v2854_v35  ;;  %v2632_v29 = vadd.f32 -1.4531521, %v2600_v0 }
 0x393   : > { %v3013_v11 = vmul.f32 %v7518_v1, %v2853_v47  ;;  %v2599_v52 = vmul.f32 1.0614054, %v7520_v57 }
 0x394   : > { %v3046_v60 = vsub.f32 1.0, %v3014_v4  ;;  %v2664_v6 = vmul.f32 %v7514_v25, %v2632_v29 }
 0x395   : > { %v3045_v32 = vsub.f32 1.0, %v3013_v11  ;;  %v2631_v5 = vadd.f32 -1.4531521, %v2599_v52 }
 0x396   : > { %v3078_v49 = vmul.f32 %v3046_v60, %v2438_v18  ;;  %v2696_v16 = vadd.f32 1.4214138, %v2664_v6 }
 0x397   : > { %v3077_v31 = vmul.f32 %v3045_v32, %v2437_v44  ;;  %v2663_v38 = vmul.f32 %v7520_v57, %v2631_v5  ;;  %v7522_v32 = vpop.eup %7521 }
 0x398   : > { %v3110_v59 = vadd.f32 1.0, %v3078_v49  ;;  %v2728_v23 = vmul.f32 %v7514_v25, %v2696_v16 }
 0x399   : > { %v3109_v7 = vadd.f32 1.0, %v3077_v31  ;;  %v2695_v61 = vadd.f32 1.4214138, %v2663_v38  ;;  %v7524_v38 = vpop.eup %7523 }
 0x39a   : > { %v10739_v53 = vmul.f32 %v3110_v59, %v2342_v39  ;;  %v6581_v27 = vpop.f32.mrb[18].mxu0  ;;  %v2760_v30 = vadd.f32 -0.28449672, %v2728_v23  ;;  %v2440_v59 = vsel %vm2408_vm6, 1.0, %v14097_v22 }
 0x39b   : > { %v10741_v35 = vmul.f32 %v3109_v7, %v2341_v34  ;;  %v10744_v24 = vadd.f32 %v10480_v55, %v6581_v27  ;;  %v2258_v0 = vpop.f32.mrb[19].mxu0  ;;  %v2727_v1 = vmul.f32 %v7520_v57, %v2695_v61  ;;  %v2439_v7 = vsel %vm2407_vm2, 1.0, %v14097_v22 }
 0x39c   : > { %v10747_v48 = vadd.f32 %v10480_v55, %v2258_v0  ;;  %v2792_v47 = vmul.f32 %v7514_v25, %v2760_v30 }
 0x39d   : > { %v10751_v10 = vpack.c.bf16 %v10739_v53, %v10741_v35  ;;  %v10754_v4 = vmul.f32 0.70710677, %v10744_v24  ;;  %v2759_v11 = vadd.f32 -0.28449672, %v2727_v1 }
 0x39e   : > { %v10757_v29 = vmul.f32 0.70710677, %v10747_v48  ;;  %v2824_v52 = vadd.f32 0.2548296, %v2792_v47 }
 0x39f   : > { %v2474_v40 = vand.u32 2147483647, %v10754_v4  ;;  %6683 = vmatpush1.bf16.msra.mxu0 %v10751_v10  ;;  %v2791_v20 = vmul.f32 %v7520_v57, %v2759_v11  ;;  %vm2410_vm3 = vcmp.ge.f32.partialorder %v10754_v4, 0.0 }
 0x3a0   : > { %v2473_v60 = vand.u32 2147483647, %v10757_v29  ;;  %6684 = vmatprep.subr.bf16.mxu0 %v14091_v13  ;;  %v2856_v18 = vmul.f32 %v7514_v25, %v2824_v52  ;;  %vm2409_vm10 = vcmp.ge.f32.partialorder %v10757_v29, 0.0 }
 0x3a1   : > { %v2506_v6 = vmul.f32 0.3275911, %v2474_v40  ;;  %v2823_v49 = vadd.f32 0.2548296, %v2791_v20  ;;  %v2890_v30 = vsub.f32 0.0, %v2474_v40 }
 0x3a2   : > { %v2505_v5 = vmul.f32 0.3275911, %v2473_v60  ;;  %v3016_v16 = vmul.f32 %v7522_v32, %v2856_v18  ;;  %v2889_v0 = vsub.f32 0.0, %v2473_v60 }
 0x3a3   : > { %v2538_v44 = vadd.f32 1.0, %v2506_v6  ;;  %v2855_v17 = vmul.f32 %v7520_v57, %v2823_v49  ;;  %v2343_v57 = vmul.f32 0.5, %v10698_v21  ;;  %v2922_v52 = vmul.f32 %v2890_v30, %v2474_v40 }
 0x3a4   : > { %v2537_v31 = vadd.f32 1.0, %v2505_v5  ;;  %v3048_v39 = vsub.f32 1.0, %v3016_v16  ;;  %v2921_v18 = vmul.f32 %v2889_v0, %v2473_v60 }
 0x3a5   : > { %7525 = vrcp.f32 %v2538_v44  ;;  %v3015_v23 = vmul.f32 %v7524_v38, %v2855_v17  ;;  %v2973_v49 = vmul.f32 1.442695, %v2922_v52 }
 0x3a6   : > { %7527 = vrcp.f32 %v2537_v31  ;;  %v3080_v34 = vmul.f32 %v3048_v39, %v2440_v59  ;;  %v2971_v16 = vmul.f32 1.442695, %v2921_v18 }
 0x3a7   : > { %v3047_v25 = vsub.f32 1.0, %v3015_v23  ;;  %7529 = vpow2.f32 %v2973_v49 }
 0x3a8   : > { %v3112_v61 = vadd.f32 1.0, %v3080_v34  ;;  %7531 = vpow2.f32 %v2971_v16 }
 0x3a9   : > { %v3079_v27 = vmul.f32 %v3047_v25, %v2439_v7 }
 0x3aa   : > { %v10769_v47 = vmul.f32 %v3112_v61, %v2344_v46 }
 0x3ab   : > { %v3111_v1 = vadd.f32 1.0, %v3079_v27 }
 0x3ad   : > { %v10771_v11 = vmul.f32 %v3111_v1, %v2343_v57 }
 0x3af   : > { %v7526_v50 = vpop.eup %7525  ;;  %v6612_v21 = vpack.c.bf16 %v10769_v47, %v10771_v11 }
 0x3b0   : > { %v7528_v6 = vpop.eup %7527  ;;  %v2602_v42 = vmul.f32 1.0614054, %v7526_v50 }
 0x3b1   : > { %v2601_v32 = vmul.f32 1.0614054, %v7528_v6  ;;  %6614 = vmatprep.subr.msk.bf16.mxu1 %vm10775_vm4, %v6612_v21  ;;  %6686 = vmatpush1.bf16.msra.mxu0 %v6612_v21  ;;  %v7530_v18 = vpop.eup %7529 }
 0x3b2   : > { %v2634_v5 = vadd.f32 -1.4531521, %v2602_v42  ;;  %6617 = vmatpush3.bf16.xpose.msk.msra.mxu1 %vm10775_vm4, %v10048_v56  ;;  %6687 = vmatprep.subr.bf16.mxu0 %v14091_v13 }
 0x3b3   : > { %v2633_v40 = vadd.f32 -1.4531521, %v2601_v32 }
 0x3b4   : > { %v2666_v44 = vmul.f32 %v7526_v50, %v2634_v5  ;;  %v7532_v5 = vpop.eup %7531 }
 0x3b5   : > { %v2665_v60 = vmul.f32 %v7528_v6, %v2633_v40 }
 0x3b6   : > { %v2698_v31 = vadd.f32 1.4214138, %v2666_v44 }
 0x3b7   : > { %v2697_v17 = vadd.f32 1.4214138, %v2665_v60 }
 0x3b8   : > { %v2730_v38 = vmul.f32 %v7526_v50, %v2698_v31  ;;  %v2442_v31 = vsel %vm2410_vm3, 1.0, %v14097_v22 }
 0x3b9   : > { %v2729_v39 = vmul.f32 %v7528_v6, %v2697_v17 }
 0x3ba   : > { %v2762_v59 = vadd.f32 -0.28449672, %v2730_v38  ;;  %v6584_v23 = vpop.f32.mrb[20].mxu0  ;;  %v2441_v38 = vsel %vm2409_vm10, 1.0, %v14097_v22 }
 0x3bb   : > { %v2761_v34 = vadd.f32 -0.28449672, %v2729_v39  ;;  %v10788_v25 = vadd.f32 %v10480_v55, %v6584_v23  ;;  %v2268_v7 = vpop.f32.mrb[21].mxu0  ;;  %v2346_v39 = vmul.f32 0.5, %v10744_v24 }
 0x3bc   : > { %v2794_v61 = vmul.f32 %v7526_v50, %v2762_v59  ;;  %v10791_v56 = vadd.f32 %v10480_v55, %v2268_v7  ;;  %v2345_v59 = vmul.f32 0.5, %v10747_v48 }
 0x3bd   : > { %v2793_v46 = vmul.f32 %v7528_v6, %v2761_v34  ;;  %v10794_v27 = vmul.f32 0.70710677, %v10788_v25 }
 0x3be   : > { %v2826_v30 = vadd.f32 0.2548296, %v2794_v61  ;;  %v10797_v57 = vmul.f32 0.70710677, %v10791_v56 }
 0x3bf   : > { %v2825_v0 = vadd.f32 0.2548296, %v2793_v46  ;;  %v2476_v1 = vand.u32 2147483647, %v10794_v27  ;;  %vm2412_vm14 = vcmp.ge.f32.partialorder %v10794_v27, 0.0 }
 0x3c0   : > { %v2858_v52 = vmul.f32 %v7526_v50, %v2826_v30  ;;  %v2475_v42 = vand.u32 2147483647, %v10797_v57  ;;  %vm2411_vm1 = vcmp.ge.f32.partialorder %v10797_v57, 0.0 }
 0x3c1   : > { %v2857_v21 = vmul.f32 %v7528_v6, %v2825_v0  ;;  %v2508_v32 = vmul.f32 0.3275911, %v2476_v1  ;;  %v2892_v7 = vsub.f32 0.0, %v2476_v1 }
 0x3c2   : > { %v3018_v55 = vmul.f32 %v7530_v18, %v2858_v52  ;;  %v2507_v49 = vmul.f32 0.3275911, %v2475_v42  ;;  %v2891_v61 = vsub.f32 0.0, %v2475_v42 }
 0x3c3   : > { %v3017_v40 = vmul.f32 %v7532_v5, %v2857_v21  ;;  %v2540_v44 = vadd.f32 1.0, %v2508_v32  ;;  %v2924_v0 = vmul.f32 %v2892_v7, %v2476_v1 }
 0x3c4   : > { %v3050_v16 = vsub.f32 1.0, %v3018_v55  ;;  %v2539_v60 = vadd.f32 1.0, %v2507_v49  ;;  %v2923_v18 = vmul.f32 %v2891_v61, %v2475_v42 }
 0x3c5   : > { %v3049_v17 = vsub.f32 1.0, %v3017_v40  ;;  %7533 = vrcp.f32 %v2540_v44  ;;  %v2977_v32 = vmul.f32 1.442695, %v2924_v0 }
 0x3c6   : > { %v3082_v50 = vmul.f32 %v3050_v16, %v2442_v31  ;;  %7535 = vrcp.f32 %v2539_v60  ;;  %v2975_v49 = vmul.f32 1.442695, %v2923_v18 }
 0x3c7   : > { %v3081_v6 = vmul.f32 %v3049_v17, %v2441_v38  ;;  %7537 = vpow2.f32 %v2977_v32 }
 0x3c8   : > { %v3114_v4 = vadd.f32 1.0, %v3082_v50  ;;  %7539 = vpow2.f32 %v2975_v49 }
 0x3c9   : > { %v3113_v23 = vadd.f32 1.0, %v3081_v6 }
 0x3ca   : > { %v10807_v29 = vmul.f32 %v3114_v4, %v2346_v39 }
 0x3cb   : > { %v10809_v34 = vmul.f32 %v3113_v23, %v2345_v59 }
 0x3cd   : > { %v6618_v46 = vpack.c.bf16 %v10807_v29, %v10809_v34 }
 0x3cf   : > { %v7534_v30 = vpop.eup %7533  ;;  %6620 = vmatprep.subr.msk.bf16.mxu1 %vm10775_vm4, %v6618_v46  ;;  %6689 = vmatpush1.bf16.msra.mxu0 %v6618_v46 }
 0x3d0   : > { %v7536_v24 = vpop.eup %7535  ;;  %v2604_v52 = vmul.f32 1.0614054, %v7534_v30  ;;  %6623 = vmatpush3.bf16.xpose.msk.msra.mxu1 %vm10775_vm4, %v10194_v51  ;;  %6690 = vmatprep.subr.bf16.mxu0 %v14091_v13  ;;  %v10822_v51 = vld [vmem:[%s13510_s2] ss:$0 sm:$0xff] }
 0x3d1   : > { %v2603_v48 = vmul.f32 1.0614054, %v7536_v24  ;;  %v7538_v18 = vpop.eup %7537 }
 0x3d2   : > { %v2636_v21 = vadd.f32 -1.4531521, %v2604_v52  ;;  %v7540_v32 = vpop.eup %7539 }
 0x3d3   : > { %v2635_v5 = vadd.f32 -1.4531521, %v2603_v48 }
 0x3d4   : > { %v2668_v55 = vmul.f32 %v7534_v30, %v2636_v21 }
 0x3d5   : > { %v2667_v1 = vmul.f32 %v7536_v24, %v2635_v5 }
 0x3d6   : > { %v2700_v40 = vadd.f32 1.4214138, %v2668_v55 }
 0x3d7   : > { %v2699_v44 = vadd.f32 1.4214138, %v2667_v1 }
 0x3d8   : > { %v2732_v16 = vmul.f32 %v7534_v30, %v2700_v40 }
 0x3d9   : > { %v2731_v60 = vmul.f32 %v7536_v24, %v2699_v44 }
 0x3da   : > { %v2764_v42 = vadd.f32 -0.28449672, %v2732_v16  ;;  %v6587_v31 = vpop.f32.mrb[22].mxu0  ;;  %v2444_v16 = vsel %vm2412_vm14, 1.0, %v14097_v22 }
 0x3db   : > { %v2763_v17 = vadd.f32 -0.28449672, %v2731_v60  ;;  %v10825_v50 = vadd.f32 %v10822_v51, %v6587_v31  ;;  %v2278_v38 = vpop.f32.mrb[23].mxu0  ;;  %v2348_v31 = vmul.f32 0.5, %v10788_v25 }
 0x3dc   : > { %v2796_v6 = vmul.f32 %v7534_v30, %v2764_v42  ;;  %v10828_v39 = vadd.f32 %v10822_v51, %v2278_v38  ;;  %v2443_v42 = vsel %vm2411_vm1, 1.0, %v14097_v22 }
 0x3dd   : > { %v2795_v4 = vmul.f32 %v7536_v24, %v2763_v17  ;;  %v10831_v59 = vmul.f32 0.70710677, %v10825_v50  ;;  %v2347_v17 = vmul.f32 0.5, %v10791_v56 }
 0x3de   : > { %v2828_v23 = vadd.f32 0.2548296, %v2796_v6  ;;  %v10834_v7 = vmul.f32 0.70710677, %v10828_v39 }
 0x3df   : > { %v2827_v61 = vadd.f32 0.2548296, %v2795_v4  ;;  %v2478_v46 = vand.u32 2147483647, %v10831_v59  ;;  %vm2414_vm6 = vcmp.ge.f32.partialorder %v10831_v59, 0.0 }
 0x3e0   : > { %v2860_v0 = vmul.f32 %v7534_v30, %v2828_v23  ;;  %v2477_v52 = vand.u32 2147483647, %v10834_v7  ;;  %vm2413_vm2 = vcmp.ge.f32.partialorder %v10834_v7, 0.0 }
 0x3e1   : > { %v2859_v48 = vmul.f32 %v7536_v24, %v2827_v61  ;;  %v2510_v21 = vmul.f32 0.3275911, %v2478_v46  ;;  %v2894_v4 = vsub.f32 0.0, %v2478_v46 }
 0x3e2   : > { %v3020_v5 = vmul.f32 %v7538_v18, %v2860_v0  ;;  %v2509_v55 = vmul.f32 0.3275911, %v2477_v52  ;;  %v2893_v23 = vsub.f32 0.0, %v2477_v52 }
 0x3e3   : > { %v3019_v49 = vmul.f32 %v7540_v32, %v2859_v48  ;;  %v2542_v1 = vadd.f32 1.0, %v2510_v21  ;;  %v2926_v18 = vmul.f32 %v2894_v4, %v2478_v46 }
 0x3e4   : > { %v3052_v40 = vsub.f32 1.0, %v3020_v5  ;;  %v2541_v44 = vadd.f32 1.0, %v2509_v55  ;;  %v2925_v21 = vmul.f32 %v2893_v23, %v2477_v52 }
 0x3e5   : > { %v3051_v60 = vsub.f32 1.0, %v3019_v49  ;;  %7541 = vrcp.f32 %v2542_v1  ;;  %v2981_v5 = vmul.f32 1.442695, %v2926_v18 }
 0x3e6   : > { %v3084_v30 = vmul.f32 %v3052_v40, %v2444_v16  ;;  %7543 = vrcp.f32 %v2541_v44  ;;  %v2979_v1 = vmul.f32 1.442695, %v2925_v21 }
 0x3e7   : > { %v3083_v24 = vmul.f32 %v3051_v60, %v2443_v42  ;;  %7545 = vpow2.f32 %v2981_v5 }
 0x3e8   : > { %v3116_v27 = vadd.f32 1.0, %v3084_v30  ;;  %7547 = vpow2.f32 %v2979_v1 }
 0x3e9   : > { %v3115_v38 = vadd.f32 1.0, %v3083_v24 }
 0x3ea   : > { %v10844_v57 = vmul.f32 %v3116_v27, %v2348_v31 }
 0x3eb   : > { %v10846_v6 = vmul.f32 %v3115_v38, %v2347_v17 }
 0x3ed   : > { %v6624_v61 = vpack.c.bf16 %v10844_v57, %v10846_v6 }
 0x3ef   : > { %v7542_v0 = vpop.eup %7541  ;;  %6626 = vmatprep.subr.msk.bf16.mxu1 %vm10775_vm4, %v6624_v61  ;;  %6692 = vmatpush1.bf16.msra.mxu0 %v6624_v61 }
 0x3f0   : > { %v7544_v25 = vpop.eup %7543  ;;  %v2606_v48 = vmul.f32 1.0614054, %v7542_v0  ;;  %6629 = vmatpush3.bf16.xpose.msk.msra.mxu1 %vm10775_vm4, %v10442_v19  ;;  %6693 = vmatprep.subr.bf16.mxu0 %v14091_v13 }
 0x3f1   : > { %v2605_v56 = vmul.f32 1.0614054, %v7544_v25 }
 0x3f2   : > { %v2638_v32 = vadd.f32 -1.4531521, %v2606_v48 }
 0x3f3   : > { %v2637_v55 = vadd.f32 -1.4531521, %v2605_v56  ;;  %v7546_v56 = vpop.eup %7545 }
 0x3f4   : > { %v2670_v49 = vmul.f32 %v7542_v0, %v2638_v32 }
 0x3f5   : > { %v2669_v46 = vmul.f32 %v7544_v25, %v2637_v55  ;;  %v7548_v55 = vpop.eup %7547 }
 0x3f6   : > { %v2702_v40 = vadd.f32 1.4214138, %v2670_v49 }
 0x3f7   : > { %v2701_v44 = vadd.f32 1.4214138, %v2669_v46 }
 0x3f8   : > { %v2734_v16 = vmul.f32 %v7542_v0, %v2702_v40 }
 0x3f9   : > { %v2733_v60 = vmul.f32 %v7544_v25, %v2701_v44 }
 0x3fa   : > { %v2766_v52 = vadd.f32 -0.28449672, %v2734_v16  ;;  %v6590_v30 = vpop.f32.mrb[24].mxu0 }
 0x3fb   : > { %v2765_v42 = vadd.f32 -0.28449672, %v2733_v60  ;;  %v10857_v19 = vadd.f32 %v10822_v51, %v6590_v30  ;;  %v2288_v24 = vpop.f32.mrb[25].mxu0  ;;  %v2446_v60 = vsel %vm2414_vm6, 1.0, %v14097_v22  ;;  %v2445_v30 = vsel %vm2413_vm2, 1.0, %v14097_v22 }
 0x3fc   : > { %v2798_v31 = vmul.f32 %v7542_v0, %v2766_v52  ;;  %v10860_v27 = vadd.f32 %v10822_v51, %v2288_v24  ;;  %v2349_v24 = vmul.f32 0.5, %v10828_v39 }
 0x3fd   : > { %v2797_v17 = vmul.f32 %v7544_v25, %v2765_v42  ;;  %v10863_v38 = vmul.f32 0.70710677, %v10857_v19  ;;  %v2350_v42 = vmul.f32 0.5, %v10825_v50 }
 0x3fe   : > { %v2830_v4 = vadd.f32 0.2548296, %v2798_v31  ;;  %v10866_v23 = vmul.f32 0.70710677, %v10860_v27 }
 0x3ff   : > { %v2829_v61 = vadd.f32 0.2548296, %v2797_v17  ;;  %v2480_v18 = vand.u32 2147483647, %v10863_v38  ;;  %vm2416_vm3 = vcmp.ge.f32.partialorder %v10863_v38, 0.0 }
 0x400   : > { %v2862_v48 = vmul.f32 %v7542_v0, %v2830_v4  ;;  %v2479_v21 = vand.u32 2147483647, %v10866_v23  ;;  %vm2415_vm10 = vcmp.ge.f32.partialorder %v10866_v23, 0.0 }
 0x401   : > { %v2861_v32 = vmul.f32 %v7544_v25, %v2829_v61  ;;  %v2512_v5 = vmul.f32 0.3275911, %v2480_v18  ;;  %v2896_v4 = vsub.f32 0.0, %v2480_v18 }
 0x402   : > { %v3022_v49 = vmul.f32 %v7546_v56, %v2862_v48  ;;  %v2511_v1 = vmul.f32 0.3275911, %v2479_v21  ;;  %v2895_v61 = vsub.f32 0.0, %v2479_v21 }
 0x403   : > { %v3021_v46 = vmul.f32 %v7548_v55, %v2861_v32  ;;  %v2544_v40 = vadd.f32 1.0, %v2512_v5  ;;  %v2928_v32 = vmul.f32 %v2896_v4, %v2480_v18 }
 0x404   : > { %v3054_v44 = vsub.f32 1.0, %v3022_v49  ;;  %v2543_v16 = vadd.f32 1.0, %v2511_v1  ;;  %v2927_v55 = vmul.f32 %v2895_v61, %v2479_v21 }
 0x405   : > { %v3053_v52 = vsub.f32 1.0, %v3021_v46  ;;  %7549 = vrcp.f32 %v2544_v40  ;;  %v2985_v1 = vmul.f32 1.442695, %v2928_v32 }
 0x406   : > { %v3086_v0 = vmul.f32 %v3054_v44, %v2446_v60  ;;  %7551 = vrcp.f32 %v2543_v16  ;;  %v2983_v44 = vmul.f32 1.442695, %v2927_v55 }
 0x407   : > { %v3085_v25 = vmul.f32 %v3053_v52, %v2445_v30  ;;  %7553 = vpow2.f32 %v2985_v1 }
 0x408   : > { %v3118_v59 = vadd.f32 1.0, %v3086_v0  ;;  %7555 = vpow2.f32 %v2983_v44 }
 0x409   : > { %v3117_v31 = vadd.f32 1.0, %v3085_v25 }
 0x40a   : > { %v10876_v7 = vmul.f32 %v3118_v59, %v2350_v42 }
 0x40b   : > { %v10878_v17 = vmul.f32 %v3117_v31, %v2349_v24 }
 0x40c   : > { %v3182_v20 = vmul.f32 0.28867513, %v10876_v7 }
 0x40d   : > { %v6630_v48 = vpack.c.bf16 %v10876_v7, %v10878_v17 }
 0x40f   : > { %v7550_v56 = vpop.eup %7549  ;;  %6632 = vmatprep.subr.msk.bf16.mxu1 %vm10775_vm4, %v6630_v48  ;;  %6695 = vmatpush1.bf16.msra.mxu0 %v6630_v48 }
 0x410   : > { %v7552_v50 = vpop.eup %7551  ;;  %v2608_v5 = vmul.f32 1.0614054, %v7550_v56  ;;  %6635 = vmatpush3.bf16.xpose.msk.msra.mxu1 %vm10775_vm4, %v10524_v26  ;;  %6696 = vmatprep.subr.bf16.mxu0 %v14091_v13 }
 0x411   : > { %v2607_v39 = vmul.f32 1.0614054, %v7552_v50 }
 0x412   : > { %v2640_v49 = vadd.f32 -1.4531521, %v2608_v5 }
 0x413   : > { %v2639_v46 = vadd.f32 -1.4531521, %v2607_v39 }
 0x414   : > { %v2672_v40 = vmul.f32 %v7550_v56, %v2640_v49  ;;  %v7554_v49 = vpop.eup %7553 }
 0x415   : > { %v2671_v18 = vmul.f32 %v7552_v50, %v2639_v46 }
 0x416   : > { %v2704_v16 = vadd.f32 1.4214138, %v2672_v40  ;;  %v7556_v40 = vpop.eup %7555 }
 0x417   : > { %v2703_v60 = vadd.f32 1.4214138, %v2671_v18 }
 0x418   : > { %v2736_v52 = vmul.f32 %v7550_v56, %v2704_v16 }
 0x419   : > { %v2735_v0 = vmul.f32 %v7552_v50, %v2703_v60 }
 0x41a   : > { %v2768_v21 = vadd.f32 -0.28449672, %v2736_v52  ;;  %v6593_v30 = vpop.f32.mrb[26].mxu0 }
 0x41b   : > { %v2767_v25 = vadd.f32 -0.28449672, %v2735_v0  ;;  %v10889_v26 = vadd.f32 %v10822_v51, %v6593_v30  ;;  %v2298_v42 = vpop.f32.mrb[27].mxu0 }
 0x41c   : > { %v2800_v59 = vmul.f32 %v7550_v56, %v2768_v21  ;;  %v10892_v24 = vadd.f32 %v10822_v51, %v2298_v42  ;;  %v2448_v21 = vsel %vm2416_vm3, 1.0, %v14097_v22  ;;  %v2352_v42 = vmul.f32 0.5, %v10857_v19 }
 0x41d   : > { %v2799_v31 = vmul.f32 %v7552_v50, %v2767_v25  ;;  %v10895_v4 = vmul.f32 0.70710677, %v10889_v26  ;;  %v2447_v25 = vsel %vm2415_vm10, 1.0, %v14097_v22 }
 0x41e   : > { %v2832_v61 = vadd.f32 0.2548296, %v2800_v59  ;;  %v10898_v48 = vmul.f32 0.70710677, %v10892_v24  ;;  %v2351_v59 = vmul.f32 0.5, %v10860_v27 }
 0x41f   : > { %v2831_v32 = vadd.f32 0.2548296, %v2799_v31  ;;  %v2482_v5 = vand.u32 2147483647, %v10895_v4  ;;  %vm2418_vm14 = vcmp.ge.f32.partialorder %v10895_v4, 0.0 }
 0x420   : > { %v2864_v55 = vmul.f32 %v7550_v56, %v2832_v61  ;;  %v2481_v39 = vand.u32 2147483647, %v10898_v48  ;;  %vm2417_vm1 = vcmp.ge.f32.partialorder %v10898_v48, 0.0 }
 0x421   : > { %v2863_v1 = vmul.f32 %v7552_v50, %v2831_v32  ;;  %v2514_v46 = vmul.f32 0.3275911, %v2482_v5  ;;  %v2898_v32 = vsub.f32 0.0, %v2482_v5 }
 0x422   : > { %v3024_v44 = vmul.f32 %v7554_v49, %v2864_v55  ;;  %v2513_v18 = vmul.f32 0.3275911, %v2481_v39  ;;  %v2897_v55 = vsub.f32 0.0, %v2481_v39 }
 0x423   : > { %v3023_v16 = vmul.f32 %v7556_v40, %v2863_v1  ;;  %v2546_v60 = vadd.f32 1.0, %v2514_v46  ;;  %v2930_v46 = vmul.f32 %v2898_v32, %v2482_v5 }
 0x424   : > { %v3056_v52 = vsub.f32 1.0, %v3024_v44  ;;  %v2545_v0 = vadd.f32 1.0, %v2513_v18  ;;  %v2929_v44 = vmul.f32 %v2897_v55, %v2481_v39 }
 0x425   : > { %v3055_v30 = vsub.f32 1.0, %v3023_v16  ;;  %7557 = vrcp.f32 %v2546_v60  ;;  %v2989_v16 = vmul.f32 1.442695, %v2930_v46 }
 0x426   : > { %v3088_v56 = vmul.f32 %v3056_v52, %v2448_v21  ;;  %7559 = vrcp.f32 %v2545_v0  ;;  %v2987_v0 = vmul.f32 1.442695, %v2929_v44 }
 0x427   : > { %v3087_v50 = vmul.f32 %v3055_v30, %v2447_v25  ;;  %7561 = vpow2.f32 %v2989_v16 }
 0x428   : > { %v3120_v38 = vadd.f32 1.0, %v3088_v56  ;;  %7563 = vpow2.f32 %v2987_v0 }
 0x429   : > { %v3119_v31 = vadd.f32 1.0, %v3087_v50 }
 0x42a   : > { %v10908_v23 = vmul.f32 %v3120_v38, %v2352_v42 }
 0x42b   : > { %v10910_v61 = vmul.f32 %v3119_v31, %v2351_v59 }
 0x42d   : > { %v6636_v49 = vpack.c.bf16 %v10908_v23, %v10910_v61 }
 0x42f   : > { %v7558_v1 = vpop.eup %7557  ;;  %6638 = vmatprep.subr.msk.bf16.mxu1 %vm10775_vm4, %v6636_v49  ;;  %6698 = vmatpush1.bf16.msra.mxu0 %v6636_v49 }
 0x430   : > { %v7560_v19 = vpop.eup %7559  ;;  %v2610_v40 = vmul.f32 1.0614054, %v7558_v1  ;;  %6641 = vmatpush3.bf16.xpose.msk.msra.mxu1 %vm10775_vm4, %v10590_v14  ;;  %6699 = vmatprep.subr.bf16.mxu0 %v14091_v13 }
 0x431   : > { %v2609_v27 = vmul.f32 1.0614054, %v7560_v19  ;;  %v7562_v16 = vpop.eup %7561 }
 0x432   : > { %v2642_v18 = vadd.f32 -1.4531521, %v2610_v40  ;;  %v7564_v0 = vpop.eup %7563 }
 0x433   : > { %v2641_v60 = vadd.f32 -1.4531521, %v2609_v27 }
 0x434   : > { %v2674_v52 = vmul.f32 %v7558_v1, %v2642_v18 }
 0x435   : > { %v2673_v5 = vmul.f32 %v7560_v19, %v2641_v60 }
 0x436   : > { %v2706_v21 = vadd.f32 1.4214138, %v2674_v52 }
 0x437   : > { %v2705_v30 = vadd.f32 1.4214138, %v2673_v5 }
 0x438   : > { %v2738_v56 = vmul.f32 %v7558_v1, %v2706_v21 }
 0x439   : > { %v2737_v25 = vmul.f32 %v7560_v19, %v2705_v30 }
 0x43a   : > { %v2770_v39 = vadd.f32 -0.28449672, %v2738_v56  ;;  %v6596_v50 = vpop.f32.mrb[28].mxu0 }
 0x43b   : > { %v2769_v42 = vadd.f32 -0.28449672, %v2737_v25  ;;  %v10921_v14 = vadd.f32 %v10822_v51, %v6596_v50  ;;  %v2308_v38 = vpop.f32.mrb[29].mxu0  ;;  %v2450_v50 = vsel %vm2418_vm14, 1.0, %v14097_v22 }
 0x43c   : > { %v2802_v59 = vmul.f32 %v7558_v1, %v2770_v39  ;;  %v10924_v31 = vadd.f32 %v10822_v51, %v2308_v38  ;;  %v2449_v38 = vsel %vm2417_vm1, 1.0, %v14097_v22 }
 0x43d   : > { %v2801_v32 = vmul.f32 %v7560_v19, %v2769_v42  ;;  %v10927_v55 = vmul.f32 0.70710677, %v10921_v14 }
 0x43e   : > { %v2834_v49 = vadd.f32 0.2548296, %v2802_v59  ;;  %v10930_v46 = vmul.f32 0.70710677, %v10924_v31  ;;  %v2354_v59 = vmul.f32 0.5, %v10889_v26 }
 0x43f   : > { %v2833_v40 = vadd.f32 0.2548296, %v2801_v32  ;;  %v2484_v44 = vand.u32 2147483647, %v10927_v55  ;;  %v2353_v32 = vmul.f32 0.5, %v10892_v24  ;;  %vm2420_vm6 = vcmp.ge.f32.partialorder %v10927_v55, 0.0 }
 0x440   : > { %v2866_v27 = vmul.f32 %v7558_v1, %v2834_v49  ;;  %v2483_v18 = vand.u32 2147483647, %v10930_v46  ;;  %vm2419_vm2 = vcmp.ge.f32.partialorder %v10930_v46, 0.0  ;;  %v2355_v46 = vmul.f32 0.5, %v10924_v31 }
 0x441   : > { %v2865_v60 = vmul.f32 %v7560_v19, %v2833_v40  ;;  %v2516_v52 = vmul.f32 0.3275911, %v2484_v44 }
 0x442   : > { %v3026_v5 = vmul.f32 %v7562_v16, %v2866_v27  ;;  %v2515_v21 = vmul.f32 0.3275911, %v2483_v18  ;;  %v2900_v27 = vsub.f32 0.0, %v2484_v44  ;;  %v2899_v16 = vsub.f32 0.0, %v2483_v18 }
 0x443   : > { %v3025_v30 = vmul.f32 %v7564_v0, %v2865_v60  ;;  %v2548_v56 = vadd.f32 1.0, %v2516_v52 }
 0x444   : > { %v3058_v25 = vsub.f32 1.0, %v3026_v5  ;;  %v2547_v39 = vadd.f32 1.0, %v2515_v21  ;;  %v2932_v0 = vmul.f32 %v2900_v27, %v2484_v44  ;;  %v2931_v21 = vmul.f32 %v2899_v16, %v2483_v18 }
 0x445   : > { %v3057_v42 = vsub.f32 1.0, %v3025_v30  ;;  %7565 = vrcp.f32 %v2548_v56 }
 0x446   : > { %v3090_v1 = vmul.f32 %v3058_v25, %v2450_v50  ;;  %7567 = vrcp.f32 %v2547_v39  ;;  %v2993_v56 = vmul.f32 1.442695, %v2932_v0  ;;  %v2991_v50 = vmul.f32 1.442695, %v2931_v21 }
 0x447   : > { %v3089_v19 = vmul.f32 %v3057_v42, %v2449_v38 }
 0x448   : > { %v3122_v4 = vadd.f32 1.0, %v3090_v1  ;;  %7569 = vpow2.f32 %v2993_v56 }
 0x449   : > { %v3121_v49 = vadd.f32 1.0, %v3089_v19  ;;  %7571 = vpow2.f32 %v2991_v50 }
 0x44a   : > { %v10940_v48 = vmul.f32 %v3122_v4, %v2354_v59 }
 0x44b   : > { %v10942_v40 = vmul.f32 %v3121_v49, %v2353_v32 }
 0x44d   : > { %v6642_v60 = vpack.c.bf16 %v10940_v48, %v10942_v40 }
 0x44f   : > { %v7566_v52 = vpop.eup %7565  ;;  %6644 = vmatprep.subr.msk.bf16.mxu1 %vm10775_vm4, %v6642_v60  ;;  %6701 = vmatpush1.bf16.msra.mxu0 %v6642_v60 }
 0x450   : > { %v7568_v26 = vpop.eup %7567  ;;  %v2612_v5 = vmul.f32 1.0614054, %v7566_v52  ;;  %6647 = vmatpush3.bf16.xpose.msk.msra.mxu1 %vm10775_vm4, %v10652_v15  ;;  %6702 = vmatprep.subr.bf16.mxu0 %v14091_v13 }
 0x451   : > { %v2611_v24 = vmul.f32 1.0614054, %v7568_v26 }
 0x452   : > { %v2644_v30 = vadd.f32 -1.4531521, %v2612_v5 }
 0x453   : > { %v2643_v25 = vadd.f32 -1.4531521, %v2611_v24  ;;  %v7570_v24 = vpop.eup %7569 }
 0x454   : > { %v2676_v39 = vmul.f32 %v7566_v52, %v2644_v30 }
 0x455   : > { %v2675_v44 = vmul.f32 %v7568_v26, %v2643_v25  ;;  %v7572_v25 = vpop.eup %7571 }
 0x456   : > { %v2708_v42 = vadd.f32 1.4214138, %v2676_v39 }
 0x457   : > { %v2707_v1 = vadd.f32 1.4214138, %v2675_v44 }
 0x458   : > { %v2740_v38 = vmul.f32 %v7566_v52, %v2708_v42 }
 0x459   : > { %v2739_v19 = vmul.f32 %v7568_v26, %v2707_v1  ;;  %v2452_v1 = vsel %vm2420_vm6, 1.0, %v14097_v22 }
 0x45a   : > { %v2772_v18 = vadd.f32 -0.28449672, %v2740_v38 }
 0x45b   : > { %v2771_v59 = vadd.f32 -0.28449672, %v2739_v19 }
 0x45c   : > { %v2804_v4 = vmul.f32 %v7566_v52, %v2772_v18  ;;  %v2451_v18 = vsel %vm2419_vm2, 1.0, %v14097_v22 }
 0x45d   : > { %v2803_v32 = vmul.f32 %v7568_v26, %v2771_v59  ;;  %v6599_v15 = vpop.f32.mrb[30].mxu0 }
 0x45e   : > { %v2836_v49 = vadd.f32 0.2548296, %v2804_v4  ;;  %v10953_v27 = vadd.f32 %v10822_v51, %v6599_v15  ;;  %v2318_v16 = vpop.f32.mrb[31].mxu0 }
 0x45f   : > { %v2835_v60 = vadd.f32 0.2548296, %v2803_v32  ;;  %v10956_v0 = vadd.f32 %v10822_v51, %v2318_v16  ;;  %v2356_v32 = vmul.f32 0.5, %v10921_v14 }
 0x460   : > { %v2868_v5 = vmul.f32 %v7566_v52, %v2836_v49  ;;  %v10959_v21 = vmul.f32 0.70710677, %v10953_v27 }
 0x461   : > { %v2867_v30 = vmul.f32 %v7568_v26, %v2835_v60  ;;  %v10962_v56 = vmul.f32 0.70710677, %v10956_v0 }
 0x462   : > { %v3028_v39 = vmul.f32 %v7570_v24, %v2868_v5  ;;  %v2486_v50 = vand.u32 2147483647, %v10959_v21  ;;  %vm2422_vm3 = vcmp.ge.f32.partialorder %v10959_v21, 0.0 }
 0x463   : > { %v3027_v44 = vmul.f32 %v7572_v25, %v2867_v30  ;;  %v2485_v51 = vand.u32 2147483647, %v10962_v56  ;;  %vm2421_vm10 = vcmp.ge.f32.partialorder %v10962_v56, 0.0 }
 0x464   : > { %v3060_v52 = vsub.f32 1.0, %v3028_v39  ;;  %v2518_v42 = vmul.f32 0.3275911, %v2486_v50  ;;  %v2902_v24 = vsub.f32 0.0, %v2486_v50 }
 0x465   : > { %v3059_v38 = vsub.f32 1.0, %v3027_v44  ;;  %v2517_v26 = vmul.f32 0.3275911, %v2485_v51  ;;  %v2901_v30 = vsub.f32 0.0, %v2485_v51 }
 0x466   : > { %v3092_v19 = vmul.f32 %v3060_v52, %v2452_v1  ;;  %v2550_v59 = vadd.f32 1.0, %v2518_v42  ;;  %v2934_v31 = vmul.f32 %v2902_v24, %v2486_v50 }
 0x467   : > { %v3091_v4 = vmul.f32 %v3059_v38, %v2451_v18  ;;  %v2549_v55 = vadd.f32 1.0, %v2517_v26  ;;  %v2933_v44 = vmul.f32 %v2901_v30, %v2485_v51 }
 0x468   : > { %v3124_v15 = vadd.f32 1.0, %v3092_v19  ;;  %7573 = vrcp.f32 %v2550_v59  ;;  %v2997_v1 = vmul.f32 1.442695, %v2934_v31 }
 0x469   : > { %v3123_v49 = vadd.f32 1.0, %v3091_v4  ;;  %7575 = vrcp.f32 %v2549_v55  ;;  %v2995_v19 = vmul.f32 1.442695, %v2933_v44 }
 0x46a   : > { %v10972_v16 = vmul.f32 %v3124_v15, %v2356_v32  ;;  %7577 = vpow2.f32 %v2997_v1 }
 0x46b   : > { %v10974_v60 = vmul.f32 %v3123_v49, %v2355_v46  ;;  %7579 = vpow2.f32 %v2995_v19  ;;  %v2358_v19 = vmul.f32 0.5, %v10953_v27  ;;  %v3160_v27 = vmul.f32 0.28867513, %v10023_v43 }
 0x46c   : > { %v3164_v43 = vmul.f32 0.28867513, %v10429_v12  ;;  %v3168_v12 = vmul.f32 0.28867513, %v10581_v45  ;;  %v3172_v45 = vmul.f32 0.28867513, %v10710_v58 }
 0x46d   : > { %v6648_v5 = vpack.c.bf16 %v10972_v16, %v10974_v60  ;;  %v3176_v58 = vmul.f32 0.28867513, %v10769_v47  ;;  %v3180_v47 = vmul.f32 0.28867513, %v10844_v57  ;;  %v3185_v57 = vmul.f32 0.28867513, %v10942_v40 }
 0x46e   : > { %v3187_v7 = vmul.f32 0.28867513, %v10974_v60  ;;  %v3192_v40 = vld [vmem:[%s13513_s5 + $0x8] sm:$0xff] }
 0x46f   : > { %6650 = vmatprep.subr.msk.bf16.mxu1 %vm10775_vm4, %v6648_v5  ;;  %6704 = vmatpush1.bf16.msra.mxu0 %v6648_v5 }
 0x470   : > { %6653 = vmatpush3.bf16.xpose.msk.msra.mxu1 %vm10775_vm4, %v10722_v33  ;;  %6705 = vmatprep.subr.bf16.mxu0 %v14091_v13 }
 0x472   : > { %v7574_v14 = vpop.eup %7573 }
 0x473   : > { %v7576_v25 = vpop.eup %7575  ;;  %v2614_v39 = vmul.f32 1.0614054, %v7574_v14 }
 0x474   : > { %v2613_v52 = vmul.f32 1.0614054, %v7576_v25  ;;  %v7578_v5 = vpop.eup %7577 }
 0x475   : > { %v2646_v42 = vadd.f32 -1.4531521, %v2614_v39  ;;  %v7580_v30 = vpop.eup %7579 }
 0x476   : > { %v2645_v38 = vadd.f32 -1.4531521, %v2613_v52  ;;  %v2454_v52 = vsel %vm2422_vm3, 1.0, %v14097_v22 }
 0x477   : > { %v2678_v26 = vmul.f32 %v7574_v14, %v2646_v42 }
 0x478   : > { %v2677_v18 = vmul.f32 %v7576_v25, %v2645_v38  ;;  %v2453_v38 = vsel %vm2421_vm10, 1.0, %v14097_v22 }
 0x479   : > { %v2710_v59 = vadd.f32 1.4214138, %v2678_v26 }
 0x47a   : > { %v2709_v4 = vadd.f32 1.4214138, %v2677_v18 }
 0x47b   : > { %v2742_v55 = vmul.f32 %v7574_v14, %v2710_v59 }
 0x47c   : > { %v2741_v33 = vmul.f32 %v7576_v25, %v2709_v4  ;;  %v3162_v4 = vmul.f32 0.28867513, %v10178_v8  ;;  %v3166_v8 = vmul.f32 0.28867513, %v10515_v54  ;;  %v3170_v54 = vmul.f32 0.28867513, %v10643_v63 }
 0x47d   : > { %v2774_v32 = vadd.f32 -0.28449672, %v2742_v55  ;;  %v3174_v63 = vmul.f32 0.28867513, %v10739_v53  ;;  %v3178_v53 = vmul.f32 0.28867513, %v10807_v29 }
 0x47e   : > { %v2773_v13 = vadd.f32 -0.28449672, %v2741_v33  ;;  %v3183_v29 = vmul.f32 0.28867513, %v10910_v61 }
 0x47f   : > { %v2806_v15 = vmul.f32 %v7574_v14, %v2774_v32  ;;  %v3193_v32 = vld [vmem:[%s13513_s5 + $0x10] sm:$0xff] }
 0x480   : > { %v2805_v50 = vmul.f32 %v7576_v25, %v2773_v13  ;;  %v3194_v13 = vld [vmem:[%s13513_s5 + $0x18] sm:$0xff] }
 0x481   : > { %v2838_v46 = vadd.f32 0.2548296, %v2806_v15 }
 0x482   : > { %v2837_v49 = vadd.f32 0.2548296, %v2805_v50 }
 0x483   : > { %v2870_v51 = vmul.f32 %v7574_v14, %v2838_v46 }
 0x484   : > { %v2869_v24 = vmul.f32 %v7576_v25, %v2837_v49  ;;  %v2357_v25 = vmul.f32 0.5, %v10956_v0  ;;  %v3161_v0 = vmul.f32 0.28867513, %v10184_v62  ;;  %v3167_v62 = vmul.f32 0.28867513, %v10584_v3 }
 0x485   : > { %v3030_v31 = vmul.f32 %v7578_v5, %v2870_v51  ;;  %v3173_v3 = vmul.f32 0.28867513, %v10741_v35  ;;  %v3179_v35 = vmul.f32 0.28867513, %v10846_v6  ;;  %v3186_v6 = vmul.f32 0.28867513, %v10940_v48 }
 0x486   : > { %v3029_v39 = vmul.f32 %v7580_v30, %v2869_v24  ;;  %v3191_v48 = vld [vmem:[%s13513_s5] sm:$0xff]  ;;  %v3196_v24 = vld [vmem:[%s13513_s5 + $0x28] sm:$0xff] }
 0x487   : > { %v3062_v44 = vsub.f32 1.0, %v3030_v31  ;;  %v3195_v5 = vld [vmem:[%s13513_s5 + $0x20] sm:$0xff] }
 0x488   : > { %v3061_v42 = vsub.f32 1.0, %v3029_v39 }
 0x489   : > { %v3094_v1 = vmul.f32 %v3062_v44, %v2454_v52 }
 0x48a   : > { %v3093_v26 = vmul.f32 %v3061_v42, %v2453_v38  ;;  %v3197_v42 = vld [vmem:[%s13513_s5 + $0x30] sm:$0xff] }
 0x48b   : > { %v3126_v14 = vadd.f32 1.0, %v3094_v1  ;;  %v3198_v1 = vld [vmem:[%s13513_s5 + $0x38] sm:$0xff] }
 0x48c   : > { %v3125_v18 = vadd.f32 1.0, %v3093_v26 }
 0x48d   : > { %v10990_v59 = vmul.f32 %v3126_v14, %v2358_v19 }
 0x48e   : > { %v10992_v21 = vmul.f32 %v3125_v18, %v2357_v25  ;;  %v3199_v18 = vld [vmem:[%s13513_s5 + $0x40] sm:$0xff] }
 0x48f   : > { %v3190_v61 = vmul.f32 0.28867513, %v10990_v59 }
 0x490   : > { %v6654_v56 = vpack.c.bf16 %v10990_v59, %v10992_v21  ;;  %v3200_v59 = vld [vmem:[%s13513_s5 + $0x48] sm:$0xff] }
 0x492   : > { %6656 = vmatprep.subr.msk.bf16.mxu1 %vm10775_vm4, %v6654_v56  ;;  %6707 = vmatpush1.bf16.msra.mxu0 %v6654_v56 }
 0x493   : > { %6659 = vmatpush3.bf16.xpose.msk.msra.mxu1 %vm10775_vm4, %v10751_v10  ;;  %v3163_v10 = vmul.f32 0.28867513, %v10434_v37  ;;  %v3169_v37 = vmul.f32 0.28867513, %v10646_v36  ;;  %v3175_v36 = vmul.f32 0.28867513, %v10771_v11 }
 0x494   : > { %v3181_v11 = vmul.f32 0.28867513, %v10878_v17  ;;  %v3188_v17 = vmul.f32 0.28867513, %v10972_v16 }
 0x49a   : > { %6439 = vmatmul.mubr.msk.f32.vlgmr.msra.gmra.mrb[0].mxu1 %vm1756_vm0, %v10045_v2  ;;  %v3165_v2 = vmul.f32 0.28867513, %v10518_v41  ;;  %v3171_v41 = vmul.f32 0.28867513, %v10715_v28  ;;  %v3177_v28 = vmul.f32 0.28867513, %v10809_v34 }
 0x49b   : > { %6440 = vmatprep.mubr.msk.f32.mxu1 %vm1756_vm0, %v3160_v27  ;;  %v3184_v34 = vmul.f32 0.28867513, %v10908_v23  ;;  %v3189_v23 = vmul.f32 0.28867513, %v10992_v21 }
 0x49e   : > { %6441 = vmatmul.mubr.msk.f32.gmra.mrb[2].mxu1 %vm1756_vm0, %v3160_v27 }
 0x49f   : > { %6442 = vmatprep.mubr.msk.f32.mxu1 %vm1756_vm0, %v3161_v0 }
 0x4a2   : > { %6443 = vmatmul.mubr.msk.f32.gmra.mrb[4].mxu1 %vm1756_vm0, %v3161_v0 }
 0x4a3   : > { %6444 = vmatprep.mubr.msk.f32.mxu1 %vm1756_vm0, %v3162_v4 }
 0x4a6   : > { %6445 = vmatmul.mubr.msk.f32.gmra.mrb[6].mxu1 %vm1756_vm0, %v3162_v4 }
 0x4a7   : > { %6446 = vmatprep.mubr.msk.f32.mxu1 %vm1756_vm0, %v3163_v10 }
 0x4aa   : > { %6447 = vmatmul.mubr.msk.f32.gmra.mrb[8].mxu1 %vm1756_vm0, %v3163_v10  ;;  %v3201_v10 = vld [vmem:[%s13513_s5 + $0x50] sm:$0xff] }
 0x4ab   : > { %6448 = vmatprep.mubr.msk.f32.mxu1 %vm1756_vm0, %v3164_v43 }
 0x4ae   : > { %6449 = vmatmul.mubr.msk.f32.gmra.mrb[10].mxu1 %vm1756_vm0, %v3164_v43  ;;  %v3202_v43 = vld [vmem:[%s13513_s5 + $0x58] sm:$0xff] }
 0x4af   : > { %6450 = vmatprep.mubr.msk.f32.mxu1 %vm1756_vm0, %v3165_v2 }
 0x4b2   : > { %6451 = vmatmul.mubr.msk.f32.gmra.mrb[12].mxu1 %vm1756_vm0, %v3165_v2 }
 0x4b3   : > { %6452 = vmatprep.mubr.msk.f32.mxu1 %vm1756_vm0, %v3166_v8 }
 0x4b6   : > { %6453 = vmatmul.mubr.msk.f32.gmra.mrb[14].mxu1 %vm1756_vm0, %v3166_v8 }
 0x4b7   : > { %6454 = vmatprep.mubr.msk.f32.mxu1 %vm1756_vm0, %v3167_v62 }
 0x4ba   : > { %6455 = vmatmul.mubr.msk.f32.gmra.mrb[16].mxu1 %vm1756_vm0, %v3167_v62 }
 0x4bb   : > { %6456 = vmatprep.mubr.msk.f32.mxu1 %vm1756_vm0, %v3168_v12 }
 0x4be   : > { %6457 = vmatmul.mubr.msk.f32.gmra.mrb[18].mxu1 %vm1756_vm0, %v3168_v12 }
 0x4bf   : > { %6458 = vmatprep.mubr.msk.f32.mxu1 %vm1756_vm0, %v3169_v37 }
 0x4c2   : > { %6459 = vmatmul.mubr.msk.f32.gmra.mrb[20].mxu1 %vm1756_vm0, %v3169_v37 }
 0x4c3   : > { %6460 = vmatprep.mubr.msk.f32.mxu1 %vm1756_vm0, %v3170_v54 }
 0x4c6   : > { %6461 = vmatmul.mubr.msk.f32.gmra.mrb[22].mxu1 %vm1756_vm0, %v3170_v54  ;;  %v3203_v54 = vld [vmem:[%s13513_s5 + $0x60] sm:$0xff] }
 0x4c7   : > { %6462 = vmatprep.mubr.msk.f32.mxu1 %vm1756_vm0, %v3171_v41 }
 0x4ca   : > { %6463 = vmatmul.mubr.msk.f32.gmra.mrb[24].mxu1 %vm1756_vm0, %v3171_v41  ;;  %v3204_v41 = vld [vmem:[%s13513_s5 + $0x68] sm:$0xff] }
 0x4cb   : > { %6464 = vmatprep.mubr.msk.f32.mxu1 %vm1756_vm0, %v3172_v45 }
 0x4ce   : > { %6465 = vmatmul.mubr.msk.f32.gmra.mrb[26].mxu1 %vm1756_vm0, %v3172_v45 }
 0x4cf   : > { %6466 = vmatprep.mubr.msk.f32.mxu1 %vm1756_vm0, %v3173_v3 }
 0x4d2   : > { %6467 = vmatmul.mubr.msk.f32.gmra.mrb[28].mxu1 %vm1756_vm0, %v3173_v3 }
 0x4d3   : > { %6468 = vmatprep.mubr.msk.f32.mxu1 %vm1756_vm0, %v3174_v63 }
 0x4d6   : > { %6469 = vmatmul.mubr.msk.f32.gmra.mrb[30].mxu1 %vm1756_vm0, %v3174_v63 }
 0x4d7   : > { %6470 = vmatprep.mubr.msk.f32.mxu1 %vm1756_vm0, %v3175_v36 }
 0x4da   : > { %6471 = vmatmul.mubr.msk.f32.gmra.mrb[32].mxu1 %vm1756_vm0, %v3175_v36 }
 0x4db   : > { %6472 = vmatprep.mubr.msk.f32.mxu1 %vm1756_vm0, %v3176_v58 }
 0x4de   : > { %6473 = vmatmul.mubr.msk.f32.gmra.mrb[34].mxu1 %vm1756_vm0, %v3176_v58 }
 0x4df   : > { %6474 = vmatprep.mubr.msk.f32.mxu1 %vm1756_vm0, %v3177_v28 }
 0x4e2   : > { %6475 = vmatmul.mubr.msk.f32.gmra.mrb[36].mxu1 %vm1756_vm0, %v3177_v28  ;;  %v3205_v28 = vld [vmem:[%s13513_s5 + $0x70] sm:$0xff] }
 0x4e3   : > { %6476 = vmatprep.mubr.msk.f32.mxu1 %vm1756_vm0, %v3178_v53 }
 0x4e6   : > { %6477 = vmatmul.mubr.msk.f32.gmra.mrb[38].mxu1 %vm1756_vm0, %v3178_v53  ;;  %v3206_v53 = vld [vmem:[%s13513_s5 + $0x78] sm:$0xff] }
 0x4e7   : > { %6478 = vmatprep.mubr.msk.f32.mxu1 %vm1756_vm0, %v3179_v35 }
 0x4ea   : > { %6479 = vmatmul.mubr.msk.f32.gmra.mrb[40].mxu1 %vm1756_vm0, %v3179_v35 }
 0x4eb   : > { %6480 = vmatprep.mubr.msk.f32.mxu1 %vm1756_vm0, %v3180_v47 }
 0x4ee   : > { %6481 = vmatmul.mubr.msk.f32.gmra.mrb[42].mxu1 %vm1756_vm0, %v3180_v47 }
 0x4ef   : > { %6482 = vmatprep.mubr.msk.f32.mxu1 %vm1756_vm0, %v3181_v11 }
 0x4f2   : > { %6483 = vmatmul.mubr.msk.f32.gmra.mrb[44].mxu1 %vm1756_vm0, %v3181_v11 }
 0x4f3   : > { %6484 = vmatprep.mubr.msk.f32.mxu1 %vm1756_vm0, %v3182_v20 }
 0x4f6   : > { %6485 = vmatmul.mubr.msk.f32.gmra.mrb[46].mxu1 %vm1756_vm0, %v3182_v20 }
 0x4f7   : > { %6486 = vmatprep.mubr.msk.f32.mxu1 %vm1756_vm0, %v3183_v29 }
 0x4fa   : > { %6487 = vmatmul.mubr.msk.f32.gmra.mrb[48].mxu1 %vm1756_vm0, %v3183_v29 }
 0x4fb   : > { %6488 = vmatprep.mubr.msk.f32.mxu1 %vm1756_vm0, %v3184_v34 }
 0x4fe   : > { %6489 = vmatmul.mubr.msk.f32.gmra.mrb[50].mxu1 %vm1756_vm0, %v3184_v34  ;;  %v3207_v34 = vld [vmem:[%s13513_s5 + $0x80] sm:$0xff] }
 0x4ff   : > { %6490 = vmatprep.mubr.msk.f32.mxu1 %vm1756_vm0, %v3185_v57 }
 0x502   : > { %6491 = vmatmul.mubr.msk.f32.gmra.mrb[52].mxu1 %vm1756_vm0, %v3185_v57  ;;  %v3208_v57 = vld [vmem:[%s13513_s5 + $0x88] sm:$0xff] }
 0x503   : > { %6492 = vmatprep.mubr.msk.f32.mxu1 %vm1756_vm0, %v3186_v6 }
 0x506   : > { %6493 = vmatmul.mubr.msk.f32.gmra.mrb[54].mxu1 %vm1756_vm0, %v3186_v6 }
 0x507   : > { %6494 = vmatprep.mubr.msk.f32.mxu1 %vm1756_vm0, %v3187_v7 }
 0x50a   : > { %6495 = vmatmul.mubr.msk.f32.gmra.mrb[56].mxu1 %vm1756_vm0, %v3187_v7 }
 0x50b   : > { %6496 = vmatprep.mubr.msk.f32.mxu1 %vm1756_vm0, %v3188_v17 }
 0x50e   : > { %6497 = vmatmul.mubr.msk.f32.gmra.mrb[58].mxu1 %vm1756_vm0, %v3188_v17 }
 0x50f   : > { %6498 = vmatprep.mubr.msk.f32.mxu1 %vm1756_vm0, %v3189_v23 }
 0x512   : > { %6499 = vmatmul.mubr.msk.f32.gmra.mrb[60].mxu1 %vm1756_vm0, %v3189_v23 }
 0x513   : > { %6500 = vmatprep.mubr.msk.f32.mxu1 %vm1756_vm0, %v3190_v61 }
 0x516   : > { %6501 = vmatmul.mubr.msk.f32.gmra.mrb[62].mxu1 %vm1756_vm0, %v3190_v61 }
 0x56d   : > { %v3513_v16 = vpop.f32.mrb[0].mxu1 }
 0x56e   : > { %v11102_v60 = vadd.f32 %v3513_v16, %v3191_v48  ;;  %v3515_v55 = vpop.f32.mrb[1].mxu1  ;;  %v3209_v48 = vld [vmem:[%s13513_s5 + $0x90] sm:$0xff] }
 0x56f   : > { %v11104_v33 = vadd.f32 %v3515_v55, %v3192_v40  ;;  %v3210_v40 = vld [vmem:[%s13513_s5 + $0x98] sm:$0xff] }
 0x571   : > { %v3704_v15 = vmax.f32 %v11102_v60, %v11104_v33  ;;  %v3519_v50 = vpop.f32.mrb[2].mxu1 }
 0x572   : > { %v11114_v46 = vadd.f32 %v3519_v50, %v3193_v32  ;;  %v3521_v49 = vpop.f32.mrb[3].mxu1  ;;  %v3211_v50 = vld [vmem:[%s13513_s5 + $0xa0] sm:$0xff] }
 0x573   : > { %v11116_v51 = vadd.f32 %v3521_v49, %v3194_v13  ;;  %3705 = vmax.xlane.f32.xlu0 %v3704_v15  ;;  %v3212_v49 = vld [vmem:[%s13513_s5 + $0xa8] sm:$0xff] }
 0x575   : > { %v3707_v30 = vmax.f32 %v11114_v46, %v11116_v51  ;;  %v3525_v31 = vpop.f32.mrb[4].mxu1 }
 0x576   : > { %v11126_v39 = vadd.f32 %v3525_v31, %v3195_v5  ;;  %v3527_v44 = vpop.f32.mrb[5].mxu1 }
 0x577   : > { %v11128_v52 = vadd.f32 %v3527_v44, %v3196_v24  ;;  %3708 = vmax.xlane.f32.xlu1 %v3707_v30 }
 0x579   : > { %v3710_v38 = vmax.f32 %v11126_v39, %v11128_v52  ;;  %v3531_v26 = vpop.f32.mrb[6].mxu1 }
 0x57a   : > { %v11138_v19 = vadd.f32 %v3531_v26, %v3197_v42  ;;  %v3533_v14 = vpop.f32.mrb[7].mxu1  ;;  %v3213_v42 = vld [vmem:[%s13513_s5 + $0xb0] sm:$0xff] }
 0x57b   : > { %v11140_v25 = vadd.f32 %v3533_v14, %v3198_v1  ;;  %3711 = vmax.xlane.f32.xlu0 %v3710_v38  ;;  %v3214_v1 = vld [vmem:[%s13513_s5 + $0xb8] sm:$0xff] }
 0x57d   : > { %v3713_v21 = vmax.f32 %v11138_v19, %v11140_v25  ;;  %v3537_v56 = vpop.f32.mrb[8].mxu1 }
 0x57e   : > { %v11150_v27 = vadd.f32 %v3537_v56, %v3199_v18  ;;  %v3539_v0 = vpop.f32.mrb[9].mxu1  ;;  %v3216_v56 = vld [vmem:[%s13513_s5 + $0xc8] sm:$0xff] }
 0x57f   : > { %v11152_v4 = vadd.f32 %v3539_v0, %v3200_v59  ;;  %3714 = vmax.xlane.f32.xlu0 %v3713_v21  ;;  %v3215_v21 = vld [vmem:[%s13513_s5 + $0xc0] sm:$0xff] }
 0x581   : > { %v3716_v2 = vmax.f32 %v11150_v27, %v11152_v4  ;;  %v3543_v8 = vpop.f32.mrb[10].mxu1 }
 0x582   : > { %v11162_v62 = vadd.f32 %v3543_v8, %v3201_v10  ;;  %v3545_v12 = vpop.f32.mrb[11].mxu1 }
 0x583   : > { %v11164_v37 = vadd.f32 %v3545_v12, %v3202_v43  ;;  %3717 = vmax.xlane.f32.xlu1 %v3716_v2  ;;  %v3217_v12 = vld [vmem:[%s13513_s5 + $0xd0] sm:$0xff] }
 0x585   : > { %v3719_v45 = vmax.f32 %v11162_v62, %v11164_v37  ;;  %v3549_v3 = vpop.f32.mrb[12].mxu1 }
 0x586   : > { %v11174_v63 = vadd.f32 %v3549_v3, %v3203_v54  ;;  %v3551_v36 = vpop.f32.mrb[13].mxu1  ;;  %v3218_v54 = vld [vmem:[%s13513_s5 + $0xd8] sm:$0xff] }
 0x587   : > { %v11176_v58 = vadd.f32 %v3551_v36, %v3204_v41  ;;  %3720 = vmax.xlane.f32.xlu0 %v3719_v45 }
 0x589   : > { %v3722_v35 = vmax.f32 %v11174_v63, %v11176_v58  ;;  %v3555_v47 = vpop.f32.mrb[14].mxu1 }
 0x58a   : > { %v11186_v11 = vadd.f32 %v3555_v47, %v3205_v28  ;;  %v3557_v20 = vpop.f32.mrb[15].mxu1 }
 0x58b   : > { %v11188_v29 = vadd.f32 %v3557_v20, %v3206_v53  ;;  %3723 = vmax.xlane.f32.xlu1 %v3722_v35  ;;  %v3219_v53 = vld [vmem:[%s13513_s5 + $0xe0] sm:$0xff]  ;;  %v3220_v35 = vld [vmem:[%s13513_s5 + $0xe8] sm:$0xff] }
 0x58d   : > { %v3725_v6 = vmax.f32 %v11186_v11, %v11188_v29  ;;  %v3561_v7 = vpop.f32.mrb[16].mxu1 }
 0x58e   : > { %v11198_v17 = vadd.f32 %v3561_v7, %v3207_v34  ;;  %v3563_v23 = vpop.f32.mrb[17].mxu1  ;;  %v3221_v7 = vld [vmem:[%s13513_s5 + $0xf0] sm:$0xff] }
 0x58f   : > { %v11200_v61 = vadd.f32 %v3563_v23, %v3208_v57  ;;  %3726 = vmax.xlane.f32.xlu0 %v3725_v6  ;;  %v3222_v23 = vld [vmem:[%s13513_s5 + $0xf8] sm:$0xff] }
 0x591   : > { %v3728_v16 = vmax.f32 %v11198_v17, %v11200_v61  ;;  %v3567_v55 = vpop.f32.mrb[18].mxu1 }
 0x592   : > { %v11210_v32 = vadd.f32 %v3567_v55, %v3209_v48  ;;  %v3569_v13 = vpop.f32.mrb[19].mxu1 }
 0x593   : > { %v11212_v15 = vadd.f32 %v3569_v13, %v3210_v40  ;;  %3729 = vmax.xlane.f32.xlu1 %v3728_v16 }
 0x595   : > { %v3731_v5 = vmax.f32 %v11210_v32, %v11212_v15  ;;  %v3573_v24 = vpop.f32.mrb[20].mxu1 }
 0x596   : > { %v11222_v30 = vadd.f32 %v3573_v24, %v3211_v50  ;;  %v3575_v31 = vpop.f32.mrb[21].mxu1  ;;  %v3223_v50 = vld [vmem:[%s13513_s5 + $0x100] sm:$0xff] }
 0x597   : > { %v11224_v44 = vadd.f32 %v3575_v31, %v3212_v49  ;;  %3732 = vmax.xlane.f32.xlu0 %v3731_v5  ;;  %v3224_v49 = vld [vmem:[%s13513_s5 + $0x108] sm:$0xff] }
 0x599   : > { %v3734_v38 = vmax.f32 %v11222_v30, %v11224_v44  ;;  %v3579_v26 = vpop.f32.mrb[22].mxu1 }
 0x59a   : > { %v11234_v14 = vadd.f32 %v3579_v26, %v3213_v42  ;;  %v3581_v18 = vpop.f32.mrb[23].mxu1  ;;  %v3226_v26 = vld [vmem:[%s13513_s5 + $0x118] sm:$0xff] }
 0x59b   : > { %v11236_v59 = vadd.f32 %v3581_v18, %v3214_v1  ;;  %3735 = vmax.xlane.f32.xlu1 %v3734_v38  ;;  %v3225_v38 = vld [vmem:[%s13513_s5 + $0x110] sm:$0xff] }
 0x59d   : > { %v3737_v0 = vmax.f32 %v11234_v14, %v11236_v59  ;;  %v3585_v10 = vpop.f32.mrb[24].mxu1 }
 0x59e   : > { %v11246_v43 = vadd.f32 %v3585_v10, %v3215_v21  ;;  %v3587_v2 = vpop.f32.mrb[25].mxu1 }
 0x59f   : > { %v11248_v8 = vadd.f32 %v3587_v2, %v3216_v56  ;;  %3738 = vmax.xlane.f32.xlu0 %v3737_v0  ;;  %v3227_v2 = vld [vmem:[%s13513_s5 + $0x120] sm:$0xff] }
 0x5a1   : > { %v3740_v41 = vmax.f32 %v11246_v43, %v11248_v8  ;;  %v3591_v45 = vpop.f32.mrb[26].mxu1 }
 0x5a2   : > { %v11258_v3 = vadd.f32 %v3591_v45, %v3217_v12  ;;  %v3593_v36 = vpop.f32.mrb[27].mxu1  ;;  %v3228_v12 = vld [vmem:[%s13513_s5 + $0x128] sm:$0xff] }
 0x5a3   : > { %v11260_v28 = vadd.f32 %v3593_v36, %v3218_v54  ;;  %3741 = vmax.xlane.f32.xlu1 %v3740_v41 }
 0x5a5   : > { %v3743_v47 = vmax.f32 %v11258_v3, %v11260_v28  ;;  %v3597_v20 = vpop.f32.mrb[28].mxu1 }
 0x5a6   : > { %v11270_v34 = vadd.f32 %v3597_v20, %v3219_v53  ;;  %v3599_v57 = vpop.f32.mrb[29].mxu1 }
 0x5a7   : > { %v11272_v6 = vadd.f32 %v3599_v57, %v3220_v35  ;;  %3744 = vmax.xlane.f32.xlu0 %v3743_v47  ;;  %v3229_v35 = vld [vmem:[%s13513_s5 + $0x130] sm:$0xff]  ;;  %v3230_v47 = vld [vmem:[%s13513_s5 + $0x138] sm:$0xff] }
 0x5a9   : > { %v3746_v48 = vmax.f32 %v11270_v34, %v11272_v6  ;;  %v3603_v40 = vpop.f32.mrb[30].mxu1 }
 0x5aa   : > { %v11282_v16 = vadd.f32 %v3603_v40, %v3221_v7  ;;  %v3605_v55 = vpop.f32.mrb[31].mxu1  ;;  %v3231_v40 = vld [vmem:[%s13513_s5 + $0x140] sm:$0xff] }
 0x5ab   : > { %v11284_v13 = vadd.f32 %v3605_v55, %v3222_v23  ;;  %3747 = vmax.xlane.f32.xlu1 %v3746_v48  ;;  %v3232_v55 = vld [vmem:[%s13513_s5 + $0x148] sm:$0xff] }
 0x5ad   : > { %v3749_v5 = vmax.f32 %v11282_v16, %v11284_v13  ;;  %v3609_v24 = vpop.f32.mrb[32].mxu1 }
 0x5ae   : > { %v11294_v31 = vadd.f32 %v3609_v24, %v3223_v50  ;;  %v3611_v42 = vpop.f32.mrb[33].mxu1 }
 0x5af   : > { %v11296_v1 = vadd.f32 %v3611_v42, %v3224_v49  ;;  %3750 = vmax.xlane.f32.xlu0 %v3749_v5 }
 0x5b1   : > { %v3752_v18 = vmax.f32 %v11294_v31, %v11296_v1  ;;  %v3615_v21 = vpop.f32.mrb[34].mxu1 }
 0x5b2   : > { %v11306_v56 = vadd.f32 %v3615_v21, %v3225_v38  ;;  %v3617_v0 = vpop.f32.mrb[35].mxu1  ;;  %v3233_v38 = vld [vmem:[%s13513_s5 + $0x150] sm:$0xff] }
 0x5b3   : > { %v11308_v10 = vadd.f32 %v3617_v0, %v3226_v26  ;;  %3753 = vmax.xlane.f32.xlu1 %v3752_v18  ;;  %v3234_v26 = vld [vmem:[%s13513_s5 + $0x158] sm:$0xff] }
 0x5b5   : > { %v3755_v54 = vmax.f32 %v11306_v56, %v11308_v10  ;;  %v3621_v41 = vpop.f32.mrb[36].mxu1 }
 0x5b6   : > { %v11318_v45 = vadd.f32 %v3621_v41, %v3227_v2  ;;  %v3623_v36 = vpop.f32.mrb[37].mxu1  ;;  %v3236_v41 = vld [vmem:[%s13513_s5 + $0x168] sm:$0xff] }
 0x5b7   : > { %v11320_v53 = vadd.f32 %v3623_v36, %v3228_v12  ;;  %3756 = vmax.xlane.f32.xlu0 %v3755_v54  ;;  %v3235_v54 = vld [vmem:[%s13513_s5 + $0x160] sm:$0xff] }
 0x5b9   : > { %v3758_v20 = vmax.f32 %v11318_v45, %v11320_v53  ;;  %v3627_v57 = vpop.f32.mrb[38].mxu1 }
 0x5ba   : > { %v11330_v7 = vadd.f32 %v3627_v57, %v3229_v35  ;;  %v3629_v23 = vpop.f32.mrb[39].mxu1 }
 0x5bb   : > { %v11332_v48 = vadd.f32 %v3629_v23, %v3230_v47  ;;  %3759 = vmax.xlane.f32.xlu1 %v3758_v20  ;;  %v3237_v23 = vld [vmem:[%s13513_s5 + $0x170] sm:$0xff] }
 0x5bd   : > { %v3761_v50 = vmax.f32 %v11330_v7, %v11332_v48  ;;  %v3633_v49 = vpop.f32.mrb[40].mxu1 }
 0x5be   : > { %v11342_v5 = vadd.f32 %v3633_v49, %v3231_v40  ;;  %v3635_v24 = vpop.f32.mrb[41].mxu1  ;;  %v3238_v40 = vld [vmem:[%s13513_s5 + $0x178] sm:$0xff] }
 0x5bf   : > { %v11344_v42 = vadd.f32 %v3635_v24, %v3232_v55  ;;  %3762 = vmax.xlane.f32.xlu0 %v3761_v50 }
 0x5c1   : > { %v3764_v18 = vmax.f32 %v11342_v5, %v11344_v42  ;;  %v3639_v21 = vpop.f32.mrb[42].mxu1 }
 0x5c2   : > { %v11354_v0 = vadd.f32 %v3639_v21, %v3233_v38  ;;  %v3641_v2 = vpop.f32.mrb[43].mxu1 }
 0x5c3   : > { %v11356_v12 = vadd.f32 %v3641_v2, %v3234_v26  ;;  %3765 = vmax.xlane.f32.xlu1 %v3764_v18  ;;  %v3239_v26 = vld [vmem:[%s13513_s5 + $0x180] sm:$0xff]  ;;  %v3240_v18 = vld [vmem:[%s13513_s5 + $0x188] sm:$0xff] }
 0x5c5   : > { %v3767_v36 = vmax.f32 %v11354_v0, %v11356_v12  ;;  %v3645_v35 = vpop.f32.mrb[44].mxu1 }
 0x5c6   : > { %v11366_v47 = vadd.f32 %v3645_v35, %v3235_v54  ;;  %v3647_v20 = vpop.f32.mrb[45].mxu1  ;;  %v3241_v35 = vld [vmem:[%s13513_s5 + $0x190] sm:$0xff] }
 0x5c7   : > { %v11368_v57 = vadd.f32 %v3647_v20, %v3236_v41  ;;  %3768 = vmax.xlane.f32.xlu0 %v3767_v36  ;;  %v3242_v20 = vld [vmem:[%s13513_s5 + $0x198] sm:$0xff] }
 0x5c9   : > { %v3770_v55 = vmax.f32 %v11366_v47, %v11368_v57  ;;  %v3651_v50 = vpop.f32.mrb[46].mxu1 }
 0x5ca   : > { %v11378_v49 = vadd.f32 %v3651_v50, %v3237_v23  ;;  %v3653_v24 = vpop.f32.mrb[47].mxu1 }
 0x5cb   : > { %v11380_v38 = vadd.f32 %v3653_v24, %v3238_v40  ;;  %3771 = vmax.xlane.f32.xlu1 %v3770_v55 }
 0x5cd   : > { %v3773_v21 = vmax.f32 %v11378_v49, %v11380_v38  ;;  %v3657_v2 = vpop.f32.mrb[48].mxu1 }
 0x5ce   : > { %v11390_v54 = vadd.f32 %v3657_v2, %v3239_v26  ;;  %v3659_v41 = vpop.f32.mrb[49].mxu1  ;;  %v3243_v26 = vld [vmem:[%s13513_s5 + $0x1a0] sm:$0xff] }
 0x5cf   : > { %v11392_v36 = vadd.f32 %v3659_v41, %v3240_v18  ;;  %3774 = vmax.xlane.f32.xlu1 %v3773_v21  ;;  %v3244_v18 = vld [vmem:[%s13513_s5 + $0x1a8] sm:$0xff] }
 0x5d0   : > { %14129 = vst [vmem:[#allocation69_spill] sm:$0xff] %v11390_v54 }
 0x5d1   : > { %14130 = vst [vmem:[#allocation76_spill] sm:$0xff] %v11392_v36  ;;  %v3776_v23 = vmax.f32 %v11390_v54, %v11392_v36  ;;  %v3663_v40 = vpop.f32.mrb[50].mxu1 }
 0x5d2   : > { %v11402_v55 = vadd.f32 %v3663_v40, %v3241_v35  ;;  %v3665_v50 = vpop.f32.mrb[51].mxu1 }
 0x5d3   : > { %v11404_v24 = vadd.f32 %v3665_v50, %v3242_v20  ;;  %3777 = vmax.xlane.f32.xlu1 %v3776_v23  ;;  %v3245_v20 = vld [vmem:[%s13513_s5 + $0x1b0] sm:$0xff]  ;;  %v3246_v23 = vld [vmem:[%s13513_s5 + $0x1b8] sm:$0xff] }
 0x5d4   : > { %14131 = vst [vmem:[#allocation79_spill] sm:$0xff] %v11402_v55 }
 0x5d5   : > { %14132 = vst [vmem:[#allocation86_spill] sm:$0xff] %v11404_v24  ;;  %v3779_v21 = vmax.f32 %v11402_v55, %v11404_v24  ;;  %v3669_v2 = vpop.f32.mrb[52].mxu1 }
 0x5d6   : > { %v11414_v41 = vadd.f32 %v3669_v2, %v3243_v26  ;;  %v3671_v35 = vpop.f32.mrb[53].mxu1 }
 0x5d7   : > { %v11416_v40 = vadd.f32 %v3671_v35, %v3244_v18  ;;  %3780 = vmax.xlane.f32.xlu1 %v3779_v21  ;;  %v3247_v18 = vld [vmem:[%s13513_s5 + $0x1c0] sm:$0xff]  ;;  %v3248_v21 = vld [vmem:[%s13513_s5 + $0x1c8] sm:$0xff] }
 0x5d8   : > { %14133 = vst [vmem:[#allocation19_spill] sm:$0xff] %v11414_v41 }
 0x5d9   : > { %14134 = vst [vmem:[#allocation89_spill] sm:$0xff] %v11416_v40  ;;  %v3782_v50 = vmax.f32 %v11414_v41, %v11416_v40  ;;  %v3675_v22 = vpop.f32.mrb[54].mxu1 }
 0x5da   : > { %v11426_v9 = vadd.f32 %v3675_v22, %v3245_v20  ;;  %v3677_v26 = vpop.f32.mrb[55].mxu1 }
 0x5db   : > { %v11428_v2 = vadd.f32 %v3677_v26, %v3246_v23  ;;  %3783 = vmax.xlane.f32.xlu1 %v3782_v50  ;;  %v3249_v23 = vld [vmem:[%s13513_s5 + $0x1d0] sm:$0xff]  ;;  %v3250_v50 = vld [vmem:[%s13513_s5 + $0x1d8] sm:$0xff] }
 0x5dc   : > { %14135 = vst [vmem:[#allocation57_spill] sm:$0xff] %v11426_v9 }
 0x5dd   : > { %14136 = vst [vmem:[#allocation95_spill] sm:$0xff] %v11428_v2  ;;  %v3785_v35 = vmax.f32 %v11426_v9, %v11428_v2  ;;  %v3681_v24 = vpop.f32.mrb[56].mxu1 }
 0x5de   : > { %v11438_v40 = vadd.f32 %v3681_v24, %v3247_v18  ;;  %v3683_v22 = vpop.f32.mrb[57].mxu1 }
 0x5df   : > { %v11440_v20 = vadd.f32 %v3683_v22, %v3248_v21  ;;  %3786 = vmax.xlane.f32.xlu1 %v3785_v35  ;;  %v3251_v21 = vld [vmem:[%s13513_s5 + $0x1e0] sm:$0xff]  ;;  %v3252_v35 = vld [vmem:[%s13513_s5 + $0x1e8] sm:$0xff] }
 0x5e0   : > { %14137 = vst [vmem:[#allocation93_spill] sm:$0xff] %v11438_v40 }
 0x5e1   : > { %14138 = vst [vmem:[#allocation103_spill] sm:$0xff] %v11440_v20  ;;  %v3788_v26 = vmax.f32 %v11438_v40, %v11440_v20  ;;  %v3687_v41 = vpop.f32.mrb[58].mxu1 }
 0x5e2   : > { %v11450_v2 = vadd.f32 %v3687_v41, %v3249_v23  ;;  %v3689_v24 = vpop.f32.mrb[59].mxu1 }
 0x5e3   : > { %v11452_v18 = vadd.f32 %v3689_v24, %v3250_v50  ;;  %3789 = vmax.xlane.f32.xlu1 %v3788_v26  ;;  %v3253_v50 = vld [vmem:[%s13513_s5 + $0x1f0] sm:$0xff]  ;;  %v3254_v26 = vld [vmem:[%s13513_s5 + $0x1f8] sm:$0xff] }
 0x5e4   : > { %14139 = vst [vmem:[#allocation53_spill] sm:$0xff] %v11450_v2 }
 0x5e5   : > { %14140 = vst [vmem:[#allocation98_spill] sm:$0xff] %v11452_v18  ;;  %v3791_v22 = vmax.f32 %v11450_v2, %v11452_v18  ;;  %v3693_v9 = vpop.f32.mrb[60].mxu1 }
 0x5e6   : > { %v11462_v20 = vadd.f32 %v3693_v9, %v3251_v21  ;;  %v3695_v41 = vpop.f32.mrb[61].mxu1 }
 0x5e7   : > { %v11464_v23 = vadd.f32 %v3695_v41, %v3252_v35  ;;  %3792 = vmax.xlane.f32.xlu1 %v3791_v22 }
 0x5e9   : > { %v3794_v24 = vmax.f32 %v11462_v20, %v11464_v23  ;;  %v3699_v40 = vpop.f32.mrb[62].mxu1 }
 0x5ea   : > { %v11474_v18 = vadd.f32 %v3699_v40, %v3253_v50  ;;  %v3701_v9 = vpop.f32.mrb[63].mxu1 }
 0x5eb   : > { %v11476_v21 = vadd.f32 %v3701_v9, %v3254_v26  ;;  %3795 = vmax.xlane.f32.xlu1 %v3794_v24 }
 0x5ed   : > { %14141 = vst [vmem:[#allocation73_spill] sm:$0xff] %v11476_v21  ;;  %v3797_v35 = vmax.f32 %v11474_v18, %v11476_v21 }
 0x5ef   : > { %3798 = vmax.xlane.f32.xlu1 %v3797_v35 }
 0x600   : > { %v3706_v22 = vpop.xlane.xlu0 %3705 }
 0x601   : > { %v3800_v41 = vsub.f32 %v11102_v60, %v3706_v22  ;;  %v3801_v2 = vsub.f32 %v11104_v33, %v3706_v22 }
 0x603   : > { %v3864_v55 = vmul.f32 1.442695, %v3800_v41  ;;  %v3866_v36 = vmul.f32 1.442695, %v3801_v2 }
 0x604   : > { %v3709_v54 = vpop.xlane.xlu1 %3708 }
 0x605   : > { %7581 = vpow2.f32 %v3864_v55  ;;  %v3802_v40 = vsub.f32 %v11114_v46, %v3709_v54  ;;  %v3803_v50 = vsub.f32 %v11116_v51, %v3709_v54 }
 0x606   : > { %7583 = vpow2.f32 %v3866_v36 }
 0x607   : > { %v3868_v26 = vmul.f32 1.442695, %v3802_v40  ;;  %v3870_v24 = vmul.f32 1.442695, %v3803_v50 }
 0x608   : > { %v3712_v9 = vpop.xlane.xlu0 %3711 }
 0x609   : > { %7585 = vpow2.f32 %v3868_v26  ;;  %v3804_v35 = vsub.f32 %v11126_v39, %v3712_v9  ;;  %v3805_v21 = vsub.f32 %v11128_v52, %v3712_v9 }
 0x60a   : > { %7587 = vpow2.f32 %v3870_v24 }
 0x60b   : > { %v3872_v60 = vmul.f32 1.442695, %v3804_v35  ;;  %v3874_v33 = vmul.f32 1.442695, %v3805_v21 }
 0x60c   : > { %v3715_v22 = vpop.xlane.xlu0 %3714 }
 0x60d   : > { %7589 = vpow2.f32 %v3872_v60  ;;  %v3806_v55 = vsub.f32 %v11138_v19, %v3715_v22  ;;  %v3807_v46 = vsub.f32 %v11140_v25, %v3715_v22 }
 0x60e   : > { %7591 = vpow2.f32 %v3874_v33 }
 0x60f   : > { %v11488_v51 = vpop.eup %7581  ;;  %v3876_v54 = vmul.f32 1.442695, %v3806_v55  ;;  %v3878_v36 = vmul.f32 1.442695, %v3807_v46 }
 0x610   : > { %v11490_v2 = vpop.eup %7583  ;;  %v3718_v41 = vpop.xlane.xlu1 %3717 }
 0x611   : > { %7593 = vpow2.f32 %v3876_v54  ;;  %v3808_v39 = vsub.f32 %v11150_v27, %v3718_v41  ;;  %v3809_v52 = vsub.f32 %v11152_v4, %v3718_v41  ;;  %v3992_v21 = vadd.f32 %v11490_v2, %v11488_v51 }
 0x612   : > { %7595 = vpow2.f32 %v3878_v36 }
 0x613   : > { %v11496_v19 = vpop.eup %7585  ;;  %v3880_v25 = vmul.f32 1.442695, %v3808_v39  ;;  %v3882_v40 = vmul.f32 1.442695, %v3809_v52  ;;  %3993 = vadd.xlane.f32.xlu0 %v3992_v21 }
 0x614   : > { %v11498_v50 = vpop.eup %7587  ;;  %v3721_v26 = vpop.xlane.xlu0 %3720 }
 0x615   : > { %7597 = vpow2.f32 %v3880_v25  ;;  %v3810_v24 = vsub.f32 %v11162_v62, %v3721_v26  ;;  %v3811_v9 = vsub.f32 %v11164_v37, %v3721_v26  ;;  %v3995_v27 = vadd.f32 %v11498_v50, %v11496_v19 }
 0x616   : > { %7599 = vpow2.f32 %v3882_v40 }
 0x617   : > { %v11504_v4 = vpop.eup %7589  ;;  %v3884_v35 = vmul.f32 1.442695, %v3810_v24  ;;  %v3886_v60 = vmul.f32 1.442695, %v3811_v9  ;;  %3996 = vadd.xlane.f32.xlu0 %v3995_v27 }
 0x618   : > { %v11506_v33 = vpop.eup %7591  ;;  %v3724_v22 = vpop.xlane.xlu1 %3723 }
 0x619   : > { %7601 = vpow2.f32 %v3884_v35  ;;  %v3812_v55 = vsub.f32 %v11174_v63, %v3724_v22  ;;  %v3813_v46 = vsub.f32 %v11176_v58, %v3724_v22  ;;  %v3998_v62 = vadd.f32 %v11506_v33, %v11504_v4 }
 0x61a   : > { %7603 = vpow2.f32 %v3886_v60 }
 0x61b   : > { %v11512_v37 = vpop.eup %7593  ;;  %v3888_v54 = vmul.f32 1.442695, %v3812_v55  ;;  %v3890_v36 = vmul.f32 1.442695, %v3813_v46  ;;  %3999 = vadd.xlane.f32.xlu0 %v3998_v62 }
 0x61c   : > { %v11514_v41 = vpop.eup %7595  ;;  %v3727_v39 = vpop.xlane.xlu0 %3726 }
 0x61d   : > { %7605 = vpow2.f32 %v3888_v54  ;;  %v3814_v52 = vsub.f32 %v11186_v11, %v3727_v39  ;;  %v3815_v21 = vsub.f32 %v11188_v29, %v3727_v39  ;;  %v4001_v63 = vadd.f32 %v11514_v41, %v11512_v37 }
 0x61e   : > { %7607 = vpow2.f32 %v3890_v36 }
 0x61f   : > { %v11520_v58 = vpop.eup %7597  ;;  %v3892_v25 = vmul.f32 1.442695, %v3814_v52  ;;  %v3894_v40 = vmul.f32 1.442695, %v3815_v21  ;;  %4002 = vadd.xlane.f32.xlu0 %v4001_v63 }
 0x620   : > { %v11522_v26 = vpop.eup %7599  ;;  %v3730_v24 = vpop.xlane.xlu1 %3729 }
 0x621   : > { %7609 = vpow2.f32 %v3892_v25  ;;  %v3816_v9 = vsub.f32 %v11198_v17, %v3730_v24  ;;  %v3817_v27 = vsub.f32 %v11200_v61, %v3730_v24  ;;  %v4004_v11 = vadd.f32 %v11522_v26, %v11520_v58 }
 0x622   : > { %7611 = vpow2.f32 %v3894_v40 }
 0x623   : > { %v11528_v29 = vpop.eup %7601  ;;  %v3896_v35 = vmul.f32 1.442695, %v3816_v9  ;;  %v3898_v60 = vmul.f32 1.442695, %v3817_v27  ;;  %4005 = vadd.xlane.f32.xlu0 %v4004_v11 }
 0x624   : > { %v11530_v22 = vpop.eup %7603  ;;  %v3733_v55 = vpop.xlane.xlu0 %3732 }
 0x625   : > { %7613 = vpow2.f32 %v3896_v35  ;;  %v3818_v46 = vsub.f32 %v11210_v32, %v3733_v55  ;;  %v3819_v62 = vsub.f32 %v11212_v15, %v3733_v55  ;;  %v4007_v17 = vadd.f32 %v11530_v22, %v11528_v29 }
 0x626   : > { %7615 = vpow2.f32 %v3898_v60 }
 0x627   : > { %v11536_v61 = vpop.eup %7605  ;;  %v3900_v54 = vmul.f32 1.442695, %v3818_v46  ;;  %v3902_v36 = vmul.f32 1.442695, %v3819_v62  ;;  %4008 = vadd.xlane.f32.xlu0 %v4007_v17 }
 0x628   : > { %v11538_v39 = vpop.eup %7607  ;;  %v3736_v52 = vpop.xlane.xlu1 %3735 }
 0x629   : > { %7617 = vpow2.f32 %v3900_v54  ;;  %v3820_v21 = vsub.f32 %v11222_v30, %v3736_v52  ;;  %v3821_v63 = vsub.f32 %v11224_v44, %v3736_v52  ;;  %v4010_v32 = vadd.f32 %v11538_v39, %v11536_v61 }
 0x62a   : > { %7619 = vpow2.f32 %v3902_v36 }
 0x62b   : > { %v11544_v15 = vpop.eup %7609  ;;  %v3904_v25 = vmul.f32 1.442695, %v3820_v21  ;;  %v3906_v40 = vmul.f32 1.442695, %v3821_v63  ;;  %4011 = vadd.xlane.f32.xlu0 %v4010_v32 }
 0x62c   : > { %v11546_v24 = vpop.eup %7611  ;;  %v3739_v9 = vpop.xlane.xlu0 %3738 }
 0x62d   : > { %7621 = vpow2.f32 %v3904_v25  ;;  %v3822_v27 = vsub.f32 %v11234_v14, %v3739_v9  ;;  %v3823_v11 = vsub.f32 %v11236_v59, %v3739_v9  ;;  %v4013_v30 = vadd.f32 %v11546_v24, %v11544_v15 }
 0x62e   : > { %7623 = vpow2.f32 %v3906_v40 }
 0x62f   : > { %v11552_v44 = vpop.eup %7613  ;;  %v3908_v35 = vmul.f32 1.442695, %v3822_v27  ;;  %v3910_v60 = vmul.f32 1.442695, %v3823_v11  ;;  %4014 = vadd.xlane.f32.xlu0 %v4013_v30 }
 0x630   : > { %v11554_v55 = vpop.eup %7615  ;;  %v3742_v46 = vpop.xlane.xlu1 %3741 }
 0x631   : > { %7625 = vpow2.f32 %v3908_v35  ;;  %v3824_v62 = vsub.f32 %v11246_v43, %v3742_v46  ;;  %v3825_v17 = vsub.f32 %v11248_v8, %v3742_v46  ;;  %v4016_v14 = vadd.f32 %v11554_v55, %v11552_v44 }
 0x632   : > { %7627 = vpow2.f32 %v3910_v60 }
 0x633   : > { %v11560_v59 = vpop.eup %7617  ;;  %v3912_v54 = vmul.f32 1.442695, %v3824_v62  ;;  %v3914_v36 = vmul.f32 1.442695, %v3825_v17  ;;  %4017 = vadd.xlane.f32.xlu0 %v4016_v14 }
 0x634   : > { %v11562_v52 = vpop.eup %7619  ;;  %v3745_v21 = vpop.xlane.xlu0 %3744 }
 0x635   : > { %7629 = vpow2.f32 %v3912_v54  ;;  %v3826_v63 = vsub.f32 %v11258_v3, %v3745_v21  ;;  %v3827_v32 = vsub.f32 %v11260_v28, %v3745_v21  ;;  %v4019_v43 = vadd.f32 %v11562_v52, %v11560_v59 }
 0x636   : > { %7631 = vpow2.f32 %v3914_v36 }
 0x637   : > { %v11568_v8 = vpop.eup %7621  ;;  %v3916_v25 = vmul.f32 1.442695, %v3826_v63  ;;  %v3918_v40 = vmul.f32 1.442695, %v3827_v32  ;;  %4020 = vadd.xlane.f32.xlu0 %v4019_v43 }
 0x638   : > { %v11570_v9 = vpop.eup %7623  ;;  %v3748_v27 = vpop.xlane.xlu1 %3747 }
 0x639   : > { %7633 = vpow2.f32 %v3916_v25  ;;  %v3828_v11 = vsub.f32 %v11270_v34, %v3748_v27  ;;  %v3829_v30 = vsub.f32 %v11272_v6, %v3748_v27  ;;  %v4022_v3 = vadd.f32 %v11570_v9, %v11568_v8 }
 0x63a   : > { %7635 = vpow2.f32 %v3918_v40 }
 0x63b   : > { %v11576_v28 = vpop.eup %7625  ;;  %v3920_v35 = vmul.f32 1.442695, %v3828_v11  ;;  %v3922_v60 = vmul.f32 1.442695, %v3829_v30  ;;  %4023 = vadd.xlane.f32.xlu1 %v4022_v3 }
 0x63c   : > { %v11578_v46 = vpop.eup %7627  ;;  %v3751_v62 = vpop.xlane.xlu0 %3750 }
 0x63d   : > { %7637 = vpow2.f32 %v3920_v35  ;;  %v3830_v17 = vsub.f32 %v11282_v16, %v3751_v62  ;;  %v3831_v14 = vsub.f32 %v11284_v13, %v3751_v62  ;;  %v4025_v34 = vadd.f32 %v11578_v46, %v11576_v28 }
 0x63e   : > { %7639 = vpow2.f32 %v3922_v60 }
 0x63f   : > { %v11584_v6 = vpop.eup %7629  ;;  %v3924_v54 = vmul.f32 1.442695, %v3830_v17  ;;  %v3926_v36 = vmul.f32 1.442695, %v3831_v14  ;;  %4026 = vadd.xlane.f32.xlu0 %v4025_v34 }
 0x640   : > { %v11586_v21 = vpop.eup %7631  ;;  %v3754_v63 = vpop.xlane.xlu1 %3753 }
 0x641   : > { %7641 = vpow2.f32 %v3924_v54  ;;  %v3832_v32 = vsub.f32 %v11294_v31, %v3754_v63  ;;  %v3833_v43 = vsub.f32 %v11296_v1, %v3754_v63  ;;  %v4028_v16 = vadd.f32 %v11586_v21, %v11584_v6 }
 0x642   : > { %7643 = vpow2.f32 %v3926_v36 }
 0x643   : > { %v11592_v13 = vpop.eup %7633  ;;  %v3928_v25 = vmul.f32 1.442695, %v3832_v32  ;;  %v3930_v40 = vmul.f32 1.442695, %v3833_v43  ;;  %4029 = vadd.xlane.f32.xlu1 %v4028_v16 }
 0x644   : > { %v11594_v27 = vpop.eup %7635  ;;  %v3757_v11 = vpop.xlane.xlu0 %3756 }
 0x645   : > { %7645 = vpow2.f32 %v3928_v25  ;;  %v3834_v30 = vsub.f32 %v11306_v56, %v3757_v11  ;;  %v3835_v3 = vsub.f32 %v11308_v10, %v3757_v11  ;;  %v4031_v31 = vadd.f32 %v11594_v27, %v11592_v13 }
 0x646   : > { %7647 = vpow2.f32 %v3930_v40 }
 0x647   : > { %v11600_v1 = vpop.eup %7637  ;;  %v3932_v35 = vmul.f32 1.442695, %v3834_v30  ;;  %v3934_v60 = vmul.f32 1.442695, %v3835_v3  ;;  %4032 = vadd.xlane.f32.xlu0 %v4031_v31 }
 0x648   : > { %v11602_v62 = vpop.eup %7639  ;;  %v3760_v17 = vpop.xlane.xlu1 %3759 }
 0x649   : > { %7649 = vpow2.f32 %v3932_v35  ;;  %v3836_v14 = vsub.f32 %v11318_v45, %v3760_v17  ;;  %v3837_v34 = vsub.f32 %v11320_v53, %v3760_v17  ;;  %v4034_v56 = vadd.f32 %v11602_v62, %v11600_v1 }
 0x64a   : > { %7651 = vpow2.f32 %v3934_v60 }
 0x64b   : > { %v11608_v10 = vpop.eup %7641  ;;  %v3936_v54 = vmul.f32 1.442695, %v3836_v14  ;;  %v3938_v36 = vmul.f32 1.442695, %v3837_v34  ;;  %4035 = vadd.xlane.f32.xlu1 %v4034_v56 }
 0x64c   : > { %v11610_v63 = vpop.eup %7643  ;;  %v3763_v32 = vpop.xlane.xlu0 %3762 }
 0x64d   : > { %7653 = vpow2.f32 %v3936_v54  ;;  %v3838_v43 = vsub.f32 %v11330_v7, %v3763_v32  ;;  %v3839_v16 = vsub.f32 %v11332_v48, %v3763_v32  ;;  %v4037_v45 = vadd.f32 %v11610_v63, %v11608_v10 }
 0x64e   : > { %7655 = vpow2.f32 %v3938_v36 }
 0x64f   : > { %v11616_v53 = vpop.eup %7645  ;;  %v3940_v25 = vmul.f32 1.442695, %v3838_v43  ;;  %v3942_v40 = vmul.f32 1.442695, %v3839_v16  ;;  %4038 = vadd.xlane.f32.xlu0 %v4037_v45 }
 0x650   : > { %v11618_v11 = vpop.eup %7647  ;;  %v3766_v30 = vpop.xlane.xlu1 %3765 }
 0x651   : > { %7657 = vpow2.f32 %v3940_v25  ;;  %v3840_v3 = vsub.f32 %v11342_v5, %v3766_v30  ;;  %v3841_v31 = vsub.f32 %v11344_v42, %v3766_v30  ;;  %v4040_v7 = vadd.f32 %v11618_v11, %v11616_v53 }
 0x652   : > { %7659 = vpow2.f32 %v3942_v40 }
 0x653   : > { %v11624_v48 = vpop.eup %7649  ;;  %v3944_v35 = vmul.f32 1.442695, %v3840_v3  ;;  %v3946_v60 = vmul.f32 1.442695, %v3841_v31  ;;  %4041 = vadd.xlane.f32.xlu1 %v4040_v7 }
 0x654   : > { %v11626_v17 = vpop.eup %7651  ;;  %v3769_v14 = vpop.xlane.xlu0 %3768 }
 0x655   : > { %7661 = vpow2.f32 %v3944_v35  ;;  %v3842_v34 = vsub.f32 %v11354_v0, %v3769_v14  ;;  %v3843_v56 = vsub.f32 %v11356_v12, %v3769_v14  ;;  %v4043_v5 = vadd.f32 %v11626_v17, %v11624_v48 }
 0x656   : > { %7663 = vpow2.f32 %v3946_v60 }
 0x657   : > { %v11632_v42 = vpop.eup %7653  ;;  %v3948_v54 = vmul.f32 1.442695, %v3842_v34  ;;  %v3950_v36 = vmul.f32 1.442695, %v3843_v56  ;;  %4044 = vadd.xlane.f32.xlu0 %v4043_v5  ;;  %v14142_v56 = vld [vmem:[#allocation69_spill] sm:$0xff] }
 0x658   : > { %v11634_v32 = vpop.eup %7655  ;;  %v3772_v43 = vpop.xlane.xlu1 %3771 }
 0x659   : > { %7665 = vpow2.f32 %v3948_v54  ;;  %v3844_v16 = vsub.f32 %v11366_v47, %v3772_v43  ;;  %v3845_v45 = vsub.f32 %v11368_v57, %v3772_v43  ;;  %v4046_v0 = vadd.f32 %v11634_v32, %v11632_v42  ;;  %v14143_v54 = vld [vmem:[#allocation76_spill] sm:$0xff] }
 0x65a   : > { %7667 = vpow2.f32 %v3950_v36 }
 0x65b   : > { %v11640_v12 = vpop.eup %7657  ;;  %v3952_v25 = vmul.f32 1.442695, %v3844_v16  ;;  %v3954_v40 = vmul.f32 1.442695, %v3845_v45  ;;  %4047 = vadd.xlane.f32.xlu1 %v4046_v0 }
 0x65c   : > { %v11642_v30 = vpop.eup %7659  ;;  %v3775_v3 = vpop.xlane.xlu1 %3774 }
 0x65d   : > { %7669 = vpow2.f32 %v3952_v25  ;;  %v3846_v31 = vsub.f32 %v11378_v49, %v3775_v3  ;;  %v3847_v7 = vsub.f32 %v11380_v38, %v3775_v3  ;;  %v4049_v47 = vadd.f32 %v11642_v30, %v11640_v12  ;;  %v14145_v25 = vld [vmem:[#allocation79_spill] sm:$0xff]  ;;  %v14146_v3 = vld [vmem:[#allocation86_spill] sm:$0xff] }
 0x65e   : > { %7671 = vpow2.f32 %v3954_v40 }
 0x65f   : > { %v11648_v57 = vpop.eup %7661  ;;  %v3956_v35 = vmul.f32 1.442695, %v3846_v31  ;;  %v3958_v60 = vmul.f32 1.442695, %v3847_v7  ;;  %4050 = vadd.xlane.f32.xlu0 %v4049_v47 }
 0x660   : > { %v11650_v14 = vpop.eup %7663  ;;  %v3778_v34 = vpop.xlane.xlu1 %3777 }
 0x661   : > { %7673 = vpow2.f32 %v3956_v35  ;;  %v3848_v5 = vsub.f32 %v14142_v56, %v3778_v34  ;;  %v3849_v36 = vsub.f32 %v14143_v54, %v3778_v34  ;;  %v4052_v49 = vadd.f32 %v11650_v14, %v11648_v57 }
 0x662   : > { %7675 = vpow2.f32 %v3958_v60 }
 0x663   : > { %v11656_v38 = vpop.eup %7665  ;;  %v3960_v43 = vmul.f32 1.442695, %v3848_v5  ;;  %v3962_v16 = vmul.f32 1.442695, %v3849_v36  ;;  %4053 = vadd.xlane.f32.xlu1 %v4052_v49  ;;  %v14149_v5 = vld [vmem:[#allocation19_spill] sm:$0xff]  ;;  %v14150_v36 = vld [vmem:[#allocation89_spill] sm:$0xff] }
 0x664   : > { %14144 = vst [vmem:[#allocation9_spill] sm:$0xff] %v11656_v38  ;;  %v11658_v45 = vpop.eup %7667  ;;  %v3781_v0 = vpop.xlane.xlu1 %3780 }
 0x665   : > { %7677 = vpow2.f32 %v3960_v43  ;;  %v3850_v40 = vsub.f32 %v14145_v25, %v3781_v0  ;;  %v3851_v31 = vsub.f32 %v14146_v3, %v3781_v0  ;;  %v4055_v7 = vadd.f32 %v11658_v45, %v11656_v38 }
 0x666   : > { %7679 = vpow2.f32 %v3962_v16 }
 0x667   : > { %v11664_v47 = vpop.eup %7669  ;;  %v3964_v35 = vmul.f32 1.442695, %v3850_v40  ;;  %v3966_v60 = vmul.f32 1.442695, %v3851_v31  ;;  %4056 = vadd.xlane.f32.xlu0 %v4055_v7  ;;  %v14153_v31 = vld [vmem:[#allocation57_spill] sm:$0xff] }
 0x668   : > { %14147 = vst [vmem:[#allocation11_spill] sm:$0xff] %v11664_v47  ;;  %v11666_v34 = vpop.eup %7671  ;;  %v3784_v56 = vpop.xlane.xlu1 %3783 }
 0x669   : > { %14148 = vst [vmem:[#allocation106_spill] sm:$0xff] %v11666_v34  ;;  %7681 = vpow2.f32 %v3964_v35  ;;  %v3852_v54 = vsub.f32 %v14149_v5, %v3784_v56  ;;  %v3853_v49 = vsub.f32 %v14150_v36, %v3784_v56  ;;  %v4058_v43 = vadd.f32 %v11666_v34, %v11664_v47  ;;  %v14154_v35 = vld [vmem:[#allocation95_spill] sm:$0xff] }
 0x66a   : > { %7683 = vpow2.f32 %v3966_v60 }
 0x66b   : > { %v11672_v0 = vpop.eup %7673  ;;  %v3968_v16 = vmul.f32 1.442695, %v3852_v54  ;;  %v3970_v25 = vmul.f32 1.442695, %v3853_v49  ;;  %4059 = vadd.xlane.f32.xlu1 %v4058_v43  ;;  %v14155_v43 = vld [vmem:[#allocation93_spill] sm:$0xff] }
 0x66c   : > { %14151 = vst [vmem:[#allocation38_spill] sm:$0xff] %v11672_v0  ;;  %v11674_v40 = vpop.eup %7675  ;;  %v3787_v3 = vpop.xlane.xlu1 %3786 }
 0x66d   : > { %14152 = vst [vmem:[#allocation83_spill] sm:$0xff] %v11674_v40  ;;  %7685 = vpow2.f32 %v3968_v16  ;;  %v3854_v7 = vsub.f32 %v14153_v31, %v3787_v3  ;;  %v3855_v38 = vsub.f32 %v14154_v35, %v3787_v3  ;;  %v4061_v56 = vadd.f32 %v11674_v40, %v11672_v0  ;;  %v14156_v16 = vld [vmem:[#allocation103_spill] sm:$0xff] }
 0x66e   : > { %7687 = vpow2.f32 %v3970_v25 }
 0x66f   : > { %v11680_v5 = vpop.eup %7677  ;;  %v3972_v60 = vmul.f32 1.442695, %v3854_v7  ;;  %v3974_v36 = vmul.f32 1.442695, %v3855_v38  ;;  %4062 = vadd.xlane.f32.xlu0 %v4061_v56  ;;  %v14158_v56 = vld [vmem:[#allocation53_spill] sm:$0xff] }
 0x670   : > { %v11682_v54 = vpop.eup %7679  ;;  %v3790_v49 = vpop.xlane.xlu1 %3789 }
 0x671   : > { %7689 = vpow2.f32 %v3972_v60  ;;  %v3856_v47 = vsub.f32 %v14155_v43, %v3790_v49  ;;  %v3857_v34 = vsub.f32 %v14156_v16, %v3790_v49  ;;  %v4064_v3 = vadd.f32 %v11682_v54, %v11680_v5  ;;  %v14159_v60 = vld [vmem:[#allocation98_spill] sm:$0xff] }
 0x672   : > { %7691 = vpow2.f32 %v3974_v36 }
 0x673   : > { %v11688_v31 = vpop.eup %7681  ;;  %v3976_v25 = vmul.f32 1.442695, %v3856_v47  ;;  %v3978_v35 = vmul.f32 1.442695, %v3857_v34  ;;  %4065 = vadd.xlane.f32.xlu1 %v4064_v3 }
 0x674   : > { %14157 = vst [vmem:[#allocation96_spill] sm:$0xff] %v11688_v31  ;;  %v11690_v7 = vpop.eup %7683  ;;  %v3793_v38 = vpop.xlane.xlu1 %3792 }
 0x675   : > { %7693 = vpow2.f32 %v3976_v25  ;;  %v3858_v0 = vsub.f32 %v14158_v56, %v3793_v38  ;;  %v3859_v40 = vsub.f32 %v14159_v60, %v3793_v38  ;;  %v4067_v49 = vadd.f32 %v11690_v7, %v11688_v31 }
 0x676   : > { %7695 = vpow2.f32 %v3978_v35 }
 0x677   : > { %v11696_v43 = vpop.eup %7685  ;;  %v3980_v36 = vmul.f32 1.442695, %v3858_v0  ;;  %v3982_v16 = vmul.f32 1.442695, %v3859_v40  ;;  %4068 = vadd.xlane.f32.xlu0 %v4067_v49 }
 0x678   : > { %v11698_v47 = vpop.eup %7687  ;;  %v3796_v34 = vpop.xlane.xlu1 %3795 }
 0x679   : > { %7697 = vpow2.f32 %v3980_v36  ;;  %v3860_v3 = vsub.f32 %v11462_v20, %v3796_v34  ;;  %v3861_v25 = vsub.f32 %v11464_v23, %v3796_v34  ;;  %v4070_v38 = vadd.f32 %v11698_v47, %v11696_v43  ;;  %v14160_v36 = vld [vmem:[#allocation73_spill] sm:$0xff] }
 0x67a   : > { %7699 = vpow2.f32 %v3982_v16 }
 0x67b   : > { %v11704_v56 = vpop.eup %7689  ;;  %v3984_v35 = vmul.f32 1.442695, %v3860_v3  ;;  %v3986_v60 = vmul.f32 1.442695, %v3861_v25  ;;  %4071 = vadd.xlane.f32.xlu1 %v4070_v38 }
 0x67c   : > { %v11706_v0 = vpop.eup %7691  ;;  %v3799_v40 = vpop.xlane.xlu1 %3798 }
 0x67d   : > { %7701 = vpow2.f32 %v3984_v35  ;;  %v3862_v49 = vsub.f32 %v11474_v18, %v3799_v40  ;;  %v3863_v31 = vsub.f32 %v14160_v36, %v3799_v40  ;;  %v4073_v20 = vadd.f32 %v11706_v0, %v11704_v56 }
 0x67e   : > { %7703 = vpow2.f32 %v3986_v60 }
 0x67f   : > { %v11712_v23 = vpop.eup %7693  ;;  %v3988_v16 = vmul.f32 1.442695, %v3862_v49  ;;  %v3990_v34 = vmul.f32 1.442695, %v3863_v31  ;;  %4074 = vadd.xlane.f32.xlu0 %v4073_v20 }
 0x680   : > { %v11714_v3 = vpop.eup %7695 }
 0x681   : > { %7705 = vpow2.f32 %v3988_v16  ;;  %v4076_v25 = vadd.f32 %v11714_v3, %v11712_v23 }
 0x682   : > { %7707 = vpow2.f32 %v3990_v34 }
 0x683   : > { %v11718_v38 = vpop.eup %7697  ;;  %4077 = vadd.xlane.f32.xlu1 %v4076_v25 }
 0x684   : > { %14161 = vst [vmem:[#allocation13_spill] sm:$0xff] %v11718_v38  ;;  %v11720_v18 = vpop.eup %7699 }
 0x685   : > { %14162 = vst [vmem:[#allocation14_spill] sm:$0xff] %v11720_v18  ;;  %v4079_v35 = vadd.f32 %v11720_v18, %v11718_v38 }
 0x687   : > { %v11724_v60 = vpop.eup %7701  ;;  %4080 = vadd.xlane.f32.xlu0 %v4079_v35 }
 0x688   : > { %14163 = vst [vmem:[#allocation28_spill] sm:$0xff] %v11724_v60  ;;  %v11726_v31 = vpop.eup %7703 }
 0x689   : > { %14164 = vst [vmem:[#allocation50_spill] sm:$0xff] %v11726_v31  ;;  %v4082_v40 = vadd.f32 %v11726_v31, %v11724_v60 }
 0x68b   : > { %v11730_v49 = vpop.eup %7705  ;;  %4083 = vadd.xlane.f32.xlu1 %v4082_v40 }
 0x68c   : > { %14165 = vst [vmem:[#allocation24_spill] sm:$0xff] %v11730_v49  ;;  %v11732_v36 = vpop.eup %7707 }
 0x68d   : > { %v4085_v20 = vadd.f32 %v11732_v36, %v11730_v49 }
 0x68f   : > { %4086 = vadd.xlane.f32.xlu0 %v4085_v20 }
 0x6a0   : > { %v3994_v16 = vpop.xlane.xlu0 %3993 }
 0x6a1   : > { %7709 = vrcp.f32 %v3994_v16 }
 0x6a4   : > { %v3997_v34 = vpop.xlane.xlu0 %3996 }
 0x6a5   : > { %7711 = vrcp.f32 %v3997_v34 }
 0x6a8   : > { %v4000_v25 = vpop.xlane.xlu0 %3999 }
 0x6a9   : > { %7713 = vrcp.f32 %v4000_v25 }
 0x6ab   : > { %v7710_v35 = vpop.eup %7709 }
 0x6ac   : > { %v4003_v38 = vpop.xlane.xlu0 %4002  ;;  %v4121_v18 = vmul.f32 %v7710_v35, %v11490_v2  ;;  %v4120_v60 = vmul.f32 %v7710_v35, %v11488_v51 }
 0x6ad   : > { %7715 = vrcp.f32 %v4003_v38 }
 0x6ae   : > { %4248 = vmatprep.mubr.f32.mxu0 %v4121_v18 }
 0x6af   : > { %v7712_v40 = vpop.eup %7711  ;;  %4249 = vmatmul.mubr.f32.vlgmr.msra.gmra.mrb[32].mxu0 %v4120_v60 }
 0x6b0   : > { %v4006_v31 = vpop.xlane.xlu0 %4005  ;;  %v4123_v49 = vmul.f32 %v7712_v40, %v11498_v50  ;;  %v4122_v20 = vmul.f32 %v7712_v40, %v11496_v19 }
 0x6b1   : > { %7717 = vrcp.f32 %v4006_v31 }
 0x6b2   : > { %4253 = vmatprep.mubr.f32.mxu0 %v4123_v49 }
 0x6b3   : > { %v7714_v16 = vpop.eup %7713  ;;  %4254 = vmatmul.mubr.f32.gmra.mrb[34].mxu0 %v4122_v20 }
 0x6b4   : > { %v4009_v34 = vpop.xlane.xlu0 %4008  ;;  %v4125_v25 = vmul.f32 %v7714_v16, %v11506_v33  ;;  %v4124_v2 = vmul.f32 %v7714_v16, %v11504_v4 }
 0x6b5   : > { %7719 = vrcp.f32 %v4009_v34 }
 0x6b6   : > { %4258 = vmatprep.mubr.f32.mxu0 %v4125_v25 }
 0x6b7   : > { %v7716_v51 = vpop.eup %7715  ;;  %4259 = vmatmul.mubr.f32.gmra.mrb[36].mxu0 %v4124_v2 }
 0x6b8   : > { %v4012_v38 = vpop.xlane.xlu0 %4011  ;;  %v4127_v18 = vmul.f32 %v7716_v51, %v11514_v41  ;;  %v4126_v50 = vmul.f32 %v7716_v51, %v11512_v37 }
 0x6b9   : > { %7721 = vrcp.f32 %v4012_v38 }
 0x6ba   : > { %4263 = vmatprep.mubr.f32.mxu0 %v4127_v18 }
 0x6bb   : > { %v7718_v19 = vpop.eup %7717  ;;  %4264 = vmatmul.mubr.f32.gmra.mrb[38].mxu0 %v4126_v50 }
 0x6bc   : > { %v4015_v60 = vpop.xlane.xlu0 %4014  ;;  %v4129_v31 = vmul.f32 %v7718_v19, %v11522_v26  ;;  %v4128_v33 = vmul.f32 %v7718_v19, %v11520_v58 }
 0x6bd   : > { %7723 = vrcp.f32 %v4015_v60 }
 0x6be   : > { %4268 = vmatprep.mubr.f32.mxu0 %v4129_v31 }
 0x6bf   : > { %v7720_v4 = vpop.eup %7719  ;;  %4269 = vmatmul.mubr.f32.gmra.mrb[40].mxu0 %v4128_v33 }
 0x6c0   : > { %v4018_v49 = vpop.xlane.xlu0 %4017  ;;  %v4131_v35 = vmul.f32 %v7720_v4, %v11530_v22  ;;  %v4130_v41 = vmul.f32 %v7720_v4, %v11528_v29 }
 0x6c1   : > { %7725 = vrcp.f32 %v4018_v49 }
 0x6c2   : > { %4273 = vmatprep.mubr.f32.mxu0 %v4131_v35 }
 0x6c3   : > { %v7722_v37 = vpop.eup %7721  ;;  %4274 = vmatmul.mubr.f32.gmra.mrb[42].mxu0 %v4130_v41 }
 0x6c4   : > { %v4021_v40 = vpop.xlane.xlu0 %4020  ;;  %v4133_v20 = vmul.f32 %v7722_v37, %v11538_v39  ;;  %v4132_v26 = vmul.f32 %v7722_v37, %v11536_v61 }
 0x6c5   : > { %7727 = vrcp.f32 %v4021_v40 }
 0x6c6   : > { %4278 = vmatprep.mubr.f32.mxu0 %v4133_v20 }
 0x6c7   : > { %v7724_v58 = vpop.eup %7723  ;;  %4279 = vmatmul.mubr.f32.gmra.mrb[44].mxu0 %v4132_v26 }
 0x6c8   : > { %v4024_v16 = vpop.xlane.xlu1 %4023  ;;  %v4135_v34 = vmul.f32 %v7724_v58, %v11546_v24  ;;  %v4134_v22 = vmul.f32 %v7724_v58, %v11544_v15 }
 0x6c9   : > { %7729 = vrcp.f32 %v4024_v16 }
 0x6ca   : > { %4283 = vmatprep.mubr.f32.mxu0 %v4135_v34 }
 0x6cb   : > { %v7726_v29 = vpop.eup %7725  ;;  %4284 = vmatmul.mubr.f32.gmra.mrb[46].mxu0 %v4134_v22 }
 0x6cc   : > { %v4027_v25 = vpop.xlane.xlu0 %4026  ;;  %v4137_v2 = vmul.f32 %v7726_v29, %v11554_v55  ;;  %v4136_v39 = vmul.f32 %v7726_v29, %v11552_v44 }
 0x6cd   : > { %7731 = vrcp.f32 %v4027_v25 }
 0x6ce   : > { %4288 = vmatprep.mubr.f32.mxu0 %v4137_v2 }
 0x6cf   : > { %v7728_v61 = vpop.eup %7727  ;;  %4289 = vmatmul.mubr.f32.gmra.mrb[48].mxu0 %v4136_v39 }
 0x6d0   : > { %v4030_v51 = vpop.xlane.xlu1 %4029  ;;  %v4139_v38 = vmul.f32 %v7728_v61, %v11562_v52  ;;  %v4138_v24 = vmul.f32 %v7728_v61, %v11560_v59 }
 0x6d1   : > { %7733 = vrcp.f32 %v4030_v51 }
 0x6d2   : > { %4293 = vmatprep.mubr.f32.mxu0 %v4139_v38  ;;  %v14166_v38 = vld [vmem:[#allocation9_spill] sm:$0xff] }
 0x6d3   : > { %v7730_v15 = vpop.eup %7729  ;;  %4294 = vmatmul.mubr.f32.gmra.mrb[50].mxu0 %v4138_v24 }
 0x6d4   : > { %v4033_v18 = vpop.xlane.xlu0 %4032  ;;  %v4141_v50 = vmul.f32 %v7730_v15, %v11570_v9  ;;  %v4140_v55 = vmul.f32 %v7730_v15, %v11568_v8  ;;  %v14167_v15 = vld [vmem:[#allocation106_spill] sm:$0xff] }
 0x6d5   : > { %7735 = vrcp.f32 %v4033_v18 }
 0x6d6   : > { %4298 = vmatprep.mubr.f32.mxu0 %v4141_v50  ;;  %v14168_v50 = vld [vmem:[#allocation11_spill] sm:$0xff] }
 0x6d7   : > { %v7732_v44 = vpop.eup %7731  ;;  %4299 = vmatmul.mubr.f32.gmra.mrb[52].mxu0 %v4140_v55 }
 0x6d8   : > { %v4036_v19 = vpop.xlane.xlu1 %4035  ;;  %v4143_v60 = vmul.f32 %v7732_v44, %v11578_v46  ;;  %v4142_v52 = vmul.f32 %v7732_v44, %v11576_v28  ;;  %v14169_v44 = vld [vmem:[#allocation83_spill] sm:$0xff] }
 0x6d9   : > { %7737 = vrcp.f32 %v4036_v19 }
 0x6da   : > { %4303 = vmatprep.mubr.f32.mxu0 %v4143_v60  ;;  %v14170_v60 = vld [vmem:[#allocation38_spill] sm:$0xff] }
 0x6db   : > { %v7734_v59 = vpop.eup %7733  ;;  %4304 = vmatmul.mubr.f32.gmra.mrb[54].mxu0 %v4142_v52 }
 0x6dc   : > { %v4039_v31 = vpop.xlane.xlu0 %4038  ;;  %v4145_v33 = vmul.f32 %v7734_v59, %v11586_v21  ;;  %v4144_v9 = vmul.f32 %v7734_v59, %v11584_v6 }
 0x6dd   : > { %7739 = vrcp.f32 %v4039_v31 }
 0x6de   : > { %4308 = vmatprep.mubr.f32.mxu0 %v4145_v33 }
 0x6df   : > { %v7736_v8 = vpop.eup %7735  ;;  %4309 = vmatmul.mubr.f32.gmra.mrb[56].mxu0 %v4144_v9 }
 0x6e0   : > { %v4042_v4 = vpop.xlane.xlu1 %4041  ;;  %v4147_v49 = vmul.f32 %v7736_v8, %v11594_v27  ;;  %v4146_v46 = vmul.f32 %v7736_v8, %v11592_v13 }
 0x6e1   : > { %7741 = vrcp.f32 %v4042_v4 }
 0x6e2   : > { %4313 = vmatprep.mubr.f32.mxu0 %v4147_v49  ;;  %v14171_v49 = vld [vmem:[#allocation96_spill] sm:$0xff] }
 0x6e3   : > { %v7738_v28 = vpop.eup %7737  ;;  %4314 = vmatmul.mubr.f32.gmra.mrb[58].mxu0 %v4146_v46 }
 0x6e4   : > { %v4045_v35 = vpop.xlane.xlu0 %4044  ;;  %v4149_v41 = vmul.f32 %v7738_v28, %v11602_v62  ;;  %v4148_v21 = vmul.f32 %v7738_v28, %v11600_v1 }
 0x6e5   : > { %7743 = vrcp.f32 %v4045_v35 }
 0x6e6   : > { %4318 = vmatprep.mubr.f32.mxu0 %v4149_v41 }
 0x6e7   : > { %v7740_v6 = vpop.eup %7739  ;;  %4319 = vmatmul.mubr.f32.gmra.mrb[60].mxu0 %v4148_v21 }
 0x6e8   : > { %v4048_v37 = vpop.xlane.xlu1 %4047  ;;  %v4151_v40 = vmul.f32 %v7740_v6, %v11610_v63  ;;  %v4150_v27 = vmul.f32 %v7740_v6, %v11608_v10 }
 0x6e9   : > { %7745 = vrcp.f32 %v4048_v37 }
 0x6ea   : > { %4323 = vmatprep.mubr.f32.mxu0 %v4151_v40 }
 0x6eb   : > { %v7742_v13 = vpop.eup %7741  ;;  %4324 = vmatmul.mubr.f32.gmra.mrb[62].mxu0 %v4150_v27 }
 0x6ec   : > { %v4051_v20 = vpop.xlane.xlu0 %4050  ;;  %v4153_v26 = vmul.f32 %v7742_v13, %v11618_v11  ;;  %v4152_v62 = vmul.f32 %v7742_v13, %v11616_v53  ;;  %v14172_v13 = vld [vmem:[#allocation14_spill] sm:$0xff] }
 0x6ed   : > { %7747 = vrcp.f32 %v4051_v20 }
 0x6ee   : > { %4328 = vmatprep.mubr.f32.mxu0 %v4153_v26  ;;  %v14173_v26 = vld [vmem:[#allocation13_spill] sm:$0xff] }
 0x6ef   : > { %v7744_v1 = vpop.eup %7743  ;;  %4329 = vmatmul.mubr.f32.gmra.mrb[64].mxu0 %v4152_v62 }
 0x6f0   : > { %v4054_v58 = vpop.xlane.xlu1 %4053  ;;  %v4155_v16 = vmul.f32 %v7744_v1, %v11626_v17  ;;  %v4154_v63 = vmul.f32 %v7744_v1, %v11624_v48 }
 0x6f1   : > { %7749 = vrcp.f32 %v4054_v58  ;;  %v14175_v58 = vld [vmem:[#allocation28_spill] sm:$0xff] }
 0x6f2   : > { %4333 = vmatprep.mubr.f32.mxu0 %v4155_v16 }
 0x6f3   : > { %v7746_v10 = vpop.eup %7745  ;;  %4334 = vmatmul.mubr.f32.gmra.mrb[66].mxu0 %v4154_v63 }
 0x6f4   : > { %v4057_v34 = vpop.xlane.xlu0 %4056  ;;  %v4157_v22 = vmul.f32 %v7746_v10, %v11634_v32  ;;  %v4156_v11 = vmul.f32 %v7746_v10, %v11632_v42 }
 0x6f5   : > { %7751 = vrcp.f32 %v4057_v34 }
 0x6f6   : > { %4338 = vmatprep.mubr.f32.mxu0 %v4157_v22 }
 0x6f7   : > { %v7748_v53 = vpop.eup %7747  ;;  %4339 = vmatmul.mubr.f32.gmra.mrb[68].mxu0 %v4156_v11 }
 0x6f8   : > { %v4060_v29 = vpop.xlane.xlu1 %4059  ;;  %v4159_v25 = vmul.f32 %v7748_v53, %v11642_v30  ;;  %v4158_v17 = vmul.f32 %v7748_v53, %v11640_v12 }
 0x6f9   : > { %7753 = vrcp.f32 %v4060_v29 }
 0x6fa   : > { %4343 = vmatprep.mubr.f32.mxu0 %v4159_v25 }
 0x6fb   : > { %v7750_v48 = vpop.eup %7749  ;;  %4344 = vmatmul.mubr.f32.gmra.mrb[70].mxu0 %v4158_v17 }
 0x6fc   : > { %v4063_v2 = vpop.xlane.xlu0 %4062  ;;  %v4161_v39 = vmul.f32 %v7750_v48, %v11650_v14  ;;  %v4160_v32 = vmul.f32 %v7750_v48, %v11648_v57 }
 0x6fd   : > { %7755 = vrcp.f32 %v4063_v2 }
 0x6fe   : > { %4348 = vmatprep.mubr.f32.mxu0 %v4161_v39 }
 0x6ff   : > { %v7752_v42 = vpop.eup %7751  ;;  %4349 = vmatmul.mubr.f32.gmra.mrb[72].mxu0 %v4160_v32 }
 0x700   : > { %v4066_v61 = vpop.xlane.xlu1 %4065  ;;  %v4163_v51 = vmul.f32 %v7752_v42, %v11658_v45  ;;  %v4162_v30 = vmul.f32 %v7752_v42, %v14166_v38 }
 0x701   : > { %7757 = vrcp.f32 %v4066_v61 }
 0x702   : > { %4353 = vmatprep.mubr.f32.mxu0 %v4163_v51 }
 0x703   : > { %v7754_v12 = vpop.eup %7753  ;;  %4354 = vmatmul.mubr.f32.gmra.mrb[74].mxu0 %v4162_v30 }
 0x704   : > { %v4069_v24 = vpop.xlane.xlu0 %4068  ;;  %v4165_v18 = vmul.f32 %v7754_v12, %v14167_v15  ;;  %v4164_v14 = vmul.f32 %v7754_v12, %v14168_v50 }
 0x705   : > { %7759 = vrcp.f32 %v4069_v24 }
 0x706   : > { %4358 = vmatprep.mubr.f32.mxu0 %v4165_v18 }
 0x707   : > { %v7756_v57 = vpop.eup %7755  ;;  %4359 = vmatmul.mubr.f32.gmra.mrb[76].mxu0 %v4164_v14 }
 0x708   : > { %v4072_v55 = vpop.xlane.xlu1 %4071  ;;  %v4167_v19 = vmul.f32 %v7756_v57, %v14169_v44  ;;  %v4166_v45 = vmul.f32 %v7756_v57, %v14170_v60 }
 0x709   : > { %7761 = vrcp.f32 %v4072_v55  ;;  %v14201_v55 = vld [vmem:[#allocation41_spill] sm:$0xff] }
 0x70a   : > { %4363 = vmatprep.mubr.f32.mxu0 %v4167_v19  ;;  %vm14202_vm10 = vcmp.eq.s32.totalorder %v14201_v55, 1 }
 0x70b   : > { %v7758_v52 = vpop.eup %7757  ;;  %4364 = vmatmul.mubr.f32.gmra.mrb[78].mxu0 %v4166_v45 }
 0x70c   : > { %v4075_v59 = vpop.xlane.xlu0 %4074  ;;  %v4169_v31 = vmul.f32 %v7758_v52, %v11682_v54  ;;  %v4168_v33 = vmul.f32 %v7758_v52, %v11680_v5 }
 0x70d   : > { %7763 = vrcp.f32 %v4075_v59 }
 0x70e   : > { %4368 = vmatprep.mubr.f32.mxu0 %v4169_v31 }
 0x70f   : > { %v7760_v9 = vpop.eup %7759  ;;  %4369 = vmatmul.mubr.f32.gmra.mrb[80].mxu0 %v4168_v33 }
 0x710   : > { %v4078_v8 = vpop.xlane.xlu1 %4077  ;;  %v4171_v4 = vmul.f32 %v7760_v9, %v11690_v7  ;;  %v4170_v46 = vmul.f32 %v7760_v9, %v14171_v49  ;;  %v14181_v49 = vld [vmem:[#allocation31_spill] sm:$0xff] }
 0x711   : > { %7765 = vrcp.f32 %v4078_v8 }
 0x712   : > { %4373 = vmatprep.mubr.f32.mxu0 %v4171_v4 }
 0x713   : > { %v7762_v28 = vpop.eup %7761  ;;  %4374 = vmatmul.mubr.f32.gmra.mrb[82].mxu0 %v4170_v46 }
 0x714   : > { %v4081_v35 = vpop.xlane.xlu0 %4080  ;;  %v4173_v41 = vmul.f32 %v7762_v28, %v11698_v47  ;;  %v4172_v54 = vmul.f32 %v7762_v28, %v11696_v43 }
 0x715   : > { %7767 = vrcp.f32 %v4081_v35 }
 0x716   : > { %4378 = vmatprep.mubr.f32.mxu0 %v4173_v41 }
 0x717   : > { %v7764_v5 = vpop.eup %7763  ;;  %4379 = vmatmul.mubr.f32.gmra.mrb[84].mxu0 %v4172_v54 }
 0x718   : > { %v4084_v21 = vpop.xlane.xlu1 %4083  ;;  %v4175_v6 = vmul.f32 %v7764_v5, %v11706_v0  ;;  %v4174_v7 = vmul.f32 %v7764_v5, %v11704_v56  ;;  %v14174_v56 = vld [vmem:[#allocation50_spill] sm:$0xff] }
 0x719   : > { %7769 = vrcp.f32 %v4084_v21 }
 0x71a   : > { %4383 = vmatprep.mubr.f32.mxu0 %v4175_v6 }
 0x71b   : > { %v7766_v37 = vpop.eup %7765  ;;  %4384 = vmatmul.mubr.f32.gmra.mrb[86].mxu0 %v4174_v7 }
 0x71c   : > { %v4087_v40 = vpop.xlane.xlu0 %4086  ;;  %v4177_v27 = vmul.f32 %v7766_v37, %v11714_v3  ;;  %v4176_v47 = vmul.f32 %v7766_v37, %v11712_v23  ;;  %v14176_v3 = vld [vmem:[#allocation24_spill] sm:$0xff]  ;;  %v14183_v37 = vld [vmem:[#allocation7_spill] sm:$0xff] }
 0x71d   : > { %7771 = vrcp.f32 %v4087_v40 }
 0x71e   : > { %4388 = vmatprep.mubr.f32.mxu0 %v4177_v27  ;;  %v14186_v27 = vld [vmem:[#allocation37_spill] sm:$0xff] }
 0x71f   : > { %v7768_v43 = vpop.eup %7767  ;;  %4389 = vmatmul.mubr.f32.gmra.mrb[88].mxu0 %v4176_v47  ;;  %vm14187_vm4 = vcmp.eq.s32.totalorder %v14186_v27, 1 }
 0x720   : > { %v4179_v20 = vmul.f32 %v7768_v43, %v14172_v13  ;;  %v4178_v62 = vmul.f32 %v7768_v43, %v14173_v26 }
 0x722   : > { %4393 = vmatprep.mubr.f32.mxu0 %v4179_v20 }
 0x723   : > { %v7770_v0 = vpop.eup %7769  ;;  %4394 = vmatmul.mubr.f32.gmra.mrb[90].mxu0 %v4178_v62 }
 0x724   : > { %v4181_v1 = vmul.f32 %v7770_v0, %v14174_v56  ;;  %v4180_v16 = vmul.f32 %v7770_v0, %v14175_v58  ;;  %v14188_v56 = vld [vmem:[#allocation20_spill] sm:$0xff] }
 0x725   : > { %vm14189_vm14 = vcmp.eq.s32.totalorder %v14188_v56, 1  ;;  %v14190_v58 = vld [vmem:[#allocation16_spill] sm:$0xff] }
 0x726   : > { %4398 = vmatprep.mubr.f32.mxu0 %v4181_v1  ;;  %vm14191_vm1 = vcmp.eq.s32.totalorder %v14190_v58, 1 }
 0x727   : > { %v7772_v63 = vpop.eup %7771  ;;  %4399 = vmatmul.mubr.f32.gmra.mrb[92].mxu0 %v4180_v16 }
 0x728   : > { %v4183_v23 = vmul.f32 %v7772_v63, %v11732_v36  ;;  %v4182_v10 = vmul.f32 %v7772_v63, %v14176_v3 }
 0x72a   : > { %4403 = vmatprep.mubr.f32.mxu0 %v4183_v23 }
 0x72b   : > { %4404 = vmatmul.mubr.f32.gmra.mrb[94].mxu0 %v4182_v10 }
 0x782   : > { %v11800_v34 = vpop.f32.mrb[32].mxu0 }
 0x783   : > { %v4252_v22 = vpop.f32.mrb[33].mxu0  ;;  %v13810_v53 = vrot.slane %v11800_v34, 7  ;;  %v13811_v19 = vrot.slane %v11800_v34, 1 }
 0x786   : > { %v4255_v11 = vpop.f32.mrb[34].mxu0 }
 0x787   : > { %v4412_v29 = vrot.slane %v4255_v11, 7  ;;  %v4257_v25 = vpop.f32.mrb[35].mxu0  ;;  %v11804_v17 = vpack.i.bf16 %v4255_v11, %v11800_v34  ;;  %v4508_v39 = vrot.slane %v4255_v11, 1 }
 0x788   : > { %v14193_v25 = vld [vmem:[#allocation5_spill] sm:$0xff] }
 0x789   : > { %14177 = vst [vmem:[#allocation88_spill] sm:$0xff] %v11804_v17  ;;  %6813 = vrot.lane.b32.xlu0 %v11804_v17, %s7842_s21  ;;  %v11812_v48 = vsel %vm409_vm9, %v13810_v53, %v4412_v29  ;;  %v11843_v31 = vsel %vm666_vm12, %v13811_v19, %v4508_v39  ;;  %vm14194_vm6 = vcmp.eq.s32.totalorder %v14193_v25, 1  ;;  %v14216_v25 = vld [vmem:[#allocation29_spill] sm:$0xff] }
 0x78a   : > { %v4260_v2 = vpop.f32.mrb[36].mxu0 }
 0x78b   : > { %v4413_v32 = vrot.slane %v4260_v2, 7  ;;  %v4509_v42 = vrot.slane %v4260_v2, 1  ;;  %v4262_v61 = vpop.f32.mrb[37].mxu0 }
 0x78d   : > { %6818 = vrot.lane.b32.xlu0 %v11804_v17, %s7849_s11  ;;  %v11818_v51 = vsel %vm666_vm12, %v4508_v39, %v4509_v42  ;;  %v11822_v38 = vsel %vm409_vm9, %v4412_v29, %v4413_v32  ;;  %v14196_v39 = vld [vmem:[#allocation17_spill] sm:$0xff] }
 0x78e   : > { %v4265_v30 = vpop.f32.mrb[38].mxu0  ;;  %vm14197_vm2 = vcmp.eq.s32.totalorder %v14196_v39, 1 }
 0x78f   : > { %v4414_v12 = vrot.slane %v4265_v30, 7  ;;  %v4510_v24 = vrot.slane %v4265_v30, 1  ;;  %v4267_v15 = vpop.f32.mrb[39].mxu0  ;;  %v6827_v18 = vpack.i.bf16 %v4265_v30, %v4260_v2 }
 0x791   : > { %6828 = vrot.lane.b32.xlu0 %v6827_v18, %s7852_s17  ;;  %6823 = vrot.lane.b32.xlu1 %v6827_v18, %s7842_s21  ;;  %v4567_v50 = vsel %vm666_vm12, %v4509_v42, %v4510_v24  ;;  %v4471_v14 = vsel %vm409_vm9, %v4413_v32, %v4414_v12  ;;  %v14199_v42 = vld [vmem:[#allocation23_spill] sm:$0xff] }
 0x792   : > { %v4270_v57 = vpop.f32.mrb[40].mxu0  ;;  %v11833_v44 = vsel %vm571_vm5, %v4471_v14, %v11812_v48  ;;  %v4573_v4 = vsel %vm797_vm7, %v11843_v31, %v4567_v50  ;;  %vm14182_vm5 = vcmp.eq.s32.totalorder %v14181_v49, 1  ;;  %vm14184_vm7 = vcmp.eq.s32.totalorder %v14183_v37, 1 }
 0x793   : > { %v4415_v60 = vrot.slane %v4270_v57, 7  ;;  %v4511_v45 = vrot.slane %v4270_v57, 1  ;;  %v4272_v52 = vpop.f32.mrb[41].mxu0  ;;  %vm14200_vm3 = vcmp.eq.s32.totalorder %v14199_v42, 1  ;;  %v14219_v42 = vld [vmem:[#allocation33_spill] sm:$0xff] }
 0x795   : > { %6833 = vrot.lane.b32.xlu1 %v6827_v18, %s7849_s11  ;;  %v4566_v59 = vsel %vm666_vm12, %v4510_v24, %v4511_v45  ;;  %v4470_v33 = vsel %vm409_vm9, %v4414_v12, %v4415_v60 }
 0x796   : > { %v4275_v9 = vpop.f32.mrb[42].mxu0  ;;  %v4574_v46 = vsel %vm14182_vm5, %v11818_v51, %v4566_v59  ;;  %v11890_v2 = vsel %vm14194_vm6, %v4470_v33, %v11822_v38  ;;  %vm14217_vm6 = vcmp.eq.s32.totalorder %v14216_v25, 1 }
 0x797   : > { %v4416_v28 = vrot.slane %v4275_v9, 7  ;;  %v4512_v35 = vrot.slane %v4275_v9, 1  ;;  %v4277_v41 = vpop.f32.mrb[43].mxu0  ;;  %v6842_v54 = vpack.i.bf16 %v4574_v46, %v4573_v4  ;;  %v6837_v5 = vpack.i.bf16 %v4275_v9, %v4270_v57  ;;  %14195 = vst [vmem:[#allocation25_spill] sm:$0xff] %v11890_v2 }
 0x799   : > { %6843 = vrot.lane.b32.xlu0 %v6842_v54, %s7848_s8  ;;  %6838 = vrot.lane.b32.xlu1 %v6837_v5, %s7842_s21  ;;  %v4469_v21 = vsel %vm409_vm9, %v4415_v60, %v4416_v28  ;;  %v4565_v6 = vsel %vm666_vm12, %v4511_v45, %v4512_v35  ;;  %v14203_v45 = vld [vmem:[#allocation101_spill] sm:$0xff] }
 0x79a   : > { %v4280_v7 = vpop.f32.mrb[44].mxu0  ;;  %v11861_v40 = vsel %vm14184_vm7, %v4469_v21, %v4471_v14  ;;  %v11865_v47 = vsel %vm14187_vm4, %v4567_v50, %v4565_v6  ;;  %vm14204_vm5 = vcmp.eq.s32.totalorder %v14203_v45, 1 }
 0x79b   : > { %14185 = vst [vmem:[#allocation61_spill] sm:$0xff] %v11861_v40  ;;  %v4417_v43 = vrot.slane %v4280_v7, 7  ;;  %v4513_v13 = vrot.slane %v4280_v7, 1  ;;  %v4282_v20 = vpop.f32.mrb[45].mxu0  ;;  %v6872_v15 = vpack.i.bf16 %v11861_v40, %v11890_v2 }
 0x79c   : > { %v14211_v20 = vld [vmem:[#allocation30_spill] sm:$0xff] }
 0x79d   : > { %6848 = vrot.lane.b32.xlu0 %v6842_v54, %s7853_s18  ;;  %6853 = vrot.lane.b32.xlu1 %v6842_v54, %s7854_s19  ;;  %v4564_v26 = vsel %vm666_vm12, %v4512_v35, %v4513_v13  ;;  %v4468_v62 = vsel %vm409_vm9, %v4416_v28, %v4417_v43  ;;  %v14206_v35 = vld [vmem:[#allocation22_spill] sm:$0xff]  ;;  %v14209_v54 = vld [vmem:[#allocation43_spill] sm:$0xff] }
 0x79e   : > { %v4285_v0 = vpop.f32.mrb[46].mxu0  ;;  %v11875_v1 = vsel %vm14189_vm14, %v4566_v59, %v4564_v26  ;;  %v11879_v16 = vsel %vm14191_vm1, %v4468_v62, %v4470_v33  ;;  %vm14207_vm7 = vcmp.eq.s32.totalorder %v14206_v35, 1  ;;  %vm14210_vm4 = vcmp.eq.s32.totalorder %v14209_v54, 1  ;;  %v14226_v35 = vld [vmem:[#allocation32_spill] sm:$0xff] }
 0x79f   : > { %14192 = vst [vmem:[#allocation111_spill] sm:$0xff] %v11879_v16  ;;  %v4418_v63 = vrot.slane %v4285_v0, 7  ;;  %v4514_v23 = vrot.slane %v4285_v0, 1  ;;  %v4287_v3 = vpop.f32.mrb[47].mxu0  ;;  %v6877_v10 = vpack.i.bf16 %v4285_v0, %v4280_v7  ;;  %v6882_v57 = vpack.i.bf16 %v11875_v1, %v11865_v47 }
 0x7a0   : > { %vm14212_vm14 = vcmp.eq.s32.totalorder %v14211_v20, 1 }
 0x7a1   : > { %6863 = vrot.lane.b32.xlu0 %v6837_v5, %s7849_s11  ;;  %6858 = vrot.lane.b32.xlu1 %v6837_v5, %s7852_s17  ;;  %v4467_v22 = vsel %vm409_vm9, %v4417_v43, %v4418_v63  ;;  %v4563_v11 = vsel %vm666_vm12, %v4513_v13, %v4514_v23 }
 0x7a2   : > { %v4290_v29 = vpop.f32.mrb[48].mxu0  ;;  %v11894_v32 = vsel %vm14197_vm2, %v4467_v22, %v4469_v21  ;;  %v4577_v61 = vsel %vm14200_vm3, %v4565_v6, %v4563_v11  ;;  %vm14220_vm2 = vcmp.eq.s32.totalorder %v14219_v42, 1 }
 0x7a3   : > { %14198 = vst [vmem:[#allocation62_spill] sm:$0xff] %v11894_v32  ;;  %v4419_v30 = vrot.slane %v4290_v29, 7  ;;  %v4515_v12 = vrot.slane %v4290_v29, 1  ;;  %v4292_v24 = vpop.f32.mrb[49].mxu0  ;;  %v6902_v13 = vpack.i.bf16 %v11894_v32, %v11879_v16 }
 0x7a5   : > { %6873 = vrot.lane.b32.xlu1 %v6872_v15, %s7845_s28  ;;  %6868 = vrot.lane.b32.xlu0 %v6872_v15, %s7855_s20  ;;  %v4562_v18 = vsel %vm666_vm12, %v4514_v23, %v4515_v12  ;;  %v4466_v50 = vsel %vm409_vm9, %v4418_v63, %v4419_v30 }
 0x7a6   : > { %v4295_v14 = vpop.f32.mrb[50].mxu0  ;;  %v4578_v60 = vsel %vm14202_vm10, %v4564_v26, %v4562_v18  ;;  %v11912_v52 = vsel %vm14204_vm5, %v4466_v50, %v4468_v62  ;;  %v14213_v62 = vld [vmem:[#allocation26_spill] sm:$0xff] }
 0x7a7   : > { %14205 = vst [vmem:[#allocation51_spill] sm:$0xff] %v11912_v52  ;;  %v4420_v59 = vrot.slane %v4295_v14, 7  ;;  %v4516_v33 = vrot.slane %v4295_v14, 1  ;;  %v4297_v9 = vpop.f32.mrb[51].mxu0  ;;  %v11914_v8 = vpack.i.bf16 %v4295_v14, %v4290_v29  ;;  %v11916_v4 = vpack.i.bf16 %v4578_v60, %v4577_v61 }
 0x7a8   : > { %vm14214_vm1 = vcmp.eq.s32.totalorder %v14213_v62, 1 }
 0x7a9   : > { %6883 = vrot.lane.b32.xlu1 %v6882_v57, %s7853_s18  ;;  %6878 = vrot.lane.b32.xlu0 %v6877_v10, %s7842_s21  ;;  %v4465_v49 = vsel %vm409_vm9, %v4419_v30, %v4420_v59  ;;  %v4561_v46 = vsel %vm666_vm12, %v4515_v12, %v4516_v33 }
 0x7aa   : > { %v4300_v28 = vpop.f32.mrb[52].mxu0  ;;  %v11926_v41 = vsel %vm14207_vm7, %v4465_v49, %v4467_v22  ;;  %v4579_v5 = vsel %vm14210_vm4, %v4563_v11, %v4561_v46 }
 0x7ab   : > { %14208 = vst [vmem:[#allocation18_spill] sm:$0xff] %v11926_v41  ;;  %v4421_v21 = vrot.slane %v4300_v28, 7  ;;  %v4517_v6 = vrot.slane %v4300_v28, 1  ;;  %v4302_v7 = vpop.f32.mrb[53].mxu0 }
 0x7ad   : > { %6898 = vrot.lane.b32.xlu1 %v6877_v10, %s7849_s11  ;;  %6888 = vrot.lane.b32.xlu0 %v6882_v57, %s7854_s19  ;;  %v4560_v37 = vsel %vm666_vm12, %v4516_v33, %v4517_v6  ;;  %v4464_v27 = vsel %vm409_vm9, %v4420_v59, %v4421_v21 }
 0x7ae   : > { %v4305_v43 = vpop.f32.mrb[54].mxu0  ;;  %v4580_v26 = vsel %vm14212_vm14, %v4562_v18, %v4560_v37  ;;  %v11942_v0 = vsel %vm14214_vm1, %v4464_v27, %v4466_v50  ;;  %v14221_v50 = vld [vmem:[#allocation45_spill] sm:$0xff] }
 0x7af   : > { %14215 = vst [vmem:[#allocation92_spill] sm:$0xff] %v11942_v0  ;;  %v4422_v56 = vrot.slane %v4305_v43, 7  ;;  %v4518_v58 = vrot.slane %v4305_v43, 1  ;;  %v4307_v63 = vpop.f32.mrb[55].mxu0  ;;  %v11944_v23 = vpack.i.bf16 %v4305_v43, %v4300_v28  ;;  %v11946_v3 = vpack.i.bf16 %v4580_v26, %v4579_v5  ;;  %v14229_v5 = vld [vmem:[#allocation48_spill] sm:$0xff]  ;;  %v14231_v26 = vld [vmem:[#allocation35_spill] sm:$0xff] }
 0x7b0   : > { %vm14222_vm3 = vcmp.eq.s32.totalorder %v14221_v50, 1  ;;  %vm14230_vm10 = vcmp.eq.s32.totalorder %v14229_v5, 1  ;;  %vm14232_vm5 = vcmp.eq.s32.totalorder %v14231_v26, 1  ;;  %v14250_v26 = vld [vmem:[#allocation42_spill] sm:$0xff] }
 0x7b1   : > { %6893 = vrot.lane.b32.xlu0 %v6877_v10, %s7852_s17  ;;  %6903 = vrot.lane.b32.xlu1 %v6902_v13, %s7855_s20  ;;  %v4463_v22 = vsel %vm409_vm9, %v4421_v21, %v4422_v56  ;;  %v4559_v11 = vsel %vm666_vm12, %v4517_v6, %v4518_v58 }
 0x7b2   : > { %v4310_v29 = vpop.f32.mrb[56].mxu0  ;;  %v11956_v39 = vsel %vm14217_vm6, %v4463_v22, %v4465_v49  ;;  %v4581_v61 = vsel %vm14220_vm2, %v4561_v46, %v4559_v11 }
 0x7b3   : > { %14218 = vst [vmem:[#allocation94_spill] sm:$0xff] %v11956_v39  ;;  %v4423_v30 = vrot.slane %v4310_v29, 7  ;;  %v4519_v12 = vrot.slane %v4310_v29, 1  ;;  %v4312_v24 = vpop.f32.mrb[57].mxu0 }
 0x7b5   : > { %6908 = vrot.lane.b32.xlu0 %v6902_v13, %s7845_s28  ;;  %6913 = vrot.lane.b32.xlu1 %v11914_v8, %s7842_s21  ;;  %v4558_v10 = vsel %vm666_vm12, %v4518_v58, %v4519_v12  ;;  %v4462_v15 = vsel %vm409_vm9, %v4422_v56, %v4423_v30  ;;  %v14234_v56 = vld [vmem:[#allocation40_spill] sm:$0xff] }
 0x7b6   : > { %v4315_v18 = vpop.f32.mrb[58].mxu0  ;;  %v4582_v14 = vsel %vm14222_vm3, %v4560_v37, %v4558_v10  ;;  %v11971_v55 = vsel %vm580_vm8, %v4462_v15, %v4464_v27  ;;  %vm14227_vm8 = vcmp.eq.s32.totalorder %v14226_v35, 1  ;;  %v6942_v27 = vpack.i.bf16 %v11926_v41, %v11912_v52 }
 0x7b7   : > { %14224 = vst [vmem:[#allocation78_spill] sm:$0xff] %v11971_v55  ;;  %v4424_v60 = vrot.slane %v4315_v18, 7  ;;  %v4520_v45 = vrot.slane %v4315_v18, 1  ;;  %v4317_v59 = vpop.f32.mrb[59].mxu0  ;;  %v11973_v33 = vpack.i.bf16 %v4315_v18, %v4310_v29  ;;  %v11975_v9 = vpack.i.bf16 %v4582_v14, %v4581_v61 }
 0x7b8   : > { %vm14235_vm7 = vcmp.eq.s32.totalorder %v14234_v56, 1  ;;  %v14242_v59 = vld [vmem:[#allocation55_spill] sm:$0xff]  ;;  %vm14251_vm3 = vcmp.eq.s32.totalorder %v14250_v26, 1 }
 0x7b9   : > { %14225 = vst [vmem:[#allocation109_spill] sm:$0xff] %v11973_v33  ;;  %6918 = vrot.lane.b32.xlu0 %v11916_v4, %s7853_s18  ;;  %6923 = vrot.lane.b32.xlu1 %v11916_v4, %s7854_s19  ;;  %v4461_v49 = vsel %vm409_vm9, %v4423_v30, %v4424_v60  ;;  %v4557_v46 = vsel %vm666_vm12, %v4519_v12, %v4520_v45  ;;  %v14237_v12 = vld [vmem:[#allocation44_spill] sm:$0xff]  ;;  %vm14243_vm1 = vcmp.eq.s32.totalorder %v14242_v59, 1 }
 0x7ba   : > { %v4320_v28 = vpop.f32.mrb[60].mxu0  ;;  %v11987_v54 = vsel %vm14227_vm8, %v4461_v49, %v4463_v22  ;;  %v4583_v21 = vsel %vm14230_vm10, %v4559_v11, %v4557_v46  ;;  %vm14238_vm4 = vcmp.eq.s32.totalorder %v14237_v12, 1  ;;  %v14253_v12 = vld [vmem:[#allocation52_spill] sm:$0xff] }
 0x7bb   : > { %14228 = vst [vmem:[#allocation97_spill] sm:$0xff] %v11987_v54  ;;  %v4425_v6 = vrot.slane %v4320_v28, 7  ;;  %v4521_v7 = vrot.slane %v4320_v28, 1  ;;  %v4322_v37 = vpop.f32.mrb[61].mxu0  ;;  %vm14254_vm8 = vcmp.eq.s32.totalorder %v14253_v12, 1  ;;  %v14263_v12 = vld [vmem:[#allocation105_spill] sm:$0xff] }
 0x7bd   : > { %6928 = vrot.lane.b32.xlu1 %v11914_v8, %s7852_s17  ;;  %6943 = vrot.lane.b32.xlu0 %v6942_v27, %s7855_s20  ;;  %v4556_v43 = vsel %vm666_vm12, %v4520_v45, %v4521_v7  ;;  %v4460_v13 = vsel %vm409_vm9, %v4424_v60, %v4425_v6 }
 0x7be   : > { %v4325_v20 = vpop.f32.mrb[62].mxu0  ;;  %v12002_v62 = vsel %vm14232_vm5, %v4460_v13, %v4462_v15  ;;  %v4584_v58 = vsel %vm14235_vm7, %v4558_v10, %v4556_v43  ;;  %v14239_v10 = vld [vmem:[#allocation39_spill] sm:$0xff] }
 0x7bf   : > { %14233 = vst [vmem:[#allocation90_spill] sm:$0xff] %v12002_v62  ;;  %v4426_v63 = vrot.slane %v4325_v20, 7  ;;  %v4522_v22 = vrot.slane %v4325_v20, 1  ;;  %v4327_v11 = vpop.f32.mrb[63].mxu0  ;;  %v12006_v29 = vpack.i.bf16 %v4325_v20, %v4320_v28  ;;  %v12008_v25 = vpack.i.bf16 %v4584_v58, %v4583_v21  ;;  %v14248_v20 = vld [vmem:[#allocation59_spill] sm:$0xff] }
 0x7c0   : > { %vm14240_vm14 = vcmp.eq.s32.totalorder %v14239_v10, 1  ;;  %vm14249_vm2 = vcmp.eq.s32.totalorder %v14248_v20, 1 }
 0x7c1   : > { %14236 = vst [vmem:[#allocation34_spill] sm:$0xff] %v12006_v29  ;;  %6933 = vrot.lane.b32.xlu1 %v11916_v4, %s7848_s8  ;;  %6953 = vrot.lane.b32.xlu0 %v11944_v23, %s7842_s21  ;;  %v4555_v42 = vsel %vm666_vm12, %v4521_v7, %v4522_v22  ;;  %v4459_v61 = vsel %vm409_vm9, %v4425_v6, %v4426_v63 }
 0x7c2   : > { %v4330_v30 = vpop.f32.mrb[64].mxu0  ;;  %v12020_v24 = vsel %vm14238_vm4, %v4557_v46, %v4555_v42  ;;  %v12024_v15 = vsel %vm14240_vm14, %v4459_v61, %v4461_v49  ;;  %v14244_v46 = vld [vmem:[#allocation104_spill] sm:$0xff]  ;;  %vm14264_vm14 = vcmp.eq.s32.totalorder %v14263_v12, 1  ;;  %v14268_v12 = vld [vmem:[#allocation66_spill] sm:$0xff] }
 0x7c3   : > { %14241 = vst [vmem:[#allocation58_spill] sm:$0xff] %v12024_v15  ;;  %v4427_v18 = vrot.slane %v4330_v30, 7  ;;  %v4523_v4 = vrot.slane %v4330_v30, 1  ;;  %v4332_v50 = vpop.f32.mrb[65].mxu0  ;;  %vm14245_vm6 = vcmp.eq.s32.totalorder %v14244_v46, 1 }
 0x7c5   : > { %6938 = vrot.lane.b32.xlu1 %v11914_v8, %s7849_s11  ;;  %7023 = vrot.lane.b32.xlu0 %v12006_v29, %s7842_s21  ;;  %v4554_v57 = vsel %vm666_vm12, %v4522_v22, %v4523_v4  ;;  %v4458_v60 = vsel %vm409_vm9, %v4426_v63, %v4427_v18 }
 0x7c6   : > { %v4335_v45 = vpop.f32.mrb[66].mxu0  ;;  %v4586_v49 = vsel %vm14243_vm1, %v4556_v43, %v4554_v57  ;;  %v12040_v28 = vsel %vm14245_vm6, %v4458_v60, %v4460_v13  ;;  %vm14269_vm6 = vcmp.eq.s32.totalorder %v14268_v12, 1  ;;  %v14272_v12 = vld [vmem:[#allocation64_spill] sm:$0xff] }
 0x7c7   : > { %14246 = vst [vmem:[#allocation49_spill] sm:$0xff] %v12040_v28  ;;  %v4428_v35 = vrot.slane %v4335_v45, 7  ;;  %v4524_v5 = vrot.slane %v4335_v45, 1  ;;  %v4337_v8 = vpop.f32.mrb[67].mxu0  ;;  %v12042_v21 = vpack.i.bf16 %v4335_v45, %v4330_v30  ;;  %v12045_v6 = vpack.i.bf16 %v4586_v49, %v12020_v24 }
 0x7c9   : > { %14247 = vst [vmem:[#allocation99_spill] sm:$0xff] %v12045_v6  ;;  %6948 = vrot.lane.b32.xlu1 %v6942_v27, %s7845_s28  ;;  %v4553_v7 = vsel %vm666_vm12, %v4523_v4, %v4524_v5  ;;  %v4457_v37 = vsel %vm409_vm9, %v4427_v18, %v4428_v35  ;;  %v14255_v18 = vld [vmem:[#allocation46_spill] sm:$0xff] }
 0x7ca   : > { %v4340_v43 = vpop.f32.mrb[68].mxu0  ;;  %v4587_v13 = vsel %vm14249_vm2, %v4555_v42, %v4553_v7  ;;  %v12056_v56 = vsel %vm14251_vm3, %v4457_v37, %v4459_v61  ;;  %vm14256_vm10 = vcmp.eq.s32.totalorder %v14255_v18, 1  ;;  %vm14273_vm3 = vcmp.eq.s32.totalorder %v14272_v12, 1  ;;  %v14275_v12 = vld [vmem:[#allocation65_spill] sm:$0xff] }
 0x7cb   : > { %v4429_v58 = vrot.slane %v4340_v43, 7  ;;  %v4525_v63 = vrot.slane %v4340_v43, 1  ;;  %v4342_v22 = vpop.f32.mrb[69].mxu0  ;;  %v7047_v11 = vpack.i.bf16 %v4587_v13, %v4586_v49  ;;  %v12060_v27 = vpack.i.bf16 %v12056_v56, %v12040_v28  ;;  %v14282_v28 = vld [vmem:[#allocation107_spill] sm:$0xff] }
 0x7cd   : > { %14252 = vst [vmem:[#allocation67_spill] sm:$0xff] %v12060_v27  ;;  %6958 = vrot.lane.b32.xlu1 %v11946_v3, %s7853_s18  ;;  %7048 = vrot.lane.b32.xlu0 %v7047_v11, %s7848_s8  ;;  %v4552_v42 = vsel %vm666_vm12, %v4524_v5, %v4525_v63  ;;  %v4456_v61 = vsel %vm409_vm9, %v4428_v35, %v4429_v58  ;;  %v14257_v5 = vld [vmem:[#allocation60_spill] sm:$0xff] }
 0x7ce   : > { %v4345_v30 = vpop.f32.mrb[70].mxu0  ;;  %v12071_v10 = vsel %vm14254_vm8, %v4554_v57, %v4552_v42  ;;  %v12075_v4 = vsel %vm14256_vm10, %v4456_v61, %v4458_v60  ;;  %vm14258_vm5 = vcmp.eq.s32.totalorder %v14257_v5, 1  ;;  %vm14276_vm8 = vcmp.eq.s32.totalorder %v14275_v12, 1  ;;  %v14280_v12 = vld [vmem:[#allocation71_spill] sm:$0xff] }
 0x7cf   : > { %v4430_v50 = vrot.slane %v4345_v30, 7  ;;  %v4526_v45 = vrot.slane %v4345_v30, 1  ;;  %v4347_v59 = vpop.f32.mrb[71].mxu0  ;;  %v12077_v49 = vpack.i.bf16 %v4345_v30, %v4340_v43  ;;  %v12080_v46 = vpack.i.bf16 %v12071_v10, %v4587_v13  ;;  %v14259_v43 = vld [vmem:[#allocation47_spill] sm:$0xff] }
 0x7d0   : > { %vm14260_vm7 = vcmp.eq.s32.totalorder %v14259_v43, 1 }
 0x7d1   : > { %6963 = vrot.lane.b32.xlu1 %v11946_v3, %s7854_s19  ;;  %7053 = vrot.lane.b32.xlu0 %v12077_v49, %s7842_s21  ;;  %v4551_v57 = vsel %vm666_vm12, %v4525_v63, %v4526_v45  ;;  %v4455_v60 = vsel %vm409_vm9, %v4429_v58, %v4430_v50  ;;  %v14261_v63 = vld [vmem:[#allocation63_spill] sm:$0xff] }
 0x7d2   : > { %v4350_v35 = vpop.f32.mrb[72].mxu0  ;;  %v12092_v8 = vsel %vm14258_vm5, %v4553_v7, %v4551_v57  ;;  %v12096_v20 = vsel %vm14260_vm7, %v4455_v60, %v4457_v37  ;;  %vm14262_vm4 = vcmp.eq.s32.totalorder %v14261_v63, 1  ;;  %vm14281_vm5 = vcmp.eq.s32.totalorder %v14280_v12, 1 }
 0x7d3   : > { %v4431_v13 = vrot.slane %v4350_v35, 7  ;;  %v4527_v26 = vrot.slane %v4350_v35, 1  ;;  %v4352_v22 = vpop.f32.mrb[73].mxu0  ;;  %vm14283_vm7 = vcmp.eq.s32.totalorder %v14282_v28, 1 }
 0x7d5   : > { %6968 = vrot.lane.b32.xlu1 %v11944_v23, %s7852_s17  ;;  %7068 = vrot.lane.b32.xlu0 %v12077_v49, %s7849_s11  ;;  %v4550_v7 = vsel %vm666_vm12, %v4526_v45, %v4527_v26  ;;  %v4454_v58 = vsel %vm409_vm9, %v4430_v50, %v4431_v13  ;;  %v14266_v45 = vld [vmem:[#allocation56_spill] sm:$0xff] }
 0x7d6   : > { %v4355_v37 = vpop.f32.mrb[74].mxu0  ;;  %v4590_v30 = vsel %vm14262_vm4, %v4552_v42, %v4550_v7  ;;  %v12112_v18 = vsel %vm14264_vm14, %v4454_v58, %v4456_v61  ;;  %vm14267_vm1 = vcmp.eq.s32.totalorder %v14266_v45, 1 }
 0x7d7   : > { %14265 = vst [vmem:[#allocation54_spill] sm:$0xff] %v12112_v18  ;;  %v4432_v59 = vrot.slane %v4355_v37, 7  ;;  %v4528_v5 = vrot.slane %v4355_v37, 1  ;;  %v4357_v43 = vpop.f32.mrb[75].mxu0  ;;  %v12115_v22 = vpack.i.bf16 %v4590_v30, %v12092_v8  ;;  %v12117_v11 = vpack.i.bf16 %v4355_v37, %v4350_v35 }
 0x7d9   : > { %6973 = vrot.lane.b32.xlu1 %v11946_v3, %s7848_s8  ;;  %7093 = vrot.lane.b32.xlu0 %v12115_v22, %s7854_s19  ;;  %v4453_v42 = vsel %vm409_vm9, %v4431_v13, %v4432_v59  ;;  %v4549_v61 = vsel %vm666_vm12, %v4527_v26, %v4528_v5 }
 0x7da   : > { %v4360_v50 = vpop.f32.mrb[76].mxu0  ;;  %v12129_v63 = vsel %vm14267_vm1, %v4453_v42, %v4455_v60  ;;  %v4591_v35 = vsel %vm14269_vm6, %v4551_v57, %v4549_v61  ;;  %v6982_v57 = vpack.i.bf16 %v11956_v39, %v11942_v0 }
 0x7db   : > { %v4433_v37 = vrot.slane %v4360_v50, 7  ;;  %v4529_v43 = vrot.slane %v4360_v50, 1  ;;  %v4362_v3 = vpop.f32.mrb[77].mxu0  ;;  %v7117_v53 = vpack.i.bf16 %v4591_v35, %v4590_v30  ;;  %v12145_v45 = vpack.i.bf16 %v12129_v63, %v12112_v18  ;;  %v14270_v30 = vld [vmem:[#allocation70_spill] sm:$0xff] }
 0x7dc   : > { %vm14271_vm2 = vcmp.eq.s32.totalorder %v14270_v30, 1 }
 0x7dd   : > { %6978 = vrot.lane.b32.xlu1 %v11944_v23, %s7849_s11  ;;  %7098 = vrot.lane.b32.xlu0 %v12117_v11, %s7852_s17  ;;  %v4548_v13 = vsel %vm666_vm12, %v4528_v5, %v4529_v43  ;;  %v4452_v60 = vsel %vm409_vm9, %v4432_v59, %v4433_v37 }
 0x7de   : > { %v4365_v26 = vpop.f32.mrb[78].mxu0  ;;  %v12149_v23 = vsel %vm14271_vm2, %v4550_v7, %v4548_v13  ;;  %v12153_v3 = vsel %vm14273_vm3, %v4452_v60, %v4454_v58 }
 0x7df   : > { %14274 = vst [vmem:[#allocation27_spill] sm:$0xff] %v12153_v3  ;;  %v4434_v5 = vrot.slane %v4365_v26, 7  ;;  %v4530_v19 = vrot.slane %v4365_v26, 1  ;;  %v4367_v14 = vpop.f32.mrb[79].mxu0  ;;  %v12155_v59 = vpack.i.bf16 %v4365_v26, %v4360_v50  ;;  %v12158_v40 = vpack.i.bf16 %v12149_v23, %v4591_v35  ;;  %v14278_v50 = vld [vmem:[#allocation75_spill] sm:$0xff] }
 0x7e0   : > { %vm14279_vm10 = vcmp.eq.s32.totalorder %v14278_v50, 1 }
 0x7e1   : > { %6983 = vrot.lane.b32.xlu1 %v6982_v57, %s7855_s20  ;;  %7113 = vrot.lane.b32.xlu0 %v12145_v45, %s7845_s28  ;;  %v4451_v7 = vsel %vm409_vm9, %v4433_v37, %v4434_v5  ;;  %v4547_v58 = vsel %vm666_vm12, %v4529_v43, %v4530_v19 }
 0x7e2   : > { %v4370_v30 = vpop.f32.mrb[80].mxu0  ;;  %v12169_v14 = vsel %vm14276_vm8, %v4451_v7, %v4453_v42  ;;  %v4593_v35 = vsel %vm14279_vm10, %v4549_v61, %v4547_v58 }
 0x7e3   : > { %14277 = vst [vmem:[#allocation21_spill] sm:$0xff] %v12169_v14  ;;  %v4435_v26 = vrot.slane %v4370_v30, 7  ;;  %v4531_v2 = vrot.slane %v4370_v30, 1  ;;  %v4372_v18 = vpop.f32.mrb[81].mxu0 }
 0x7e5   : > { %6988 = vrot.lane.b32.xlu1 %v6982_v57, %s7845_s28  ;;  %7118 = vrot.lane.b32.xlu0 %v7117_v53, %s7848_s8  ;;  %v4546_v37 = vsel %vm666_vm12, %v4530_v19, %v4531_v2  ;;  %v4450_v43 = vsel %vm409_vm9, %v4434_v5, %v4435_v26  ;;  %v14286_v5 = vld [vmem:[#allocation84_spill] sm:$0xff] }
 0x7e6   : > { %v4375_v32 = vpop.f32.mrb[82].mxu0  ;;  %v4594_v42 = vsel %vm14281_vm5, %v4548_v13, %v4546_v37  ;;  %v12183_v61 = vsel %vm14283_vm7, %v4450_v43, %v4452_v60  ;;  %v14284_v60 = vld [vmem:[#allocation72_spill] sm:$0xff]  ;;  %vm14287_vm14 = vcmp.eq.s32.totalorder %v14286_v5, 1 }
 0x7e7   : > { %v4436_v50 = vrot.slane %v4375_v32, 7  ;;  %v4532_v18 = vrot.slane %v4375_v32, 1  ;;  %v4377_v6 = vpop.f32.mrb[83].mxu0  ;;  %v12185_v57 = vpack.i.bf16 %v4594_v42, %v4593_v35  ;;  %v12187_v53 = vpack.i.bf16 %v4375_v32, %v4370_v30  ;;  %v14288_v42 = vld [vmem:[#allocation74_spill] sm:$0xff] }
 0x7e8   : > { %vm14285_vm4 = vcmp.eq.s32.totalorder %v14284_v60, 1  ;;  %vm14289_vm1 = vcmp.eq.s32.totalorder %v14288_v42, 1 }
 0x7e9   : > { %6993 = vrot.lane.b32.xlu1 %v11973_v33, %s7842_s21  ;;  %7123 = vrot.lane.b32.xlu0 %v12155_v59, %s7842_s21  ;;  %v4449_v19 = vsel %vm409_vm9, %v4435_v26, %v4436_v50  ;;  %v4545_v28 = vsel %vm666_vm12, %v4531_v2, %v4532_v18 }
 0x7ea   : > { %v4380_v13 = vpop.f32.mrb[84].mxu0  ;;  %v12199_v6 = vsel %vm14285_vm4, %v4449_v19, %v4451_v7  ;;  %v4595_v32 = vsel %vm14287_vm14, %v4547_v58, %v4545_v28  ;;  %v14290_v58 = vld [vmem:[#allocation108_spill] sm:$0xff] }
 0x7eb   : > { %v4437_v30 = vrot.slane %v4380_v13, 7  ;;  %v4533_v35 = vrot.slane %v4380_v13, 1  ;;  %v4382_v12 = vpop.f32.mrb[85].mxu0  ;;  %vm14291_vm6 = vcmp.eq.s32.totalorder %v14290_v58, 1  ;;  %v12237_v58 = vpack.i.bf16 %v12169_v14, %v12153_v3 }
 0x7ed   : > { %6998 = vrot.lane.b32.xlu1 %v11975_v9, %s7853_s18  ;;  %7128 = vrot.lane.b32.xlu0 %v12158_v40, %s7853_s18  ;;  %v4544_v2 = vsel %vm666_vm12, %v4532_v18, %v4533_v35  ;;  %v4448_v26 = vsel %vm409_vm9, %v4436_v50, %v4437_v30  ;;  %v14293_v18 = vld [vmem:[#allocation82_spill] sm:$0xff] }
 0x7ee   : > { %v4385_v7 = vpop.f32.mrb[86].mxu0  ;;  %v4596_v60 = vsel %vm14289_vm1, %v4546_v37, %v4544_v2  ;;  %v12215_v5 = vsel %vm14291_vm6, %v4448_v26, %v4450_v43  ;;  %vm14294_vm2 = vcmp.eq.s32.totalorder %v14293_v18, 1  ;;  %v14298_v18 = vld [vmem:[#allocation91_spill] sm:$0xff] }
 0x7ef   : > { %14292 = vst [vmem:[#allocation36_spill] sm:$0xff] %v12215_v5  ;;  %v4438_v12 = vrot.slane %v4385_v7, 7  ;;  %v4534_v16 = vrot.slane %v4385_v7, 1  ;;  %v4387_v29 = vpop.f32.mrb[87].mxu0  ;;  %v12217_v27 = vpack.i.bf16 %v4385_v7, %v4380_v13  ;;  %v12219_v39 = vpack.i.bf16 %v4596_v60, %v4595_v32  ;;  %v14296_v13 = vld [vmem:[#allocation81_spill] sm:$0xff] }
 0x7f0   : > { %vm14297_vm3 = vcmp.eq.s32.totalorder %v14296_v13, 1  ;;  %vm14299_vm8 = vcmp.eq.s32.totalorder %v14298_v18, 1  ;;  %v14303_v18 = vld [vmem:[#allocation110_spill] sm:$0xff] }
 0x7f1   : > { %7003 = vrot.lane.b32.xlu1 %v11975_v9, %s7854_s19  ;;  %7148 = vrot.lane.b32.xlu0 %v12155_v59, %s7849_s11  ;;  %v4447_v37 = vsel %vm409_vm9, %v4437_v30, %v4438_v12  ;;  %v4543_v43 = vsel %vm666_vm12, %v4533_v35, %v4534_v16  ;;  %v7012_v35 = vpack.i.bf16 %v11987_v54, %v11971_v55  ;;  %vm14304_vm5 = vcmp.eq.s32.totalorder %v14303_v18, 1  ;;  %v14309_v18 = vld [vmem:[#allocation100_spill] sm:$0xff] }
 0x7f2   : > { %v4390_v50 = vpop.f32.mrb[88].mxu0  ;;  %v12231_v29 = vsel %vm14294_vm2, %v4447_v37, %v4449_v19  ;;  %v4597_v32 = vsel %vm14297_vm3, %v4545_v28, %v4543_v43  ;;  %vm14310_vm4 = vcmp.eq.s32.totalorder %v14309_v18, 1 }
 0x7f3   : > { %14295 = vst [vmem:[#allocation68_spill] sm:$0xff] %v12231_v29  ;;  %v4439_v7 = vrot.slane %v4390_v50, 7  ;;  %v4535_v42 = vrot.slane %v4390_v50, 1  ;;  %v4392_v60 = vpop.f32.mrb[89].mxu0 }
 0x7f4   : > { %v14300_v60 = vld [vmem:[#allocation85_spill] sm:$0xff] }
 0x7f5   : > { %7008 = vrot.lane.b32.xlu1 %v11973_v33, %s7852_s17  ;;  %7153 = vrot.lane.b32.xlu0 %v12237_v58, %s7855_s20  ;;  %v4542_v19 = vsel %vm666_vm12, %v4534_v16, %v4535_v42  ;;  %v4446_v30 = vsel %vm409_vm9, %v4438_v12, %v4439_v7  ;;  %vm14301_vm10 = vcmp.eq.s32.totalorder %v14300_v60, 1 }
 0x7f6   : > { %v4395_v28 = vpop.f32.mrb[90].mxu0  ;;  %v4598_v13 = vsel %vm14299_vm8, %v4544_v2, %v4542_v19  ;;  %v12253_v14 = vsel %vm14301_vm10, %v4446_v30, %v4448_v26 }
 0x7f7   : > { %14302 = vst [vmem:[#allocation69_spill] sm:$0xff] %v12253_v14  ;;  %v4440_v3 = vrot.slane %v4395_v28, 7  ;;  %v4536_v0 = vrot.slane %v4395_v28, 1  ;;  %v4397_v17 = vpop.f32.mrb[91].mxu0  ;;  %v12255_v33 = vpack.i.bf16 %v4598_v13, %v4597_v32  ;;  %v12257_v16 = vpack.i.bf16 %v4395_v28, %v4390_v50 }
 0x7f8   : > { %v14306_v17 = vld [vmem:[#allocation113_spill] sm:$0xff] }
 0x7f9   : > { %7013 = vrot.lane.b32.xlu1 %v7012_v35, %s7855_s20  ;;  %7173 = vrot.lane.b32.xlu0 %v12185_v57, %s7854_s19  ;;  %v4445_v12 = vsel %vm409_vm9, %v4439_v7, %v4440_v3  ;;  %v4541_v2 = vsel %vm666_vm12, %v4535_v42, %v4536_v0  ;;  %vm14307_vm7 = vcmp.eq.s32.totalorder %v14306_v17, 1  ;;  %v14311_v17 = vld [vmem:[#allocation112_spill] sm:$0xff] }
 0x7fa   : > { %v4400_v26 = vpop.f32.mrb[92].mxu0  ;;  %v12268_v60 = vsel %vm14304_vm5, %v4445_v12, %v4447_v37  ;;  %v4599_v50 = vsel %vm14307_vm7, %v4543_v43, %v4541_v2  ;;  %vm14312_vm14 = vcmp.eq.s32.totalorder %v14311_v17, 1  ;;  %vm5628_vm7 = vcmask 588800  }
 0x7fb   : > { %14305 = vst [vmem:[#allocation76_spill] sm:$0xff] %v12268_v60  ;;  %v4441_v32 = vrot.slane %v4400_v26, 7  ;;  %v4537_v28 = vrot.slane %v4400_v26, 1  ;;  %v4402_v13 = vpop.f32.mrb[93].mxu0  ;;  %v12272_v55 = vpop.permute.xlu0 %6813 }
 0x7fc   : > { %14308 = vst [vmem:[#allocation79_spill] sm:$0xff] %v12272_v55 }
 0x7fd   : > { %7018 = vrot.lane.b32.xlu1 %v7012_v35, %s7845_s28  ;;  %7178 = vrot.lane.b32.xlu0 %v12187_v53, %s7852_s17  ;;  %v4540_v7 = vsel %vm666_vm12, %v4536_v0, %v4537_v28  ;;  %v4444_v37 = vsel %vm409_vm9, %v4440_v3, %v4441_v32  ;;  %v12293_v0 = vpack.i.bf16 %v12024_v15, %v12002_v62 }
 0x7fe   : > { %v4405_v42 = vpop.f32.mrb[94].mxu0  ;;  %v4600_v43 = vsel %vm14310_vm4, %v4542_v19, %v4540_v7  ;;  %v12285_v13 = vsel %vm14312_vm14, %v4444_v37, %v4446_v30  ;;  %v14314_v19 = vpack.i.bf16 %v12020_v24, %v11865_v47  ;;  %v14319_v24 = vld [vmem:[#allocation4_spill] sm:$0xff]  ;;  %vm5661_vm4 = vcmask 687104  }
 0x7ff   : > { %14313 = vst [vmem:[#allocation86_spill] sm:$0xff] %v12285_v13  ;;  %v4442_v54 = vrot.slane %v4405_v42, 7  ;;  %v4538_v55 = vrot.slane %v4405_v42, 1  ;;  %v4407_v35 = vpop.f32.mrb[95].mxu0  ;;  %v12287_v52 = vpack.i.bf16 %v4600_v43, %v4599_v50  ;;  %v12289_v41 = vpack.i.bf16 %v4405_v42, %v4400_v26  ;;  %v12295_v3 = vpop.permute.xlu0 %6818  ;;  %v14317_v43 = vld [vmem:[#allocation10_spill] sm:$0xff] }
 0x800   : > { %v14315_v26 = vrot.slane %v11800_v34, 1  ;;  %v14316_v42 = vrot.slane %v11800_v34, 7  ;;  %vm14318_vm1 = vcmp.eq.s32.totalorder %v14317_v43, 1  ;;  %vm14320_vm6 = vcmp.eq.s32.totalorder %v14319_v24, 1  ;;  %v14321_v35 = vld [vmem:[#allocation3_spill] sm:$0xff]  ;;  %v14329_v43 = vld [vmem:[#allocation77_spill] sm:$0xff] }
 0x801   : > { %7028 = vrot.lane.b32.xlu1 %v14314_v19, %s7848_s8  ;;  %7183 = vrot.lane.b32.xlu0 %v12185_v57, %s7848_s8  ;;  %v4539_v30 = vsel %vm666_vm12, %v4537_v28, %v4538_v55  ;;  %vm14322_vm2 = vcmp.eq.s32.totalorder %v14321_v35, 1  ;;  %v14324_v19 = vld [vmem:[#allocation8_spill] sm:$0xff]  ;;  %vm14330_vm8 = vcmp.eq.s32.totalorder %v14329_v43, 1  ;;  %v14333_v24 = vld [vmem:[#allocation87_spill] sm:$0xff]  ;;  %vm5694_vm14 = vcmask 785408  }
 0x802   : > { %v4570_v50 = vsel %vm666_vm12, %v4538_v55, %v14315_v26  ;;  %v4474_v18 = vsel %vm409_vm9, %v4442_v54, %v14316_v42  ;;  %v4601_v47 = vsel %vm14318_vm1, %v4541_v2, %v4539_v30  ;;  %vm14325_vm3 = vcmp.eq.s32.totalorder %v14324_v19, 1  ;;  %v14327_v2 = vld [vmem:[#allocation12_spill] sm:$0xff] }
 0x803   : > { %v4602_v17 = vsel %vm14320_vm6, %v4540_v7, %v4570_v50  ;;  %v12320_v28 = vsel %vm14322_vm2, %v11822_v38, %v4474_v18  ;;  %v4571_v55 = vsel %vm14325_vm3, %v4539_v30, %v11843_v31  ;;  %v12325_v26 = vpop.permute.xlu1 %6823  ;;  %vm14328_vm12 = vcmp.eq.s32.totalorder %v14327_v2, 1  ;;  %v14336_v35 = vld [vmem:[#allocation80_spill] sm:$0xff] }
 0x804   : > { %14323 = vst [vmem:[#allocation19_spill] sm:$0xff] %v12320_v28  ;;  %14326 = vst [vmem:[#allocation89_spill] sm:$0xff] %v12325_v26  ;;  %v12327_v34 = vpack.i.bf16 %v4602_v17, %v4601_v47  ;;  %v12331_v42 = vpack.i.bf16 %v11833_v44, %v12320_v28  ;;  %v4572_v7 = vsel %vm14328_vm12, %v4570_v50, %v11818_v51  ;;  %v12352_v51 = vpop.permute.xlu0 %6828  ;;  %vm14334_vm10 = vcmp.eq.s32.totalorder %v14333_v24, 1  ;;  %v14355_v28 = vld [vmem:[#allocation18_spill] sm:$0xff] }
 0x805   : > { %7033 = vrot.lane.b32.xlu1 %v12293_v0, %s7855_s20  ;;  %7188 = vrot.lane.b32.xlu0 %v12187_v53, %s7849_s11  ;;  %v12340_v38 = vpack.i.bf16 %v4572_v7, %v4571_v55  ;;  %v12344_v31 = vpack.i.bf16 %v12199_v6, %v12183_v61  ;;  %v4443_v30 = vsel %vm409_vm9, %v4441_v32, %v4442_v54  ;;  %vm14337_vm5 = vcmp.eq.s32.totalorder %v14336_v35, 1 }
 0x806   : > { %v12350_v47 = vsel %vm14330_vm8, %v4474_v18, %v4444_v37  ;;  %14331 = vst [vmem:[#allocation57_spill] sm:$0xff] %v12352_v51  ;;  %v12358_v17 = vsel %vm14334_vm10, %v4443_v30, %v4445_v12  ;;  %v12363_v19 = vsel %vm14337_vm5, %v11812_v48, %v4443_v30  ;;  %v12399_v2 = vpack.i.bf16 %v12096_v20, %v12075_v4 }
 0x807   : > { %v12354_v50 = vpop.permute.xlu1 %6833  ;;  %14335 = vst [vmem:[#allocation93_spill] sm:$0xff] %v12358_v17  ;;  %v14346_v30 = vpack.i.bf16 %v12092_v8, %v12071_v10  ;;  %v7232_v10 = vpack.i.bf16 %v12231_v29, %v12215_v5  ;;  %vm5595_vm9 = vcmask 490496   ;;  %v14360_v5 = vld [vmem:[#allocation94_spill] sm:$0xff]  ;;  %vm5739_vm1 = vcmask 883712  }
 0x808   : > { %14332 = vst [vmem:[#allocation95_spill] sm:$0xff] %v12354_v50  ;;  %vm12866_vm6 = vmpackc.low %vm5739_vm1, %vm5739_vm1 }
 0x809   : > { %7038 = vrot.lane.b32.xlu1 %v12042_v21, %s7842_s21  ;;  %7198 = vrot.lane.b32.xlu0 %v12344_v31, %s7845_s28 }
 0x80b   : > { %v12369_v36 = vpop.permute.xlu1 %6838  ;;  %v12371_v54 = vpop.permute.xlu0 %6843 }
 0x80c   : > { %14338 = vst [vmem:[#allocation103_spill] sm:$0xff] %v12371_v54 }
 0x80d   : > { %7043 = vrot.lane.b32.xlu1 %v12042_v21, %s7849_s11  ;;  %7203 = vrot.lane.b32.xlu0 %v12217_v27, %s7842_s21 }
 0x80f   : > { %v12377_v12 = vpop.permute.xlu1 %6853  ;;  %v12379_v48 = vpop.permute.xlu0 %6848 }
 0x810   : > { %14339 = vst [vmem:[#allocation53_spill] sm:$0xff] %v12377_v12  ;;  %14340 = vst [vmem:[#allocation98_spill] sm:$0xff] %v12379_v48 }
 0x811   : > { %7058 = vrot.lane.b32.xlu1 %v12080_v46, %s7854_s19  ;;  %7208 = vrot.lane.b32.xlu0 %v12219_v39, %s7853_s18 }
 0x813   : > { %v12385_v32 = vpop.permute.xlu1 %6858  ;;  %v12387_v37 = vpop.permute.xlu0 %6863 }
 0x814   : > { %14341 = vst [vmem:[#allocation73_spill] sm:$0xff] %v12385_v32  ;;  %14342 = vst [vmem:[#allocation9_spill] sm:$0xff] %v12387_v37 }
 0x815   : > { %7063 = vrot.lane.b32.xlu1 %v12077_v49, %s7852_s17  ;;  %7213 = vrot.lane.b32.xlu0 %v12219_v39, %s7854_s19 }
 0x817   : > { %v12393_v18 = vpop.permute.xlu1 %6873  ;;  %v12395_v55 = vpop.permute.xlu0 %6868 }
 0x818   : > { %14343 = vst [vmem:[#allocation106_spill] sm:$0xff] %v12393_v18  ;;  %14344 = vst [vmem:[#allocation11_spill] sm:$0xff] %v12395_v55 }
 0x819   : > { %7073 = vrot.lane.b32.xlu1 %v12399_v2, %s7845_s28  ;;  %7218 = vrot.lane.b32.xlu0 %v12217_v27, %s7852_s17 }
 0x81b   : > { %v12405_v7 = vpop.permute.xlu1 %6883  ;;  %v12407_v49 = vpop.permute.xlu0 %6878 }
 0x81c   : > { %14345 = vst [vmem:[#allocation83_spill] sm:$0xff] %v12405_v7  ;;  %v6881_v37 = vunpack.i.h.bf16 %v12407_v49  ;;  %v6880_v32 = vunpack.i.l.bf16 %v12407_v49  ;;  %v14356_v49 = vld [vmem:[#allocation51_spill] sm:$0xff] }
 0x81d   : > { %7078 = vrot.lane.b32.xlu1 %v14346_v30, %s7848_s8  ;;  %7223 = vrot.lane.b32.xlu0 %v12219_v39, %s7848_s8 }
 0x81e   : > { %v5476_v50 = vsel %vm1756_vm0, %v14355_v28, %v6881_v37  ;;  %v5475_v54 = vsel %vm1756_vm0, %v14356_v49, %v6880_v32 }
 0x81f   : > { %v12415_v43 = vpop.permute.xlu1 %6898  ;;  %v12417_v24 = vpop.permute.xlu0 %6888 }
 0x820   : > { %14347 = vst [vmem:[#allocation38_spill] sm:$0xff] %v12417_v24 }
 0x821   : > { %7083 = vrot.lane.b32.xlu1 %v12117_v11, %s7842_s21  ;;  %7228 = vrot.lane.b32.xlu0 %v12217_v27, %s7849_s11 }
 0x823   : > { %v12423_v35 = vpop.permute.xlu1 %6903  ;;  %v12425_v15 = vpop.permute.xlu0 %6893 }
 0x824   : > { %14348 = vst [vmem:[#allocation96_spill] sm:$0xff] %v12423_v35  ;;  %14349 = vst [vmem:[#allocation14_spill] sm:$0xff] %v12425_v15 }
 0x825   : > { %7088 = vrot.lane.b32.xlu1 %v12115_v22, %s7853_s18  ;;  %7233 = vrot.lane.b32.xlu0 %v7232_v10, %s7855_s20 }
 0x827   : > { %v12432_v39 = vpop.permute.xlu1 %6913  ;;  %v12434_v8 = vpop.permute.xlu0 %6908 }
 0x828   : > { %14350 = vst [vmem:[#allocation13_spill] sm:$0xff] %v12434_v8  ;;  %v6916_v49 = vunpack.i.h.bf16 %v12432_v39 }
 0x829   : > { %7103 = vrot.lane.b32.xlu1 %v12117_v11, %s7849_s11  ;;  %7238 = vrot.lane.b32.xlu0 %v7232_v10, %s7845_s28 }
 0x82b   : > { %v12439_v27 = vpop.permute.xlu1 %6923  ;;  %v12441_v30 = vpop.permute.xlu0 %6918 }
 0x82c   : > { %14351 = vst [vmem:[#allocation50_spill] sm:$0xff] %v12441_v30  ;;  %v7142_v30 = vpack.i.bf16 %v11875_v1, %v12149_v23 }
 0x82d   : > { %7108 = vrot.lane.b32.xlu1 %v12145_v45, %s7855_s20  ;;  %7248 = vrot.lane.b32.xlu0 %v12255_v33, %s7853_s18 }
 0x82f   : > { %v12447_v22 = vpop.permute.xlu1 %6928  ;;  %v12449_v62 = vpop.permute.xlu0 %6943 }
 0x830   : > { %14352 = vst [vmem:[#allocation28_spill] sm:$0xff] %v12449_v62 }
 0x831   : > { %7133 = vrot.lane.b32.xlu1 %v12158_v40, %s7854_s19  ;;  %7253 = vrot.lane.b32.xlu0 %v12255_v33, %s7854_s19  ;;  %v7262_v40 = vpack.i.bf16 %v12268_v60, %v12253_v14 }
 0x833   : > { %v12455_v11 = vpop.permute.xlu1 %6933  ;;  %v12457_v10 = vpop.permute.xlu0 %6953 }
 0x834   : > { %14353 = vst [vmem:[#allocation24_spill] sm:$0xff] %v12457_v10 }
 0x835   : > { %7138 = vrot.lane.b32.xlu1 %v12155_v59, %s7852_s17  ;;  %7258 = vrot.lane.b32.xlu0 %v12257_v16, %s7852_s17 }
 0x837   : > { %v12463_v45 = vpop.permute.xlu1 %6938  ;;  %v12471_v15 = vpop.permute.xlu0 %7023 }
 0x838   : > { %v7026_v59 = vunpack.i.h.bf16 %v12471_v15 }
 0x839   : > { %7143 = vrot.lane.b32.xlu1 %v7142_v30, %s7848_s8  ;;  %7263 = vrot.lane.b32.xlu0 %v7262_v40, %s7855_s20 }
 0x83a   : > { %v5484_v30 = vsel %vm1756_vm0, %v12056_v56, %v7026_v59 }
 0x83b   : > { %v12473_v10 = vpop.permute.xlu1 %6948 }
 0x83d   : > { %7158 = vrot.lane.b32.xlu1 %v12237_v58, %s7845_s28  ;;  %7268 = vrot.lane.b32.xlu0 %v7262_v40, %s7845_s28 }
 0x83f   : > { %v12479_v24 = vpop.permute.xlu1 %6958  ;;  %v12481_v1 = vpop.permute.xlu0 %7048 }
 0x840   : > { %v7050_v23 = vunpack.i.l.bf16 %v12481_v1 }
 0x841   : > { %7163 = vrot.lane.b32.xlu1 %v12187_v53, %s7842_s21  ;;  %7283 = vrot.lane.b32.xlu0 %v12287_v52, %s7853_s18 }
 0x842   : > { %v12491_v14 = vsel %vm1822_vm11, %v5484_v30, %v7050_v23 }
 0x843   : > { %v12493_v58 = vpop.permute.xlu1 %6963  ;;  %v12495_v40 = vpop.permute.xlu0 %7053 }
 0x844   : > { %v7056_v62 = vunpack.i.h.bf16 %v12495_v40 }
 0x845   : > { %7168 = vrot.lane.b32.xlu1 %v12185_v57, %s7853_s18  ;;  %7288 = vrot.lane.b32.xlu0 %v12327_v34, %s7848_s8 }
 0x847   : > { %v12501_v56 = vpop.permute.xlu1 %6968  ;;  %v12503_v59 = vpop.permute.xlu0 %7068 }
 0x849   : > { %7193 = vrot.lane.b32.xlu1 %v12344_v31, %s7855_s20  ;;  %7298 = vrot.lane.b32.xlu0 %v12331_v42, %s7845_s28 }
 0x84b   : > { %v12509_v53 = vpop.permute.xlu1 %6973  ;;  %v12511_v23 = vpop.permute.xlu0 %7093 }
 0x84c   : > { %v6976_v26 = vunpack.i.h.bf16 %v12509_v53 }
 0x84d   : > { %7243 = vrot.lane.b32.xlu1 %v12257_v16, %s7842_s21  ;;  %7303 = vrot.lane.b32.xlu0 %v12340_v38, %s7854_s19 }
 0x84f   : > { %v12517_v57 = vpop.permute.xlu1 %6978  ;;  %v12519_v30 = vpop.permute.xlu0 %7098 }
 0x851   : > { %7273 = vrot.lane.b32.xlu1 %v12289_v41, %s7842_s21  ;;  %7308 = vrot.lane.b32.xlu0 %v12255_v33, %s7848_s8  ;;  %v5488_v33 = vsel %vm1756_vm0, %v12129_v63, %v7056_v62 }
 0x853   : > { %v12525_v31 = vpop.permute.xlu1 %6983  ;;  %v12527_v60 = vpop.permute.xlu0 %7113 }
 0x855   : > { %7278 = vrot.lane.b32.xlu1 %v12008_v25, %s7853_s18  ;;  %7323 = vrot.lane.b32.xlu0 %v12257_v16, %s7849_s11 }
 0x857   : > { %v6989_v35 = vpop.permute.xlu1 %6988  ;;  %v12534_v7 = vpop.permute.xlu0 %7118 }
 0x858   : > { %v7120_v18 = vunpack.i.l.bf16 %v12534_v7 }
 0x859   : > { %7293 = vrot.lane.b32.xlu1 %v12340_v38, %s7848_s8  ;;  %7333 = vrot.lane.b32.xlu0 %v12287_v52, %s7854_s19 }
 0x85a   : > { %v12544_v8 = vsel %vm1822_vm11, %v5488_v33, %v7120_v18  ;;  %v6936_v18 = vunpack.i.h.bf16 %v12455_v11  ;;  %v6991_v33 = vunpack.i.h.bf16 %v6989_v35 }
 0x85b   : > { %v12546_v55 = vpop.permute.xlu1 %6993  ;;  %v12548_v16 = vpop.permute.xlu0 %7123 }
 0x85c   : > { %14354 = vst [vmem:[#allocation2_spill] sm:$0xff] %v12546_v55  ;;  %v6990_v55 = vunpack.i.l.bf16 %v6989_v35  ;;  %v5508_v35 = vsel %vm1822_vm11, %v5476_v50, %v6936_v18  ;;  %v6975_v50 = vunpack.i.l.bf16 %v12509_v53  ;;  %v7407_v18 = vpack.i.bf16 %v12358_v17, %v12285_v13  ;;  %v14361_v53 = vld [vmem:[#allocation67_spill] sm:$0xff] }
 0x85d   : > { %7313 = vrot.lane.b32.xlu1 %v11975_v9, %s7848_s8  ;;  %7348 = vrot.lane.b32.xlu0 %v12289_v41, %s7852_s17  ;;  %v6935_v9 = vunpack.i.l.bf16 %v12455_v11  ;;  %v6915_v11 = vunpack.i.l.bf16 %v12432_v39  ;;  %v5540_v28 = vsel %vm1888_vm13, %v5508_v35, %v6991_v33  ;;  %v6840_v39 = vunpack.i.l.bf16 %v12369_v36 }
 0x85e   : > { %v6965_v35 = vunpack.i.l.bf16 %v12493_v58  ;;  %v5478_v17 = vsel %vm1756_vm0, %v14360_v5, %v6916_v49  ;;  %v6971_v13 = vunpack.i.h.bf16 %v12501_v56 }
 0x85f   : > { %v12554_v62 = vpop.permute.xlu1 %6998  ;;  %v12556_v63 = vpop.permute.xlu0 %7128 }
 0x860   : > { %v7000_v5 = vunpack.i.l.bf16 %v12554_v62 }
 0x861   : > { %7318 = vrot.lane.b32.xlu1 %v12293_v0, %s7845_s28  ;;  %7363 = vrot.lane.b32.xlu0 %v12287_v52, %s7848_s8  ;;  %v14357_v0 = vld [vmem:[#allocation109_spill] sm:$0xff]  ;;  %v5507_v52 = vsel %vm1822_vm11, %v5475_v54, %v6935_v9  ;;  %v6940_v54 = vunpack.i.l.bf16 %v12463_v45 }
 0x862   : > { %v5539_v51 = vsel %vm1888_vm13, %v5507_v52, %v6990_v55  ;;  %v14358_v55 = vld [vmem:[#allocation88_spill] sm:$0xff]  ;;  %v6966_v52 = vunpack.i.h.bf16 %v12493_v58 }
 0x863   : > { %v12566_v48 = vpop.permute.xlu1 %7003  ;;  %v12568_v12 = vpop.permute.xlu0 %7148  ;;  %v5571_v9 = vsel %vm1954_vm15, %v5539_v51, %v6940_v54 }
 0x865   : > { %7328 = vrot.lane.b32.xlu1 %v14357_v0, %s7849_s11  ;;  %7378 = vrot.lane.b32.xlu0 %v12289_v41, %s7849_s11  ;;  %v6941_v41 = vunpack.i.h.bf16 %v12463_v45  ;;  %v14359_v45 = vld [vmem:[#allocation92_spill] sm:$0xff] }
 0x866   : > { %v5477_v0 = vsel %vm1756_vm0, %v14359_v45, %v6915_v11  ;;  %v7001_v45 = vunpack.i.h.bf16 %v12554_v62 }
 0x867   : > { %v12583_v37 = vpop.permute.xlu1 %7008  ;;  %v12585_v32 = vpop.permute.xlu0 %7153  ;;  %v5572_v33 = vsel %vm1954_vm15, %v5540_v28, %v6941_v41  ;;  %v6970_v28 = vunpack.i.l.bf16 %v12501_v56  ;;  %v5509_v11 = vsel %vm1822_vm11, %v5477_v0, %v6975_v50  ;;  %v5604_v41 = vsel %vm5595_vm9, %v5571_v9, %v6965_v35 }
 0x868   : > { %v5605_v58 = vsel %vm5595_vm9, %v5572_v33, %v6966_v52  ;;  %v5510_v56 = vsel %vm1822_vm11, %v5478_v17, %v6976_v26  ;;  %v7126_v50 = vunpack.i.h.bf16 %v12548_v16  ;;  %v6980_v26 = vunpack.i.l.bf16 %v12517_v57 }
 0x869   : > { %7338 = vrot.lane.b32.xlu1 %v12008_v25, %s7854_s19  ;;  %7398 = vrot.lane.b32.xlu0 %v14358_v55, %s7852_s17  ;;  %v7125_v17 = vunpack.i.l.bf16 %v12548_v16  ;;  %v7006_v16 = vunpack.i.h.bf16 %v12566_v48 }
 0x86b   : > { %v7014_v29 = vpop.permute.xlu1 %7013  ;;  %v12605_v55 = vpop.permute.xlu0 %7173 }
 0x86c   : > { %v7016_v51 = vunpack.i.h.bf16 %v7014_v29  ;;  %v7015_v54 = vunpack.i.l.bf16 %v7014_v29 }
 0x86d   : > { %7343 = vrot.lane.b32.xlu1 %v14361_v53, %s7855_s20  ;;  %7408 = vrot.lane.b32.xlu0 %v7407_v18, %s7855_s20 }
 0x86e   : > { %v5637_v49 = vsel %vm5628_vm7, %v5604_v41, %v7015_v54  ;;  %v5638_v29 = vsel %vm5628_vm7, %v5605_v58, %v7016_v51  ;;  %v6981_v51 = vunpack.i.h.bf16 %v12517_v57  ;;  %v14363_v58 = vld [vmem:[#allocation111_spill] sm:$0xff]  ;;  %v7417_v57 = vpack.i.bf16 %v12363_v19, %v12350_v47 }
 0x86f   : > { %v5670_v9 = vsel %vm5661_vm4, %v5637_v49, %v6970_v28  ;;  %v5671_v33 = vsel %vm5661_vm4, %v5638_v29, %v6971_v13  ;;  %v7019_v0 = vpop.permute.xlu1 %7018  ;;  %v12625_v52 = vpop.permute.xlu0 %7178  ;;  %v14362_v28 = vld [vmem:[#allocation34_spill] sm:$0xff]  ;;  %v7005_v29 = vunpack.i.l.bf16 %v12566_v48  ;;  %v14364_v48 = vld [vmem:[#allocation99_spill] sm:$0xff] }
 0x870   : > { %v12628_v35 = vsel %vm5694_vm14, %v5670_v9, %v7000_v5  ;;  %v12631_v62 = vsel %vm5694_vm14, %v5671_v33, %v7001_v45  ;;  %v7021_v54 = vunpack.i.h.bf16 %v7019_v0  ;;  %v7020_v41 = vunpack.i.l.bf16 %v7019_v0 }
 0x871   : > { %7353 = vrot.lane.b32.xlu1 %v14362_v28, %s7852_s17  ;;  %7413 = vrot.lane.b32.xlu0 %v7407_v18, %s7845_s28  ;;  %v5473_v45 = vsel %vm1756_vm0, %v14363_v58, %v6840_v39  ;;  %v5492_v39 = vsel %vm1756_vm0, %v12199_v6, %v7126_v50  ;;  %v5491_v58 = vsel %vm1756_vm0, %v12183_v61, %v7125_v17  ;;  %v6900_v6 = vunpack.i.l.bf16 %v12415_v43 }
 0x872   : > { %v5542_v5 = vsel %vm1888_vm13, %v5510_v56, %v7021_v54  ;;  %v5541_v49 = vsel %vm1888_vm13, %v5509_v11, %v7020_v41  ;;  %v6950_v41 = vunpack.i.l.bf16 %v12473_v10  ;;  %v6925_v61 = vunpack.i.l.bf16 %v12439_v27 }
 0x873   : > { %v5574_v9 = vsel %vm1954_vm15, %v5542_v5, %v6981_v51  ;;  %v5573_v33 = vsel %vm1954_vm15, %v5541_v49, %v6980_v26  ;;  %v12651_v0 = vpop.permute.xlu1 %7028  ;;  %v7184_v18 = vpop.permute.xlu0 %7183 }
 0x874   : > { %v7030_v56 = vunpack.i.l.bf16 %v12651_v0  ;;  %v7186_v11 = vunpack.i.h.bf16 %v7184_v18  ;;  %v7185_v54 = vunpack.i.l.bf16 %v7184_v18  ;;  %v5606_v51 = vsel %vm5595_vm9, %v5573_v33, %v7005_v29 }
 0x875   : > { %7358 = vrot.lane.b32.xlu1 %v14364_v48, %s7853_s18  ;;  %7418 = vrot.lane.b32.xlu0 %v7417_v57, %s7855_s20  ;;  %v5607_v26 = vsel %vm5595_vm9, %v5574_v9, %v7006_v16  ;;  %v6985_v29 = vunpack.i.l.bf16 %v12525_v31 }
 0x876   : > { %v5505_v50 = vsel %vm1822_vm11, %v5473_v45, %v7030_v56  ;;  %v12667_v5 = vsel %vm1822_vm11, %v5491_v58, %v7185_v54  ;;  %v12670_v49 = vsel %vm1822_vm11, %v5492_v39, %v7186_v11  ;;  %v7011_v45 = vunpack.i.h.bf16 %v12583_v37 }
 0x877   : > { %v5537_v17 = vsel %vm1888_vm13, %v5505_v50, %v6950_v41  ;;  %v7034_v18 = vpop.permute.xlu1 %7033  ;;  %v12674_v13 = vpop.permute.xlu0 %7188  ;;  %v7010_v56 = vunpack.i.l.bf16 %v12583_v37 }
 0x878   : > { %v5569_v16 = vsel %vm1954_vm15, %v5537_v17, %v6900_v6  ;;  %v7036_v9 = vunpack.i.h.bf16 %v7034_v18  ;;  %v7035_v33 = vunpack.i.l.bf16 %v7034_v18  ;;  %v7070_v17 = vunpack.i.l.bf16 %v12503_v59 }
 0x879   : > { %v5602_v39 = vsel %vm5595_vm9, %v5569_v16, %v6925_v61  ;;  %7368 = vrot.lane.b32.xlu1 %v12008_v25, %s7848_s8  ;;  %7423 = vrot.lane.b32.xlu0 %v12327_v34, %s7853_s18  ;;  %v7051_v61 = vunpack.i.h.bf16 %v12481_v1  ;;  %v7095_v1 = vunpack.i.l.bf16 %v12511_v23 }
 0x87a   : > { %v12686_v11 = vsel %vm5628_vm7, %v5602_v39, %v6985_v29  ;;  %v5640_v54 = vsel %vm5628_vm7, %v5607_v26, %v7036_v9  ;;  %v5639_v41 = vsel %vm5628_vm7, %v5606_v51, %v7035_v33  ;;  %v7115_v26 = vunpack.i.l.bf16 %v12527_v60 }
 0x87b   : > { %v7039_v58 = vpop.permute.xlu1 %7038  ;;  %v12690_v6 = vpop.permute.xlu0 %7198  ;;  %v12693_v37 = vsel %vm5661_vm4, %v5639_v41, %v7010_v56  ;;  %v12696_v50 = vsel %vm5661_vm4, %v5640_v54, %v7011_v45  ;;  %v7100_v33 = vunpack.i.l.bf16 %v12519_v30  ;;  %v7130_v54 = vunpack.i.l.bf16 %v12556_v63 }
 0x87c   : > { %v7040_v25 = vunpack.i.l.bf16 %v7039_v58 }
 0x87d   : > { %7373 = vrot.lane.b32.xlu1 %v14361_v53, %s7845_s28  ;;  %7428 = vrot.lane.b32.xlu0 %v7417_v57, %s7845_s28  ;;  %v7155_v53 = vunpack.i.l.bf16 %v12585_v32 }
 0x87e   : > { %v5485_v51 = vsel %vm1756_vm0, %v12075_v4, %v7040_v25 }
 0x87f   : > { %v5517_v18 = vsel %vm1822_vm11, %v5485_v51, %v7051_v61  ;;  %v12707_v29 = vpop.permute.xlu1 %7043  ;;  %v12709_v16 = vpop.permute.xlu0 %7203  ;;  %v7041_v51 = vunpack.i.h.bf16 %v7039_v58 }
 0x880   : > { %v5549_v9 = vsel %vm1888_vm13, %v5517_v18, %v7115_v26  ;;  %v12751_v26 = vld [vmem:[%s13511_s3] sm:$0xff]  ;;  %v7116_v18 = vunpack.i.h.bf16 %v12527_v60  ;;  %v7101_v60 = vunpack.i.h.bf16 %v12519_v30  ;;  %v7150_v30 = vunpack.i.l.bf16 %v12568_v12 }
 0x881   : > { %v5581_v57 = vsel %vm1954_vm15, %v5549_v9, %v7070_v17  ;;  %7383 = vrot.lane.b32.xlu1 %v14362_v28, %s7849_s11  ;;  %7433 = vrot.lane.b32.xlu0 %v12327_v34, %s7854_s19  ;;  %v7025_v9 = vunpack.i.l.bf16 %v12471_v15  ;;  %v5728_v15 = vld [vmem:[%s13512_s4 + $0x8] sm:$0xf] }
 0x882   : > { %v5614_v4 = vsel %vm5595_vm9, %v5581_v57, %v7095_v1  ;;  %6534 = vmatprep.mubr.msk.f32.mxu1 %vm5739_vm1, %v12751_v26  ;;  %v5486_v1 = vsel %vm1756_vm0, %v12096_v20, %v7041_v51  ;;  %v7156_v20 = vunpack.i.h.bf16 %v12585_v32  ;;  %v7200_v32 = vunpack.i.l.bf16 %v12690_v6 }
 0x883   : > { %v12721_v45 = vpop.permute.xlu1 %7058  ;;  %v12723_v56 = vpop.permute.xlu0 %7208  ;;  %v5647_v39 = vsel %vm5628_vm7, %v5614_v4, %v7155_v53  ;;  %v7096_v53 = vunpack.i.h.bf16 %v12511_v23  ;;  %v7121_v23 = vunpack.i.h.bf16 %v12534_v7 }
 0x884   : > { %v5680_v34 = vsel %vm5661_vm4, %v5647_v39, %v7100_v33  ;;  %v7131_v39 = vunpack.i.h.bf16 %v12556_v63 }
 0x885   : > { %7388 = vrot.lane.b32.xlu1 %v14364_v48, %s7854_s19  ;;  %7438 = vrot.lane.b32.xlu0 %v12331_v42, %s7855_s20  ;;  %v12733_v28 = vsel %vm5694_vm14, %v5680_v34, %v7130_v54  ;;  %v5727_v48 = vld [vmem:[%s13512_s4] sm:$0xff]  ;;  %v7031_v54 = vunpack.i.h.bf16 %v12651_v0 }
 0x887   : > { %v12735_v41 = vpop.permute.xlu1 %7063  ;;  %v12737_v25 = vpop.permute.xlu0 %7213 }
 0x889   : > { %7393 = vrot.lane.b32.xlu1 %v12399_v2, %s7855_s20  ;;  %7443 = vrot.lane.b32.xlu0 %v12340_v38, %s7853_s18 }
 0x88b   : > { %v7074_v42 = vpop.permute.xlu1 %7073  ;;  %v12746_v61 = vpop.permute.xlu0 %7218 }
 0x88d   : > { %7403 = vrot.lane.b32.xlu1 %v12042_v21, %s7852_s17  ;;  %5731 = vperm.xlu0 %6811, %v5727_v48   ;;  %v7071_v21 = vunpack.i.h.bf16 %v12503_v59  ;;  %v14365_v48 = vld [vmem:[#allocation27_spill] sm:$0xff] }
 0x88f   : > { %v12757_v38 = vpop.permute.xlu1 %7078  ;;  %v12759_v2 = vpop.permute.xlu0 %7223 }
 0x890   : > { %v7080_v17 = vunpack.i.l.bf16 %v12757_v38 }
 0x891   : > { %7448 = vrot.lane.b32.xlu1 %v12080_v46, %s7853_s18 }
 0x892   : > { %v5518_v58 = vsel %vm1822_vm11, %v5486_v1, %v7080_v17  ;;  %v7075_v1 = vunpack.i.l.bf16 %v7074_v42 }
 0x893   : > { %v5550_v57 = vsel %vm1888_vm13, %v5518_v58, %v7116_v18  ;;  %v12772_v4 = vpop.permute.xlu1 %7083  ;;  %v12774_v33 = vpop.permute.xlu0 %7228  ;;  %v7076_v18 = vunpack.i.h.bf16 %v7074_v42  ;;  %v14366_v58 = vld [vmem:[#allocation49_spill] sm:$0xff] }
 0x894   : > { %v5582_v46 = vsel %vm1954_vm15, %v5550_v57, %v7071_v21  ;;  %v7085_v59 = vunpack.i.l.bf16 %v12772_v4  ;;  %v7175_v57 = vunpack.i.l.bf16 %v12605_v55 }
 0x895   : > { %v5615_v34 = vsel %vm5595_vm9, %v5582_v46, %v7096_v53  ;;  %5736 = vperm.xlu1 %7452, %v5728_v15   ;;  %v5483_v53 = vsel %vm1756_vm0, %v14366_v58, %v7025_v9  ;;  %v7180_v46 = vunpack.i.l.bf16 %v12625_v52 }
 0x896   : > { %v5489_v51 = vsel %vm1756_vm0, %v14365_v48, %v7085_v59  ;;  %v5648_v17 = vsel %vm5628_vm7, %v5615_v34, %v7156_v20  ;;  %v5515_v20 = vsel %vm1822_vm11, %v5483_v53, %v7031_v54  ;;  %v7190_v34 = vunpack.i.l.bf16 %v12674_v13 }
 0x897   : > { %v5521_v7 = vsel %vm1822_vm11, %v5489_v51, %v7121_v23  ;;  %v12793_v21 = vpop.permute.xlu1 %7088  ;;  %v12795_v63 = vpop.permute.xlu0 %7233  ;;  %v5681_v0 = vsel %vm5661_vm4, %v5648_v17, %v7101_v60  ;;  %v7191_v60 = vunpack.i.h.bf16 %v12674_v13  ;;  %v5547_v54 = vsel %vm1888_vm13, %v5515_v20, %v7075_v1 }
 0x898   : > { %v5553_v59 = vsel %vm1888_vm13, %v5521_v7, %v7200_v32  ;;  %v7235_v42 = vunpack.i.l.bf16 %v12795_v63  ;;  %v12807_v23 = vsel %vm5694_vm14, %v5681_v0, %v7131_v39  ;;  %v7210_v32 = vunpack.i.l.bf16 %v12723_v56 }
 0x899   : > { %v5585_v15 = vsel %vm1954_vm15, %v5553_v59, %v7150_v30  ;;  %v5548_v51 = vsel %vm1888_vm13, %v12491_v14, %v7076_v18  ;;  %v7046_v7 = vunpack.i.h.bf16 %v12707_v29  ;;  %v7045_v13 = vunpack.i.l.bf16 %v12707_v29 }
 0x89a   : > { %v5618_v9 = vsel %vm5595_vm9, %v5585_v15, %v7175_v57  ;;  %v7061_v53 = vunpack.i.h.bf16 %v12721_v45  ;;  %v7060_v57 = vunpack.i.l.bf16 %v12721_v45  ;;  %v7066_v14 = vunpack.i.h.bf16 %v12735_v41 }
 0x89b   : > { %v5651_v30 = vsel %vm5628_vm7, %v5618_v9, %v7235_v42  ;;  %v12819_v39 = vpop.permute.xlu1 %7103  ;;  %v7239_v17 = vpop.permute.xlu0 %7238  ;;  %v5579_v18 = vsel %vm1954_vm15, %v5547_v54, %v7045_v13  ;;  %v5580_v20 = vsel %vm1954_vm15, %v5548_v51, %v7046_v7  ;;  %v7215_v42 = vunpack.i.l.bf16 %v12737_v25 }
 0x89c   : > { %v5684_v0 = vsel %vm5661_vm4, %v5651_v30, %v7180_v46  ;;  %v7241_v58 = vunpack.i.h.bf16 %v7239_v17  ;;  %v7240_v1 = vunpack.i.l.bf16 %v7239_v17  ;;  %v7216_v46 = vunpack.i.h.bf16 %v12737_v25 }
 0x89d   : > { %v12827_v59 = vsel %vm5694_vm14, %v5684_v0, %v7210_v32  ;;  %v7065_v30 = vunpack.i.l.bf16 %v12735_v41  ;;  %v5613_v7 = vsel %vm5595_vm9, %v5580_v20, %v7061_v53 }
 0x89e   : > { %v5556_v29 = vsel %vm1888_vm13, %v12670_v49, %v7241_v58  ;;  %v5555_v45 = vsel %vm1888_vm13, %v12667_v5, %v7240_v1  ;;  %v5612_v49 = vsel %vm5595_vm9, %v5579_v18, %v7060_v57  ;;  %v14367_v5 = vld [vmem:[#allocation79_spill] sm:$0xff]  ;;  %v7090_v1 = vunpack.i.l.bf16 %v12793_v21 }
 0x89f   : > { %v5588_v15 = vsel %vm1954_vm15, %v5556_v29, %v7191_v60  ;;  %v7109_v9 = vpop.permute.xlu1 %7108  ;;  %v12839_v32 = vpop.permute.xlu0 %7248  ;;  %v5587_v54 = vsel %vm1954_vm15, %v5555_v45, %v7190_v34  ;;  %v6816_v0 = vunpack.i.h.bf16 %v14367_v5  ;;  %v6841_v60 = vunpack.i.h.bf16 %v12369_v36 }
 0x8a0   : > { %v7111_v51 = vunpack.i.h.bf16 %v7109_v9  ;;  %v7110_v17 = vunpack.i.l.bf16 %v7109_v9  ;;  %v5620_v25 = vsel %vm5595_vm9, %v5587_v54, %v7215_v42  ;;  %v5621_v13 = vsel %vm5595_vm9, %v5588_v15, %v7216_v46  ;;  %v14370_v15 = vld [vmem:[#allocation62_spill] sm:$0xff] }
 0x8a1   : > { %v7091_v34 = vunpack.i.h.bf16 %v12793_v21  ;;  %v7055_v29 = vunpack.i.l.bf16 %v12495_v40  ;;  %v6815_v36 = vunpack.i.l.bf16 %v14367_v5  ;;  %v6930_v46 = vunpack.i.l.bf16 %v12447_v22 }
 0x8a2   : > { %v5645_v58 = vsel %vm5628_vm7, %v5612_v49, %v7110_v17  ;;  %v5646_v41 = vsel %vm5628_vm7, %v5613_v7, %v7111_v51  ;;  %v6821_v40 = vunpack.i.h.bf16 %v12295_v3  ;;  %v5474_v9 = vsel %vm1756_vm0, %v14370_v15, %v6841_v60  ;;  %v14372_v15 = vld [vmem:[#allocation21_spill] sm:$0xff] }
 0x8a3   : > { %v5678_v57 = vsel %vm5661_vm4, %v5645_v58, %v7065_v30  ;;  %v5679_v53 = vsel %vm5661_vm4, %v5646_v41, %v7066_v14  ;;  %v12855_v18 = vpop.permute.xlu1 %7133  ;;  %v12857_v20 = vpop.permute.xlu0 %7253  ;;  %v12872_v14 = vsel %vm1756_vm0, %v11833_v44, %v6816_v0  ;;  %v6901_v54 = vunpack.i.h.bf16 %v12415_v43  ;;  %v14371_v41 = vld [vmem:[#allocation54_spill] sm:$0xff] }
 0x8a4   : > { %v5711_v42 = vsel %vm5694_vm14, %v5678_v57, %v7090_v1  ;;  %v5712_v45 = vsel %vm5694_vm14, %v5679_v53, %v7091_v34  ;;  %v6926_v51 = vunpack.i.h.bf16 %v12439_v27  ;;  %v6931_v17 = vunpack.i.h.bf16 %v12447_v22 }
 0x8a5   : > { %v6708_v30 = vpack.c.bf16 %v5712_v45, %v5711_v42  ;;  %v5668_v44 = vsel %vm5661_vm4, %v12686_v11, %v6930_v46  ;;  %v6951_v0 = vunpack.i.h.bf16 %v12473_v10  ;;  %v6961_v58 = vunpack.i.h.bf16 %v12479_v24 }
 0x8a6   : > { %v6960_v60 = vunpack.i.l.bf16 %v12479_v24  ;;  %v5487_v43 = vsel %vm1756_vm0, %v14371_v41, %v7055_v29  ;;  %v6986_v27 = vunpack.i.h.bf16 %v12525_v31  ;;  %v7151_v22 = vunpack.i.h.bf16 %v12568_v12 }
 0x8a7   : > { %v12880_v49 = vpop.permute.xlu1 %7138  ;;  %v12882_v7 = vpop.permute.xlu0 %7258  ;;  %6710 = vmatprep.subr.msk.bf16.mxu1 %vm12866_vm6, %v6708_v30  ;;  %v7081_v34 = vunpack.i.h.bf16 %v12757_v38  ;;  %v7086_v11 = vunpack.i.h.bf16 %v12772_v4  ;;  %v7176_v10 = vunpack.i.h.bf16 %v12605_v55  ;;  %v7181_v1 = vunpack.i.h.bf16 %v12625_v52 }
 0x8a8   : > { %v7201_v24 = vunpack.i.h.bf16 %v12690_v6  ;;  %v12901_v57 = vsel %vm5694_vm14, %v5668_v44, %v6960_v60  ;;  %v7211_v53 = vunpack.i.h.bf16 %v12723_v56  ;;  %v7221_v29 = vunpack.i.h.bf16 %v12746_v61 }
 0x8a9   : > { %v7220_v31 = vunpack.i.l.bf16 %v12746_v61  ;;  %v7226_v12 = vunpack.i.h.bf16 %v12759_v2  ;;  %v5519_v52 = vsel %vm1822_vm11, %v5487_v43, %v7081_v34  ;;  %v7225_v6 = vunpack.i.l.bf16 %v12759_v2 }
 0x8aa   : > { %v5490_v30 = vsel %vm1756_vm0, %v14372_v15, %v7086_v11  ;;  %v7231_v56 = vunpack.i.h.bf16 %v12774_v33  ;;  %v7230_v15 = vunpack.i.l.bf16 %v12774_v33 }
 0x8ab   : > { %v7144_v38 = vpop.permute.xlu1 %7143  ;;  %v7264_v46 = vpop.permute.xlu0 %7263 }
 0x8ac   : > { %v7146_v4 = vunpack.i.h.bf16 %v7144_v38  ;;  %v7145_v42 = vunpack.i.l.bf16 %v7144_v38  ;;  %v7266_v55 = vunpack.i.h.bf16 %v7264_v46  ;;  %v7265_v45 = vunpack.i.l.bf16 %v7264_v46 }
 0x8ae   : > { %v5506_v44 = vsel %vm1822_vm11, %v5474_v9, %v7146_v4  ;;  %v5522_v61 = vsel %vm1822_vm11, %v5490_v30, %v7145_v42  ;;  %v5653_v60 = vsel %vm5628_vm7, %v5620_v25, %v7265_v45  ;;  %v5654_v41 = vsel %vm5628_vm7, %v5621_v13, %v7266_v55 }
 0x8af   : > { %v5538_v38 = vsel %vm1888_vm13, %v5506_v44, %v6951_v0  ;;  %v5554_v46 = vsel %vm1888_vm13, %v5522_v61, %v7201_v24  ;;  %v5686_v43 = vsel %vm5661_vm4, %v5653_v60, %v7220_v31  ;;  %v5687_v2 = vsel %vm5661_vm4, %v5654_v41, %v7221_v29  ;;  %v7159_v34 = vpop.permute.xlu1 %7158  ;;  %v7269_v11 = vpop.permute.xlu0 %7268 }
 0x8b0   : > { %v7236_v9 = vunpack.i.h.bf16 %v12795_v63  ;;  %v5570_v4 = vsel %vm1954_vm15, %v5538_v38, %v6901_v54  ;;  %v5586_v25 = vsel %vm1954_vm15, %v5554_v46, %v7151_v22  ;;  %v7161_v42 = vunpack.i.h.bf16 %v7159_v34  ;;  %v14373_v38 = vld [vmem:[#allocation36_spill] sm:$0xff] }
 0x8b1   : > { %v5603_v13 = vsel %vm5595_vm9, %v5570_v4, %v6926_v51  ;;  %v5619_v0 = vsel %vm5595_vm9, %v5586_v25, %v7176_v10  ;;  %v7160_v24 = vunpack.i.l.bf16 %v7159_v34  ;;  %v7106_v31 = vunpack.i.h.bf16 %v12819_v39  ;;  %v14374_v46 = vld [vmem:[#allocation68_spill] sm:$0xff] }
 0x8b2   : > { %v7105_v29 = vunpack.i.l.bf16 %v12819_v39  ;;  %v5636_v55 = vsel %vm5628_vm7, %v5603_v13, %v6986_v27  ;;  %v5652_v33 = vsel %vm5628_vm7, %v5619_v0, %v7236_v9  ;;  %v7251_v63 = vunpack.i.h.bf16 %v12839_v32 }
 0x8b3   : > { %v7250_v54 = vunpack.i.l.bf16 %v12839_v32  ;;  %v7164_v45 = vpop.permute.xlu1 %7163  ;;  %v12932_v22 = vpop.permute.xlu0 %7283  ;;  %v5685_v51 = vsel %vm5661_vm4, %v5652_v33, %v7181_v1  ;;  %v5669_v10 = vsel %vm5661_vm4, %v5636_v55, %v6931_v17  ;;  %v7271_v30 = vunpack.i.h.bf16 %v7269_v11 }
 0x8b4   : > { %v7270_v44 = vunpack.i.l.bf16 %v7269_v11  ;;  %v7166_v61 = vunpack.i.h.bf16 %v7164_v45  ;;  %v7165_v60 = vunpack.i.l.bf16 %v7164_v45  ;;  %v5551_v39 = vsel %vm1888_vm13, %v5519_v52, %v7160_v24 }
 0x8b5   : > { %v5552_v27 = vsel %vm1888_vm13, %v12544_v8, %v7161_v42  ;;  %v12940_v41 = vsel %vm5694_vm14, %v5685_v51, %v7211_v53  ;;  %v12943_v32 = vsel %vm5694_vm14, %v5669_v10, %v6961_v58  ;;  %v12958_v58 = vsel %vm5694_vm14, %v5686_v43, %v7250_v54 }
 0x8b6   : > { %v5493_v1 = vsel %vm1756_vm0, %v14373_v38, %v7165_v60  ;;  %v5494_v17 = vsel %vm1756_vm0, %v14374_v46, %v7166_v61  ;;  %v12961_v4 = vsel %vm5694_vm14, %v5687_v2, %v7251_v63  ;;  %v7256_v25 = vunpack.i.h.bf16 %v12857_v20  ;;  %v14375_v63 = vld [vmem:[#allocation89_spill] sm:$0xff] }
 0x8b7   : > { %v5525_v8 = vsel %vm1822_vm11, %v5493_v1, %v7225_v6  ;;  %v5526_v53 = vsel %vm1822_vm11, %v5494_v17, %v7226_v12  ;;  %v7169_v11 = vpop.permute.xlu1 %7168  ;;  %v12955_v9 = vpop.permute.xlu0 %7288  ;;  %v7255_v13 = vunpack.i.l.bf16 %v12857_v20  ;;  %v6820_v6 = vunpack.i.l.bf16 %v12295_v3 }
 0x8b8   : > { %v5557_v0 = vsel %vm1888_vm13, %v5525_v8, %v7270_v44  ;;  %v5558_v42 = vsel %vm1888_vm13, %v5526_v53, %v7271_v30  ;;  %v5583_v12 = vsel %vm1954_vm15, %v5551_v39, %v7105_v29  ;;  %v5584_v55 = vsel %vm1954_vm15, %v5552_v27, %v7106_v31  ;;  %v14376_v31 = vld [vmem:[#allocation57_spill] sm:$0xff]  ;;  %v14377_v30 = vld [vmem:[#allocation103_spill] sm:$0xff] }
 0x8b9   : > { %v5589_v24 = vsel %vm1954_vm15, %v5557_v0, %v7230_v15  ;;  %v5590_v43 = vsel %vm1954_vm15, %v5558_v42, %v7231_v56  ;;  %v6826_v54 = vunpack.i.h.bf16 %v14375_v63  ;;  %v6825_v45 = vunpack.i.l.bf16 %v14375_v63  ;;  %v14380_v63 = vld [vmem:[#allocation95_spill] sm:$0xff] }
 0x8ba   : > { %v12973_v2 = vsel %vm5595_vm9, %v5589_v24, %v7255_v13  ;;  %v12976_v33 = vsel %vm5595_vm9, %v5590_v43, %v7256_v25  ;;  %v7136_v29 = vunpack.i.h.bf16 %v12855_v18  ;;  %v7135_v15 = vunpack.i.l.bf16 %v12855_v18  ;;  %v14379_v43 = vld [vmem:[#allocation61_spill] sm:$0xff] }
 0x8bb   : > { %v7194_v56 = vpop.permute.xlu1 %7193  ;;  %v7299_v51 = vpop.permute.xlu0 %7298  ;;  %v6831_v10 = vunpack.i.h.bf16 %v14376_v31  ;;  %v6846_v44 = vunpack.i.h.bf16 %v14377_v30  ;;  %v7141_v39 = vunpack.i.h.bf16 %v12880_v49  ;;  %v7140_v27 = vunpack.i.l.bf16 %v12880_v49 }
 0x8bc   : > { %v7196_v61 = vunpack.i.h.bf16 %v7194_v56  ;;  %v7195_v60 = vunpack.i.l.bf16 %v7194_v56  ;;  %v5616_v38 = vsel %vm5595_vm9, %v5583_v12, %v7135_v15  ;;  %v5617_v1 = vsel %vm5595_vm9, %v5584_v55, %v7136_v29  ;;  %v14378_v12 = vld [vmem:[#allocation25_spill] sm:$0xff] }
 0x8bd   : > { %v6830_v46 = vunpack.i.l.bf16 %v14376_v31  ;;  %v6845_v18 = vunpack.i.l.bf16 %v14377_v30  ;;  %v7171_v53 = vunpack.i.h.bf16 %v7169_v11  ;;  %v7170_v25 = vunpack.i.l.bf16 %v7169_v11  ;;  %v14381_v11 = vld [vmem:[#allocation19_spill] sm:$0xff]  ;;  %v14387_v15 = vld [vmem:[#allocation13_spill] sm:$0xff] }
 0x8be   : > { %v5649_v17 = vsel %vm5628_vm7, %v5616_v38, %v7195_v60  ;;  %v5650_v8 = vsel %vm5628_vm7, %v5617_v1, %v7196_v61  ;;  %v5471_v24 = vsel %vm1756_vm0, %v14378_v12, %v6825_v45  ;;  %v5472_v55 = vsel %vm1756_vm0, %v14379_v43, %v6826_v54  ;;  %v14382_v54 = vld [vmem:[#allocation53_spill] sm:$0xff]  ;;  %v14383_v38 = vld [vmem:[#allocation98_spill] sm:$0xff]  ;;  %v14386_v43 = vld [vmem:[#allocation11_spill] sm:$0xff] }
 0x8bf   : > { %v5682_v13 = vsel %vm5661_vm4, %v5649_v17, %v7140_v27  ;;  %v5683_v0 = vsel %vm5661_vm4, %v5650_v8, %v7141_v39  ;;  %v12996_v42 = vpop.permute.xlu1 %7243  ;;  %v7304_v49 = vpop.permute.xlu0 %7303  ;;  %v5504_v56 = vsel %vm1822_vm11, %v5472_v55, %v6846_v44  ;;  %v5469_v30 = vsel %vm1756_vm0, %v14381_v11, %v6815_v36  ;;  %v14384_v36 = vld [vmem:[#allocation73_spill] sm:$0xff] }
 0x8c0   : > { %v13010_v61 = vsel %vm5694_vm14, %v5682_v13, %v7170_v25  ;;  %v13013_v60 = vsel %vm5694_vm14, %v5683_v0, %v7171_v53  ;;  %v5503_v45 = vsel %vm1822_vm11, %v5471_v24, %v6845_v18  ;;  %v6851_v5 = vunpack.i.h.bf16 %v14383_v38  ;;  %v14385_v13 = vld [vmem:[#allocation9_spill] sm:$0xff] }
 0x8c1   : > { %v6850_v1 = vunpack.i.l.bf16 %v14383_v38  ;;  %v6866_v18 = vunpack.i.h.bf16 %v14385_v13  ;;  %v6865_v0 = vunpack.i.l.bf16 %v14385_v13  ;;  %v6871_v55 = vunpack.i.h.bf16 %v14386_v43 }
 0x8c2   : > { %v6870_v11 = vunpack.i.l.bf16 %v14386_v43  ;;  %v7291_v20 = vunpack.i.h.bf16 %v12955_v9  ;;  %v7290_v38 = vunpack.i.l.bf16 %v12955_v9  ;;  %v7301_v52 = vunpack.i.h.bf16 %v7299_v51 }
 0x8c3   : > { %v7274_v25 = vpop.permute.xlu1 %7273  ;;  %v13024_v53 = vpop.permute.xlu0 %7308  ;;  %v7300_v34 = vunpack.i.l.bf16 %v7299_v51  ;;  %v7306_v8 = vunpack.i.h.bf16 %v7304_v49  ;;  %v7305_v13 = vunpack.i.l.bf16 %v7304_v49 }
 0x8c4   : > { %v7276_v12 = vunpack.i.h.bf16 %v7274_v25  ;;  %v7275_v24 = vunpack.i.l.bf16 %v7274_v25 }
 0x8c6   : > { %v5467_v44 = vsel %vm1756_vm0, %v12350_v47, %v7275_v24  ;;  %v5468_v17 = vsel %vm1756_vm0, %v12363_v19, %v7276_v12  ;;  %v6911_v47 = vunpack.i.h.bf16 %v14387_v15  ;;  %v6910_v24 = vunpack.i.l.bf16 %v14387_v15  ;;  %v14388_v15 = vld [vmem:[#allocation106_spill] sm:$0xff] }
 0x8c7   : > { %v5499_v25 = vsel %vm1822_vm11, %v5467_v44, %v7290_v38  ;;  %v5500_v48 = vsel %vm1822_vm11, %v5468_v17, %v7291_v20  ;;  %v7279_v39 = vpop.permute.xlu1 %7278  ;;  %v13038_v43 = vpop.permute.xlu0 %7323  ;;  %v6875_v17 = vunpack.i.l.bf16 %v14388_v15 }
 0x8c8   : > { %v5531_v27 = vsel %vm1888_vm13, %v5499_v25, %v7300_v34  ;;  %v5532_v9 = vsel %vm1888_vm13, %v5500_v48, %v7301_v52  ;;  %v7281_v51 = vunpack.i.h.bf16 %v7279_v39  ;;  %v7280_v29 = vunpack.i.l.bf16 %v7279_v39 }
 0x8c9   : > { %v5563_v19 = vsel %vm1954_vm15, %v5531_v27, %v6820_v6  ;;  %v5564_v20 = vsel %vm1954_vm15, %v5532_v9, %v6821_v40  ;;  %v6876_v39 = vunpack.i.h.bf16 %v14388_v15  ;;  %v14393_v15 = vunpack.i.l.bf16 %v14382_v54 }
 0x8ca   : > { %v5596_v49 = vsel %vm5595_vm9, %v5563_v19, %v7305_v13  ;;  %v5597_v34 = vsel %vm5595_vm9, %v5564_v20, %v7306_v8  ;;  %v13054_v48 = vsel %vm5694_vm14, %v12696_v50, %v7281_v51  ;;  %v13058_v52 = vsel %vm5694_vm14, %v12693_v37, %v7280_v29  ;;  %v14389_v50 = vld [vmem:[#allocation83_spill] sm:$0xff] }
 0x8cb   : > { %v6741_v6 = vpack.c.bf16 %v13054_v48, %v13058_v52  ;;  %v7294_v3 = vpop.permute.xlu1 %7293  ;;  %v13063_v27 = vpop.permute.xlu0 %7333  ;;  %v5629_v40 = vsel %vm5628_vm7, %v5596_v49, %v6870_v11  ;;  %v5630_v44 = vsel %vm5628_vm7, %v5597_v34, %v6871_v55  ;;  %v6886_v8 = vunpack.i.h.bf16 %v14389_v50 }
 0x8cc   : > { %v7296_v12 = vunpack.i.h.bf16 %v7294_v3  ;;  %v7295_v38 = vunpack.i.l.bf16 %v7294_v3  ;;  %v5535_v37 = vsel %vm1888_vm13, %v5503_v45, %v6910_v24  ;;  %v5536_v29 = vsel %vm1888_vm13, %v5504_v56, %v6911_v47  ;;  %v14390_v24 = vld [vmem:[#allocation96_spill] sm:$0xff] }
 0x8cd   : > { %v5662_v13 = vsel %vm5661_vm4, %v5629_v40, %v6830_v46  ;;  %v5663_v11 = vsel %vm5661_vm4, %v5630_v44, %v6831_v10  ;;  %v6885_v45 = vunpack.i.l.bf16 %v14389_v50  ;;  %v6905_v19 = vunpack.i.l.bf16 %v14390_v24  ;;  %v14395_v44 = vld [vmem:[#allocation28_spill] sm:$0xff] }
 0x8ce   : > { %v5501_v55 = vsel %vm1822_vm11, %v5469_v30, %v7295_v38  ;;  %v5502_v25 = vsel %vm1822_vm11, %v12872_v14, %v7296_v12  ;;  %v5695_v9 = vsel %vm5694_vm14, %v5662_v13, %v6850_v1  ;;  %v5696_v51 = vsel %vm5694_vm14, %v5663_v11, %v6851_v5 }
 0x8cf   : > { %v5533_v56 = vsel %vm1888_vm13, %v5501_v55, %v6875_v17  ;;  %v5534_v47 = vsel %vm1888_vm13, %v5502_v25, %v6876_v39  ;;  %v13085_v46 = vpop.permute.xlu1 %7313  ;;  %v13087_v31 = vpop.permute.xlu0 %7348  ;;  %v6711_v10 = vpack.c.bf16 %v5696_v51, %v5695_v9  ;;  %v6906_v30 = vunpack.i.h.bf16 %v14390_v24 }
 0x8d0   : > { %v14391_v14 = vunpack.i.l.bf16 %v14380_v63  ;;  %v14392_v5 = vunpack.i.h.bf16 %v14380_v63  ;;  %v5567_v49 = vsel %vm1954_vm15, %v5535_v37, %v6865_v0  ;;  %v5568_v34 = vsel %vm1954_vm15, %v5536_v29, %v6866_v18 }
 0x8d1   : > { %v14394_v3 = vunpack.i.h.bf16 %v14382_v54  ;;  %6713 = vmatpush3.bf16.xpose.msk.msra.mxu1 %vm12866_vm6, %v6711_v10  ;;  %v6946_v17 = vunpack.i.h.bf16 %v14395_v44  ;;  %v6945_v63 = vunpack.i.l.bf16 %v14395_v44  ;;  %v14396_v18 = vpack.c.bf16 %v12807_v23, %v12733_v28  ;;  %v14397_v54 = vld [vmem:[#allocation38_spill] sm:$0xff] }
 0x8d2   : > { %v5565_v1 = vsel %vm1954_vm15, %v5533_v56, %v14391_v14  ;;  %v5566_v20 = vsel %vm1954_vm15, %v5534_v47, %v14392_v5  ;;  %v6891_v12 = vunpack.i.h.bf16 %v14397_v54  ;;  %v6890_v38 = vunpack.i.l.bf16 %v14397_v54  ;;  %v14400_v10 = vld [vmem:[#allocation14_spill] sm:$0xff] }
 0x8d3   : > { %v5598_v39 = vsel %vm5595_vm9, %v5565_v1, %v14393_v15  ;;  %v5599_v40 = vsel %vm5595_vm9, %v5566_v20, %v14394_v3  ;;  %6716 = vmatprep.subr.msk.bf16.mxu1 %vm12866_vm6, %v14396_v18  ;;  %v13118_v37 = vpop.permute.xlu1 %7318  ;;  %v13120_v29 = vpop.permute.xlu0 %7363  ;;  %v14398_v13 = vunpack.i.l.bf16 %v14384_v36  ;;  %v14399_v55 = vunpack.i.h.bf16 %v14384_v36 }
 0x8d4   : > { %v5631_v50 = vsel %vm5628_vm7, %v5598_v39, %v6905_v19  ;;  %v5632_v0 = vsel %vm5628_vm7, %v5599_v40, %v6906_v30  ;;  %v5600_v28 = vsel %vm5595_vm9, %v5567_v49, %v6890_v38  ;;  %v5601_v23 = vsel %vm5595_vm9, %v5568_v34, %v6891_v12 }
 0x8d5   : > { %v5664_v11 = vsel %vm5661_vm4, %v5631_v50, %v14398_v13  ;;  %v5665_v25 = vsel %vm5661_vm4, %v5632_v0, %v14399_v55  ;;  %v5633_v56 = vsel %vm5628_vm7, %v5600_v28, %v6945_v63  ;;  %v5634_v47 = vsel %vm5628_vm7, %v5601_v23, %v6946_v17  ;;  %v14403_v63 = vld [vmem:[#allocation24_spill] sm:$0xff] }
 0x8d6   : > { %v5697_v9 = vsel %vm5694_vm14, %v5664_v11, %v6885_v45  ;;  %v5698_v51 = vsel %vm5694_vm14, %v5665_v25, %v6886_v8  ;;  %v6896_v24 = vunpack.i.h.bf16 %v14400_v10  ;;  %v6895_v30 = vunpack.i.l.bf16 %v14400_v10  ;;  %v14401_v8 = vld [vmem:[#allocation50_spill] sm:$0xff]  ;;  %v14407_v10 = vld [vmem:[#allocation69_spill] sm:$0xff] }
 0x8d7   : > { %v13136_v19 = vpop.permute.xlu1 %7328  ;;  %v13138_v36 = vpop.permute.xlu0 %7378  ;;  %v6717_v14 = vpack.c.bf16 %v5698_v51, %v5697_v9  ;;  %v6921_v45 = vunpack.i.h.bf16 %v14401_v8  ;;  %v6920_v20 = vunpack.i.l.bf16 %v14401_v8  ;;  %v14402_v49 = vpack.c.bf16 %v13013_v60, %v13010_v61 }
 0x8d8   : > { %v5666_v1 = vsel %vm5661_vm4, %v5633_v56, %v6895_v30  ;;  %v5667_v5 = vsel %vm5661_vm4, %v5634_v47, %v6896_v24  ;;  %v6956_v50 = vunpack.i.h.bf16 %v14403_v63  ;;  %v7206_v61 = vunpack.i.h.bf16 %v12709_v16 }
 0x8d9   : > { %6719 = vmatpush3.bf16.xpose.msk.msra.mxu1 %vm12866_vm6, %v6717_v14  ;;  %v5699_v39 = vsel %vm5694_vm14, %v5666_v1, %v6920_v20  ;;  %v5700_v3 = vsel %vm5694_vm14, %v5667_v5, %v6921_v45  ;;  %v7205_v60 = vunpack.i.l.bf16 %v12709_v16  ;;  %v7261_v54 = vunpack.i.h.bf16 %v12882_v7 }
 0x8da   : > { %6722 = vmatprep.subr.msk.bf16.mxu1 %vm12866_vm6, %v14402_v49  ;;  %v6723_v17 = vpack.c.bf16 %v5700_v3, %v5699_v39  ;;  %v7260_v12 = vunpack.i.l.bf16 %v12882_v7  ;;  %v7311_v38 = vunpack.i.h.bf16 %v13024_v53  ;;  %v7310_v13 = vunpack.i.l.bf16 %v13024_v53 }
 0x8db   : > { %v13151_v34 = vpop.permute.xlu1 %7338  ;;  %v13153_v15 = vpop.permute.xlu0 %7398  ;;  %v14404_v16 = vpack.c.bf16 %v12940_v41, %v12827_v59  ;;  %v7286_v7 = vunpack.i.h.bf16 %v12932_v22  ;;  %v7285_v25 = vunpack.i.l.bf16 %v12932_v22  ;;  %v6955_v9 = vunpack.i.l.bf16 %v14403_v63  ;;  %v14406_v41 = vld [vmem:[#allocation76_spill] sm:$0xff]  ;;  %v14408_v63 = vld [vmem:[#allocation97_spill] sm:$0xff] }
 0x8dc   : > { %v5496_v47 = vsel %vm1756_vm0, %v14406_v41, %v7206_v61  ;;  %v5495_v24 = vsel %vm1756_vm0, %v14407_v10, %v7205_v60  ;;  %v7245_v3 = vunpack.i.l.bf16 %v12996_v42  ;;  %v14410_v60 = vld [vmem:[#allocation90_spill] sm:$0xff]  ;;  %v7350_v10 = vunpack.i.l.bf16 %v13087_v31 }
 0x8dd   : > { %v5527_v14 = vsel %vm1822_vm11, %v5495_v24, %v7310_v13  ;;  %v5528_v1 = vsel %vm1822_vm11, %v5496_v47, %v7311_v38  ;;  %v14411_v38 = vpack.c.bf16 %v12943_v32, %v12901_v57  ;;  %v7315_v13 = vunpack.i.l.bf16 %v13085_v46 }
 0x8de   : > { %v7335_v57 = vunpack.i.l.bf16 %v13063_v27  ;;  %v7321_v32 = vunpack.i.h.bf16 %v13118_v37  ;;  %v7351_v47 = vunpack.i.h.bf16 %v13087_v31 }
 0x8df   : > { %v13157_v40 = vpop.permute.xlu1 %7343  ;;  %v7409_v44 = vpop.permute.xlu0 %7408 }
 0x8e0   : > { %v7411_v0 = vunpack.i.h.bf16 %v7409_v44  ;;  %v7410_v18 = vunpack.i.l.bf16 %v7409_v44  ;;  %v7326_v44 = vunpack.i.h.bf16 %v13038_v43 }
 0x8e1   : > { %6725 = vmatpush3.bf16.xpose.msk.msra.mxu1 %vm12866_vm6, %v6723_v17  ;;  %v7325_v17 = vunpack.i.l.bf16 %v13038_v43  ;;  %v7316_v43 = vunpack.i.h.bf16 %v13085_v46 }
 0x8e2   : > { %v5655_v11 = vsel %vm5628_vm7, %v12973_v2, %v7410_v18  ;;  %v5656_v55 = vsel %vm5628_vm7, %v12976_v33, %v7411_v0  ;;  %6728 = vmatprep.subr.msk.bf16.mxu1 %vm12866_vm6, %v14404_v16  ;;  %v14405_v33 = vld [vmem:[#allocation2_spill] sm:$0xff]  ;;  %v5480_v0 = vsel %vm1756_vm0, %v14408_v63, %v6956_v50  ;;  %v7320_v16 = vunpack.i.l.bf16 %v13118_v37 }
 0x8e3   : > { %v5688_v28 = vsel %vm5661_vm4, %v5655_v11, %v7260_v12  ;;  %v5689_v53 = vsel %vm5661_vm4, %v5656_v55, %v7261_v54  ;;  %v13181_v23 = vpop.permute.xlu1 %7353  ;;  %v7414_v2 = vpop.permute.xlu0 %7413  ;;  %v6995_v51 = vunpack.i.l.bf16 %v14405_v33  ;;  %v6996_v39 = vunpack.i.h.bf16 %v14405_v33  ;;  %v14409_v18 = vld [vmem:[#allocation78_spill] sm:$0xff] }
 0x8e4   : > { %v7416_v56 = vunpack.i.h.bf16 %v7414_v2  ;;  %v7415_v59 = vunpack.i.l.bf16 %v7414_v2  ;;  %v5721_v22 = vsel %vm5694_vm14, %v5688_v28, %v7285_v25  ;;  %v5722_v30 = vsel %vm5694_vm14, %v5689_v53, %v7286_v7  ;;  %v14413_v25 = vld [vmem:[#allocation58_spill] sm:$0xff] }
 0x8e5   : > { %v6738_v49 = vpack.c.bf16 %v5722_v30, %v5721_v22  ;;  %v5479_v61 = vsel %vm1756_vm0, %v14409_v18, %v6955_v9  ;;  %v13207_v54 = vsel %vm1756_vm0, %v14410_v60, %v6995_v51  ;;  %v7246_v12 = vunpack.i.h.bf16 %v12996_v42  ;;  %v14414_v53 = vld [vmem:[#allocation86_spill] sm:$0xff]  ;;  %v14415_v51 = vld [vmem:[#allocation93_spill] sm:$0xff] }
 0x8e6   : > { %v5559_v5 = vsel %vm1888_vm13, %v5527_v14, %v7415_v59  ;;  %v5560_v8 = vsel %vm1888_vm13, %v5528_v1, %v7416_v56  ;;  %v14412_v55 = vpack.c.bf16 %v12961_v4, %v12958_v58  ;;  %v7336_v42 = vunpack.i.h.bf16 %v13063_v27 }
 0x8e7   : > { %v13195_v45 = vpop.permute.xlu1 %7358  ;;  %v7419_v20 = vpop.permute.xlu0 %7418  ;;  %v5591_v50 = vsel %vm1954_vm15, %v5559_v5, %v7325_v17  ;;  %v5592_v11 = vsel %vm1954_vm15, %v5560_v8, %v7326_v44  ;;  %v13232_v28 = vsel %vm1756_vm0, %v14413_v25, %v6996_v39  ;;  %v5497_v58 = vsel %vm1756_vm0, %v14414_v53, %v7245_v3 }
 0x8e8   : > { %v7421_v4 = vunpack.i.h.bf16 %v7419_v20  ;;  %v7420_v2 = vunpack.i.l.bf16 %v7419_v20  ;;  %v7366_v9 = vunpack.i.h.bf16 %v13120_v29  ;;  %v7365_v27 = vunpack.i.l.bf16 %v13120_v29 }
 0x8e9   : > { %6731 = vmatpush3.bf16.xpose.msk.msra.mxu1 %vm12866_vm6, %v14411_v38  ;;  %v5624_v33 = vsel %vm5595_vm9, %v5591_v50, %v7335_v57  ;;  %v5625_v37 = vsel %vm5595_vm9, %v5592_v11, %v7336_v42  ;;  %v5498_v56 = vsel %vm1756_vm0, %v14415_v51, %v7246_v12  ;;  %v5511_v59 = vsel %vm1822_vm11, %v5479_v61, %v7315_v13 }
 0x8ea   : > { %6734 = vmatprep.subr.msk.bf16.mxu1 %vm12866_vm6, %v14412_v55  ;;  %v5512_v41 = vsel %vm1822_vm11, %v5480_v0, %v7316_v43  ;;  %v5543_v24 = vsel %vm1888_vm13, %v5511_v59, %v7320_v16  ;;  %v7330_v29 = vunpack.i.l.bf16 %v13136_v19  ;;  %v5657_v1 = vsel %vm5628_vm7, %v5624_v33, %v7420_v2 }
 0x8eb   : > { %v13228_v7 = vpop.permute.xlu1 %7368  ;;  %v7424_v46 = vpop.permute.xlu0 %7423  ;;  %v5544_v22 = vsel %vm1888_vm13, %v5512_v41, %v7321_v32  ;;  %v5658_v5 = vsel %vm5628_vm7, %v5625_v37, %v7421_v4  ;;  %v5530_v39 = vsel %vm1822_vm11, %v5498_v56, %v7366_v9  ;;  %v5529_v3 = vsel %vm1822_vm11, %v5497_v58, %v7365_v27 }
 0x8ec   : > { %v7426_v8 = vunpack.i.h.bf16 %v7424_v46  ;;  %v7425_v20 = vunpack.i.l.bf16 %v7424_v46  ;;  %v14416_v17 = vpack.c.bf16 %v12631_v62, %v12628_v35  ;;  %v7331_v63 = vunpack.i.h.bf16 %v13136_v19 }
 0x8ed   : > { %v7381_v0 = vunpack.i.h.bf16 %v13138_v36  ;;  %v7380_v18 = vunpack.i.l.bf16 %v13138_v36  ;;  %v7340_v61 = vunpack.i.l.bf16 %v13151_v34  ;;  %v5575_v60 = vsel %vm1954_vm15, %v5543_v24, %v7330_v29 }
 0x8ee   : > { %v7341_v12 = vunpack.i.h.bf16 %v13151_v34  ;;  %v5690_v35 = vsel %vm5661_vm4, %v5657_v1, %v7350_v10  ;;  %v5691_v62 = vsel %vm5661_vm4, %v5658_v5, %v7351_v47  ;;  %v7346_v43 = vunpack.i.h.bf16 %v13157_v40 }
 0x8ef   : > { %v13249_v30 = vpop.permute.xlu1 %7373  ;;  %v7429_v14 = vpop.permute.xlu0 %7428  ;;  %v7345_v36 = vunpack.i.l.bf16 %v13157_v40  ;;  %v5723_v13 = vsel %vm5694_vm14, %v5690_v35, %v7425_v20  ;;  %v5724_v50 = vsel %vm5694_vm14, %v5691_v62, %v7426_v8  ;;  %v5576_v42 = vsel %vm1954_vm15, %v5544_v22, %v7331_v63 }
 0x8f0   : > { %v7431_v31 = vunpack.i.h.bf16 %v7429_v14  ;;  %v7430_v44 = vunpack.i.l.bf16 %v7429_v14  ;;  %v5608_v57 = vsel %vm5595_vm9, %v5575_v60, %v7340_v61  ;;  %v7356_v32 = vunpack.i.h.bf16 %v13181_v23 }
 0x8f1   : > { %6737 = vmatpush3.bf16.xpose.msk.msra.mxu1 %vm12866_vm6, %v14416_v17  ;;  %v7355_v16 = vunpack.i.l.bf16 %v13181_v23  ;;  %v5609_v40 = vsel %vm5595_vm9, %v5576_v42, %v7341_v12  ;;  %v7361_v46 = vunpack.i.h.bf16 %v13195_v45  ;;  %v7360_v25 = vunpack.i.l.bf16 %v13195_v45 }
 0x8f2   : > { %6740 = vmatprep.subr.msk.bf16.mxu1 %vm12866_vm6, %v6738_v49  ;;  %v5561_v49 = vsel %vm1888_vm13, %v5529_v3, %v7430_v44  ;;  %v5562_v11 = vsel %vm1888_vm13, %v5530_v39, %v7431_v31  ;;  %v6744_v53 = vpack.c.bf16 %v5724_v50, %v5723_v13  ;;  %v5641_v37 = vsel %vm5628_vm7, %v5608_v57, %v7345_v36 }
 0x8f3   : > { %v13270_v38 = vpop.permute.xlu1 %7383  ;;  %v7434_v19 = vpop.permute.xlu0 %7433  ;;  %v5593_v2 = vsel %vm1954_vm15, %v5561_v49, %v7380_v18  ;;  %v5594_v9 = vsel %vm1954_vm15, %v5562_v11, %v7381_v0  ;;  %v5642_v51 = vsel %vm5628_vm7, %v5609_v40, %v7346_v43  ;;  %v5674_v45 = vsel %vm5661_vm4, %v5641_v37, %v7355_v16 }
 0x8f4   : > { %v7436_v34 = vunpack.i.h.bf16 %v7434_v19  ;;  %v7435_v55 = vunpack.i.l.bf16 %v7434_v19  ;;  %v5675_v59 = vsel %vm5661_vm4, %v5642_v51, %v7356_v32  ;;  %v7401_v10 = vunpack.i.h.bf16 %v13153_v15 }
 0x8f5   : > { %v7400_v24 = vunpack.i.l.bf16 %v13153_v15  ;;  %v5707_v48 = vsel %vm5694_vm14, %v5674_v45, %v7360_v25  ;;  %v5708_v52 = vsel %vm5694_vm14, %v5675_v59, %v7361_v46  ;;  %v7371_v29 = vunpack.i.h.bf16 %v13228_v7  ;;  %v4410_v46 = vld [vmem:[%s13511_s3 + $0x8] sm:$0xf] }
 0x8f6   : > { %v5626_v23 = vsel %vm5595_vm9, %v5593_v2, %v7435_v55  ;;  %v5627_v56 = vsel %vm5595_vm9, %v5594_v9, %v7436_v34  ;;  %v7370_v14 = vunpack.i.l.bf16 %v13228_v7  ;;  %v7376_v8 = vunpack.i.h.bf16 %v13249_v30 }
 0x8f7   : > { %v7389_v58 = vpop.permute.xlu1 %7388  ;;  %v7439_v4 = vpop.permute.xlu0 %7438  ;;  %v7375_v20 = vunpack.i.l.bf16 %v13249_v30  ;;  %v7386_v3 = vunpack.i.h.bf16 %v13270_v38  ;;  %v7385_v31 = vunpack.i.l.bf16 %v13270_v38  ;;  %v6747_v63 = vpack.c.bf16 %v5708_v52, %v5707_v48 }
 0x8f8   : > { %v7441_v27 = vunpack.i.h.bf16 %v7439_v4  ;;  %v7440_v33 = vunpack.i.l.bf16 %v7439_v4  ;;  %v7391_v7 = vunpack.i.h.bf16 %v7389_v58  ;;  %v7390_v0 = vunpack.i.l.bf16 %v7389_v58 }
 0x8f9   : > { %6743 = vmatpush3.bf16.xpose.msk.msra.mxu1 %vm12866_vm6, %v6741_v6  ;;  %v5514_v30 = vsel %vm1822_vm11, %v13232_v28, %v7371_v29  ;;  %v5513_v60 = vsel %vm1822_vm11, %v13207_v54, %v7370_v14 }
 0x8fa   : > { %v5659_v41 = vsel %vm5628_vm7, %v5626_v23, %v7440_v33  ;;  %v5660_v47 = vsel %vm5628_vm7, %v5627_v56, %v7441_v27  ;;  %6746 = vmatprep.subr.msk.bf16.mxu1 %vm12866_vm6, %v6744_v53  ;;  %v5545_v62 = vsel %vm1888_vm13, %v5513_v60, %v7375_v20  ;;  %v5546_v38 = vsel %vm1888_vm13, %v5514_v30, %v7376_v8 }
 0x8fb   : > { %v7394_v6 = vpop.permute.xlu1 %7393  ;;  %v7444_v22 = vpop.permute.xlu0 %7443  ;;  %v5692_v39 = vsel %vm5661_vm4, %v5659_v41, %v7400_v24  ;;  %v5693_v15 = vsel %vm5661_vm4, %v5660_v47, %v7401_v10  ;;  %v5577_v36 = vsel %vm1954_vm15, %v5545_v62, %v7385_v31  ;;  %v5578_v13 = vsel %vm1954_vm15, %v5546_v38, %v7386_v3 }
 0x8fc   : > { %v7446_v1 = vunpack.i.h.bf16 %v7444_v22  ;;  %v7445_v5 = vunpack.i.l.bf16 %v7444_v22  ;;  %v7396_v12 = vunpack.i.h.bf16 %v7394_v6  ;;  %v7395_v35 = vunpack.i.l.bf16 %v7394_v6 }
 0x8fd   : > { %v5610_v54 = vsel %vm5595_vm9, %v5577_v36, %v7390_v0  ;;  %v5611_v28 = vsel %vm5595_vm9, %v5578_v13, %v7391_v7  ;;  %vm7856_vm9 = vmmov 1  }
 0x8fe   : > { %v5725_v44 = vsel %vm5694_vm14, %v5692_v39, %v7445_v5  ;;  %v5726_v17 = vsel %vm5694_vm14, %v5693_v15, %v7446_v1  ;;  %v5643_v49 = vsel %vm5628_vm7, %v5610_v54, %v7395_v35  ;;  %v5644_v11 = vsel %vm5628_vm7, %v5611_v28, %v7396_v12 }
 0x8ff   : > { %v6750_v18 = vpack.c.bf16 %v5726_v17, %v5725_v44  ;;  %v7404_v61 = vpop.permute.xlu1 %7403 }
 0x900   : > { %v7406_v19 = vunpack.i.h.bf16 %v7404_v61  ;;  %v7405_v43 = vunpack.i.l.bf16 %v7404_v61 }
 0x901   : > { %6749 = vmatpush3.bf16.xpose.msk.msra.mxu1 %vm12866_vm6, %v6747_v63 }
 0x902   : > { %6752 = vmatprep.subr.msk.bf16.mxu1 %vm12866_vm6, %v6750_v18  ;;  %v5676_v42 = vsel %vm5661_vm4, %v5643_v49, %v7405_v43  ;;  %v5677_v57 = vsel %vm5661_vm4, %v5644_v11, %v7406_v19 }
 0x903   : > { %v7449_v50 = vpop.permute.xlu1 %7448 }
 0x904   : > { %v7451_v34 = vunpack.i.h.bf16 %v7449_v50  ;;  %v7450_v55 = vunpack.i.l.bf16 %v7449_v50 }
 0x906   : > { %v5709_v32 = vsel %vm5694_vm14, %v5676_v42, %v7450_v55  ;;  %v5710_v16 = vsel %vm5694_vm14, %v5677_v57, %v7451_v34 }
 0x907   : > { %v6753_v40 = vpack.c.bf16 %v5710_v16, %v5709_v32 }
 0x909   : > { %6755 = vmatpush3.bf16.xpose.msk.msra.mxu1 %vm12866_vm6, %v6753_v40 }
 0x90c   : > { %v5732_v25 = vpop.permute.xlu0 %5731 }
 0x910   : > { %6535 = vmatmul.mubr.msk.f32.vlgmr.msra.gmra.mrb[64].mxu1 %vm5739_vm1, %v12751_v26 }
 0x911   : > { %6536 = vmatprep.mubr.msk.f32.mxu1 %vm5739_vm1, %v4410_v46 }
 0x914   : > { %6537 = vmatmul.mubr.msk.f32.gmra.mrb[66].mxu1 %vm5739_vm1, %v4410_v46  ;;  %v5737_v21 = vpop.permute.xlu1 %5736 }
 0x9e3   : > { %v5908_v53 = vpop.f32.mrb[64].mxu1 }
 0x9e4   : > { %v13345_v58 = vadd.f32 %v5908_v53, %v5732_v25  ;;  %v5910_v4 = vpop.f32.mrb[65].mxu1 }
 0x9e5   : > { %v13347_v2 = vadd.f32 %v5910_v4, %v5732_v25 }
 0x9e6   : > { %v13350_v9 = vmul.f32 0.70710677, %v13345_v58 }
 0x9e7   : > { %v13353_v27 = vmul.f32 0.70710677, %v13347_v2  ;;  %v5914_v33 = vpop.f32.mrb[66].mxu1 }
 0x9e8   : > { %v5935_v26 = vand.u32 2147483647, %v13350_v9  ;;  %v13356_v37 = vadd.f32 %v5914_v33, %v5737_v21  ;;  %v5916_v51 = vpop.f32.mrb[67].mxu1  ;;  %vm5927_vm13 = vcmp.ge.f32.partialorder %v13350_v9, 0.0 }
 0x9e9   : > { %v5936_v23 = vand.u32 2147483647, %v13353_v27  ;;  %v13359_v56 = vadd.f32 %v5916_v51, %v5737_v21  ;;  %vm5928_vm11 = vcmp.ge.f32.partialorder %v13353_v27, 0.0 }
 0x9ea   : > { %v5939_v45 = vmul.f32 0.3275911, %v5935_v26  ;;  %v13362_v41 = vmul.f32 0.70710677, %v13356_v37  ;;  %v5987_v14 = vsub.f32 0.0, %v5935_v26 }
 0x9eb   : > { %v5940_v59 = vmul.f32 0.3275911, %v5936_v23  ;;  %v13365_v10 = vmul.f32 0.70710677, %v13359_v56  ;;  %v5988_v5 = vsub.f32 0.0, %v5936_v23 }
 0x9ec   : > { %v5943_v47 = vadd.f32 1.0, %v5939_v45  ;;  %v5937_v48 = vand.u32 2147483647, %v13362_v41  ;;  %v5991_v20 = vmul.f32 %v5987_v14, %v5935_v26  ;;  %vm5929_vm15 = vcmp.ge.f32.partialorder %v13362_v41, 0.0 }
 0x9ed   : > { %v5944_v24 = vadd.f32 1.0, %v5940_v59  ;;  %v5938_v6 = vand.u32 2147483647, %v13365_v10  ;;  %v5992_v3 = vmul.f32 %v5988_v5, %v5936_v23  ;;  %vm5930_vm0 = vcmp.ge.f32.partialorder %v13365_v10, 0.0 }
 0x9ee   : > { %7773 = vrcp.f32 %v5943_v47  ;;  %v5941_v52 = vmul.f32 0.3275911, %v5937_v48  ;;  %v5989_v31 = vsub.f32 0.0, %v5937_v48  ;;  %v5995_v63 = vmul.f32 1.442695, %v5991_v20 }
 0x9ef   : > { %7775 = vrcp.f32 %v5944_v24  ;;  %v5942_v29 = vmul.f32 0.3275911, %v5938_v6  ;;  %v5990_v0 = vsub.f32 0.0, %v5938_v6  ;;  %v5997_v30 = vmul.f32 1.442695, %v5992_v3 }
 0x9f0   : > { %v5945_v22 = vadd.f32 1.0, %v5941_v52  ;;  %v5993_v60 = vmul.f32 %v5989_v31, %v5937_v48  ;;  %v5919_v31 = vmul.f32 0.5, %v13345_v58 }
 0x9f1   : > { %v5946_v1 = vadd.f32 1.0, %v5942_v29  ;;  %v5994_v36 = vmul.f32 %v5990_v0, %v5938_v6  ;;  %v14417_v29 = vmov -1.0  }
 0x9f2   : > { %7777 = vrcp.f32 %v5945_v22  ;;  %v5999_v54 = vmul.f32 1.442695, %v5993_v60  ;;  %v5931_v14 = vsel %vm5927_vm13, 1.0, %v14417_v29  ;;  %v5934_v10 = vsel %vm5930_vm0, 1.0, %v14417_v29 }
 0x9f3   : > { %7779 = vrcp.f32 %v5946_v1  ;;  %v6001_v57 = vmul.f32 1.442695, %v5994_v36 }
 0x9f4   : > { %7781 = vpow2.f32 %v5995_v63  ;;  %v5920_v63 = vmul.f32 0.5, %v13347_v2 }
 0x9f5   : > { %7783 = vpow2.f32 %v5997_v30 }
 0x9f6   : > { %7785 = vpow2.f32 %v5999_v54 }
 0x9f7   : > { %7787 = vpow2.f32 %v6001_v57 }
 0x9f8   : > { %v7774_v8 = vpop.eup %7773 }
 0x9f9   : > { %v7776_v39 = vpop.eup %7775  ;;  %v5951_v15 = vmul.f32 1.0614054, %v7774_v8 }
 0x9fa   : > { %v5952_v44 = vmul.f32 1.0614054, %v7776_v39 }
 0x9fb   : > { %v5955_v17 = vadd.f32 -1.4531521, %v5951_v15 }
 0x9fc   : > { %v5956_v7 = vadd.f32 -1.4531521, %v5952_v44  ;;  %v7778_v18 = vpop.eup %7777 }
 0x9fd   : > { %v5959_v61 = vmul.f32 %v7774_v8, %v5955_v17  ;;  %v5953_v35 = vmul.f32 1.0614054, %v7778_v18  ;;  %v7780_v38 = vpop.eup %7779 }
 0x9fe   : > { %v5960_v12 = vmul.f32 %v7776_v39, %v5956_v7  ;;  %v5954_v28 = vmul.f32 1.0614054, %v7780_v38  ;;  %v7782_v51 = vpop.eup %7781 }
 0x9ff   : > { %v5963_v62 = vadd.f32 1.4214138, %v5959_v61  ;;  %v5957_v43 = vadd.f32 -1.4531521, %v5953_v35  ;;  %v7784_v59 = vpop.eup %7783 }
 0xa00   : > { %v5964_v19 = vadd.f32 1.4214138, %v5960_v12  ;;  %v5958_v34 = vadd.f32 -1.4531521, %v5954_v28 }
 0xa01   : > { %v5967_v13 = vmul.f32 %v7774_v8, %v5963_v62  ;;  %v5961_v49 = vmul.f32 %v7778_v18, %v5957_v43  ;;  %v5921_v43 = vmul.f32 0.5, %v13356_v37 }
 0xa02   : > { %v5968_v50 = vmul.f32 %v7776_v39, %v5964_v19  ;;  %v5962_v16 = vmul.f32 %v7780_v38, %v5958_v34 }
 0xa03   : > { %v5971_v11 = vadd.f32 -0.28449672, %v5967_v13  ;;  %v5965_v42 = vadd.f32 1.4214138, %v5961_v49  ;;  %v5922_v49 = vmul.f32 0.5, %v13359_v56 }
 0xa04   : > { %v5972_v55 = vadd.f32 -0.28449672, %v5968_v50  ;;  %v5966_v53 = vadd.f32 1.4214138, %v5962_v16 }
 0xa05   : > { %v5975_v32 = vmul.f32 %v7774_v8, %v5971_v11  ;;  %v5969_v46 = vmul.f32 %v7778_v18, %v5965_v42 }
 0xa06   : > { %v5976_v40 = vmul.f32 %v7776_v39, %v5972_v55  ;;  %v5970_v26 = vmul.f32 %v7780_v38, %v5966_v53 }
 0xa07   : > { %v5979_v25 = vadd.f32 0.2548296, %v5975_v32  ;;  %v5973_v21 = vadd.f32 -0.28449672, %v5969_v46 }
 0xa08   : > { %v5980_v4 = vadd.f32 0.2548296, %v5976_v40  ;;  %v5974_v24 = vadd.f32 -0.28449672, %v5970_v26 }
 0xa09   : > { %v5983_v33 = vmul.f32 %v7774_v8, %v5979_v25  ;;  %v5977_v45 = vmul.f32 %v7778_v18, %v5973_v21  ;;  %v7786_v8 = vpop.eup %7785 }
 0xa0a   : > { %v5984_v23 = vmul.f32 %v7776_v39, %v5980_v4  ;;  %v5978_v22 = vmul.f32 %v7780_v38, %v5974_v24  ;;  %v5932_v39 = vsel %vm5928_vm11, 1.0, %v14417_v29  ;;  %v7788_v17 = vpop.eup %7787 }
 0xa0b   : > { %v6003_v47 = vmul.f32 %v7782_v51, %v5983_v33  ;;  %v5981_v52 = vadd.f32 0.2548296, %v5977_v45 }
 0xa0c   : > { %v6004_v48 = vmul.f32 %v7784_v59, %v5984_v23  ;;  %v5982_v15 = vadd.f32 0.2548296, %v5978_v22 }
 0xa0d   : > { %v6007_v6 = vsub.f32 1.0, %v6003_v47  ;;  %v5985_v5 = vmul.f32 %v7778_v18, %v5981_v52  ;;  %v5933_v18 = vsel %vm5929_vm15, 1.0, %v14417_v29 }
 0xa0e   : > { %v6008_v1 = vsub.f32 1.0, %v6004_v48  ;;  %v5986_v44 = vmul.f32 %v7780_v38, %v5982_v15 }
 0xa0f   : > { %v6011_v20 = vmul.f32 %v6007_v6, %v5931_v14  ;;  %v6005_v9 = vmul.f32 %v7786_v8, %v5985_v5 }
 0xa10   : > { %v6012_v3 = vmul.f32 %v6008_v1, %v5932_v39  ;;  %v6006_v30 = vmul.f32 %v7788_v17, %v5986_v44 }
 0xa11   : > { %v6015_v27 = vadd.f32 1.0, %v6011_v20  ;;  %v6009_v0 = vsub.f32 1.0, %v6005_v9 }
 0xa12   : > { %v6016_v7 = vadd.f32 1.0, %v6012_v3  ;;  %v6010_v62 = vsub.f32 1.0, %v6006_v30 }
 0xa13   : > { %v13376_v61 = vmul.f32 %v6015_v27, %v5919_v31  ;;  %v6013_v12 = vmul.f32 %v6009_v0, %v5933_v18 }
 0xa14   : > { %v13379_v60 = vmul.f32 %v6016_v7, %v5920_v63  ;;  %v6014_v54 = vmul.f32 %v6010_v62, %v5934_v10 }
 0xa15   : > { %v13382_v41 = vand.u32 2147483647, %v13376_v61  ;;  %v6017_v35 = vadd.f32 1.0, %v6013_v12 }
 0xa16   : > { %v13385_v58 = vand.u32 2147483647, %v13379_v60  ;;  %v6018_v50 = vadd.f32 1.0, %v6014_v54 }
 0xa17   : > { %vm6051_vm2 = vcmp.eq.f32.partialorder %v13382_v41, 0.0  ;;  %v6063_v2 = vadd.f32 1.0, %v13382_v41  ;;  %v13396_v13 = vmul.f32 %v6017_v35, %v5921_v43  ;;  %vm6035_vm8 = vcmp.gt.f32.partialorder %v13382_v41, 2.4142137 }
 0xa18   : > { %v6055_v38 = vsel %vm6051_vm2, 1.0, %v13382_v41  ;;  %vm6052_vm3 = vcmp.eq.f32.partialorder %v13385_v58, 0.0  ;;  %v6064_v19 = vadd.f32 1.0, %v13385_v58  ;;  %v13406_v34 = vmul.f32 %v6018_v50, %v5922_v49  ;;  %vm6043_vm7 = vmxor %vm6035_vm8, %vm7856_vm9 }
 0xa19   : > { %7789 = vrcp.f32 %v6055_v38  ;;  %v6056_v36 = vsel %vm6052_vm3, 1.0, %v13385_v58  ;;  %v13399_v28 = vand.u32 2147483647, %v13396_v13  ;;  %vm6036_vm10 = vcmp.gt.f32.partialorder %v13385_v58, 2.4142137 }
 0xa1a   : > { %7791 = vrcp.f32 %v6063_v2  ;;  %v13410_v55 = vand.u32 2147483647, %v13406_v34  ;;  %vm6039_vm5 = vcmp.gt.f32.partialorder %v13382_v41, 0.41421357  ;;  %v6351_v56 = vadd.f32 -1.0, %v13382_v41  ;;  %vm6044_vm1 = vmxor %vm6036_vm10, %vm7856_vm9 }
 0xa1b   : > { %7793 = vrcp.f32 %v6056_v36  ;;  %vm6053_vm12 = vcmp.eq.f32.partialorder %v13399_v28, 0.0  ;;  %v6065_v37 = vadd.f32 1.0, %v13399_v28  ;;  %vm6040_vm4 = vcmp.gt.f32.partialorder %v13385_v58, 0.41421357  ;;  %vm13427_vm6 = vmand %vm6039_vm5, %vm6043_vm7 }
 0xa1c   : > { %7795 = vrcp.f32 %v6064_v19  ;;  %v6057_v11 = vsel %vm6053_vm12, 1.0, %v13399_v28  ;;  %vm6054_vm14 = vcmp.eq.f32.partialorder %v13410_v55, 0.0  ;;  %v6352_v46 = vadd.f32 -1.0, %v13385_v58  ;;  %vm13438_vm13 = vmand %vm6040_vm4, %vm6044_vm1 }
 0xa1d   : > { %7797 = vrcp.f32 %v6057_v11  ;;  %v6058_v25 = vsel %vm6054_vm14, 1.0, %v13410_v55  ;;  %v6066_v53 = vadd.f32 1.0, %v13410_v55  ;;  %vm6037_vm11 = vcmp.gt.f32.partialorder %v13399_v28, 2.4142137 }
 0xa1e   : > { %7799 = vrcp.f32 %v6065_v37  ;;  %vm6041_vm15 = vcmp.gt.f32.partialorder %v13399_v28, 0.41421357  ;;  %vm6045_vm0 = vmxor %vm6037_vm11, %vm7856_vm9  ;;  %v6353_v22 = vadd.f32 -1.0, %v13399_v28  ;;  %vm6038_vm2 = vcmp.gt.f32.partialorder %v13410_v55, 2.4142137 }
 0xa1f   : > { %7801 = vrcp.f32 %v6058_v25  ;;  %vm13454_vm3 = vmand %vm6041_vm15, %vm6045_vm0  ;;  %vm6042_vm12 = vcmp.gt.f32.partialorder %v13410_v55, 0.41421357  ;;  %v6354_v44 = vadd.f32 -1.0, %v13410_v55  ;;  %vm6024_vm4 = vcmp.ge.f32.partialorder %v13379_v60, 0.0 }
 0xa20   : > { %7803 = vrcp.f32 %v6066_v53  ;;  %vm6046_vm5 = vmxor %vm6038_vm2, %vm7856_vm9  ;;  %vm6023_vm9 = vcmp.ge.f32.partialorder %v13376_v61, 0.0 }
 0xa21   : > { %vm13468_vm7 = vmand %vm6042_vm12, %vm6046_vm5 }
 0xa23   : > { %v7790_v42 = vpop.eup %7789 }
 0xa24   : > { %v7792_v57 = vpop.eup %7791  ;;  %v6071_v32 = vsub.f32 0.0, %v7790_v42  ;;  %v7857_v42 = vmov 0.0  }
 0xa25   : > { %v7794_v16 = vpop.eup %7793  ;;  %v6079_v40 = vmul.f32 %v7792_v57, %v6351_v56  ;;  %v6091_v56 = vsel %vm13427_vm6, 0.7853982, %v7857_v42  ;;  %v6092_v25 = vsel %vm13438_vm13, 0.7853982, %v7857_v42 }
 0xa26   : > { %v7796_v4 = vpop.eup %7795  ;;  %v6072_v33 = vsub.f32 0.0, %v7794_v16  ;;  %v6096_v61 = vsel %vm6036_vm10, 1.5707964, %v6092_v25 }
 0xa27   : > { %v6083_v26 = vsel %vm13427_vm6, %v6079_v40, %v13382_v41  ;;  %v6080_v51 = vmul.f32 %v7796_v4, %v6352_v46  ;;  %v7798_v48 = vpop.eup %7797  ;;  %v6028_v41 = vsel %vm6024_vm4, 1.0, %v14417_v29 }
 0xa28   : > { %v6087_v23 = vsel %vm6035_vm8, %v6071_v32, %v6083_v26  ;;  %v7800_v14 = vpop.eup %7799  ;;  %v6073_v1 = vsub.f32 0.0, %v7798_v48 }
 0xa29   : > { %v6099_v59 = vmul.f32 %v6087_v23, %v6087_v23  ;;  %v6084_v47 = vsel %vm13438_vm13, %v6080_v51, %v13385_v58  ;;  %v6081_v20 = vmul.f32 %v7800_v14, %v6353_v22  ;;  %v7802_v31 = vpop.eup %7801 }
 0xa2a   : > { %v6088_v24 = vsel %vm6036_vm10, %v6072_v33, %v6084_v47  ;;  %v7804_v17 = vpop.eup %7803  ;;  %v6074_v18 = vsub.f32 0.0, %v7802_v31  ;;  %v6095_v33 = vsel %vm6035_vm8, 1.5707964, %v6091_v56  ;;  %v6027_v47 = vsel %vm6023_vm9, 1.0, %v14417_v29 }
 0xa2b   : > { %v6103_v52 = vmul.f32 0.080537446, %v6099_v59  ;;  %v6100_v6 = vmul.f32 %v6088_v24, %v6088_v24  ;;  %v6085_v9 = vsel %vm13454_vm3, %v6081_v20, %v13399_v28  ;;  %v6082_v30 = vmul.f32 %v7804_v17, %v6354_v44 }
 0xa2c   : > { %v6089_v27 = vsel %vm6037_vm11, %v6073_v1, %v6085_v9  ;;  %vm6025_vm8 = vcmp.ge.f32.partialorder %v13396_v13, 0.0  ;;  %v6094_v9 = vsel %vm13468_vm7, 0.7853982, %v7857_v42  ;;  %vm6026_vm10 = vcmp.ge.f32.partialorder %v13406_v34, 0.0 }
 0xa2d   : > { %v6355_v5 = vadd.f32 -0.13877685, %v6103_v52  ;;  %v6104_v8 = vmul.f32 0.080537446, %v6100_v6  ;;  %v6101_v0 = vmul.f32 %v6089_v27, %v6089_v27  ;;  %v6086_v38 = vsel %vm13468_vm7, %v6082_v30, %v13410_v55 }
 0xa2e   : > { %v6090_v10 = vsel %vm6038_vm2, %v6074_v18, %v6086_v38  ;;  %v6098_v13 = vsel %vm6038_vm2, 1.5707964, %v6094_v9  ;;  %v6030_v28 = vsel %vm6026_vm10, 1.0, %v14417_v29 }
 0xa2f   : > { %v6111_v15 = vmul.f32 %v6355_v5, %v6099_v59  ;;  %v6356_v3 = vadd.f32 -0.13877685, %v6104_v8  ;;  %v6105_v35 = vmul.f32 0.080537446, %v6101_v0  ;;  %v6102_v54 = vmul.f32 %v6090_v10, %v6090_v10 }
 0xa31   : > { %v6115_v63 = vadd.f32 0.19977711, %v6111_v15  ;;  %v6112_v7 = vmul.f32 %v6356_v3, %v6100_v6  ;;  %v6357_v36 = vadd.f32 -0.13877685, %v6105_v35  ;;  %v6106_v11 = vmul.f32 0.080537446, %v6102_v54 }
 0xa32   : > { %v6029_v3 = vsel %vm6025_vm8, 1.0, %v14417_v29 }
 0xa33   : > { %v6119_v12 = vmul.f32 %v6115_v63, %v6099_v59  ;;  %v6116_v2 = vadd.f32 0.19977711, %v6112_v7  ;;  %v6113_v37 = vmul.f32 %v6357_v36, %v6101_v0  ;;  %v6358_v40 = vadd.f32 -0.13877685, %v6106_v11 }
 0xa35   : > { %v6359_v19 = vadd.f32 -0.3333295, %v6119_v12  ;;  %v6120_v43 = vmul.f32 %v6116_v2, %v6100_v6  ;;  %v6117_v16 = vadd.f32 0.19977711, %v6113_v37  ;;  %v6114_v26 = vmul.f32 %v6358_v40, %v6102_v54 }
 0xa37   : > { %v6127_v50 = vmul.f32 %v6359_v19, %v6099_v59  ;;  %v6360_v49 = vadd.f32 -0.3333295, %v6120_v43  ;;  %v6121_v4 = vmul.f32 %v6117_v16, %v6101_v0 }
 0xa39   : > { %v6131_v57 = vmul.f32 %v6127_v50, %v6087_v23  ;;  %v6128_v32 = vmul.f32 %v6360_v49, %v6100_v6  ;;  %v6361_v59 = vadd.f32 -0.3333295, %v6121_v4 }
 0xa3b   : > { %v6135_v46 = vadd.f32 %v6131_v57, %v6087_v23  ;;  %v6132_v53 = vmul.f32 %v6128_v32, %v6088_v24  ;;  %v6118_v23 = vadd.f32 0.19977711, %v6114_v26  ;;  %v6129_v52 = vmul.f32 %v6361_v59, %v6101_v0 }
 0xa3d   : > { %v6139_v51 = vadd.f32 %v6135_v46, %v6095_v33  ;;  %v6136_v21 = vadd.f32 %v6132_v53, %v6088_v24  ;;  %v6122_v6 = vmul.f32 %v6118_v23, %v6102_v54  ;;  %v6093_v24 = vsel %vm13454_vm3, 0.7853982, %v7857_v42 }
 0xa3e   : > { %v6133_v14 = vmul.f32 %v6129_v52, %v6089_v27  ;;  %v6097_v8 = vsel %vm6037_vm11, 1.5707964, %v6093_v24 }
 0xa3f   : > { %v6143_v45 = vmul.f32 %v6139_v51, %v6027_v47  ;;  %v6140_v48 = vadd.f32 %v6136_v21, %v6096_v61  ;;  %v6362_v1 = vadd.f32 -0.3333295, %v6122_v6 }
 0xa40   : > { %v6137_v5 = vadd.f32 %v6133_v14, %v6089_v27 }
 0xa41   : > { %v6147_v22 = vmul.f32 0.15915494, %v6143_v45  ;;  %v6144_v60 = vmul.f32 %v6140_v48, %v6028_v41  ;;  %v6130_v20 = vmul.f32 %v6362_v1, %v6102_v54 }
 0xa42   : > { %v6141_v15 = vadd.f32 %v6137_v5, %v6097_v8 }
 0xa43   : > { %6151 = vst [vmem:[%s278_s9] sm:$0xff] %v6147_v22  ;;  %v6148_v58 = vmul.f32 0.15915494, %v6144_v60  ;;  %v6134_v39 = vmul.f32 %v6130_v20, %v6090_v10 }
 0xa44   : > { %v6145_v31 = vmul.f32 %v6141_v15, %v6029_v3 }
 0xa45   : > { %6152 = vst [vmem:[%s278_s9 + $0x8] sm:$0xff] %v6148_v58  ;;  %v6138_v44 = vadd.f32 %v6134_v39, %v6090_v10 }
 0xa46   : > { %v6149_v17 = vmul.f32 0.15915494, %v6145_v31 }
 0xa47   : > { %v6142_v27 = vadd.f32 %v6138_v44, %v6098_v13 }
 0xa48   : > { %6153 = vst [vmem:[%s278_s9 + $0x10] sm:$0xf] %v6149_v17 }
 0xa49   : > { %v6146_v63 = vmul.f32 %v6142_v27, %v6030_v28 }
 0xa4b   : > { %v6150_v7 = vmul.f32 0.15915494, %v6146_v63 }
 0xa4d   : > { %6154 = vst [vmem:[%s278_s9 + $0x18] sm:$0xf] %v6150_v7 }
 0xa4e PF: > { %s17_s24 = sadd.s32 1, %s7838_s24  }
 0xa4f   : > { %p14_p4 = scmp.ge.s32.totalorder %s17_s24, 4  }
 0xa51   :  { %16 = sbr.rel (!%p14_p4) target bundleno = 1 (0x1), region = 78 }

</bundles_post_ra>
